<compile_context>
chip_gen: v5e
topology: v5e:2x2
jax: 0.10.0
libtpu: 0.0.40
codegen_flags: <defaults>
</compile_context>

<pallas_src>
import functools

import jax
import jax.numpy as jnp
from jax import lax
from jax.experimental import pallas as pl
from jax.experimental.pallas import tpu as pltpu

_BN_EPS = 1e-5


# ----------------------------------------------------------------------------
# Conv pass kernel: [optional fused BN(scale/shift)+ReLU of the previous layer]
#   -> in-VMEM zero pad -> single im2col matmul -> raw conv out + BN partial stats
# ----------------------------------------------------------------------------
def _conv_pass_kernel(*refs, H, W, Cin, Cout, apply_input_act):
    if apply_input_act:
        x_ref, sc_ref, sh_ref, w_ref, y_ref, st_ref = refs
        # Fused BN (folded scale/shift) + ReLU of the previous layer's raw conv output.
        v = jnp.maximum(x_ref[...] * sc_ref[...] + sh_ref[...], 0.0)   # (H*W, Cin)
        v = v.reshape(H, W, Cin)
    else:
        x_ref, w_ref, y_ref, st_ref = refs
        v = x_ref[...]                                                 # (H, W, Cin)

    # Zero padding built in VMEM (after the activation, matching Conv2d(padding=1)).
    zrow = jnp.zeros((1, W, Cin), jnp.float32)
    zcol = jnp.zeros((H + 2, 1, Cin), jnp.float32)
    xp = jnp.concatenate([zrow, v, zrow], axis=0)                      # (H+2, W,   Cin)
    xp = jnp.concatenate([zcol, xp, zcol], axis=1)                     # (H+2, W+2, Cin)

    # Single im2col matmul on the MXU: (H*W, 9*Cin) x (9*Cin, Cout).
    # Tap order (dy-major, dx, then Cin) matches the wrapper's weight flattening.
    cols = [xp[dy:dy + H, dx:dx + W, :].reshape(H * W, Cin)
            for dy in range(3) for dx in range(3)]
    patches = jnp.concatenate(cols, axis=-1)                           # (H*W, 9*Cin)
    acc = jnp.dot(patches, w_ref[...], preferred_element_type=jnp.float32)  # (H*W, Cout)

    # Raw (pre-BN) conv output. The conv bias is omitted: it cancels exactly under
    # training-mode BatchNorm (the batch mean absorbs any per-channel constant).
    y_ref[...] = acc
    # Per-image BN partial statistics; reduced over the batch in the wrapper.
    st_ref[...] = jnp.concatenate(
        [jnp.sum(acc, axis=0, keepdims=True),
         jnp.sum(acc * acc, axis=0, keepdims=True)], axis=0)           # (2, Cout)


def _conv_pass(x, w9, *, H, W, Cin, Cout, in_scale=None, in_shift=None):
    """One ConvBNRelu "conv pass": raw conv + BN stats (BN/ReLU applied by the consumer)."""
    N = x.shape[0]
    apply_act = in_scale is not None
    kern = functools.partial(_conv_pass_kernel, H=H, W=W, Cin=Cin, Cout=Cout,
                             apply_input_act=apply_act)
    if apply_act:
        in_specs = [pl.BlockSpec((None, H * W, Cin), lambda n: (n, 0, 0)),
                    pl.BlockSpec((1, Cin), lambda n: (0, 0)),
                    pl.BlockSpec((1, Cin), lambda n: (0, 0)),
                    pl.BlockSpec((9 * Cin, Cout), lambda n: (0, 0))]
        args = (x, in_scale.reshape(1, Cin), in_shift.reshape(1, Cin), w9)
    else:
        in_specs = [pl.BlockSpec((None, H, W, Cin), lambda n: (n, 0, 0, 0)),
                    pl.BlockSpec((9 * Cin, Cout), lambda n: (0, 0))]
        args = (x, w9)

    y, stats = pl.pallas_call(
        kern,
        grid=(N,),
        in_specs=in_specs,
        out_specs=(pl.BlockSpec((None, H * W, Cout), lambda n: (n, 0, 0)),
                   pl.BlockSpec((None, 2, Cout), lambda n: (n, 0, 0))),
        out_shape=(jax.ShapeDtypeStruct((N, H * W, Cout), jnp.float32),
                   jax.ShapeDtypeStruct((N, 2, Cout), jnp.float32)),
        compiler_params=pltpu.CompilerParams(dimension_semantics=("parallel",)),
    )(*args)
    return y, stats


# ----------------------------------------------------------------------------
# Fused BN(scale/shift) + ReLU + 2x2/stride-2 max pool with indices
# (PyTorch first-occurrence tie-break; window selection done in-kernel)
# ----------------------------------------------------------------------------
def _bn_relu_pool_kernel(y_ref, sc_ref, sh_ref, o_ref, i_ref, *, H, W, C):
    Ho, Wo = H // 2, W // 2
    v = jnp.maximum(y_ref[...] * sc_ref[...] + sh_ref[...], 0.0)       # (H*W, C)

    v4 = v.reshape(Ho, 2, W, C)                                        # split rows: (ho, dy, w, c)
    r0 = v4[:, 0, :, :].reshape(Ho, Wo, 2, C)                          # (ho, wo, dx, c), dy=0
    r1 = v4[:, 1, :, :].reshape(Ho, Wo, 2, C)                          # dy=1
    a = r0[:, :, 0, :]
    b = r0[:, :, 1, :]
    c = r1[:, :, 0, :]
    d = r1[:, :, 1, :]
    m = jnp.maximum(jnp.maximum(a, b), jnp.maximum(c, d))

    ho = lax.broadcasted_iota(jnp.int32, (Ho, Wo, C), 0)
    wo = lax.broadcasted_iota(jnp.int32, (Ho, Wo, C), 1)
    i00 = (2 * ho) * W + 2 * wo                                        # flattened h*W + w index
    # First-occurrence tie-break in PyTorch window scan order (0,0),(0,1),(1,0),(1,1).
    # NOTE: NaN handling differs from PyTorch (irrelevant after ReLU).
    idx = jnp.where(a == m, i00,
          jnp.where(b == m, i00 + 1,
          jnp.where(c == m, i00 + W, i00 + W + 1)))

    o_ref[...] = m
    i_ref[...] = idx


def _bn_relu_pool(y, scale, shift, *, H, W, C):
    N = y.shape[0]
    Ho, Wo = H // 2, W // 2
    kern = functools.partial(_bn_relu_pool_kernel, H=H, W=W, C=C)
    # TODO(synk): PyTorch returns int64 indices; int32 used here (TPU-friendly).
    out, idx = pl.pallas_call(
        kern,
        grid=(N,),
        in_specs=[pl.BlockSpec((None, H * W, C), lambda n: (n, 0, 0)),
                  pl.BlockSpec((1, C), lambda n: (0, 0)),
                  pl.BlockSpec((1, C), lambda n: (0, 0))],
        out_specs=(pl.BlockSpec((None, Ho, Wo, C), lambda n: (n, 0, 0, 0)),
                   pl.BlockSpec((None, Ho, Wo, C), lambda n: (n, 0, 0, 0))),
        out_shape=(jax.ShapeDtypeStruct((N, Ho, Wo, C), jnp.float32),
                   jax.ShapeDtypeStruct((N, Ho, Wo, C), jnp.int32)),
        compiler_params=pltpu.CompilerParams(dimension_semantics=("parallel",)),
    )(y, scale.reshape(1, C), shift.reshape(1, C))
    return out, idx


# ----------------------------------------------------------------------------
# Encoder: parameters + forward
# ----------------------------------------------------------------------------
def init_encoder_params(key, in_ch, out_ch, block_num=2):
    params = []
    chs = [in_ch] + [out_ch] * block_num
    for i in range(block_num):
        cin, cout = chs[i], chs[i + 1]
        key, k1, k2, k3, k4 = jax.random.split(key, 5)
        w_oihw = 0.1 * jax.random.normal(k1, (cout, cin, 3, 3), jnp.float32)
        w = jnp.transpose(w_oihw, (2, 3, 1, 0))          # (3, 3, Cin, Cout), dy-major tap order
        b = 0.1 * jax.random.normal(k2, (cout,), jnp.float32)
        gamma = 1.0 + 0.1 * jax.random.normal(k3, (cout,), jnp.float32)
        beta = 0.1 * jax.random.normal(k4, (cout,), jnp.float32)
        params.append((w, b, gamma, beta))
    return params


def _fold_bn(stats, count, gamma, beta):
    """Fold training-mode BatchNorm (batch stats) into per-channel scale/shift."""
    s = jnp.sum(stats, axis=0)                           # (2, Cout) total sum / sumsq
    mean = s[0] / count
    var = jnp.maximum(s[1] / count - mean * mean, 0.0)   # biased variance (PyTorch BN training)
    scale = gamma * lax.rsqrt(var + _BN_EPS)
    shift = beta - mean * scale
    return scale, shift


@jax.jit
def encoder_forward(params, x_nchw):
    N, _, H, W = x_nchw.shape
    x = jnp.transpose(x_nchw, (0, 2, 3, 1))              # NCHW -> NHWC (channels minor)
    count = float(N * H * W)

    in_scale = in_shift = None
    y = x
    for (w, b, gamma, beta) in params:
        # NOTE: conv bias `b` is intentionally unused — it cancels exactly under
        # training-mode BatchNorm (the batch mean absorbs any per-channel constant).
        Cin, Cout = w.shape[2], w.shape[3]
        w9 = w.reshape(9 * Cin, Cout)
        y, stats = _conv_pass(y, w9, H=H, W=W, Cin=Cin, Cout=Cout,
                              in_scale=in_scale, in_shift=in_shift)
        in_scale, in_shift = _fold_bn(stats, count, gamma, beta)

    C_last = params[-1][0].shape[3]
    out_nhwc, idx_nhwc = _bn_relu_pool(y, in_scale, in_shift, H=H, W=W, C=C_last)
    # NHWC -> NCHW to match the PyTorch module's output convention
    return jnp.transpose(out_nhwc, (0, 3, 1, 2)), jnp.transpose(idx_nhwc, (0, 3, 1, 2))


# ----------------------------------------------------------------------------
# Pure-JAX (XLA) reference of the PyTorch module, for validation only
# ----------------------------------------------------------------------------
def _reference_forward(params, x_nchw):
    f = x_nchw
    for (w, b, gamma, beta) in params:
        w_oihw = jnp.transpose(w, (3, 2, 0, 1))          # (Cout, Cin, 3, 3)
        y = lax.conv_general_dilated(f, w_oihw, window_strides=(1, 1),
                                     padding=((1, 1), (1, 1)),
                                     dimension_numbers=("NCHW", "OIHW", "NCHW"))
        y = y + b[None, :, None, None]
        mean = jnp.mean(y, axis=(0, 2, 3), keepdims=True)
        var = jnp.mean((y - mean) ** 2, axis=(0, 2, 3), keepdims=True)
        y = (y - mean) * lax.rsqrt(var + _BN_EPS)
        y = y * gamma[None, :, None, None] + beta[None, :, None, None]
        f = jnp.maximum(y, 0.0)
    a = f[:, :, 0::2, 0::2]
    b_ = f[:, :, 0::2, 1::2]
    c = f[:, :, 1::2, 0::2]
    d = f[:, :, 1::2, 1::2]
    ref_out = jnp.maximum(jnp.maximum(a, b_), jnp.maximum(c, d))
    return f, ref_out


if __name__ == "__main__":
    key = jax.random.PRNGKey(0)
    kx, kp = jax.random.split(key)

    N, IN_CH, OUT_CH, H, W = 2, 4, 8, 16, 16
    x = jax.random.normal(kx, (N, IN_CH, H, W), jnp.float32)
    params = init_encoder_params(kp, IN_CH, OUT_CH, block_num=2)

    out, indices = encoder_forward(params, x)
    out, indices = jax.block_until_ready((out, indices))

    assert out.shape == (N, OUT_CH, H // 2, W // 2)
    assert indices.shape == (N, OUT_CH, H // 2, W // 2)
    assert bool(jnp.all(jnp.isfinite(out)))
    assert bool(jnp.all(out >= 0.0))
    assert bool(jnp.all((indices >= 0) & (indices < H * W)))

    # Validate against the pure-JAX reference (includes the conv bias that the
    # kernel omits; match confirms the bias cancels under training-mode BN).
    feat_ref, out_ref = _reference_forward(params, x)
    assert bool(jnp.allclose(out, out_ref, atol=2e-4, rtol=2e-4))
    # Each returned index must point at the pooled max within its (n, c) plane.
    gathered = jnp.take_along_axis(feat_ref.reshape(N, OUT_CH, H * W),
                                   indices.reshape(N, OUT_CH, -1), axis=2)
    assert bool(jnp.allclose(gathered, out.reshape(N, OUT_CH, -1), atol=2e-4, rtol=2e-4))

    print("KERNEL_OK")
</pallas_src>

<mosaic_0001>
module attributes {stable_mosaic.version = 11 : i64} {
  func.func @_conv_pass_kernel(%arg0: i32, %arg1: memref<1x16x16x4xf32, #tpu.memory_space<vmem>>, %arg2: memref<36x8xf32, #tpu.memory_space<vmem>>, %arg3: memref<1x256x8xf32, #tpu.memory_space<vmem>>, %arg4: memref<1x2x8xf32, #tpu.memory_space<vmem>>) attributes {dimension_semantics = [#tpu.dimension_semantics<parallel>], iteration_bounds = array<i64: 2>, scalar_prefetch = 0 : i64, scratch_operands = 0 : i64, tpu.core_type = #tpu.core_type<tc>, window_params = [{transform_indices = @transform_0, window_bounds = array<i64: 1, 16, 16, 4>}, {pipeline_mode = #tpu.pipeline_mode<synchronous>, transform_indices = @transform_1, window_bounds = array<i64: 36, 8>}, {transform_indices = @transform_2, window_bounds = array<i64: 1, 256, 8>}, {transform_indices = @transform_3, window_bounds = array<i64: 1, 2, 8>}]} {
    %c0 = arith.constant 0 : index
    %c0_0 = arith.constant 0 : index
    %c0_1 = arith.constant 0 : index
    %c0_2 = arith.constant 0 : index
    %0 = vector.load %arg1[%c0, %c0_0, %c0_1, %c0_2] : memref<1x16x16x4xf32, #tpu.memory_space<vmem>>, vector<1x16x16x4xf32>
    %1 = vector.shape_cast %0 : vector<1x16x16x4xf32> to vector<16x16x4xf32>
    %cst = arith.constant 0.000000e+00 : f32
    %2 = vector.broadcast %cst : f32 to vector<1x16x4xf32>
    %cst_3 = arith.constant 0.000000e+00 : f32
    %3 = vector.broadcast %cst_3 : f32 to vector<18x1x4xf32>
    %4 = tpu.concatenate %2, %1, %2 in 0 : vector<1x16x4xf32>, vector<16x16x4xf32>, vector<1x16x4xf32> -> vector<18x16x4xf32>
    %5 = tpu.concatenate %3, %4, %3 in 1 : vector<18x1x4xf32>, vector<18x16x4xf32>, vector<18x1x4xf32> -> vector<18x18x4xf32>
    %6 = vector.extract_strided_slice %5 {offsets = [0, 0, 0], sizes = [16, 16, 4], strides = [1, 1, 1]} : vector<18x18x4xf32> to vector<16x16x4xf32>
    %7 = vector.shape_cast %6 : vector<16x16x4xf32> to vector<256x4xf32>
    %8 = vector.extract_strided_slice %5 {offsets = [0, 1, 0], sizes = [16, 16, 4], strides = [1, 1, 1]} : vector<18x18x4xf32> to vector<16x16x4xf32>
    %9 = vector.shape_cast %8 : vector<16x16x4xf32> to vector<256x4xf32>
    %10 = vector.extract_strided_slice %5 {offsets = [0, 2, 0], sizes = [16, 16, 4], strides = [1, 1, 1]} : vector<18x18x4xf32> to vector<16x16x4xf32>
    %11 = vector.shape_cast %10 : vector<16x16x4xf32> to vector<256x4xf32>
    %12 = vector.extract_strided_slice %5 {offsets = [1, 0, 0], sizes = [16, 16, 4], strides = [1, 1, 1]} : vector<18x18x4xf32> to vector<16x16x4xf32>
    %13 = vector.shape_cast %12 : vector<16x16x4xf32> to vector<256x4xf32>
    %14 = vector.extract_strided_slice %5 {offsets = [1, 1, 0], sizes = [16, 16, 4], strides = [1, 1, 1]} : vector<18x18x4xf32> to vector<16x16x4xf32>
    %15 = vector.shape_cast %14 : vector<16x16x4xf32> to vector<256x4xf32>
    %16 = vector.extract_strided_slice %5 {offsets = [1, 2, 0], sizes = [16, 16, 4], strides = [1, 1, 1]} : vector<18x18x4xf32> to vector<16x16x4xf32>
    %17 = vector.shape_cast %16 : vector<16x16x4xf32> to vector<256x4xf32>
    %18 = vector.extract_strided_slice %5 {offsets = [2, 0, 0], sizes = [16, 16, 4], strides = [1, 1, 1]} : vector<18x18x4xf32> to vector<16x16x4xf32>
    %19 = vector.shape_cast %18 : vector<16x16x4xf32> to vector<256x4xf32>
    %20 = vector.extract_strided_slice %5 {offsets = [2, 1, 0], sizes = [16, 16, 4], strides = [1, 1, 1]} : vector<18x18x4xf32> to vector<16x16x4xf32>
    %21 = vector.shape_cast %20 : vector<16x16x4xf32> to vector<256x4xf32>
    %22 = vector.extract_strided_slice %5 {offsets = [2, 2, 0], sizes = [16, 16, 4], strides = [1, 1, 1]} : vector<18x18x4xf32> to vector<16x16x4xf32>
    %23 = vector.shape_cast %22 : vector<16x16x4xf32> to vector<256x4xf32>
    %24 = tpu.concatenate %7, %9, %11, %13, %15, %17, %19, %21, %23 in 1 : vector<256x4xf32>, vector<256x4xf32>, vector<256x4xf32>, vector<256x4xf32>, vector<256x4xf32>, vector<256x4xf32>, vector<256x4xf32>, vector<256x4xf32>, vector<256x4xf32> -> vector<256x36xf32>
    %c0_4 = arith.constant 0 : index
    %c0_5 = arith.constant 0 : index
    %25 = vector.load %arg2[%c0_4, %c0_5] : memref<36x8xf32, #tpu.memory_space<vmem>>, vector<36x8xf32>
    %cst_6 = arith.constant dense<0.000000e+00> : vector<256x8xf32>
    %26 = tpu.matmul %24, %25, %cst_6 {dimension_numbers = #tpu.dot_dimension_numbers<[1], [0], [0], [1], [0, 0, 1, 1], [], []>} : vector<256x36xf32>, vector<36x8xf32>, vector<256x8xf32> -> vector<256x8xf32>
    %c0_7 = arith.constant 0 : index
    %c0_8 = arith.constant 0 : index
    %c0_9 = arith.constant 0 : index
    %27 = vector.load %arg3[%c0_7, %c0_8, %c0_9] : memref<1x256x8xf32, #tpu.memory_space<vmem>>, vector<1x256x8xf32>
    %28 = vector.shape_cast %27 : vector<1x256x8xf32> to vector<256x8xf32>
    %29 = vector.shape_cast %26 : vector<256x8xf32> to vector<1x256x8xf32>
    tpu.vector_store %arg3[%c0_7, %c0_8, %c0_9], %29 {strides = array<i32>} : memref<1x256x8xf32, #tpu.memory_space<vmem>>, vector<1x256x8xf32>,
    %cst_10 = arith.constant dense<0.000000e+00> : vector<8xf32>
    %30 = vector.multi_reduction <add>, %26, %cst_10 [0] : vector<256x8xf32> to vector<8xf32>
    %31 = vector.shape_cast %30 : vector<8xf32> to vector<1x8xf32>
    %32 = arith.mulf %26, %26 : vector<256x8xf32>
    %cst_11 = arith.constant dense<0.000000e+00> : vector<8xf32>
    %33 = vector.multi_reduction <add>, %32, %cst_11 [0] : vector<256x8xf32> to vector<8xf32>
    %34 = vector.shape_cast %33 : vector<8xf32> to vector<1x8xf32>
    %35 = tpu.concatenate %31, %34 in 0 : vector<1x8xf32>, vector<1x8xf32> -> vector<2x8xf32>
    %c0_12 = arith.constant 0 : index
    %c0_13 = arith.constant 0 : index
    %c0_14 = arith.constant 0 : index
    %36 = vector.load %arg4[%c0_12, %c0_13, %c0_14] : memref<1x2x8xf32, #tpu.memory_space<vmem>>, vector<1x2x8xf32>
    %37 = vector.shape_cast %36 : vector<1x2x8xf32> to vector<2x8xf32>
    %38 = vector.shape_cast %35 : vector<2x8xf32> to vector<1x2x8xf32>
    tpu.vector_store %arg4[%c0_12, %c0_13, %c0_14], %38 {strides = array<i32>} : memref<1x2x8xf32, #tpu.memory_space<vmem>>, vector<1x2x8xf32>,
    return
  }
  func.func @transform_0(%arg0: i32) -> (i32, i32, i32, i32) {
    %c0_i32 = arith.constant 0 : i32
    %c0_i32_0 = arith.constant 0 : i32
    %c0_i32_1 = arith.constant 0 : i32
    %c0_i32_2 = arith.constant 0 : i32
    return %arg0, %c0_i32, %c0_i32_0, %c0_i32_1 : i32, i32, i32, i32
  }
  func.func @transform_1(%arg0: i32) -> (i32, i32) {
    %c0_i32 = arith.constant 0 : i32
    %c0_i32_0 = arith.constant 0 : i32
    %c0_i32_1 = arith.constant 0 : i32
    return %c0_i32, %c0_i32_0 : i32, i32
  }
  func.func @transform_2(%arg0: i32) -> (i32, i32, i32) {
    %c0_i32 = arith.constant 0 : i32
    %c0_i32_0 = arith.constant 0 : i32
    %c0_i32_1 = arith.constant 0 : i32
    return %arg0, %c0_i32, %c0_i32_0 : i32, i32, i32
  }
  func.func @transform_3(%arg0: i32) -> (i32, i32, i32) {
    %c0_i32 = arith.constant 0 : i32
    %c0_i32_0 = arith.constant 0 : i32
    %c0_i32_1 = arith.constant 0 : i32
    return %arg0, %c0_i32, %c0_i32_0 : i32, i32, i32
  }
}

module attributes {stable_mosaic.version = 11 : i64} {
  func.func @_conv_pass_kernel(%arg0: i32, %arg1: memref<1x256x8xf32, #tpu.memory_space<vmem>>, %arg2: memref<1x8xf32, #tpu.memory_space<vmem>>, %arg3: memref<1x8xf32, #tpu.memory_space<vmem>>, %arg4: memref<72x8xf32, #tpu.memory_space<vmem>>, %arg5: memref<1x256x8xf32, #tpu.memory_space<vmem>>, %arg6: memref<1x2x8xf32, #tpu.memory_space<vmem>>) attributes {dimension_semantics = [#tpu.dimension_semantics<parallel>], iteration_bounds = array<i64: 2>, scalar_prefetch = 0 : i64, scratch_operands = 0 : i64, tpu.core_type = #tpu.core_type<tc>, window_params = [{transform_indices = @transform_0, window_bounds = array<i64: 1, 256, 8>}, {pipeline_mode = #tpu.pipeline_mode<synchronous>, transform_indices = @transform_1, window_bounds = array<i64: 1, 8>}, {pipeline_mode = #tpu.pipeline_mode<synchronous>, transform_indices = @transform_2, window_bounds = array<i64: 1, 8>}, {pipeline_mode = #tpu.pipeline_mode<synchronous>, transform_indices = @transform_3, window_bounds = array<i64: 72, 8>}, {transform_indices = @transform_4, window_bounds = array<i64: 1, 256, 8>}, {transform_indices = @transform_5, window_bounds = array<i64: 1, 2, 8>}]} {
    %c0 = arith.constant 0 : index
    %c0_0 = arith.constant 0 : index
    %c0_1 = arith.constant 0 : index
    %0 = vector.load %arg1[%c0, %c0_0, %c0_1] : memref<1x256x8xf32, #tpu.memory_space<vmem>>, vector<1x256x8xf32>
    %1 = vector.shape_cast %0 : vector<1x256x8xf32> to vector<256x8xf32>
    %c0_2 = arith.constant 0 : index
    %c0_3 = arith.constant 0 : index
    %2 = vector.load %arg2[%c0_2, %c0_3] : memref<1x8xf32, #tpu.memory_space<vmem>>, vector<1x8xf32>
    %3 = vector.broadcast %2 : vector<1x8xf32> to vector<256x8xf32>
    %4 = arith.mulf %1, %3 : vector<256x8xf32>
    %c0_4 = arith.constant 0 : index
    %c0_5 = arith.constant 0 : index
    %5 = vector.load %arg3[%c0_4, %c0_5] : memref<1x8xf32, #tpu.memory_space<vmem>>, vector<1x8xf32>
    %6 = vector.broadcast %5 : vector<1x8xf32> to vector<256x8xf32>
    %7 = arith.addf %4, %6 : vector<256x8xf32>
    %cst = arith.constant 0.000000e+00 : f32
    %8 = vector.broadcast %cst : f32 to vector<256x8xf32>
    %9 = arith.maximumf %7, %8 : vector<256x8xf32>
    %10 = vector.shape_cast %9 : vector<256x8xf32> to vector<16x16x8xf32>
    %cst_6 = arith.constant 0.000000e+00 : f32
    %11 = vector.broadcast %cst_6 : f32 to vector<1x16x8xf32>
    %cst_7 = arith.constant 0.000000e+00 : f32
    %12 = vector.broadcast %cst_7 : f32 to vector<18x1x8xf32>
    %13 = tpu.concatenate %11, %10, %11 in 0 : vector<1x16x8xf32>, vector<16x16x8xf32>, vector<1x16x8xf32> -> vector<18x16x8xf32>
    %14 = tpu.concatenate %12, %13, %12 in 1 : vector<18x1x8xf32>, vector<18x16x8xf32>, vector<18x1x8xf32> -> vector<18x18x8xf32>
    %15 = vector.extract_strided_slice %14 {offsets = [0, 0, 0], sizes = [16, 16, 8], strides = [1, 1, 1]} : vector<18x18x8xf32> to vector<16x16x8xf32>
    %16 = vector.shape_cast %15 : vector<16x16x8xf32> to vector<256x8xf32>
    %17 = vector.extract_strided_slice %14 {offsets = [0, 1, 0], sizes = [16, 16, 8], strides = [1, 1, 1]} : vector<18x18x8xf32> to vector<16x16x8xf32>
    %18 = vector.shape_cast %17 : vector<16x16x8xf32> to vector<256x8xf32>
    %19 = vector.extract_strided_slice %14 {offsets = [0, 2, 0], sizes = [16, 16, 8], strides = [1, 1, 1]} : vector<18x18x8xf32> to vector<16x16x8xf32>
    %20 = vector.shape_cast %19 : vector<16x16x8xf32> to vector<256x8xf32>
    %21 = vector.extract_strided_slice %14 {offsets = [1, 0, 0], sizes = [16, 16, 8], strides = [1, 1, 1]} : vector<18x18x8xf32> to vector<16x16x8xf32>
    %22 = vector.shape_cast %21 : vector<16x16x8xf32> to vector<256x8xf32>
    %23 = vector.extract_strided_slice %14 {offsets = [1, 1, 0], sizes = [16, 16, 8], strides = [1, 1, 1]} : vector<18x18x8xf32> to vector<16x16x8xf32>
    %24 = vector.shape_cast %23 : vector<16x16x8xf32> to vector<256x8xf32>
    %25 = vector.extract_strided_slice %14 {offsets = [1, 2, 0], sizes = [16, 16, 8], strides = [1, 1, 1]} : vector<18x18x8xf32> to vector<16x16x8xf32>
    %26 = vector.shape_cast %25 : vector<16x16x8xf32> to vector<256x8xf32>
    %27 = vector.extract_strided_slice %14 {offsets = [2, 0, 0], sizes = [16, 16, 8], strides = [1, 1, 1]} : vector<18x18x8xf32> to vector<16x16x8xf32>
    %28 = vector.shape_cast %27 : vector<16x16x8xf32> to vector<256x8xf32>
    %29 = vector.extract_strided_slice %14 {offsets = [2, 1, 0], sizes = [16, 16, 8], strides = [1, 1, 1]} : vector<18x18x8xf32> to vector<16x16x8xf32>
    %30 = vector.shape_cast %29 : vector<16x16x8xf32> to vector<256x8xf32>
    %31 = vector.extract_strided_slice %14 {offsets = [2, 2, 0], sizes = [16, 16, 8], strides = [1, 1, 1]} : vector<18x18x8xf32> to vector<16x16x8xf32>
    %32 = vector.shape_cast %31 : vector<16x16x8xf32> to vector<256x8xf32>
    %33 = tpu.concatenate %16, %18, %20, %22, %24, %26, %28, %30, %32 in 1 : vector<256x8xf32>, vector<256x8xf32>, vector<256x8xf32>, vector<256x8xf32>, vector<256x8xf32>, vector<256x8xf32>, vector<256x8xf32>, vector<256x8xf32>, vector<256x8xf32> -> vector<256x72xf32>
    %c0_8 = arith.constant 0 : index
    %c0_9 = arith.constant 0 : index
    %34 = vector.load %arg4[%c0_8, %c0_9] : memref<72x8xf32, #tpu.memory_space<vmem>>, vector<72x8xf32>
    %cst_10 = arith.constant dense<0.000000e+00> : vector<256x8xf32>
    %35 = tpu.matmul %33, %34, %cst_10 {dimension_numbers = #tpu.dot_dimension_numbers<[1], [0], [0], [1], [0, 0, 1, 1], [], []>} : vector<256x72xf32>, vector<72x8xf32>, vector<256x8xf32> -> vector<256x8xf32>
    %c0_11 = arith.constant 0 : index
    %c0_12 = arith.constant 0 : index
    %c0_13 = arith.constant 0 : index
    %36 = vector.load %arg5[%c0_11, %c0_12, %c0_13] : memref<1x256x8xf32, #tpu.memory_space<vmem>>, vector<1x256x8xf32>
    %37 = vector.shape_cast %36 : vector<1x256x8xf32> to vector<256x8xf32>
    %38 = vector.shape_cast %35 : vector<256x8xf32> to vector<1x256x8xf32>
    tpu.vector_store %arg5[%c0_11, %c0_12, %c0_13], %38 {strides = array<i32>} : memref<1x256x8xf32, #tpu.memory_space<vmem>>, vector<1x256x8xf32>,
    %cst_14 = arith.constant dense<0.000000e+00> : vector<8xf32>
    %39 = vector.multi_reduction <add>, %35, %cst_14 [0] : vector<256x8xf32> to vector<8xf32>
    %40 = vector.shape_cast %39 : vector<8xf32> to vector<1x8xf32>
    %41 = arith.mulf %35, %35 : vector<256x8xf32>
    %cst_15 = arith.constant dense<0.000000e+00> : vector<8xf32>
    %42 = vector.multi_reduction <add>, %41, %cst_15 [0] : vector<256x8xf32> to vector<8xf32>
    %43 = vector.shape_cast %42 : vector<8xf32> to vector<1x8xf32>
    %44 = tpu.concatenate %40, %43 in 0 : vector<1x8xf32>, vector<1x8xf32> -> vector<2x8xf32>
    %c0_16 = arith.constant 0 : index
    %c0_17 = arith.constant 0 : index
    %c0_18 = arith.constant 0 : index
    %45 = vector.load %arg6[%c0_16, %c0_17, %c0_18] : memref<1x2x8xf32, #tpu.memory_space<vmem>>, vector<1x2x8xf32>
    %46 = vector.shape_cast %45 : vector<1x2x8xf32> to vector<2x8xf32>
    %47 = vector.shape_cast %44 : vector<2x8xf32> to vector<1x2x8xf32>
    tpu.vector_store %arg6[%c0_16, %c0_17, %c0_18], %47 {strides = array<i32>} : memref<1x2x8xf32, #tpu.memory_space<vmem>>, vector<1x2x8xf32>,
    return
  }
  func.func @transform_0(%arg0: i32) -> (i32, i32, i32) {
    %c0_i32 = arith.constant 0 : i32
    %c0_i32_0 = arith.constant 0 : i32
    %c0_i32_1 = arith.constant 0 : i32
    return %arg0, %c0_i32, %c0_i32_0 : i32, i32, i32
  }
  func.func @transform_1(%arg0: i32) -> (i32, i32) {
    %c0_i32 = arith.constant 0 : i32
    %c0_i32_0 = arith.constant 0 : i32
    %c0_i32_1 = arith.constant 0 : i32
    return %c0_i32, %c0_i32_0 : i32, i32
  }
  func.func @transform_2(%arg0: i32) -> (i32, i32) {
    %c0_i32 = arith.constant 0 : i32
    %c0_i32_0 = arith.constant 0 : i32
    %c0_i32_1 = arith.constant 0 : i32
    return %c0_i32, %c0_i32_0 : i32, i32
  }
  func.func @transform_3(%arg0: i32) -> (i32, i32) {
    %c0_i32 = arith.constant 0 : i32
    %c0_i32_0 = arith.constant 0 : i32
    %c0_i32_1 = arith.constant 0 : i32
    return %c0_i32, %c0_i32_0 : i32, i32
  }
  func.func @transform_4(%arg0: i32) -> (i32, i32, i32) {
    %c0_i32 = arith.constant 0 : i32
    %c0_i32_0 = arith.constant 0 : i32
    %c0_i32_1 = arith.constant 0 : i32
    return %arg0, %c0_i32, %c0_i32_0 : i32, i32, i32
  }
  func.func @transform_5(%arg0: i32) -> (i32, i32, i32) {
    %c0_i32 = arith.constant 0 : i32
    %c0_i32_0 = arith.constant 0 : i32
    %c0_i32_1 = arith.constant 0 : i32
    return %arg0, %c0_i32, %c0_i32_0 : i32, i32, i32
  }
}

module attributes {stable_mosaic.version = 11 : i64} {
  func.func @_bn_relu_pool_kernel(%arg0: i32, %arg1: memref<1x256x8xf32, #tpu.memory_space<vmem>>, %arg2: memref<1x8xf32, #tpu.memory_space<vmem>>, %arg3: memref<1x8xf32, #tpu.memory_space<vmem>>, %arg4: memref<1x8x8x8xf32, #tpu.memory_space<vmem>>, %arg5: memref<1x8x8x8xi32, #tpu.memory_space<vmem>>) attributes {dimension_semantics = [#tpu.dimension_semantics<parallel>], iteration_bounds = array<i64: 2>, scalar_prefetch = 0 : i64, scratch_operands = 0 : i64, tpu.core_type = #tpu.core_type<tc>, window_params = [{transform_indices = @transform_0, window_bounds = array<i64: 1, 256, 8>}, {pipeline_mode = #tpu.pipeline_mode<synchronous>, transform_indices = @transform_1, window_bounds = array<i64: 1, 8>}, {pipeline_mode = #tpu.pipeline_mode<synchronous>, transform_indices = @transform_2, window_bounds = array<i64: 1, 8>}, {transform_indices = @transform_3, window_bounds = array<i64: 1, 8, 8, 8>}, {transform_indices = @transform_4, window_bounds = array<i64: 1, 8, 8, 8>}]} {
    %c0 = arith.constant 0 : index
    %c0_0 = arith.constant 0 : index
    %c0_1 = arith.constant 0 : index
    %0 = vector.load %arg1[%c0, %c0_0, %c0_1] : memref<1x256x8xf32, #tpu.memory_space<vmem>>, vector<1x256x8xf32>
    %1 = vector.shape_cast %0 : vector<1x256x8xf32> to vector<256x8xf32>
    %c0_2 = arith.constant 0 : index
    %c0_3 = arith.constant 0 : index
    %2 = vector.load %arg2[%c0_2, %c0_3] : memref<1x8xf32, #tpu.memory_space<vmem>>, vector<1x8xf32>
    %3 = vector.broadcast %2 : vector<1x8xf32> to vector<256x8xf32>
    %4 = arith.mulf %1, %3 : vector<256x8xf32>
    %c0_4 = arith.constant 0 : index
    %c0_5 = arith.constant 0 : index
    %5 = vector.load %arg3[%c0_4, %c0_5] : memref<1x8xf32, #tpu.memory_space<vmem>>, vector<1x8xf32>
    %6 = vector.broadcast %5 : vector<1x8xf32> to vector<256x8xf32>
    %7 = arith.addf %4, %6 : vector<256x8xf32>
    %cst = arith.constant 0.000000e+00 : f32
    %8 = vector.broadcast %cst : f32 to vector<256x8xf32>
    %9 = arith.maximumf %7, %8 : vector<256x8xf32>
    %10 = vector.shape_cast %9 : vector<256x8xf32> to vector<8x2x16x8xf32>
    %11 = vector.extract_strided_slice %10 {offsets = [0, 0, 0, 0], sizes = [8, 1, 16, 8], strides = [1, 1, 1, 1]} : vector<8x2x16x8xf32> to vector<8x1x16x8xf32>
    %12 = vector.shape_cast %11 : vector<8x1x16x8xf32> to vector<8x16x8xf32>
    %13 = vector.shape_cast %12 : vector<8x16x8xf32> to vector<8x8x2x8xf32>
    %14 = vector.extract_strided_slice %10 {offsets = [0, 1, 0, 0], sizes = [8, 1, 16, 8], strides = [1, 1, 1, 1]} : vector<8x2x16x8xf32> to vector<8x1x16x8xf32>
    %15 = vector.shape_cast %14 : vector<8x1x16x8xf32> to vector<8x16x8xf32>
    %16 = vector.shape_cast %15 : vector<8x16x8xf32> to vector<8x8x2x8xf32>
    %17 = vector.extract_strided_slice %13 {offsets = [0, 0, 0, 0], sizes = [8, 8, 1, 8], strides = [1, 1, 1, 1]} : vector<8x8x2x8xf32> to vector<8x8x1x8xf32>
    %18 = vector.shape_cast %17 : vector<8x8x1x8xf32> to vector<8x8x8xf32>
    %19 = vector.extract_strided_slice %13 {offsets = [0, 0, 1, 0], sizes = [8, 8, 1, 8], strides = [1, 1, 1, 1]} : vector<8x8x2x8xf32> to vector<8x8x1x8xf32>
    %20 = vector.shape_cast %19 : vector<8x8x1x8xf32> to vector<8x8x8xf32>
    %21 = vector.extract_strided_slice %16 {offsets = [0, 0, 0, 0], sizes = [8, 8, 1, 8], strides = [1, 1, 1, 1]} : vector<8x8x2x8xf32> to vector<8x8x1x8xf32>
    %22 = vector.shape_cast %21 : vector<8x8x1x8xf32> to vector<8x8x8xf32>
    %23 = vector.extract_strided_slice %16 {offsets = [0, 0, 1, 0], sizes = [8, 8, 1, 8], strides = [1, 1, 1, 1]} : vector<8x8x2x8xf32> to vector<8x8x1x8xf32>
    %24 = vector.shape_cast %23 : vector<8x8x1x8xf32> to vector<8x8x8xf32>
    %25 = arith.maximumf %18, %20 : vector<8x8x8xf32>
    %26 = arith.maximumf %22, %24 : vector<8x8x8xf32>
    %27 = arith.maximumf %25, %26 : vector<8x8x8xf32>
    %28 = tpu.iota {dimensions = array<i32: 0>} : vector<8x8x8xi32>
    %29 = tpu.iota {dimensions = array<i32: 1>} : vector<8x8x8xi32>
    %c2_i32 = arith.constant 2 : i32
    %30 = vector.broadcast %c2_i32 : i32 to vector<8x8x8xi32>
    %31 = arith.muli %30, %28 : vector<8x8x8xi32>
    %c16_i32 = arith.constant 16 : i32
    %32 = vector.broadcast %c16_i32 : i32 to vector<8x8x8xi32>
    %33 = arith.muli %31, %32 : vector<8x8x8xi32>
    %c2_i32_6 = arith.constant 2 : i32
    %34 = vector.broadcast %c2_i32_6 : i32 to vector<8x8x8xi32>
    %35 = arith.muli %34, %29 : vector<8x8x8xi32>
    %36 = arith.addi %33, %35 : vector<8x8x8xi32>
    %37 = arith.cmpf oeq, %18, %27 : vector<8x8x8xf32>
    %38 = arith.cmpf oeq, %20, %27 : vector<8x8x8xf32>
    %c1_i32 = arith.constant 1 : i32
    %39 = vector.broadcast %c1_i32 : i32 to vector<8x8x8xi32>
    %40 = arith.addi %36, %39 : vector<8x8x8xi32>
    %41 = arith.cmpf oeq, %22, %27 : vector<8x8x8xf32>
    %c16_i32_7 = arith.constant 16 : i32
    %42 = vector.broadcast %c16_i32_7 : i32 to vector<8x8x8xi32>
    %43 = arith.addi %36, %42 : vector<8x8x8xi32>
    %c16_i32_8 = arith.constant 16 : i32
    %44 = vector.broadcast %c16_i32_8 : i32 to vector<8x8x8xi32>
    %45 = arith.addi %36, %44 : vector<8x8x8xi32>
    %c1_i32_9 = arith.constant 1 : i32
    %46 = vector.broadcast %c1_i32_9 : i32 to vector<8x8x8xi32>
    %47 = arith.addi %45, %46 : vector<8x8x8xi32>
    %48 = arith.select %41, %43, %47 : vector<8x8x8xi1>, vector<8x8x8xi32>
    %49 = arith.select %38, %40, %48 : vector<8x8x8xi1>, vector<8x8x8xi32>
    %50 = arith.select %37, %36, %49 : vector<8x8x8xi1>, vector<8x8x8xi32>
    %c0_10 = arith.constant 0 : index
    %c0_11 = arith.constant 0 : index
    %c0_12 = arith.constant 0 : index
    %c0_13 = arith.constant 0 : index
    %51 = vector.load %arg4[%c0_10, %c0_11, %c0_12, %c0_13] : memref<1x8x8x8xf32, #tpu.memory_space<vmem>>, vector<1x8x8x8xf32>
    %52 = vector.shape_cast %51 : vector<1x8x8x8xf32> to vector<8x8x8xf32>
    %53 = vector.shape_cast %27 : vector<8x8x8xf32> to vector<1x8x8x8xf32>
    tpu.vector_store %arg4[%c0_10, %c0_11, %c0_12, %c0_13], %53 {strides = array<i32>} : memref<1x8x8x8xf32, #tpu.memory_space<vmem>>, vector<1x8x8x8xf32>,
    %c0_14 = arith.constant 0 : index
    %c0_15 = arith.constant 0 : index
    %c0_16 = arith.constant 0 : index
    %c0_17 = arith.constant 0 : index
    %54 = vector.load %arg5[%c0_14, %c0_15, %c0_16, %c0_17] : memref<1x8x8x8xi32, #tpu.memory_space<vmem>>, vector<1x8x8x8xi32>
    %55 = vector.shape_cast %54 : vector<1x8x8x8xi32> to vector<8x8x8xi32>
    %56 = vector.shape_cast %50 : vector<8x8x8xi32> to vector<1x8x8x8xi32>
    tpu.vector_store %arg5[%c0_14, %c0_15, %c0_16, %c0_17], %56 {strides = array<i32>} : memref<1x8x8x8xi32, #tpu.memory_space<vmem>>, vector<1x8x8x8xi32>,
    return
  }
  func.func @transform_0(%arg0: i32) -> (i32, i32, i32) {
    %c0_i32 = arith.constant 0 : i32
    %c0_i32_0 = arith.constant 0 : i32
    %c0_i32_1 = arith.constant 0 : i32
    return %arg0, %c0_i32, %c0_i32_0 : i32, i32, i32
  }
  func.func @transform_1(%arg0: i32) -> (i32, i32) {
    %c0_i32 = arith.constant 0 : i32
    %c0_i32_0 = arith.constant 0 : i32
    %c0_i32_1 = arith.constant 0 : i32
    return %c0_i32, %c0_i32_0 : i32, i32
  }
  func.func @transform_2(%arg0: i32) -> (i32, i32) {
    %c0_i32 = arith.constant 0 : i32
    %c0_i32_0 = arith.constant 0 : i32
    %c0_i32_1 = arith.constant 0 : i32
    return %c0_i32, %c0_i32_0 : i32, i32
  }
  func.func @transform_3(%arg0: i32) -> (i32, i32, i32, i32) {
    %c0_i32 = arith.constant 0 : i32
    %c0_i32_0 = arith.constant 0 : i32
    %c0_i32_1 = arith.constant 0 : i32
    %c0_i32_2 = arith.constant 0 : i32
    return %arg0, %c0_i32, %c0_i32_0, %c0_i32_1 : i32, i32, i32, i32
  }
  func.func @transform_4(%arg0: i32) -> (i32, i32, i32, i32) {
    %c0_i32 = arith.constant 0 : i32
    %c0_i32_0 = arith.constant 0 : i32
    %c0_i32_1 = arith.constant 0 : i32
    %c0_i32_2 = arith.constant 0 : i32
    return %arg0, %c0_i32, %c0_i32_0, %c0_i32_1 : i32, i32, i32, i32
  }
}

</mosaic_0001>

<bundles_post_ra>
// kernel: encoder_forward.4
= control target key start
LH: loop header
LB: loop body
LE: loop exit
PB: predicated region body
PF: predicated region fallthrough
CT: control target
= control target key end

     0   :  { %s2436_s18 = smov 0   ;;  %s4587_s0 = inlined_call_operand.vmem [shape: f32[2,256,8], index: 0, kind: input, shape index: {}]   ;;  %s4588_s1 = inlined_call_operand.vmem [shape: f32[1,8], index: 1, kind: input, shape index: {}]   ;;  %s4589_s2 = inlined_call_operand.vmem [shape: f32[1,8], index: 2, kind: input, shape index: {}]   ;;  %s4590_s3 = inlined_call_operand.vmem [shape: f32[72,8], index: 3, kind: input, shape index: {}]   ;;  %s4591_s4 = inlined_call_operand.vmem [shape: f32[2,256,8], index: 4, kind: output, shape index: {0}]   ;;  %s4592_s5 = inlined_call_operand.vmem [shape: f32[2,2,8], index: 5, kind: output, shape index: {1}]  }
   0x1 LB: > { %s2287_s19 = sadd.s32 4294967295, %s2395_s18   ;;  %p2291_p0 = scmp.ge.s32.totalorder %s2395_s18, 1  ;;  %s2395_s18 = sphi %s2436_s18, %s16_s18  }
   0x2   : > { %p190_p1 = scmp.lt.s32.totalorder %s2395_s18, 3 }
   0x4   : > { %p191_p2 = pnand %p2291_p0, %p190_p1 }
   0x6   : > { %194 = sbr.rel (%p191_p2) target bundleno = 970 (0x3ca), region = 36 }
   0xb   : > { %vm405_vm0 = vcmask 1040384   ;;  %p222_p3 = scmp.lt.s32.totalorder %s2287_s19, 1  ;;  %v2397_v0 = vmov 0.0   ;;  %vm571_vm1 = vcmask 1046528   ;;  %v2460_v5 = vld [vmem:[%s4588_s1] ss:$0 sm:$0xff] }
   0xc   : > { %v2444_v1 = vrot.slane %v2397_v0, 7  ;;  %v2475_v8 = vld [vmem:[%s4589_s2] ss:$0 sm:$0xff]  ;;  %s2398_s28 = smov 8   ;;  %vm652_vm2 = vcmask 1045504   ;;  %s2399_s29 = smov 16  }
   0xd   : > { %s5111_s19 = smov (!%p222_p3, %s2287_s19), 1  ;;  %s2400_s30 = smov 24   ;;  %vm1513_vm3 = vcmask 64512   ;;  %vm1546_vm4 = vcmask 130048   ;;  %vm1579_vm5 = vcmask 195584   ;;  %vm1612_vm6 = vcmask 261120  }
   0xe   : > { %4730 = vst [vmem:[#allocation2_spill] sm:$0xff] %v2444_v1  ;;  %v2450_v2 = vsel %vm405_vm0, 0.0, %v2444_v1  ;;  %v2454_v3 = vsel %vm405_vm0, %v2444_v1, 0.0  ;;  %v573_v4 = vrot.slane %v2444_v1, 1  ;;  %s2331_s22 = sshll.u32 %s5111_s19, 8  ;;  %s2401_s6 = smov 32  }
   0xf   : > { %4731 = vst [vmem:[#allocation3_spill] sm:$0xff] %v2450_v2  ;;  %v572_v6 = vrot.slane %v2450_v2, 1  ;;  %v575_v7 = vrot.slane %v2454_v3, 1  ;;  %s2470_s25 = scalar_lea.vmem %s4587_s0, %s2331_s22  ;;  %s2402_s7 = smov 40   ;;  %vm1645_vm7 = vcmask 326656   ;;  %vm1678_vm8 = vcmask 392192  }
  0x10   : > { %v238_v11 = vld [vmem:[%s2470_s25 + $0x10] sm:$0xff]  ;;  %v239_v12 = vld [vmem:[%s2470_s25 + $0x18] sm:$0xff]  ;;  %v236_v13 = vld [vmem:[%s2470_s25] sm:$0xff]  ;;  %s2403_s8 = smov 48   ;;  %s2404_s9 = smov 56   ;;  %vm1711_vm9 = vcmask 457728  }
  0x11   : > { %v2478_v9 = vsel %vm571_vm1, %v572_v6, %v573_v4  ;;  %v2481_v10 = vsel %vm571_vm1, %v573_v4, %v575_v7  ;;  %v274_v15 = vmul.f32 %v2460_v5, %v238_v11  ;;  %v275_v16 = vmul.f32 %v2460_v5, %v239_v12  ;;  %v237_v17 = vld [vmem:[%s2470_s25 + $0x8] sm:$0xff]  ;;  %v240_v19 = vld [vmem:[%s2470_s25 + $0x20] sm:$0xff]  ;;  %v242_v24 = vld [vmem:[%s2470_s25 + $0x30] sm:$0xff]  ;;  %s2405_s10 = smov 64   ;;  %s4281_s12 = scalar_lea.vmem %s4591_s4, %s2331_s22 }
  0x12   : > { %4732 = vst [vmem:[#allocation4_spill] sm:$0xff] %v2478_v9  ;;  %v2377_v14 = vpack.i.bf16 %v2481_v10, %v2478_v9  ;;  %v272_v18 = vmul.f32 %v2460_v5, %v236_v13  ;;  %v241_v20 = vld [vmem:[%s2470_s25 + $0x28] sm:$0xff]  ;;  %v273_v21 = vmul.f32 %v2460_v5, %v237_v17  ;;  %v276_v22 = vmul.f32 %v2460_v5, %v240_v19  ;;  %v243_v25 = vld [vmem:[%s2470_s25 + $0x38] sm:$0xff]  ;;  %v244_v6 = vld [vmem:[%s2470_s25 + $0x40] sm:$0xff]  ;;  %s2296_s22 = sshll.u32 %s5111_s19, 1 }
  0x13   : > { %4733 = vst [vmem:[#allocation5_spill] sm:$0xff] %v2481_v10  ;;  %v277_v23 = vmul.f32 %v2460_v5, %v241_v20  ;;  %v310_v26 = vadd.f32 %v2475_v8, %v274_v15  ;;  %v311_v27 = vadd.f32 %v2475_v8, %v275_v16  ;;  %v278_v29 = vmul.f32 %v2460_v5, %v242_v24  ;;  %v245_v7 = vld [vmem:[%s2470_s25 + $0x48] sm:$0xff]  ;;  %v246_v11 = vld [vmem:[%s2470_s25 + $0x50] sm:$0xff] }
  0x14   : > { %2378 = vrot.lane.b32.xlu0 %v2377_v14, %s2398_s28  ;;  %v308_v28 = vadd.f32 %v2475_v8, %v272_v18  ;;  %v309_v30 = vadd.f32 %v2475_v8, %v273_v21  ;;  %v312_v31 = vadd.f32 %v2475_v8, %v276_v22  ;;  %v279_v33 = vmul.f32 %v2460_v5, %v243_v25  ;;  %v247_v21 = vld [vmem:[%s2470_s25 + $0x58] sm:$0xff] }
  0x15   : > { %v313_v32 = vadd.f32 %v2475_v8, %v277_v23  ;;  %v342_v34 = vmax.f32 %v310_v26, 0.0  ;;  %v343_v35 = vmax.f32 %v311_v27, 0.0  ;;  %v314_v37 = vadd.f32 %v2475_v8, %v278_v29  ;;  %v248_v23 = vld [vmem:[%s2470_s25 + $0x60] sm:$0xff]  ;;  %v249_v27 = vld [vmem:[%s2470_s25 + $0x68] sm:$0xff] }
  0x16   : > { %v340_v36 = vmax.f32 %v308_v28, 0.0  ;;  %v341_v38 = vmax.f32 %v309_v30, 0.0  ;;  %v344_v39 = vmax.f32 %v312_v31, 0.0  ;;  %v315_v41 = vadd.f32 %v2475_v8, %v279_v33 }
  0x17   : > { %v345_v40 = vmax.f32 %v313_v32, 0.0  ;;  %v411_v42 = vrot.slane %v342_v34, 7  ;;  %v412_v43 = vrot.slane %v343_v35, 7  ;;  %v346_v45 = vmax.f32 %v314_v37, 0.0 }
  0x18   : > { %v408_v44 = vrot.slane %v340_v36, 7  ;;  %v409_v46 = vrot.slane %v341_v38, 7  ;;  %v414_v47 = vrot.slane %v344_v39, 7  ;;  %v347_v49 = vmax.f32 %v315_v41, 0.0  ;;  %v250_v36 = vld [vmem:[%s2470_s25 + $0x70] sm:$0xff]  ;;  %v251_v41 = vld [vmem:[%s2470_s25 + $0x78] sm:$0xff] }
  0x19   : > { %v415_v48 = vrot.slane %v345_v40, 7  ;;  %v2511_v50 = vsel %vm405_vm0, %v411_v42, %v412_v43  ;;  %v2514_v51 = vsel %vm405_vm0, %v412_v43, 0.0  ;;  %v2520_v53 = vsel %vm405_vm0, 0.0, %v411_v42 }
  0x1a   : > { %v2517_v52 = vsel %vm405_vm0, 0.0, %v408_v44  ;;  %v583_v54 = vrot.slane %v2511_v50, 1  ;;  %v585_v55 = vrot.slane %v2514_v51, 1  ;;  %v2525_v56 = vsel %vm405_vm0, %v408_v44, %v409_v46 }
  0x1b   : > { %4734 = vst [vmem:[#allocation6_spill] sm:$0xff] %v2517_v52  ;;  %v2528_v57 = vsel %vm405_vm0, %v409_v46, 0.0  ;;  %v578_v58 = vrot.slane %v2525_v56, 1  ;;  %v577_v60 = vrot.slane %v2517_v52, 1  ;;  %v2534_v61 = vsel %vm405_vm0, %v414_v47, %v415_v48 }
  0x1c   : > { %4735 = vst [vmem:[#allocation7_spill] sm:$0xff] %v2525_v56  ;;  %v580_v59 = vrot.slane %v2528_v57, 1  ;;  %v2537_v62 = vsel %vm571_vm1, %v583_v54, %v585_v55  ;;  %v2540_v63 = vsel %vm405_vm0, 0.0, %v414_v47  ;;  %v588_v0 = vrot.slane %v2534_v61, 1 }
  0x1d   : > { %4736 = vst [vmem:[#allocation8_spill] sm:$0xff] %v2534_v61  ;;  %v582_v4 = vrot.slane %v2520_v53, 1  ;;  %755 = vrot.lane.b32.xlu2 %v2537_v62, %s2398_s28  ;;  %v2553_v13 = vsel %vm571_vm1, %v577_v60, %v578_v58  ;;  %v587_v14 = vrot.slane %v2540_v63, 1  ;;  %v2557_v15 = vsel %vm405_vm0, %v415_v48, 0.0 }
  0x1e   : > { %4737 = vst [vmem:[#allocation9_spill] sm:$0xff] %v2537_v62  ;;  %v2550_v12 = vsel %vm571_vm1, %v578_v58, %v580_v59  ;;  %749 = vrot.lane.b32.xlu0 %v2553_v13, %s2398_s28  ;;  %v590_v16 = vrot.slane %v2557_v15, 1  ;;  %v417_v17 = vrot.slane %v346_v45, 7  ;;  %v418_v18 = vrot.slane %v347_v49, 7 }
  0x1f   : > { %4738 = vst [vmem:[#allocation10_spill] sm:$0xff] %v2540_v63  ;;  %751 = vrot.lane.b32.xlu1 %v2550_v12, %s2398_s28  ;;  %v280_v19 = vmul.f32 %v2460_v5, %v244_v6  ;;  %v281_v20 = vmul.f32 %v2460_v5, %v245_v7  ;;  %v282_v22 = vmul.f32 %v2460_v5, %v246_v11  ;;  %vm1744_vm10 = vcmask 523264  }
  0x20   : > { %v2570_v24 = vsel %vm571_vm1, %v582_v4, %v583_v54  ;;  %v2573_v25 = vsel %vm405_vm0, %v417_v17, %v418_v18  ;;  %v2576_v26 = vsel %vm405_vm0, %v418_v18, 0.0  ;;  %v2580_v28 = vsel %vm571_vm1, %v587_v14, %v588_v0 }
  0x21   : > { %4739 = vst [vmem:[#allocation11_spill] sm:$0xff] %v2570_v24  ;;  %v2583_v29 = vsel %vm571_vm1, %v588_v0, %v590_v16  ;;  %v2586_v30 = vsel %vm405_vm0, 0.0, %v417_v17  ;;  %v316_v31 = vadd.f32 %v2475_v8, %v280_v19  ;;  %v317_v32 = vadd.f32 %v2475_v8, %v281_v20 }
  0x22   : > { %4740 = vst [vmem:[#allocation12_spill] sm:$0xff] %v2573_v25  ;;  %v283_v33 = vmul.f32 %v2460_v5, %v247_v21  ;;  %v318_v34 = vadd.f32 %v2475_v8, %v282_v22  ;;  %v284_v35 = vmul.f32 %v2460_v5, %v248_v23  ;;  %v593_v37 = vrot.slane %v2573_v25, 1 }
  0x23   : > { %4741 = vst [vmem:[#allocation13_spill] sm:$0xff] %v2580_v28  ;;  %v595_v38 = vrot.slane %v2576_v26, 1  ;;  %v348_v39 = vmax.f32 %v316_v31, 0.0  ;;  %v285_v40 = vmul.f32 %v2460_v5, %v249_v27  ;;  %v349_v42 = vmax.f32 %v317_v32, 0.0 }
  0x24   : > { %4742 = vst [vmem:[#allocation14_spill] sm:$0xff] %v2583_v29  ;;  %v319_v43 = vadd.f32 %v2475_v8, %v283_v33  ;;  %v350_v44 = vmax.f32 %v318_v34, 0.0  ;;  %v320_v45 = vadd.f32 %v2475_v8, %v284_v35  ;;  %v286_v48 = vmul.f32 %v2460_v5, %v250_v36  ;;  %v252_v33 = vld [vmem:[%s2470_s25 + $0x80] sm:$0xff]  ;;  %v253_v34 = vld [vmem:[%s2470_s25 + $0x88] sm:$0xff] }
  0x25   : > { %757 = vrot.lane.b32.xlu2 %v2580_v28, %s2398_s28  ;;  %v420_v46 = vrot.slane %v348_v39, 7  ;;  %v321_v47 = vadd.f32 %v2475_v8, %v285_v40  ;;  %v421_v49 = vrot.slane %v349_v42, 7  ;;  %v287_v58 = vmul.f32 %v2460_v5, %v251_v41 }
  0x26   : > { %759 = vrot.lane.b32.xlu0 %v2583_v29, %s2398_s28  ;;  %v351_v54 = vmax.f32 %v319_v43, 0.0  ;;  %v423_v55 = vrot.slane %v350_v44, 7  ;;  %v592_v59 = vrot.slane %v2586_v30, 1  ;;  %v352_v0 = vmax.f32 %v320_v45, 0.0  ;;  %v254_v43 = vld [vmem:[%s2470_s25 + $0x90] sm:$0xff]  ;;  %v255_v44 = vld [vmem:[%s2470_s25 + $0x98] sm:$0xff] }
  0x27   : > { %753 = vrot.lane.b32.xlu1 %v2570_v24, %s2398_s28  ;;  %v2611_v60 = vsel %vm405_vm0, 0.0, %v420_v46  ;;  %v2614_v4 = vsel %vm571_vm1, %v593_v37, %v595_v38  ;;  %v2617_v6 = vsel %vm405_vm0, %v420_v46, %v421_v49  ;;  %v2622_v16 = vsel %vm405_vm0, %v421_v49, 0.0  ;;  %v265_v29 = vld [vmem:[%s2470_s25 + $0xe8] sm:$0xff] }
  0x28   : > { %4743 = vst [vmem:[#allocation15_spill] sm:$0xff] %v2611_v60  ;;  %v597_v7 = vrot.slane %v2611_v60, 1  ;;  %v424_v11 = vrot.slane %v351_v54, 7  ;;  %v598_v14 = vrot.slane %v2617_v6, 1  ;;  %v353_v17 = vmax.f32 %v321_v47, 0.0 }
  0x29   : > { %4744 = vst [vmem:[#allocation16_spill] sm:$0xff] %v2614_v4  ;;  %v322_v18 = vadd.f32 %v2475_v8, %v286_v48  ;;  %v2629_v20 = vsel %vm405_vm0, 0.0, %v423_v55  ;;  %v323_v22 = vadd.f32 %v2475_v8, %v287_v58  ;;  %v2636_v23 = vsel %vm571_vm1, %v592_v59, %v593_v37  ;;  %v257_v58 = vld [vmem:[%s2470_s25 + $0xa8] sm:$0xff] }
  0x2a   : > { %4745 = vst [vmem:[#allocation17_spill] sm:$0xff] %v2617_v6  ;;  %v2626_v19 = vsel %vm405_vm0, %v423_v55, %v424_v11  ;;  %v2632_v21 = vsel %vm405_vm0, %v424_v11, 0.0  ;;  %v2639_v27 = vsel %vm571_vm1, %v597_v7, %v598_v14  ;;  %v600_v31 = vrot.slane %v2622_v16, 1  ;;  %v256_v55 = vld [vmem:[%s2470_s25 + $0xa0] sm:$0xff] }
  0x2b   : > { %4746 = vst [vmem:[#allocation18_spill] sm:$0xff] %v2629_v20  ;;  %v426_v32 = vrot.slane %v352_v0, 7  ;;  %v602_v35 = vrot.slane %v2629_v20, 1  ;;  %v603_v36 = vrot.slane %v2626_v19, 1  ;;  %v605_v37 = vrot.slane %v2632_v21, 1 }
  0x2c   : > { %4747 = vst [vmem:[#allocation19_spill] sm:$0xff] %v2636_v23  ;;  %v427_v38 = vrot.slane %v353_v17, 7  ;;  %v354_v39 = vmax.f32 %v322_v18, 0.0  ;;  %v355_v40 = vmax.f32 %v323_v22, 0.0  ;;  %v288_v41 = vmul.f32 %v2460_v5, %v252_v33 }
  0x2d   : > { %4748 = vst [vmem:[#allocation20_spill] sm:$0xff] %v2639_v27  ;;  %763 = vrot.lane.b32.xlu2 %v2614_v4, %s2398_s28  ;;  %v289_v42 = vmul.f32 %v2460_v5, %v253_v34  ;;  %v2658_v45 = vsel %vm571_vm1, %v598_v14, %v600_v31  ;;  %v2661_v46 = vsel %vm405_vm0, 0.0, %v426_v32  ;;  %v290_v7 = vmul.f32 %v2460_v5, %v254_v43  ;;  %v264_v4 = vld [vmem:[%s2470_s25 + $0xe0] sm:$0xff] }
  0x2e   : > { %765 = vrot.lane.b32.xlu0 %v2639_v27, %s2398_s28  ;;  %4749 = vst [vmem:[#allocation21_spill] sm:$0xff] %v2658_v45  ;;  %v429_v47 = vrot.slane %v354_v39, 7  ;;  %v430_v48 = vrot.slane %v355_v40, 7  ;;  %v324_v49 = vadd.f32 %v2475_v8, %v288_v41  ;;  %v2668_v59 = vsel %vm405_vm0, %v426_v32, %v427_v38 }
  0x2f   : > { %761 = vrot.lane.b32.xlu1 %v2636_v23, %s2398_s28  ;;  %v325_v54 = vadd.f32 %v2475_v8, %v289_v42  ;;  %v2671_v0 = vsel %vm405_vm0, %v427_v38, 0.0  ;;  %v291_v11 = vmul.f32 %v2460_v5, %v255_v44  ;;  %v2676_v14 = vsel %vm571_vm1, %v602_v35, %v603_v36 }
  0x30   : > { %4750 = vst [vmem:[#allocation22_spill] sm:$0xff] %v2676_v14  ;;  %v2679_v17 = vsel %vm571_vm1, %v603_v36, %v605_v37  ;;  %v356_v18 = vmax.f32 %v324_v49, 0.0  ;;  %v2682_v31 = vsel %vm405_vm0, %v429_v47, %v430_v48  ;;  %v2685_v32 = vsel %vm405_vm0, 0.0, %v429_v47 }
  0x31   : > { %4751 = vst [vmem:[#allocation23_spill] sm:$0xff] %v2679_v17  ;;  %v357_v22 = vmax.f32 %v325_v54, 0.0  ;;  %v292_v33 = vmul.f32 %v2460_v5, %v256_v55  ;;  %v293_v34 = vmul.f32 %v2460_v5, %v257_v58  ;;  %v608_v38 = vrot.slane %v2668_v59, 1  ;;  %v258_v54 = vld [vmem:[%s2470_s25 + $0xb0] sm:$0xff]  ;;  %v259_v55 = vld [vmem:[%s2470_s25 + $0xb8] sm:$0xff] }
  0x32   : > { %4752 = vst [vmem:[#allocation24_spill] sm:$0xff] %v2685_v32  ;;  %v610_v35 = vrot.slane %v2671_v0, 1  ;;  %v607_v36 = vrot.slane %v2661_v46, 1  ;;  %v326_v37 = vadd.f32 %v2475_v8, %v290_v7  ;;  %v327_v39 = vadd.f32 %v2475_v8, %v291_v11 }
  0x33   : > { %v612_v40 = vrot.slane %v2685_v32, 1  ;;  %v613_v41 = vrot.slane %v2682_v31, 1  ;;  %v432_v42 = vrot.slane %v356_v18, 7  ;;  %v433_v43 = vrot.slane %v357_v22, 7 }
  0x34   : > { %v328_v44 = vadd.f32 %v2475_v8, %v292_v33  ;;  %v329_v47 = vadd.f32 %v2475_v8, %v293_v34  ;;  %v2705_v49 = vsel %vm571_vm1, %v608_v38, %v610_v35  ;;  %v2710_v58 = vsel %vm571_vm1, %v607_v36, %v608_v38 }
  0x35   : > { %769 = vrot.lane.b32.xlu2 %v2676_v14, %s2398_s28  ;;  %4753 = vst [vmem:[#allocation25_spill] sm:$0xff] %v2705_v49  ;;  %v2713_v7 = vsel %vm405_vm0, %v430_v48, 0.0  ;;  %v358_v11 = vmax.f32 %v326_v37, 0.0  ;;  %v359_v10 = vmax.f32 %v327_v39, 0.0  ;;  %v2716_v18 = vsel %vm571_vm1, %v612_v40, %v613_v41 }
  0x36   : > { %771 = vrot.lane.b32.xlu0 %v2679_v17, %s2398_s28  ;;  %4754 = vst [vmem:[#allocation26_spill] sm:$0xff] %v2710_v58  ;;  %v2719_v22 = vsel %vm405_vm0, %v432_v42, %v433_v43  ;;  %v2722_v33 = vsel %vm405_vm0, 0.0, %v432_v42  ;;  %v2725_v34 = vsel %vm405_vm0, %v433_v43, 0.0  ;;  %v360_v35 = vmax.f32 %v328_v44, 0.0  ;;  %v261_v17 = vld [vmem:[%s2470_s25 + $0xc8] sm:$0xff] }
  0x37   : > { %767 = vrot.lane.b32.xlu1 %v2658_v45, %s2398_s28  ;;  %4755 = vst [vmem:[#allocation27_spill] sm:$0xff] %v2716_v18  ;;  %v361_v38 = vmax.f32 %v329_v47, 0.0  ;;  %v294_v48 = vmul.f32 %v2460_v5, %v258_v54  ;;  %v295_v36 = vmul.f32 %v2460_v5, %v259_v55  ;;  %v615_v37 = vrot.slane %v2713_v7, 1 }
  0x38   : > { %4756 = vst [vmem:[#allocation28_spill] sm:$0xff] %v2719_v22  ;;  %v617_v39 = vrot.slane %v2722_v33, 1  ;;  %v618_v40 = vrot.slane %v2719_v22, 1  ;;  %v620_v42 = vrot.slane %v2725_v34, 1  ;;  %v435_v43 = vrot.slane %v358_v11, 7 }
  0x39   : > { %4757 = vst [vmem:[#allocation29_spill] sm:$0xff] %v2722_v33  ;;  %v436_v44 = vrot.slane %v359_v10, 7  ;;  %v438_v47 = vrot.slane %v360_v35, 7  ;;  %v439_v54 = vrot.slane %v361_v38, 7  ;;  %v330_v55 = vadd.f32 %v2475_v8, %v294_v48  ;;  %v262_v10 = vld [vmem:[%s2470_s25 + $0xd0] sm:$0xff]  ;;  %v263_v35 = vld [vmem:[%s2470_s25 + $0xd8] sm:$0xff] }
  0x3a   : > { %v331_v9 = vadd.f32 %v2475_v8, %v295_v36  ;;  %v2744_v45 = vsel %vm571_vm1, %v617_v39, %v618_v40  ;;  %v2747_v11 = vsel %vm571_vm1, %v613_v41, %v615_v37  ;;  %v297_v39 = vmul.f32 %v2460_v5, %v261_v17 }
  0x3b   : > { %4758 = vst [vmem:[#allocation30_spill] sm:$0xff] %v2744_v45  ;;  %v2758_v38 = vsel %vm405_vm0, %v435_v43, %v436_v44  ;;  %v2761_v48 = vsel %vm405_vm0, %v436_v44, 0.0  ;;  %v2766_v41 = vsel %vm405_vm0, %v438_v47, %v439_v54  ;;  %v2769_v37 = vsel %vm405_vm0, 0.0, %v438_v47 }
  0x3c   : > { %4759 = vst [vmem:[#allocation31_spill] sm:$0xff] %v2747_v11  ;;  %v298_v14 = vmul.f32 %v2460_v5, %v262_v10  ;;  %v625_v17 = vrot.slane %v2761_v48, 1  ;;  %v628_v47 = vrot.slane %v2766_v41, 1  ;;  %v333_v10 = vadd.f32 %v2475_v8, %v297_v39 }
  0x3d   : > { %775 = vrot.lane.b32.xlu2 %v2705_v49, %s2398_s28  ;;  %v260_v49 = vld [vmem:[%s2470_s25 + $0xc0] sm:$0xff]  ;;  %4761 = vst [vmem:[#allocation33_spill] sm:$0xff] %v2758_v38  ;;  %vm1786_vm11 = vcmask 588800   ;;  %vm2199_vm12 = vcmask 58368  }
  0x3e   : > { %777 = vrot.lane.b32.xlu0 %v2716_v18, %s2398_s28  ;;  %v2753_v18 = vsel %vm405_vm0, 0.0, %v435_v43  ;;  %v296_v36 = vmul.f32 %v2460_v5, %v260_v49  ;;  %4762 = vst [vmem:[#allocation34_spill] sm:$0xff] %v2769_v37  ;;  %v299_v43 = vmul.f32 %v2460_v5, %v263_v35  ;;  %v623_v49 = vrot.slane %v2758_v38, 1 }
  0x3f   : > { %773 = vrot.lane.b32.xlu1 %v2710_v58, %s2398_s28  ;;  %v2750_v58 = vsel %vm571_vm1, %v618_v40, %v620_v42  ;;  %v362_v40 = vmax.f32 %v330_v55, 0.0  ;;  %v363_v42 = vmax.f32 %v331_v9, 0.0  ;;  %v622_v44 = vrot.slane %v2753_v18, 1 }
  0x40   : > { %4760 = vst [vmem:[#allocation32_spill] sm:$0xff] %v2750_v58  ;;  %v627_v9 = vrot.slane %v2769_v37, 1  ;;  %v332_v55 = vadd.f32 %v2475_v8, %v296_v36  ;;  %v334_v27 = vadd.f32 %v2475_v8, %v298_v14  ;;  %v335_v23 = vadd.f32 %v2475_v8, %v299_v43 }
  0x41   : > { %v441_v35 = vrot.slane %v362_v40, 7  ;;  %v2800_v36 = vsel %vm405_vm0, %v439_v54, 0.0  ;;  %v365_v40 = vmax.f32 %v333_v10, 0.0  ;;  %v300_v43 = vmul.f32 %v2460_v5, %v264_v4 }
  0x42   : > { %v2797_v62 = vsel %vm571_vm1, %v627_v9, %v628_v47  ;;  %v364_v39 = vmax.f32 %v332_v55, 0.0  ;;  %v367_v9 = vmax.f32 %v335_v23, 0.0  ;;  %v630_v54 = vrot.slane %v2800_v36, 1 }
  0x43   : > { %4765 = vst [vmem:[#allocation37_spill] sm:$0xff] %v2797_v62  ;;  %v336_v23 = vadd.f32 %v2475_v8, %v300_v43 }
  0x44   : > { %v444_v55 = vrot.slane %v364_v39, 7 }
  0x45   : > { %781 = vrot.lane.b32.xlu2 %v2744_v45, %s2398_s28  ;;  %v442_v45 = vrot.slane %v363_v42, 7  ;;  %v2806_v42 = vsel %vm405_vm0, 0.0, %v441_v35 }
  0x46   : > { %783 = vrot.lane.b32.xlu0 %v2750_v58, %s2398_s28  ;;  %v2794_v58 = vsel %vm571_vm1, %v622_v44, %v623_v49  ;;  %4767 = vst [vmem:[#allocation39_spill] sm:$0xff] %v2806_v42  ;;  %v366_v44 = vmax.f32 %v334_v27, 0.0  ;;  %v632_v4 = vrot.slane %v2806_v42, 1  ;;  %v2841_v43 = vsel %vm405_vm0, 0.0, %v444_v55 }
  0x47   : > { %779 = vrot.lane.b32.xlu1 %v2747_v11, %s2398_s28  ;;  %v2791_v11 = vsel %vm571_vm1, %v623_v49, %v625_v17  ;;  %4764 = vst [vmem:[#allocation36_spill] sm:$0xff] %v2794_v58  ;;  %v2803_v14 = vsel %vm405_vm0, %v441_v35, %v442_v45  ;;  %v301_v17 = vmul.f32 %v2460_v5, %v265_v29  ;;  %v2811_v49 = vsel %vm405_vm0, %v442_v45, 0.0 }
  0x48   : > { %4763 = vst [vmem:[#allocation35_spill] sm:$0xff] %v2791_v11  ;;  %v633_v29 = vrot.slane %v2803_v14, 1  ;;  %v445_v45 = vrot.slane %v365_v40, 7  ;;  %v635_v27 = vrot.slane %v2811_v49, 1  ;;  %v447_v35 = vrot.slane %v366_v44, 7 }
  0x49   : > { %4766 = vst [vmem:[#allocation38_spill] sm:$0xff] %v2803_v14  ;;  %v337_v10 = vadd.f32 %v2475_v8, %v301_v17  ;;  %v368_v17 = vmax.f32 %v336_v23, 0.0 }
  0x4a   : > { %v2826_v28 = vsel %vm571_vm1, %v632_v4, %v633_v29  ;;  %v2835_v39 = vsel %vm405_vm0, %v445_v45, 0.0  ;;  %v2838_v40 = vsel %vm571_vm1, %v633_v29, %v635_v27  ;;  %4772 = vst [vmem:[#allocation44_spill] sm:$0xff] %v2841_v43  ;;  %v637_v29 = vrot.slane %v2841_v43, 1 }
  0x4b   : > { %4768 = vst [vmem:[#allocation40_spill] sm:$0xff] %v2826_v28  ;;  %v369_v44 = vmax.f32 %v337_v10, 0.0  ;;  %v640_v4 = vrot.slane %v2835_v39, 1  ;;  %v450_v27 = vrot.slane %v368_v17, 7 }
  0x4c   : > { %4771 = vst [vmem:[#allocation43_spill] sm:$0xff] %v2838_v40 }
  0x4d   : > { %787 = vrot.lane.b32.xlu2 %v2791_v11, %s2398_s28  ;;  %v448_v11 = vrot.slane %v367_v9, 7  ;;  %v451_v23 = vrot.slane %v369_v44, 7 }
  0x4e   : > { %789 = vrot.lane.b32.xlu0 %v2797_v62, %s2398_s28  ;;  %v2832_v62 = vsel %vm405_vm0, %v444_v55, %v445_v45 }
  0x4f   : > { %785 = vrot.lane.b32.xlu1 %v2794_v58, %s2398_s28  ;;  %v2829_v58 = vsel %vm571_vm1, %v628_v47, %v630_v54  ;;  %4770 = vst [vmem:[#allocation42_spill] sm:$0xff] %v2832_v62  ;;  %v2844_v9 = vsel %vm405_vm0, %v447_v35, %v448_v11  ;;  %v2847_v47 = vsel %vm405_vm0, 0.0, %v447_v35  ;;  %v638_v54 = vrot.slane %v2832_v62, 1 }
  0x50   : > { %4769 = vst [vmem:[#allocation41_spill] sm:$0xff] %v2829_v58  ;;  %v642_v55 = vrot.slane %v2847_v47, 1  ;;  %v643_v45 = vrot.slane %v2844_v9, 1  ;;  %v2876_v24 = vsel %vm405_vm0, %v448_v11, 0.0  ;;  %v2879_v17 = vsel %vm405_vm0, %v451_v23, 0.0 }
  0x51   : > { %4773 = vst [vmem:[#allocation45_spill] sm:$0xff] %v2844_v9  ;;  %v2861_v10 = vsel %vm571_vm1, %v638_v54, %v640_v4  ;;  %v2864_v35 = vsel %vm571_vm1, %v637_v29, %v638_v54  ;;  %v645_v4 = vrot.slane %v2876_v24, 1  ;;  %v650_v11 = vrot.slane %v2879_v17, 1 }
  0x52   : > { %4774 = vst [vmem:[#allocation46_spill] sm:$0xff] %v2847_v47  ;;  %v656_v29 = vrot.slane %v2454_v3, 2  ;;  %v658_v3 = vrot.slane %v2517_v52, 2 }
  0x53   : > { %4775 = vst [vmem:[#allocation47_spill] sm:$0xff] %v2861_v10 }
  0x54   : > { %4776 = vst [vmem:[#allocation48_spill] sm:$0xff] %v2864_v35 }
  0x55   : > { %793 = vrot.lane.b32.xlu2 %v2826_v28, %s2398_s28  ;;  %v2873_v28 = vsel %vm405_vm0, 0.0, %v450_v27 }
  0x56   : > { %795 = vrot.lane.b32.xlu0 %v2838_v40, %s2398_s28  ;;  %v2867_v40 = vsel %vm571_vm1, %v642_v55, %v643_v45  ;;  %4779 = vst [vmem:[#allocation51_spill] sm:$0xff] %v2873_v28  ;;  %v647_v44 = vrot.slane %v2873_v28, 1 }
  0x57   : > { %791 = vrot.lane.b32.xlu1 %v2829_v58, %s2398_s28  ;;  %4777 = vst [vmem:[#allocation49_spill] sm:$0xff] %v2867_v40  ;;  %v2870_v58 = vsel %vm405_vm0, %v450_v27, %v451_v23  ;;  %v2896_v27 = vsel %vm571_vm1, %v643_v45, %v645_v4  ;;  %v659_v45 = vrot.slane %v2525_v56, 2  ;;  %v661_v4 = vrot.slane %v2528_v57, 2 }
  0x58   : > { %4778 = vst [vmem:[#allocation50_spill] sm:$0xff] %v2870_v58  ;;  %v648_v54 = vrot.slane %v2870_v58, 1  ;;  %v664_v57 = vrot.slane %v2511_v50, 2 }
  0x59   : > { %4781 = vst [vmem:[#allocation53_spill] sm:$0xff] %v2896_v27 }
  0x5a   : > { %v2893_v55 = vsel %vm571_vm1, %v647_v44, %v648_v54  ;;  %v2899_v23 = vsel %vm571_vm1, %v648_v54, %v650_v11  ;;  %v2919_v11 = vsel %vm652_vm2, %v658_v3, %v659_v45  ;;  %v669_v3 = vrot.slane %v2534_v61, 2 }
  0x5b   : > { %4780 = vst [vmem:[#allocation52_spill] sm:$0xff] %v2893_v55 }
  0x5c   : > { %4782 = vst [vmem:[#allocation54_spill] sm:$0xff] %v2899_v23 }
  0x5d   : > { %799 = vrot.lane.b32.xlu2 %v2861_v10, %s2398_s28 }
  0x5e   : > { %801 = vrot.lane.b32.xlu0 %v2867_v40, %s2398_s28  ;;  %v653_v40 = vrot.slane %v2450_v2, 2  ;;  %v2924_v2 = vsel %vm652_vm2, %v659_v45, %v661_v4 }
  0x5f   : > { %797 = vrot.lane.b32.xlu1 %v2864_v35, %s2398_s28  ;;  %v654_v35 = vrot.slane %v2444_v1, 2 }
  0x61   : > { %v2912_v44 = vsel %vm652_vm2, %v653_v40, %v654_v35  ;;  %v2915_v54 = vsel %vm652_vm2, %v654_v35, %v656_v29  ;;  %v666_v40 = vrot.slane %v2514_v51, 2  ;;  %v663_v35 = vrot.slane %v2520_v53, 2 }
  0x62   : > { %4783 = vst [vmem:[#allocation55_spill] sm:$0xff] %v2912_v44  ;;  %v2382_v1 = vpack.i.bf16 %v2915_v54, %v2912_v44  ;;  %v668_v29 = vrot.slane %v2540_v63, 2  ;;  %v673_v51 = vrot.slane %v2586_v30, 2 }
  0x63   : > { %4784 = vst [vmem:[#allocation56_spill] sm:$0xff] %v2915_v54  ;;  %v2937_v45 = vsel %vm652_vm2, %v664_v57, %v666_v40  ;;  %v2940_v4 = vsel %vm652_vm2, %v663_v35, %v664_v57  ;;  %v674_v40 = vrot.slane %v2573_v25, 2  ;;  %v671_v57 = vrot.slane %v2557_v15, 2 }
  0x64   : > { %4785 = vst [vmem:[#allocation57_spill] sm:$0xff] %v2937_v45  ;;  %v676_v35 = vrot.slane %v2576_v26, 2  ;;  %v679_v15 = vrot.slane %v2617_v6, 2  ;;  %v681_v26 = vrot.slane %v2622_v16, 2 }
  0x65   : > { %805 = vrot.lane.b32.xlu2 %v2893_v55, %s2398_s28  ;;  %v2961_v44 = vsel %vm652_vm2, %v669_v3, %v671_v57  ;;  %v684_v57 = vrot.slane %v2626_v19, 2 }
  0x66   : > { %807 = vrot.lane.b32.xlu0 %v2899_v23, %s2398_s28 }
  0x67   : > { %803 = vrot.lane.b32.xlu1 %v2896_v27, %s2398_s28 }
  0x6d   : > { %845 = vrot.lane.b32.xlu2 %v2919_v11, %s2399_s29 }
  0x6e   : > { %847 = vrot.lane.b32.xlu0 %v2924_v2, %s2399_s29 }
  0x6f   : > { %2383 = vrot.lane.b32.xlu1 %v2382_v1, %s2399_s29  ;;  %v2943_v1 = vsel %vm652_vm2, %v668_v29, %v669_v3  ;;  %v2958_v29 = vsel %vm652_vm2, %v673_v51, %v674_v40  ;;  %v678_v3 = vrot.slane %v2611_v60, 2 }
  0x70   : > { %4787 = vst [vmem:[#allocation59_spill] sm:$0xff] %v2958_v29 }
  0x75   : > { %851 = vrot.lane.b32.xlu2 %v2937_v45, %s2399_s29  ;;  %v2964_v45 = vsel %vm652_vm2, %v674_v40, %v676_v35  ;;  %v683_v40 = vrot.slane %v2629_v20, 2  ;;  %v2980_v35 = vsel %vm652_vm2, %v679_v15, %v681_v26  ;;  %v688_v26 = vrot.slane %v2661_v46, 2 }
  0x76   : > { %853 = vrot.lane.b32.xlu0 %v2943_v1, %s2399_s29  ;;  %4788 = vst [vmem:[#allocation60_spill] sm:$0xff] %v2964_v45 }
  0x77   : > { %849 = vrot.lane.b32.xlu1 %v2940_v4, %s2399_s29  ;;  %v2953_v54 = vpop.permute.xlu2 %755  ;;  %4790 = vst [vmem:[#allocation62_spill] sm:$0xff] %v2980_v35 }
  0x78   : > { %4786 = vst [vmem:[#allocation58_spill] sm:$0xff] %v2953_v54  ;;  %v2983_v54 = vsel %vm652_vm2, %v678_v3, %v679_v15  ;;  %v686_v3 = vrot.slane %v2632_v21, 2  ;;  %v694_v21 = vrot.slane %v2682_v31, 2 }
  0x79   : > { %4791 = vst [vmem:[#allocation63_spill] sm:$0xff] %v2983_v54 }
  0x7d   : > { %857 = vrot.lane.b32.xlu2 %v2958_v29, %s2399_s29 }
  0x7e   : > { %859 = vrot.lane.b32.xlu0 %v2964_v45, %s2399_s29  ;;  %v2986_v45 = vsel %vm652_vm2, %v683_v40, %v684_v57  ;;  %v691_v40 = vrot.slane %v2671_v0, 2  ;;  %v696_v0 = vrot.slane %v2713_v7, 2 }
  0x7f   : > { %855 = vrot.lane.b32.xlu1 %v2961_v44, %s2399_s29  ;;  %v2974_v51 = vpop.permute.xlu2 %757  ;;  %4792 = vst [vmem:[#allocation64_spill] sm:$0xff] %v2986_v45 }
  0x80   : > { %4789 = vst [vmem:[#allocation61_spill] sm:$0xff] %v2974_v51  ;;  %v689_v51 = vrot.slane %v2668_v59, 2 }
  0x85   : > { %863 = vrot.lane.b32.xlu2 %v2980_v35, %s2399_s29  ;;  %v3003_v35 = vsel %vm652_vm2, %v688_v26, %v689_v51 }
  0x86   : > { %865 = vrot.lane.b32.xlu0 %v2986_v45, %s2399_s29  ;;  %v2994_v16 = vpop.permute.xlu0 %2378  ;;  %v3009_v45 = vsel %vm652_vm2, %v689_v51, %v691_v40  ;;  %v698_v51 = vrot.slane %v2722_v33, 2 }
  0x87   : > { %861 = vrot.lane.b32.xlu1 %v2983_v54, %s2399_s29  ;;  %4793 = vst [vmem:[#allocation65_spill] sm:$0xff] %v2994_v16  ;;  %v2998_v15 = vpop.permute.xlu2 %763  ;;  %v3006_v54 = vsel %vm652_vm2, %v684_v57, %v686_v3  ;;  %v693_v57 = vrot.slane %v2685_v32, 2  ;;  %v699_v3 = vrot.slane %v2719_v22, 2  ;;  %v3029_v16 = vsel %vm652_vm2, %v694_v21, %v696_v0 }
  0x88   : > { %4794 = vst [vmem:[#allocation66_spill] sm:$0xff] %v2998_v15  ;;  %v704_v0 = vrot.slane %v2758_v38, 2 }
  0x89   : > { %4795 = vst [vmem:[#allocation67_spill] sm:$0xff] %v3009_v45  ;;  %v3035_v7 = vsel %vm652_vm2, %v698_v51, %v699_v3 }
  0x8a   : > { %4799 = vst [vmem:[#allocation71_spill] sm:$0xff] %v3029_v16 }
  0x8b   : > { %4801 = vst [vmem:[#allocation73_spill] sm:$0xff] %v3035_v7 }
  0x8d   : > { %869 = vrot.lane.b32.xlu2 %v3003_v35, %s2399_s29 }
  0x8e   : > { %871 = vrot.lane.b32.xlu0 %v3009_v45, %s2399_s29  ;;  %v3032_v45 = vsel %vm652_vm2, %v693_v57, %v694_v21  ;;  %v701_v21 = vrot.slane %v2725_v34, 2  ;;  %v706_v57 = vrot.slane %v2761_v48, 2  ;;  %v709_v34 = vrot.slane %v2766_v41, 2 }
  0x8f   : > { %867 = vrot.lane.b32.xlu1 %v3006_v54, %s2399_s29  ;;  %v3019_v26 = vpop.permute.xlu2 %769  ;;  %4800 = vst [vmem:[#allocation72_spill] sm:$0xff] %v3032_v45  ;;  %v711_v48 = vrot.slane %v2800_v36, 2 }
  0x90   : > { %4796 = vst [vmem:[#allocation68_spill] sm:$0xff] %v3019_v26  ;;  %v3026_v15 = vpop.permute.xlu0 %749  ;;  %v703_v26 = vrot.slane %v2753_v18, 2 }
  0x91   : > { %v3024_v40 = vpop.permute.xlu1 %751  ;;  %4798 = vst [vmem:[#allocation70_spill] sm:$0xff] %v3026_v15 }
  0x92   : > { %4797 = vst [vmem:[#allocation69_spill] sm:$0xff] %v3024_v40 }
  0x95   : > { %875 = vrot.lane.b32.xlu2 %v3029_v16, %s2399_s29  ;;  %v3054_v16 = vsel %vm652_vm2, %v703_v26, %v704_v0 }
  0x96   : > { %877 = vrot.lane.b32.xlu0 %v3035_v7, %s2399_s29  ;;  %v3060_v7 = vsel %vm652_vm2, %v704_v0, %v706_v57  ;;  %v713_v0 = vrot.slane %v2806_v42, 2 }
  0x97   : > { %873 = vrot.lane.b32.xlu1 %v3032_v45, %s2399_s29  ;;  %v3045_v40 = vpop.permute.xlu2 %775  ;;  %v3057_v45 = vsel %vm652_vm2, %v699_v3, %v701_v21  ;;  %4806 = vst [vmem:[#allocation78_spill] sm:$0xff] %v3060_v7  ;;  %v708_v3 = vrot.slane %v2769_v37, 2  ;;  %v714_v21 = vrot.slane %v2803_v14, 2 }
  0x98   : > { %4802 = vst [vmem:[#allocation74_spill] sm:$0xff] %v3045_v40  ;;  %v3051_v15 = vpop.permute.xlu0 %759 }
  0x99   : > { %v3049_v51 = vpop.permute.xlu1 %753  ;;  %4804 = vst [vmem:[#allocation76_spill] sm:$0xff] %v3051_v15  ;;  %v3083_v40 = vsel %vm652_vm2, %v708_v3, %v709_v34  ;;  %v3086_v36 = vsel %vm652_vm2, %v713_v0, %v714_v21  ;;  %v721_v3 = vrot.slane %v2835_v39, 2  ;;  %v726_v39 = vrot.slane %v2876_v24, 2 }
  0x9a   : > { %4803 = vst [vmem:[#allocation75_spill] sm:$0xff] %v3049_v51  ;;  %v3080_v51 = vsel %vm652_vm2, %v709_v34, %v711_v48  ;;  %v719_v48 = vrot.slane %v2832_v62, 2  ;;  %v716_v34 = vrot.slane %v2811_v49, 2  ;;  %v724_v49 = vrot.slane %v2844_v9, 2 }
  0x9b   : > { %4805 = vst [vmem:[#allocation77_spill] sm:$0xff] %v3057_v45 }
  0x9c   : > { %4810 = vst [vmem:[#allocation82_spill] sm:$0xff] %v3080_v51 }
  0x9d   : > { %881 = vrot.lane.b32.xlu2 %v3054_v16, %s2399_s29  ;;  %4811 = vst [vmem:[#allocation83_spill] sm:$0xff] %v3083_v40 }
  0x9e   : > { %883 = vrot.lane.b32.xlu0 %v3060_v7, %s2399_s29  ;;  %4812 = vst [vmem:[#allocation84_spill] sm:$0xff] %v3086_v36  ;;  %v3108_v7 = vsel %vm652_vm2, %v714_v21, %v716_v34  ;;  %v723_v21 = vrot.slane %v2847_v47, 2  ;;  %v729_v34 = vrot.slane %v2870_v58, 2 }
  0x9f   : > { %879 = vrot.lane.b32.xlu1 %v3057_v45, %s2399_s29  ;;  %v3070_v26 = vpop.permute.xlu2 %781  ;;  %4817 = vst [vmem:[#allocation89_spill] sm:$0xff] %v3108_v7 }
  0xa0   : > { %4807 = vst [vmem:[#allocation79_spill] sm:$0xff] %v3070_v26  ;;  %v3077_v15 = vpop.permute.xlu0 %765 }
  0xa1   : > { %v3075_v57 = vpop.permute.xlu1 %761  ;;  %4809 = vst [vmem:[#allocation81_spill] sm:$0xff] %v3077_v15  ;;  %v718_v15 = vrot.slane %v2841_v43, 2 }
  0xa2   : > { %4808 = vst [vmem:[#allocation80_spill] sm:$0xff] %v3075_v57 }
  0xa5   : > { %887 = vrot.lane.b32.xlu2 %v3080_v51, %s2399_s29  ;;  %v3105_v51 = vsel %vm652_vm2, %v718_v15, %v719_v48 }
  0xa6   : > { %889 = vrot.lane.b32.xlu0 %v3086_v36, %s2399_s29  ;;  %4816 = vst [vmem:[#allocation88_spill] sm:$0xff] %v3105_v51  ;;  %v3111_v36 = vsel %vm652_vm2, %v719_v48, %v721_v3  ;;  %v728_v48 = vrot.slane %v2873_v28, 2 }
  0xa7   : > { %885 = vrot.lane.b32.xlu1 %v3083_v40, %s2399_s29  ;;  %v3096_v57 = vpop.permute.xlu2 %787  ;;  %4818 = vst [vmem:[#allocation90_spill] sm:$0xff] %v3111_v36 }
  0xa8   : > { %4813 = vst [vmem:[#allocation85_spill] sm:$0xff] %v3096_v57  ;;  %v3102_v26 = vpop.permute.xlu0 %771  ;;  %v3131_v57 = vsel %vm652_vm2, %v724_v49, %v726_v39  ;;  %v3137_v24 = vsel %vm652_vm2, %v728_v48, %v729_v34  ;;  %v731_v39 = vrot.slane %v2879_v17, 2 }
  0xa9   : > { %v3100_v0 = vpop.permute.xlu1 %767  ;;  %4815 = vst [vmem:[#allocation87_spill] sm:$0xff] %v3102_v26  ;;  %v3134_v26 = vsel %vm652_vm2, %v723_v21, %v724_v49 }
  0xaa   : > { %4814 = vst [vmem:[#allocation86_spill] sm:$0xff] %v3100_v0  ;;  %v3153_v21 = vsel %vm652_vm2, %v729_v34, %v731_v39 }
  0xab   : > { %4821 = vst [vmem:[#allocation93_spill] sm:$0xff] %v3131_v57 }
  0xac   : > { %4824 = vst [vmem:[#allocation96_spill] sm:$0xff] %v3153_v21 }
  0xad   : > { %893 = vrot.lane.b32.xlu2 %v3105_v51, %s2399_s29 }
  0xae   : > { %895 = vrot.lane.b32.xlu0 %v3111_v36, %s2399_s29 }
  0xaf   : > { %891 = vrot.lane.b32.xlu1 %v3108_v7, %s2399_s29  ;;  %v3121_v15 = vpop.permute.xlu2 %793 }
  0xb0   : > { %4819 = vst [vmem:[#allocation91_spill] sm:$0xff] %v3121_v15  ;;  %v3128_v0 = vpop.permute.xlu0 %777 }
  0xb1   : > { %v3126_v3 = vpop.permute.xlu1 %773  ;;  %4820 = vst [vmem:[#allocation92_spill] sm:$0xff] %v3128_v0 }
  0xb5   : > { %899 = vrot.lane.b32.xlu2 %v3131_v57, %s2399_s29 }
  0xb6   : > { %901 = vrot.lane.b32.xlu0 %v3137_v24, %s2399_s29 }
  0xb7   : > { %897 = vrot.lane.b32.xlu1 %v3134_v26, %s2399_s29  ;;  %v3145_v15 = vpop.permute.xlu2 %799 }
  0xb8   : > { %4822 = vst [vmem:[#allocation94_spill] sm:$0xff] %v3145_v15  ;;  %v3150_v49 = vpop.permute.xlu0 %783 }
  0xb9   : > { %v3148_v0 = vpop.permute.xlu1 %779  ;;  %4823 = vst [vmem:[#allocation95_spill] sm:$0xff] %v3150_v49 }
  0xbd   : > { %937 = vrot.lane.b32.xlu2 %v2517_v52, %s2400_s30 }
  0xbe   : > { %939 = vrot.lane.b32.xlu0 %v2525_v56, %s2400_s30 }
  0xbf   : > { %903 = vrot.lane.b32.xlu1 %v3153_v21, %s2399_s29  ;;  %v3161_v48 = vpop.permute.xlu2 %805 }
  0xc0   : > { %4825 = vst [vmem:[#allocation97_spill] sm:$0xff] %v3161_v48  ;;  %v3165_v15 = vpop.permute.xlu0 %789 }
  0xc1   : > { %v3163_v17 = vpop.permute.xlu1 %785  ;;  %4826 = vst [vmem:[#allocation98_spill] sm:$0xff] %v3165_v15 }
  0xc5   : > { %943 = vrot.lane.b32.xlu2 %v2511_v50, %s2400_s30 }
  0xc6   : > { %945 = vrot.lane.b32.xlu0 %v2540_v63, %s2400_s30 }
  0xc7   : > { %941 = vrot.lane.b32.xlu1 %v2520_v53, %s2400_s30  ;;  %v3173_v34 = vpop.permute.xlu2 %845 }
  0xc8   : > { %4827 = vst [vmem:[#allocation99_spill] sm:$0xff] %v3173_v34  ;;  %v3177_v56 = vpop.permute.xlu0 %795 }
  0xc9   : > { %v3175_v39 = vpop.permute.xlu1 %791  ;;  %4828 = vst [vmem:[#allocation100_spill] sm:$0xff] %v3177_v56 }
  0xcd   : > { %949 = vrot.lane.b32.xlu2 %v2586_v30, %s2400_s30 }
  0xce   : > { %951 = vrot.lane.b32.xlu0 %v2573_v25, %s2400_s30 }
  0xcf   : > { %947 = vrot.lane.b32.xlu1 %v2534_v61, %s2400_s30  ;;  %v3185_v52 = vpop.permute.xlu2 %851 }
  0xd0   : > { %4829 = vst [vmem:[#allocation101_spill] sm:$0xff] %v3185_v52  ;;  %v3189_v15 = vpop.permute.xlu0 %801 }
  0xd1   : > { %v3187_v48 = vpop.permute.xlu1 %797  ;;  %4831 = vst [vmem:[#allocation103_spill] sm:$0xff] %v3189_v15 }
  0xd2   : > { %4830 = vst [vmem:[#allocation102_spill] sm:$0xff] %v3187_v48 }
  0xd5   : > { %955 = vrot.lane.b32.xlu2 %v2617_v6, %s2400_s30 }
  0xd6   : > { %957 = vrot.lane.b32.xlu0 %v2629_v20, %s2400_s30 }
  0xd7   : > { %953 = vrot.lane.b32.xlu1 %v2611_v60, %s2400_s30  ;;  %v3197_v34 = vpop.permute.xlu2 %857 }
  0xd8   : > { %4832 = vst [vmem:[#allocation104_spill] sm:$0xff] %v3197_v34  ;;  %v3201_v25 = vpop.permute.xlu0 %807 }
  0xd9   : > { %v3199_v56 = vpop.permute.xlu1 %803  ;;  %4834 = vst [vmem:[#allocation106_spill] sm:$0xff] %v3201_v25 }
  0xda   : > { %4833 = vst [vmem:[#allocation105_spill] sm:$0xff] %v3199_v56  ;;  %v267_v56 = vld [vmem:[%s2470_s25 + $0xf8] sm:$0xff] }
  0xdd   : > { %961 = vrot.lane.b32.xlu2 %v2661_v46, %s2400_s30 }
  0xde   : > { %963 = vrot.lane.b32.xlu0 %v2668_v59, %s2400_s30 }
  0xdf   : > { %959 = vrot.lane.b32.xlu1 %v2626_v19, %s2400_s30  ;;  %v3209_v52 = vpop.permute.xlu2 %863 }
  0xe0   : > { %4835 = vst [vmem:[#allocation107_spill] sm:$0xff] %v3209_v52  ;;  %v3213_v60 = vpop.permute.xlu0 %847 }
  0xe1   : > { %v3211_v6 = vpop.permute.xlu1 %2383  ;;  %4837 = vst [vmem:[#allocation109_spill] sm:$0xff] %v3213_v60 }
  0xe2   : > { %4836 = vst [vmem:[#allocation108_spill] sm:$0xff] %v3211_v6 }
  0xe5   : > { %967 = vrot.lane.b32.xlu2 %v2682_v31, %s2400_s30 }
  0xe6   : > { %969 = vrot.lane.b32.xlu0 %v2722_v33, %s2400_s30 }
  0xe7   : > { %965 = vrot.lane.b32.xlu1 %v2685_v32, %s2400_s30  ;;  %v3221_v34 = vpop.permute.xlu2 %869 }
  0xe8   : > { %v3225_v52 = vpop.permute.xlu0 %853 }
  0xe9   : > { %v3223_v25 = vpop.permute.xlu1 %849  ;;  %4839 = vst [vmem:[#allocation111_spill] sm:$0xff] %v3225_v52 }
  0xea   : > { %4838 = vst [vmem:[#allocation110_spill] sm:$0xff] %v3223_v25  ;;  %v266_v25 = vld [vmem:[%s2470_s25 + $0xf0] sm:$0xff] }
  0xed   : > { %973 = vrot.lane.b32.xlu2 %v2753_v18, %s2400_s30 }
  0xee   : > { %975 = vrot.lane.b32.xlu0 %v2758_v38, %s2400_s30 }
  0xef   : > { %971 = vrot.lane.b32.xlu1 %v2719_v22, %s2400_s30  ;;  %v3233_v60 = vpop.permute.xlu2 %875 }
  0xf0   : > { %v3237_v15 = vpop.permute.xlu0 %859 }
  0xf1   : > { %v3235_v6 = vpop.permute.xlu1 %855  ;;  %4841 = vst [vmem:[#allocation113_spill] sm:$0xff] %v3237_v15  ;;  %v303_v15 = vmul.f32 %v2460_v5, %v267_v56 }
  0xf2   : > { %4840 = vst [vmem:[#allocation112_spill] sm:$0xff] %v3235_v6  ;;  %v302_v6 = vmul.f32 %v2460_v5, %v266_v25 }
  0xf5   : > { %979 = vrot.lane.b32.xlu2 %v2766_v41, %s2400_s30 }
  0xf6   : > { %981 = vrot.lane.b32.xlu0 %v2806_v42, %s2400_s30 }
  0xf7   : > { %977 = vrot.lane.b32.xlu1 %v2769_v37, %s2400_s30  ;;  %v3245_v52 = vpop.permute.xlu2 %881  ;;  %v338_v37 = vadd.f32 %v2475_v8, %v302_v6 }
  0xf8   : > { %v3250_v49 = vpop.permute.xlu0 %865 }
  0xf9   : > { %v3248_v22 = vpop.permute.xlu1 %861  ;;  %4843 = vst [vmem:[#allocation115_spill] sm:$0xff] %v3250_v49  ;;  %v339_v49 = vadd.f32 %v2475_v8, %v303_v15  ;;  %v370_v5 = vmax.f32 %v338_v37, 0.0 }
  0xfa   : > { %4842 = vst [vmem:[#allocation114_spill] sm:$0xff] %v3248_v22 }
  0xfb   : > { %v371_v56 = vmax.f32 %v339_v49, 0.0  ;;  %v453_v6 = vrot.slane %v370_v5, 7 }
  0xfd   : > { %985 = vrot.lane.b32.xlu2 %v2841_v43, %s2400_s30  ;;  %v3284_v37 = vsel %vm405_vm0, 0.0, %v453_v6 }
  0xfe   : > { %987 = vrot.lane.b32.xlu0 %v2832_v62, %s2400_s30  ;;  %v3277_v62 = vrot.slane %v371_v56, 7  ;;  %4847 = vst [vmem:[#allocation119_spill] sm:$0xff] %v3284_v37 }
  0xff   : > { %983 = vrot.lane.b32.xlu1 %v2803_v14, %s2400_s30  ;;  %v3262_v42 = vpop.permute.xlu2 %887 }
 0x100   : > { %v3267_v25 = vpop.permute.xlu0 %871  ;;  %v3288_v49 = vsel %vm405_vm0, %v453_v6, %v3277_v62  ;;  %v4852_v6 = vld [vmem:[#allocation11_spill] sm:$0xff] }
 0x101   : > { %v3265_v22 = vpop.permute.xlu1 %867  ;;  %4848 = vst [vmem:[#allocation120_spill] sm:$0xff] %v3288_v49 }
 0x105   : > { %991 = vrot.lane.b32.xlu2 %v2844_v9, %s2400_s30 }
 0x106   : > { %993 = vrot.lane.b32.xlu0 %v2873_v28, %s2400_s30 }
 0x107   : > { %989 = vrot.lane.b32.xlu1 %v2847_v47, %s2400_s30  ;;  %v3275_v14 = vpop.permute.xlu2 %893 }
 0x108   : > { %4844 = vst [vmem:[#allocation116_spill] sm:$0xff] %v3275_v14  ;;  %v3281_v15 = vpop.permute.xlu0 %877 }
 0x109   : > { %v3279_v8 = vpop.permute.xlu1 %873  ;;  %4846 = vst [vmem:[#allocation118_spill] sm:$0xff] %v3281_v15 }
 0x10a   : > { %4845 = vst [vmem:[#allocation117_spill] sm:$0xff] %v3279_v8 }
 0x10d   : > { %997 = vrot.lane.b32.xlu2 %v3284_v37, %s2400_s30 }
 0x10e   : > { %999 = vrot.lane.b32.xlu0 %v3288_v49, %s2400_s30 }
 0x10f   : > { %995 = vrot.lane.b32.xlu1 %v2870_v58, %s2400_s30  ;;  %v3296_v5 = vpop.permute.xlu2 %899 }
 0x110   : > { %4849 = vst [vmem:[#allocation121_spill] sm:$0xff] %v3296_v5  ;;  %v3300_v28 = vpop.permute.xlu0 %883 }
 0x111   : > { %v3298_v56 = vpop.permute.xlu1 %879  ;;  %4851 = vst [vmem:[#allocation123_spill] sm:$0xff] %v3300_v28  ;;  %v4857_v28 = vld [vmem:[#allocation9_spill] sm:$0xff] }
 0x112   : > { %4850 = vst [vmem:[#allocation122_spill] sm:$0xff] %v3298_v56  ;;  %v4856_v56 = vld [vmem:[#allocation13_spill] sm:$0xff] }
 0x115   : > { %1035 = vrot.lane.b32.xlu2 %v2550_v12, %s2401_s6  ;;  %v4858_v12 = vld [vmem:[#allocation14_spill] sm:$0xff] }
 0x116   : > { %1037 = vrot.lane.b32.xlu0 %v4852_v6, %s2401_s6 }
 0x117   : > { %1033 = vrot.lane.b32.xlu1 %v2553_v13, %s2401_s6  ;;  %v3308_v58 = vpop.permute.xlu2 %937 }
 0x118   : > { %4853 = vst [vmem:[#allocation11_spill] sm:$0xff] %v3308_v58  ;;  %v3312_v9 = vpop.permute.xlu0 %889  ;;  %v4862_v58 = vld [vmem:[#allocation16_spill] sm:$0xff] }
 0x119   : > { %v3310_v47 = vpop.permute.xlu1 %885  ;;  %4855 = vst [vmem:[#allocation125_spill] sm:$0xff] %v3312_v9  ;;  %v4863_v9 = vld [vmem:[#allocation19_spill] sm:$0xff] }
 0x11a   : > { %4854 = vst [vmem:[#allocation124_spill] sm:$0xff] %v3310_v47  ;;  %v4864_v47 = vld [vmem:[#allocation20_spill] sm:$0xff] }
 0x11d   : > { %1041 = vrot.lane.b32.xlu2 %v4856_v56, %s2401_s6 }
 0x11e   : > { %1043 = vrot.lane.b32.xlu0 %v4858_v12, %s2401_s6 }
 0x11f   : > { %1039 = vrot.lane.b32.xlu1 %v4857_v28, %s2401_s6  ;;  %v3320_v5 = vpop.permute.xlu2 %943 }
 0x120   : > { %4859 = vst [vmem:[#allocation13_spill] sm:$0xff] %v3320_v5  ;;  %v3324_v15 = vpop.permute.xlu0 %895  ;;  %v4868_v5 = vld [vmem:[#allocation22_spill] sm:$0xff] }
 0x121   : > { %v3322_v13 = vpop.permute.xlu1 %891  ;;  %4861 = vst [vmem:[#allocation14_spill] sm:$0xff] %v3324_v15  ;;  %v4869_v15 = vld [vmem:[#allocation21_spill] sm:$0xff] }
 0x122   : > { %4860 = vst [vmem:[#allocation9_spill] sm:$0xff] %v3322_v13  ;;  %v4870_v13 = vld [vmem:[#allocation23_spill] sm:$0xff] }
 0x125   : > { %1047 = vrot.lane.b32.xlu2 %v4862_v58, %s2401_s6 }
 0x126   : > { %1049 = vrot.lane.b32.xlu0 %v4864_v47, %s2401_s6 }
 0x127   : > { %1045 = vrot.lane.b32.xlu1 %v4863_v9, %s2401_s6  ;;  %v3332_v8 = vpop.permute.xlu2 %949 }
 0x128   : > { %4865 = vst [vmem:[#allocation126_spill] sm:$0xff] %v3332_v8  ;;  %v3336_v32 = vpop.permute.xlu0 %901  ;;  %v4874_v8 = vld [vmem:[#allocation25_spill] sm:$0xff] }
 0x129   : > { %v3334_v14 = vpop.permute.xlu1 %897  ;;  %4867 = vst [vmem:[#allocation128_spill] sm:$0xff] %v3336_v32  ;;  %v4875_v32 = vld [vmem:[#allocation26_spill] sm:$0xff] }
 0x12a   : > { %4866 = vst [vmem:[#allocation127_spill] sm:$0xff] %v3334_v14  ;;  %v4876_v14 = vld [vmem:[#allocation27_spill] sm:$0xff] }
 0x12d   : > { %1053 = vrot.lane.b32.xlu2 %v4868_v5, %s2401_s6 }
 0x12e   : > { %1055 = vrot.lane.b32.xlu0 %v4870_v13, %s2401_s6 }
 0x12f   : > { %1051 = vrot.lane.b32.xlu1 %v4869_v15, %s2401_s6  ;;  %v3344_v58 = vpop.permute.xlu2 %955 }
 0x130   : > { %4871 = vst [vmem:[#allocation22_spill] sm:$0xff] %v3344_v58  ;;  %v3348_v47 = vpop.permute.xlu0 %939  ;;  %v4880_v58 = vld [vmem:[#allocation30_spill] sm:$0xff] }
 0x131   : > { %v3346_v33 = vpop.permute.xlu1 %903  ;;  %4873 = vst [vmem:[#allocation129_spill] sm:$0xff] %v3348_v47  ;;  %v4881_v47 = vld [vmem:[#allocation31_spill] sm:$0xff] }
 0x132   : > { %4872 = vst [vmem:[#allocation23_spill] sm:$0xff] %v3346_v33  ;;  %v4882_v33 = vld [vmem:[#allocation32_spill] sm:$0xff] }
 0x135   : > { %1059 = vrot.lane.b32.xlu2 %v4874_v8, %s2401_s6 }
 0x136   : > { %1061 = vrot.lane.b32.xlu0 %v4876_v14, %s2401_s6 }
 0x137   : > { %1057 = vrot.lane.b32.xlu1 %v4875_v32, %s2401_s6  ;;  %v3356_v43 = vpop.permute.xlu2 %961 }
 0x138   : > { %4877 = vst [vmem:[#allocation26_spill] sm:$0xff] %v3356_v43  ;;  %v3360_v48 = vpop.permute.xlu0 %945  ;;  %v4886_v43 = vld [vmem:[#allocation35_spill] sm:$0xff] }
 0x139   : > { %v3358_v15 = vpop.permute.xlu1 %941  ;;  %4879 = vst [vmem:[#allocation131_spill] sm:$0xff] %v3360_v48  ;;  %v4887_v48 = vld [vmem:[#allocation36_spill] sm:$0xff] }
 0x13a   : > { %4878 = vst [vmem:[#allocation130_spill] sm:$0xff] %v3358_v15 }
 0x13d   : > { %1065 = vrot.lane.b32.xlu2 %v4880_v58, %s2401_s6  ;;  %v4888_v58 = vld [vmem:[#allocation37_spill] sm:$0xff] }
 0x13e   : > { %1067 = vrot.lane.b32.xlu0 %v4882_v33, %s2401_s6 }
 0x13f   : > { %1063 = vrot.lane.b32.xlu1 %v4881_v47, %s2401_s6  ;;  %v3368_v8 = vpop.permute.xlu2 %967 }
 0x140   : > { %4883 = vst [vmem:[#allocation132_spill] sm:$0xff] %v3368_v8  ;;  %v3372_v14 = vpop.permute.xlu0 %951  ;;  %v4892_v8 = vld [vmem:[#allocation40_spill] sm:$0xff] }
 0x141   : > { %v3370_v38 = vpop.permute.xlu1 %947  ;;  %4885 = vst [vmem:[#allocation134_spill] sm:$0xff] %v3372_v14  ;;  %v4893_v14 = vld [vmem:[#allocation41_spill] sm:$0xff] }
 0x142   : > { %4884 = vst [vmem:[#allocation133_spill] sm:$0xff] %v3370_v38  ;;  %v4894_v38 = vld [vmem:[#allocation43_spill] sm:$0xff] }
 0x145   : > { %1071 = vrot.lane.b32.xlu2 %v4886_v43, %s2401_s6 }
 0x146   : > { %1073 = vrot.lane.b32.xlu0 %v4888_v58, %s2401_s6 }
 0x147   : > { %1069 = vrot.lane.b32.xlu1 %v4887_v48, %s2401_s6  ;;  %v3380_v15 = vpop.permute.xlu2 %973 }
 0x148   : > { %4889 = vst [vmem:[#allocation36_spill] sm:$0xff] %v3380_v15  ;;  %v3384_v33 = vpop.permute.xlu0 %957 }
 0x149   : > { %v3382_v47 = vpop.permute.xlu1 %953  ;;  %4891 = vst [vmem:[#allocation136_spill] sm:$0xff] %v3384_v33  ;;  %v4897_v33 = vld [vmem:[#allocation48_spill] sm:$0xff] }
 0x14a   : > { %4890 = vst [vmem:[#allocation135_spill] sm:$0xff] %v3382_v47 }
 0x14d   : > { %1077 = vrot.lane.b32.xlu2 %v4892_v8, %s2401_s6  ;;  %v4898_v8 = vld [vmem:[#allocation49_spill] sm:$0xff] }
 0x14e   : > { %1079 = vrot.lane.b32.xlu0 %v4894_v38, %s2401_s6 }
 0x14f   : > { %1075 = vrot.lane.b32.xlu1 %v4893_v14, %s2401_s6  ;;  %v3392_v43 = vpop.permute.xlu2 %979 }
 0x150   : > { %4895 = vst [vmem:[#allocation137_spill] sm:$0xff] %v3392_v43  ;;  %v3396_v58 = vpop.permute.xlu0 %963 }
 0x151   : > { %v3394_v9 = vpop.permute.xlu1 %959 }
 0x152   : > { %4896 = vst [vmem:[#allocation138_spill] sm:$0xff] %v3394_v9  ;;  %v3412_v9 = vsel %vm405_vm0, %v3277_v62, 0.0 }
 0x155   : > { %1083 = vrot.lane.b32.xlu2 %v2861_v10, %s2401_s6  ;;  %v736_v10 = vrot.slane %v3288_v49, 1 }
 0x156   : > { %1085 = vrot.lane.b32.xlu0 %v4898_v8, %s2401_s6 }
 0x157   : > { %1081 = vrot.lane.b32.xlu1 %v4897_v33, %s2401_s6  ;;  %v3404_v47 = vpop.permute.xlu2 %985  ;;  %v738_v33 = vrot.slane %v3412_v9, 1 }
 0x158   : > { %4899 = vst [vmem:[#allocation139_spill] sm:$0xff] %v3404_v47  ;;  %v3408_v38 = vpop.permute.xlu0 %969  ;;  %v735_v47 = vrot.slane %v3284_v37, 1 }
 0x159   : > { %v3406_v14 = vpop.permute.xlu1 %965  ;;  %4900 = vst [vmem:[#allocation140_spill] sm:$0xff] %v3408_v38 }
 0x15d   : > { %1089 = vrot.lane.b32.xlu2 %v2893_v55, %s2401_s6  ;;  %v3430_v55 = vsel %vm571_vm1, %v736_v10, %v738_v33  ;;  %v4907_v33 = vld [vmem:[#allocation57_spill] sm:$0xff] }
 0x15e   : > { %1091 = vrot.lane.b32.xlu0 %v2899_v23, %s2401_s6  ;;  %4903 = vst [vmem:[#allocation143_spill] sm:$0xff] %v3430_v55 }
 0x15f   : > { %1087 = vrot.lane.b32.xlu1 %v2896_v27, %s2401_s6  ;;  %v3422_v8 = vpop.permute.xlu2 %991  ;;  %v3433_v27 = vsel %vm571_vm1, %v735_v47, %v736_v10 }
 0x160   : > { %4901 = vst [vmem:[#allocation141_spill] sm:$0xff] %v3422_v8  ;;  %v3427_v62 = vpop.permute.xlu0 %975 }
 0x161   : > { %v3425_v43 = vpop.permute.xlu1 %971  ;;  %4902 = vst [vmem:[#allocation142_spill] sm:$0xff] %v3427_v62 }
 0x162   : > { %4904 = vst [vmem:[#allocation144_spill] sm:$0xff] %v3433_v27 }
 0x165   : > { %1095 = vrot.lane.b32.xlu2 %v3430_v55, %s2401_s6 }
 0x166   : > { %1129 = vrot.lane.b32.xlu0 %v2919_v11, %s2402_s7 }
 0x167   : > { %1093 = vrot.lane.b32.xlu1 %v3433_v27, %s2401_s6  ;;  %v3441_v23 = vpop.permute.xlu2 %997 }
 0x168   : > { %4905 = vst [vmem:[#allocation145_spill] sm:$0xff] %v3441_v23  ;;  %v3445_v62 = vpop.permute.xlu0 %981  ;;  %v4914_v23 = vld [vmem:[#allocation60_spill] sm:$0xff] }
 0x169   : > { %v3443_v8 = vpop.permute.xlu1 %977  ;;  %4906 = vst [vmem:[#allocation146_spill] sm:$0xff] %v3445_v62 }
 0x16d   : > { %1133 = vrot.lane.b32.xlu2 %v2940_v4, %s2402_s7 }
 0x16e   : > { %1135 = vrot.lane.b32.xlu0 %v4907_v33, %s2402_s7 }
 0x16f   : > { %1131 = vrot.lane.b32.xlu1 %v2924_v2, %s2402_s7  ;;  %v3453_v47 = vpop.permute.xlu2 %1035 }
 0x170   : > { %4908 = vst [vmem:[#allocation57_spill] sm:$0xff] %v3453_v47  ;;  %v3457_v11 = vpop.permute.xlu0 %987  ;;  %v4913_v47 = vld [vmem:[#allocation63_spill] sm:$0xff] }
 0x171   : > { %v3455_v10 = vpop.permute.xlu1 %983  ;;  %4909 = vst [vmem:[#allocation147_spill] sm:$0xff] %v3457_v11  ;;  %v4915_v11 = vld [vmem:[#allocation62_spill] sm:$0xff] }
 0x175   : > { %1139 = vrot.lane.b32.xlu2 %v2961_v44, %s2402_s7 }
 0x176   : > { %1141 = vrot.lane.b32.xlu0 %v2958_v29, %s2402_s7 }
 0x177   : > { %1137 = vrot.lane.b32.xlu1 %v2943_v1, %s2402_s7  ;;  %v3465_v55 = vpop.permute.xlu2 %1041 }
 0x178   : > { %4910 = vst [vmem:[#allocation148_spill] sm:$0xff] %v3465_v55  ;;  %v3469_v27 = vpop.permute.xlu0 %993  ;;  %v4919_v55 = vld [vmem:[#allocation64_spill] sm:$0xff] }
 0x179   : > { %v3467_v2 = vpop.permute.xlu1 %989  ;;  %4912 = vst [vmem:[#allocation150_spill] sm:$0xff] %v3469_v27 }
 0x17a   : > { %4911 = vst [vmem:[#allocation149_spill] sm:$0xff] %v3467_v2 }
 0x17d   : > { %1145 = vrot.lane.b32.xlu2 %v4913_v47, %s2402_s7 }
 0x17e   : > { %1147 = vrot.lane.b32.xlu0 %v4915_v11, %s2402_s7 }
 0x17f   : > { %1143 = vrot.lane.b32.xlu1 %v4914_v23, %s2402_s7  ;;  %v3477_v62 = vpop.permute.xlu2 %1047  ;;  %v4925_v23 = vld [vmem:[#allocation71_spill] sm:$0xff] }
 0x180   : > { %4916 = vst [vmem:[#allocation151_spill] sm:$0xff] %v3477_v62  ;;  %v3481_v15 = vpop.permute.xlu0 %999  ;;  %v4923_v62 = vld [vmem:[#allocation72_spill] sm:$0xff] }
 0x181   : > { %v3479_v38 = vpop.permute.xlu1 %995  ;;  %4918 = vst [vmem:[#allocation153_spill] sm:$0xff] %v3481_v15  ;;  %v4924_v15 = vld [vmem:[#allocation67_spill] sm:$0xff] }
 0x182   : > { %4917 = vst [vmem:[#allocation152_spill] sm:$0xff] %v3479_v38 }
 0x185   : > { %1151 = vrot.lane.b32.xlu2 %v3006_v54, %s2402_s7 }
 0x186   : > { %1153 = vrot.lane.b32.xlu0 %v3003_v35, %s2402_s7 }
 0x187   : > { %1149 = vrot.lane.b32.xlu1 %v4919_v55, %s2402_s7  ;;  %v3489_v47 = vpop.permute.xlu2 %1053 }
 0x188   : > { %4920 = vst [vmem:[#allocation64_spill] sm:$0xff] %v3489_v47  ;;  %v3493_v11 = vpop.permute.xlu0 %1037  ;;  %v4928_v47 = vld [vmem:[#allocation73_spill] sm:$0xff] }
 0x189   : > { %v3491_v27 = vpop.permute.xlu1 %1033  ;;  %4922 = vst [vmem:[#allocation155_spill] sm:$0xff] %v3493_v11 }
 0x18a   : > { %4921 = vst [vmem:[#allocation154_spill] sm:$0xff] %v3491_v27 }
 0x18d   : > { %1157 = vrot.lane.b32.xlu2 %v4923_v62, %s2402_s7 }
 0x18e   : > { %1159 = vrot.lane.b32.xlu0 %v4925_v23, %s2402_s7 }
 0x18f   : > { %1155 = vrot.lane.b32.xlu1 %v4924_v15, %s2402_s7  ;;  %v3501_v38 = vpop.permute.xlu2 %1059 }
 0x190   : > { %v3505_v2 = vpop.permute.xlu0 %1043 }
 0x191   : > { %v3503_v29 = vpop.permute.xlu1 %1039  ;;  %4927 = vst [vmem:[#allocation156_spill] sm:$0xff] %v3505_v2  ;;  %v4931_v2 = vld [vmem:[#allocation78_spill] sm:$0xff] }
 0x192   : > { %4926 = vst [vmem:[#allocation67_spill] sm:$0xff] %v3503_v29 }
 0x195   : > { %1163 = vrot.lane.b32.xlu2 %v3057_v45, %s2402_s7  ;;  %v4932_v45 = vld [vmem:[#allocation82_spill] sm:$0xff] }
 0x196   : > { %1165 = vrot.lane.b32.xlu0 %v3054_v16, %s2402_s7 }
 0x197   : > { %1161 = vrot.lane.b32.xlu1 %v4928_v47, %s2402_s7  ;;  %v3513_v11 = vpop.permute.xlu2 %1065 }
 0x198   : > { %v3517_v23 = vpop.permute.xlu0 %1049 }
 0x199   : > { %v3515_v62 = vpop.permute.xlu1 %1045  ;;  %4930 = vst [vmem:[#allocation158_spill] sm:$0xff] %v3517_v23 }
 0x19a   : > { %4929 = vst [vmem:[#allocation157_spill] sm:$0xff] %v3515_v62  ;;  %v4935_v62 = vld [vmem:[#allocation84_spill] sm:$0xff] }
 0x19d   : > { %1169 = vrot.lane.b32.xlu2 %v3083_v40, %s2402_s7 }
 0x19e   : > { %1171 = vrot.lane.b32.xlu0 %v4932_v45, %s2402_s7 }
 0x19f   : > { %1167 = vrot.lane.b32.xlu1 %v4931_v2, %s2402_s7  ;;  %v3525_v29 = vpop.permute.xlu2 %1071 }
 0x1a0   : > { %v3529_v27 = vpop.permute.xlu0 %1055 }
 0x1a1   : > { %v3527_v47 = vpop.permute.xlu1 %1051  ;;  %4934 = vst [vmem:[#allocation159_spill] sm:$0xff] %v3529_v27  ;;  %v740_v27 = vrot.slane %v3284_v37, 2 }
 0x1a2   : > { %4933 = vst [vmem:[#allocation78_spill] sm:$0xff] %v3527_v47 }
 0x1a5   : > { %1175 = vrot.lane.b32.xlu2 %v3108_v7, %s2402_s7  ;;  %v741_v7 = vrot.slane %v3288_v49, 2  ;;  %v743_v49 = vrot.slane %v3412_v9, 2 }
 0x1a6   : > { %1177 = vrot.lane.b32.xlu0 %v3105_v51, %s2402_s7 }
 0x1a7   : > { %1173 = vrot.lane.b32.xlu1 %v4935_v62, %s2402_s7  ;;  %v3537_v23 = vpop.permute.xlu2 %1077 }
 0x1a8   : > { %v1062_v45 = vpop.permute.xlu0 %1061 }
 0x1a9   : > { %v3539_v40 = vpop.permute.xlu1 %1057 }
 0x1aa   : > { %4936 = vst [vmem:[#allocation160_spill] sm:$0xff] %v3539_v40  ;;  %v3556_v40 = vsel %vm652_vm2, %v740_v27, %v741_v7  ;;  %v3572_v27 = vsel %vm652_vm2, %v741_v7, %v743_v49 }
 0x1ab   : > { %4937 = vst [vmem:[#allocation161_spill] sm:$0xff] %v3556_v40 }
 0x1ac   : > { %4938 = vst [vmem:[#allocation162_spill] sm:$0xff] %v3572_v27 }
 0x1ad   : > { %1181 = vrot.lane.b32.xlu2 %v3134_v26, %s2402_s7 }
 0x1ae   : > { %1183 = vrot.lane.b32.xlu0 %v3131_v57, %s2402_s7 }
 0x1af   : > { %1179 = vrot.lane.b32.xlu1 %v3111_v36, %s2402_s7  ;;  %v3549_v62 = vpop.permute.xlu2 %1083 }
 0x1b0   : > { %v3553_v47 = vpop.permute.xlu0 %1067 }
 0x1b1   : > { %v3551_v51 = vpop.permute.xlu1 %1063 }
 0x1b5   : > { %1187 = vrot.lane.b32.xlu2 %v3153_v21, %s2402_s7 }
 0x1b6   : > { %1189 = vrot.lane.b32.xlu0 %v3556_v40, %s2402_s7 }
 0x1b7   : > { %1185 = vrot.lane.b32.xlu1 %v3137_v24, %s2402_s7  ;;  %v3564_v36 = vpop.permute.xlu2 %1089 }
 0x1b8   : > { %v3569_v57 = vpop.permute.xlu0 %1073 }
 0x1b9   : > { %v3567_v37 = vpop.permute.xlu1 %1069 }
 0x1bd   : > { %1225 = vrot.lane.b32.xlu2 %v2520_v53, %s2403_s8 }
 0x1be   : > { %1321 = vrot.lane.b32.xlu0 %v4852_v6, %s2404_s9 }
 0x1bf   : > { %1191 = vrot.lane.b32.xlu1 %v3572_v27, %s2402_s7  ;;  %v3580_v40 = vpop.permute.xlu2 %1095 }
 0x1c0   : > { %v3584_v21 = vpop.permute.xlu0 %1079 }
 0x1c1   : > { %v3582_v9 = vpop.permute.xlu1 %1075 }
 0x1c5   : > { %1227 = vrot.lane.b32.xlu2 %v2511_v50, %s2403_s8 }
 0x1c6   : > { %1323 = vrot.lane.b32.xlu0 %v4857_v28, %s2404_s9 }
 0x1c7   : > { %1417 = vrot.lane.b32.xlu1 %v2940_v4, %s2405_s10  ;;  %v3592_v7 = vpop.permute.xlu2 %1133 }
 0x1c8   : > { %v3596_v6 = vpop.permute.xlu0 %1085 }
 0x1c9   : > { %v3594_v49 = vpop.permute.xlu1 %1081 }
 0x1cd   : > { %1229 = vrot.lane.b32.xlu2 %v2540_v63, %s2403_s8 }
 0x1ce   : > { %1241 = vrot.lane.b32.xlu0 %v2629_v20, %s2403_s8 }
 0x1cf   : > { %1419 = vrot.lane.b32.xlu1 %v4907_v33, %s2405_s10  ;;  %v3604_v27 = vpop.permute.xlu2 %1139 }
 0x1d0   : > { %4939 = vst [vmem:[#allocation163_spill] sm:$0xff] %v3604_v27  ;;  %v3608_v28 = vpop.permute.xlu0 %1091  ;;  %v1528_v27 = vsel %vm1513_vm3, %v2661_v46, %v3126_v3 }
 0x1d1   : > { %v3606_v4 = vpop.permute.xlu1 %1087 }
 0x1d5   : > { %1337 = vrot.lane.b32.xlu2 %v4868_v5, %s2404_s9 }
 0x1d6   : > { %1421 = vrot.lane.b32.xlu0 %v2943_v1, %s2405_s10 }
 0x1d7   : > { %1325 = vrot.lane.b32.xlu1 %v4856_v56, %s2404_s9  ;;  %v3616_v63 = vpop.permute.xlu2 %1145 }
 0x1d8   : > { %v3620_v20 = vpop.permute.xlu0 %1129 }
 0x1d9   : > { %v3618_v33 = vpop.permute.xlu1 %1093 }
 0x1dd   : > { %1231 = vrot.lane.b32.xlu2 %v2534_v61, %s2403_s8  ;;  %v1561_v61 = vsel %vm1546_vm4, %v1528_v27, %v3221_v34 }
 0x1de   : > { %1243 = vrot.lane.b32.xlu0 %v2626_v19, %s2403_s8 }
 0x1df   : > { %1433 = vrot.lane.b32.xlu1 %v4919_v55, %s2405_s10  ;;  %v3628_v5 = vpop.permute.xlu2 %1151  ;;  %v1594_v55 = vsel %vm1579_vm5, %v1561_v61, %v3406_v14  ;;  %v1531_v61 = vsel %vm1513_vm3, %v2682_v31, %v3148_v0 }
 0x1e0   : > { %4940 = vst [vmem:[#allocation164_spill] sm:$0xff] %v3628_v5  ;;  %v3632_v1 = vpop.permute.xlu0 %1135  ;;  %v1627_v3 = vsel %vm1612_vm6, %v1594_v55, %v1062_v45  ;;  %v1564_v14 = vsel %vm1546_vm4, %v1531_v61, %v3233_v60 }
 0x1e1   : > { %v3630_v56 = vpop.permute.xlu1 %1131  ;;  %v1597_v45 = vsel %vm1579_vm5, %v1564_v14, %v3425_v43  ;;  %v1534_v43 = vsel %vm1513_vm3, %v2753_v18, %v3163_v17 }
 0x1e5   : > { %1339 = vrot.lane.b32.xlu2 %v4870_v13, %s2404_s9 }
 0x1e6   : > { %1257 = vrot.lane.b32.xlu0 %v2753_v18, %s2403_s8 }
 0x1e7   : > { %1327 = vrot.lane.b32.xlu1 %v4858_v12, %s2404_s9  ;;  %v1158_v5 = vpop.permute.xlu2 %1157  ;;  %v1630_v12 = vsel %vm1612_vm6, %v1597_v45, %v3553_v47 }
 0x1e8   : > { %v3649_v34 = vsel %vm1645_vm7, %v1627_v3, %v1158_v5  ;;  %v3653_v13 = vpop.permute.xlu0 %1141  ;;  %v4941_v3 = vld [vmem:[#allocation74_spill] sm:$0xff] }
 0x1e9   : > { %v3651_v27 = vpop.permute.xlu1 %1137 }
 0x1ed   : > { %1435 = vrot.lane.b32.xlu2 %v3006_v54, %s2405_s10 }
 0x1ee   : > { %1353 = vrot.lane.b32.xlu0 %v4887_v48, %s2404_s9 }
 0x1ef   : > { %1423 = vrot.lane.b32.xlu1 %v2961_v44, %s2405_s10  ;;  %v1164_v5 = vpop.permute.xlu2 %1163  ;;  %v1567_v44 = vsel %vm1546_vm4, %v1534_v43, %v3245_v52 }
 0x1f0   : > { %v3671_v0 = vsel %vm1645_vm7, %v1630_v12, %v1164_v5  ;;  %v3675_v55 = vpop.permute.xlu0 %1147  ;;  %v1600_v54 = vsel %vm1579_vm5, %v1567_v44, %v3443_v8  ;;  %v1537_v8 = vsel %vm1513_vm3, %v2766_v41, %v3175_v39  ;;  %v4943_v12 = vld [vmem:[#allocation19_spill] sm:$0xff]  ;;  %v4945_v5 = vld [vmem:[#allocation132_spill] sm:$0xff] }
 0x1f1   : > { %v3673_v60 = vpop.permute.xlu1 %1143  ;;  %v1633_v48 = vsel %vm1612_vm6, %v1600_v54, %v3569_v57  ;;  %v1570_v61 = vsel %vm1546_vm4, %v1537_v8, %v3262_v42  ;;  %v4947_v8 = vld [vmem:[#allocation102_spill] sm:$0xff] }
 0x1f2   : > { %v1603_v45 = vsel %vm1579_vm5, %v1570_v61, %v3455_v10 }
 0x1f5   : > { %1233 = vrot.lane.b32.xlu2 %v2586_v30, %s2403_s8 }
 0x1f6   : > { %1245 = vrot.lane.b32.xlu0 %v2661_v46, %s2403_s8  ;;  %v4942_v46 = vld [vmem:[#allocation87_spill] sm:$0xff] }
 0x1f7   : > { %1449 = vrot.lane.b32.xlu1 %v3054_v16, %s2405_s10  ;;  %v1170_v47 = vpop.permute.xlu2 %1169  ;;  %v1529_v16 = vsel %vm1513_vm3, %v2668_v59, %v4941_v3  ;;  %v1527_v57 = vsel %vm1513_vm3, %v2626_v19, %v4942_v46  ;;  %v4944_v19 = vld [vmem:[#allocation33_spill] sm:$0xff] }
 0x1f8   : > { %v3693_v18 = vsel %vm1645_vm7, %v1633_v48, %v1170_v47  ;;  %v3697_v17 = vpop.permute.xlu0 %1153  ;;  %v1560_v14 = vsel %vm1546_vm4, %v1527_v57, %v3265_v22  ;;  %v1562_v39 = vsel %vm1546_vm4, %v1529_v16, %v3267_v25  ;;  %v1636_v22 = vsel %vm1612_vm6, %v1603_v45, %v3584_v21  ;;  %v4948_v21 = vld [vmem:[#allocation44_spill] sm:$0xff]  ;;  %v4949_v16 = vld [vmem:[#allocation79_spill] sm:$0xff]  ;;  %v4954_v45 = vld [vmem:[#allocation117_spill] sm:$0xff] }
 0x1f9   : > { %v3695_v52 = vpop.permute.xlu1 %1149  ;;  %v1595_v42 = vsel %vm1579_vm5, %v1562_v39, %v4945_v5  ;;  %v1540_v3 = vsel %vm1513_vm3, %v4948_v21, %v4947_v8  ;;  %v4952_v57 = vld [vmem:[#allocation24_spill] sm:$0xff]  ;;  %v4955_v5 = vld [vmem:[#allocation118_spill] sm:$0xff] }
 0x1fa   : > { %v1628_v10 = vsel %vm1612_vm6, %v1595_v42, %v3551_v51  ;;  %v4951_v51 = vld [vmem:[#allocation92_spill] sm:$0xff] }
 0x1fb   : > { %v1530_v61 = vsel %vm1513_vm3, %v4952_v57, %v4951_v51 }
 0x1fd   : > { %1341 = vrot.lane.b32.xlu2 %v4875_v32, %s2404_s9  ;;  %v1593_v32 = vsel %vm1579_vm5, %v1560_v14, %v3396_v58  ;;  %v4953_v14 = vld [vmem:[#allocation116_spill] sm:$0xff] }
 0x1fe   : > { %1259 = vrot.lane.b32.xlu0 %v4944_v19, %s2403_s8  ;;  %v1626_v25 = vsel %vm1612_vm6, %v1593_v32, %v3501_v38  ;;  %v4950_v38 = vld [vmem:[#allocation29_spill] sm:$0xff]  ;;  %v1573_v39 = vsel %vm1546_vm4, %v1540_v3, %v4953_v14 }
 0x1ff   : > { %1329 = vrot.lane.b32.xlu1 %v4943_v12, %s2404_s9  ;;  %v1176_v43 = vpop.permute.xlu2 %1175  ;;  %v1532_v46 = vsel %vm1513_vm3, %v4950_v38, %v4949_v16  ;;  %v1563_v12 = vsel %vm1546_vm4, %v1530_v61, %v4954_v45  ;;  %v4956_v32 = vld [vmem:[#allocation149_spill] sm:$0xff] }
 0x200   : > { %v3733_v44 = vsel %vm1645_vm7, %v1636_v22, %v1176_v43  ;;  %v1160_v48 = vpop.permute.xlu0 %1159  ;;  %v1565_v42 = vsel %vm1546_vm4, %v1532_v46, %v4955_v5  ;;  %v1606_v22 = vsel %vm1579_vm5, %v1573_v39, %v4956_v32  ;;  %v4957_v43 = vld [vmem:[#allocation59_spill] sm:$0xff]  ;;  %v1785_v39 = vld [vmem:[%s4590_s3 + $0x40] sm:$0xff]  ;;  %v4962_v5 = vld [vmem:[#allocation45_spill] sm:$0xff] }
 0x201   : > { %4946 = vst [vmem:[#allocation74_spill] sm:$0xff] %v3733_v44  ;;  %v1156_v54 = vpop.permute.xlu1 %1155  ;;  %v3739_v58 = vsel %vm1645_vm7, %v1628_v10, %v1160_v48  ;;  %v4959_v10 = vld [vmem:[#allocation36_spill] sm:$0xff]  ;;  %v1639_v8 = vsel %vm1612_vm6, %v1606_v22, %v3596_v6  ;;  %1890 = vmatpush.msra.mxu0 %v1785_v39  ;;  %2333 = vmatpush.msra.mxu1 %v1785_v39  ;;  %v4963_v32 = vld [vmem:[#allocation85_spill] sm:$0xff] }
 0x202   : > { %v3736_v47 = vsel %vm1645_vm7, %v1626_v25, %v1156_v54  ;;  %v4958_v25 = vld [vmem:[#allocation35_spill] sm:$0xff]  ;;  %v1598_v54 = vsel %vm1579_vm5, %v1565_v42, %v4959_v10  ;;  %v4960_v48 = vld [vmem:[#allocation140_spill] sm:$0xff]  ;;  %2334 = vmatpush.msra.mxu2 %v1785_v39  ;;  %2335 = vmatpush.msra.mxu3 %v1785_v39  ;;  %v1535_v22 = vsel %vm1513_vm3, %v4944_v19, %v4963_v32  ;;  %v4971_v39 = vld [vmem:[#allocation137_spill] sm:$0xff] }
 0x203   : > { %v1631_v46 = vsel %vm1612_vm6, %v1598_v54, %v3567_v37  ;;  %v1784_v37 = vld [vmem:[%s4590_s3 + $0x38] sm:$0xff] }
 0x204   : > { %1891 = vmatpush.msra.mxu0 %v1784_v37  ;;  %2336 = vmatpush.msra.mxu1 %v1784_v37  ;;  %v4966_v54 = vld [vmem:[#allocation121_spill] sm:$0xff] }
 0x205   : > { %1437 = vrot.lane.b32.xlu2 %v3003_v35, %s2405_s10  ;;  %v1596_v35 = vsel %vm1579_vm5, %v1563_v12, %v4960_v48  ;;  %v4961_v12 = vld [vmem:[#allocation105_spill] sm:$0xff]  ;;  %2337 = vmatpush.msra.mxu2 %v1784_v37 }
 0x206   : > { %1355 = vrot.lane.b32.xlu0 %v4958_v25, %s2404_s9  ;;  %v1629_v16 = vsel %vm1612_vm6, %v1596_v35, %v3513_v11  ;;  %v1783_v11 = vld [vmem:[%s4590_s3 + $0x30] sm:$0xff]  ;;  %v1543_v42 = vsel %vm1513_vm3, %v4962_v5, %v4961_v12  ;;  %2338 = vmatpush.msra.mxu3 %v1784_v37  ;;  %v4972_v12 = vld [vmem:[#allocation142_spill] sm:$0xff] }
 0x207   : > { %1425 = vrot.lane.b32.xlu1 %v4957_v43, %s2405_s10  ;;  %v1182_v3 = vpop.permute.xlu2 %1181  ;;  %v4964_v43 = vld [vmem:[#allocation95_spill] sm:$0xff]  ;;  %v4965_v25 = vld [vmem:[#allocation28_spill] sm:$0xff]  ;;  %v1576_v48 = vsel %vm1546_vm4, %v1543_v42, %v4966_v54  ;;  %1892 = vmatpush.msra.mxu0 %v1783_v11 }
 0x208   : > { %v3775_v51 = vsel %vm1645_vm7, %v1639_v8, %v1182_v3  ;;  %v1166_v14 = vpop.permute.xlu0 %1165  ;;  %v1533_v10 = vsel %vm1513_vm3, %v4965_v25, %v4964_v43  ;;  %v4967_v35 = vld [vmem:[#allocation12_spill] sm:$0xff]  ;;  %v4968_v8 = vld [vmem:[#allocation122_spill] sm:$0xff]  ;;  %2339 = vmatpush.msra.mxu1 %v1783_v11  ;;  %2340 = vmatpush.msra.mxu2 %v1783_v11 }
 0x209   : > { %v1162_v61 = vpop.permute.xlu1 %1161  ;;  %v3784_v6 = vsel %vm1645_vm7, %v1631_v46, %v1166_v14  ;;  %v1566_v3 = vsel %vm1546_vm4, %v1533_v10, %v4968_v8  ;;  %v1782_v14 = vld [vmem:[%s4590_s3 + $0x28] sm:$0xff]  ;;  %2341 = vmatpush.msra.mxu3 %v1783_v11 }
 0x20a   : > { %v3781_v45 = vsel %vm1645_vm7, %v1629_v16, %v1162_v61  ;;  %v4969_v16 = vld [vmem:[#allocation123_spill] sm:$0xff]  ;;  %v4970_v61 = vld [vmem:[#allocation152_spill] sm:$0xff]  ;;  %v1599_v42 = vsel %vm1579_vm5, %v1566_v3, %v4972_v12  ;;  %1893 = vmatpush.msra.mxu0 %v1782_v14  ;;  %2342 = vmatpush.msra.mxu1 %v1782_v14 }
 0x20b   : > { %v1568_v46 = vsel %vm1546_vm4, %v1535_v22, %v4969_v16  ;;  %v1609_v19 = vsel %vm1579_vm5, %v1576_v48, %v4970_v61  ;;  %v1781_v48 = vld [vmem:[%s4590_s3 + $0x20] sm:$0xff]  ;;  %2343 = vmatpush.msra.mxu2 %v1782_v14  ;;  %2344 = vmatpush.msra.mxu3 %v1782_v14  ;;  %v4974_v11 = vld [vmem:[#allocation91_spill] sm:$0xff]  ;;  %v4980_v14 = vld [vmem:[#allocation125_spill] sm:$0xff] }
 0x20c   : > { %v1601_v37 = vsel %vm1579_vm5, %v1568_v46, %v4971_v39  ;;  %v1642_v32 = vsel %vm1612_vm6, %v1609_v19, %v3608_v28  ;;  %1894 = vmatpush.msra.mxu0 %v1781_v48  ;;  %2345 = vmatpush.msra.mxu1 %v1781_v48  ;;  %v4975_v3 = vld [vmem:[#allocation39_spill] sm:$0xff]  ;;  %v4976_v46 = vld [vmem:[#allocation98_spill] sm:$0xff]  ;;  %v4978_v39 = vld [vmem:[#allocation25_spill] sm:$0xff] }
 0x20d   : > { %1235 = vrot.lane.b32.xlu2 %v4967_v35, %s2403_s8  ;;  %2346 = vmatpush.msra.mxu2 %v1781_v48  ;;  %v1538_v16 = vsel %vm1513_vm3, %v4975_v3, %v4974_v11  ;;  %v4977_v61 = vld [vmem:[#allocation34_spill] sm:$0xff] }
 0x20e   : > { %1247 = vrot.lane.b32.xlu0 %v2668_v59, %s2403_s8  ;;  %v1634_v59 = vsel %vm1612_vm6, %v1601_v37, %v3582_v9  ;;  %v1779_v9 = vld [vmem:[%s4590_s3 + $0x10] sm:$0xff]  ;;  %2347 = vmatpush.msra.mxu3 %v1781_v48  ;;  %v1536_v19 = vsel %vm1513_vm3, %v4977_v61, %v4976_v46 }
 0x20f   : > { %1451 = vrot.lane.b32.xlu1 %v4931_v2, %s2405_s10  ;;  %v1188_v22 = vpop.permute.xlu2 %1187  ;;  %v1632_v2 = vsel %vm1612_vm6, %v1599_v42, %v3525_v29  ;;  %v1780_v29 = vld [vmem:[%s4590_s3 + $0x18] sm:$0xff]  ;;  %v4979_v37 = vld [vmem:[#allocation124_spill] sm:$0xff]  ;;  %v1571_v42 = vsel %vm1546_vm4, %v1538_v16, %v4980_v14 }
 0x210   : > { %v3829_v43 = vsel %vm1645_vm7, %v1642_v32, %v1188_v22  ;;  %v1172_v54 = vpop.permute.xlu0 %1171  ;;  %1895 = vmatpush.msra.mxu0 %v1780_v29  ;;  %v1569_v12 = vsel %vm1546_vm4, %v1536_v19, %v4979_v37  ;;  %v4981_v32 = vld [vmem:[#allocation16_spill] sm:$0xff]  ;;  %v1778_v22 = vld [vmem:[%s4590_s3 + $0x8] sm:$0xff]  ;;  %2348 = vmatpush.msra.mxu1 %v1780_v29  ;;  %v1777_v19 = vld [vmem:[%s4590_s3] sm:$0xff] }
 0x211   : > { %4973 = vst [vmem:[#allocation87_spill] sm:$0xff] %v3829_v43  ;;  %v1168_v10 = vpop.permute.xlu1 %1167  ;;  %v3838_v8 = vsel %vm1645_vm7, %v1634_v59, %v1172_v54  ;;  %2349 = vmatpush.msra.mxu2 %v1780_v29  ;;  %2350 = vmatpush.msra.mxu3 %v1780_v29  ;;  %v4986_v14 = vld [vmem:[#allocation100_spill] sm:$0xff]  ;;  %v5013_v43 = vld [vmem:[#allocation11_spill] sm:$0xff] }
 0x212   : > { %v3835_v28 = vsel %vm1645_vm7, %v1632_v2, %v1168_v10  ;;  %1896 = vmatpush.msra.mxu0 %v1779_v9  ;;  %v4982_v2 = vld [vmem:[#allocation139_spill] sm:$0xff]  ;;  %v4983_v10 = vld [vmem:[#allocation146_spill] sm:$0xff]  ;;  %2351 = vmatpush.msra.mxu1 %v1779_v9 }
 0x213   : > { %v1604_v59 = vsel %vm1579_vm5, %v1571_v42, %v4982_v2  ;;  %v1602_v54 = vsel %vm1579_vm5, %v1569_v12, %v4983_v10  ;;  %2352 = vmatpush.msra.mxu2 %v1779_v9  ;;  %2353 = vmatpush.msra.mxu3 %v1779_v9  ;;  %v4987_v42 = vld [vmem:[#allocation38_spill] sm:$0xff]  ;;  %v4989_v2 = vld [vmem:[#allocation9_spill] sm:$0xff] }
 0x214   : > { %1897 = vmatpush.msra.mxu0 %v1778_v22  ;;  %v1635_v11 = vsel %vm1612_vm6, %v1602_v54, %v3537_v23  ;;  %v1637_v16 = vsel %vm1612_vm6, %v1604_v59, %v3594_v49  ;;  %2354 = vmatpush.msra.mxu1 %v1778_v22  ;;  %v4984_v23 = vld [vmem:[#allocation94_spill] sm:$0xff]  ;;  %v1539_v29 = vsel %vm1513_vm3, %v4987_v42, %v4986_v14  ;;  %v4992_v54 = vld [vmem:[#allocation141_spill] sm:$0xff] }
 0x215   : > { %1343 = vrot.lane.b32.xlu2 %v4978_v39, %s2404_s9  ;;  %2355 = vmatpush.msra.mxu2 %v1778_v22  ;;  %v4985_v49 = vld [vmem:[#allocation42_spill] sm:$0xff]  ;;  %v1572_v59 = vsel %vm1546_vm4, %v1539_v29, %v4989_v2  ;;  %v4994_v2 = vld [vmem:[#allocation97_spill] sm:$0xff] }
 0x216   : > { %1261 = vrot.lane.b32.xlu0 %v4977_v61, %s2403_s8  ;;  %1898 = vmatpush.msra.mxu0 %v1777_v19  ;;  %v1541_v12 = vsel %vm1513_vm3, %v4985_v49, %v4984_v23  ;;  %v4990_v10 = vld [vmem:[#allocation14_spill] sm:$0xff] }
 0x217   : > { %1331 = vrot.lane.b32.xlu1 %v4981_v32, %s2404_s9  ;;  %v3869_v48 = vpop.permute.xlu2 %1225  ;;  %2356 = vmatpush.msra.mxu3 %v1778_v22  ;;  %v4988_v32 = vld [vmem:[#allocation60_spill] sm:$0xff]  ;;  %v1574_v9 = vsel %vm1546_vm4, %v1541_v12, %v4990_v10  ;;  %v4991_v22 = vld [vmem:[#allocation46_spill] sm:$0xff] }
 0x218   : > { %v1178_v61 = vpop.permute.xlu0 %1177  ;;  %2357 = vmatpush.msra.mxu1 %v1777_v19  ;;  %2358 = vmatpush.msra.mxu2 %v1777_v19 }
 0x219   : > { %v1174_v46 = vpop.permute.xlu1 %1173  ;;  %v3882_v37 = vsel %vm1645_vm7, %v1637_v16, %v1178_v61  ;;  %v4993_v16 = vld [vmem:[#allocation147_spill] sm:$0xff]  ;;  %2359 = vmatpush.msra.mxu3 %v1777_v19 }
 0x21a   : > { %v3879_v39 = vsel %vm1645_vm7, %v1635_v11, %v1174_v46  ;;  %v1607_v11 = vsel %vm1579_vm5, %v1574_v9, %v4992_v54  ;;  %v1605_v46 = vsel %vm1579_vm5, %v1572_v59, %v4993_v16  ;;  %v4995_v59 = vld [vmem:[#allocation51_spill] sm:$0xff] }
 0x21b   : > { %v1638_v23 = vsel %vm1612_vm6, %v1605_v46, %v3549_v62  ;;  %v1640_v12 = vsel %vm1612_vm6, %v1607_v11, %v3606_v4  ;;  %v1544_v10 = vsel %vm1513_vm3, %v4995_v59, %v4994_v2  ;;  %v4996_v9 = vld [vmem:[#allocation103_spill] sm:$0xff]  ;;  %v4997_v62 = vld [vmem:[#allocation49_spill] sm:$0xff]  ;;  %v4999_v11 = vld [vmem:[#allocation128_spill] sm:$0xff] }
 0x21c   : > { %v1542_v19 = vsel %vm1513_vm3, %v4991_v22, %v4996_v9  ;;  %v4998_v4 = vld [vmem:[#allocation127_spill] sm:$0xff]  ;;  %v1577_v16 = vsel %vm1546_vm4, %v1544_v10, %v4999_v11  ;;  %v5000_v46 = vld [vmem:[#allocation37_spill] sm:$0xff] }
 0x21d   : > { %1427 = vrot.lane.b32.xlu2 %v4988_v32, %s2405_s10  ;;  %v1575_v54 = vsel %vm1546_vm4, %v1542_v19, %v4998_v4 }
 0x21e   : > { %1439 = vrot.lane.b32.xlu0 %v4924_v15, %s2405_s10 }
 0x21f   : > { %1273 = vrot.lane.b32.xlu1 %v4991_v22, %s2403_s8  ;;  %v3904_v61 = vpop.permute.xlu2 %1227 }
 0x220   : > { %v1184_v29 = vpop.permute.xlu0 %1183 }
 0x221   : > { %v1180_v14 = vpop.permute.xlu1 %1179  ;;  %v3914_v32 = vsel %vm1645_vm7, %v1640_v12, %v1184_v29  ;;  %v5002_v12 = vld [vmem:[#allocation145_spill] sm:$0xff]  ;;  %v5003_v29 = vld [vmem:[#allocation150_spill] sm:$0xff] }
 0x222   : > { %v3911_v15 = vsel %vm1645_vm7, %v1638_v23, %v1180_v14  ;;  %v5001_v23 = vld [vmem:[#allocation83_spill] sm:$0xff]  ;;  %v1610_v14 = vsel %vm1579_vm5, %v1577_v16, %v5002_v12  ;;  %v1608_v22 = vsel %vm1579_vm5, %v1575_v54, %v5003_v29  ;;  %v5005_v16 = vld [vmem:[#allocation106_spill] sm:$0xff]  ;;  %v5008_v12 = vld [vmem:[#allocation65_spill] sm:$0xff] }
 0x223   : > { %v1641_v9 = vsel %vm1612_vm6, %v1608_v22, %v3564_v36  ;;  %v1643_v10 = vsel %vm1612_vm6, %v1610_v14, %v3618_v33  ;;  %v2380_v36 = vunpack.i.l.bf16 %v5008_v12  ;;  %v5009_v29 = vld [vmem:[#allocation23_spill] sm:$0xff]  ;;  %v5010_v14 = vld [vmem:[#allocation108_spill] sm:$0xff] }
 0x224   : > { %v2385_v22 = vunpack.i.l.bf16 %v5010_v14 }
 0x225   : > { %1369 = vrot.lane.b32.xlu2 %v4997_v62, %s2404_s9 }
 0x226   : > { %1453 = vrot.lane.b32.xlu0 %v5001_v23, %s2405_s10  ;;  %v5007_v23 = vld [vmem:[#allocation15_spill] sm:$0xff] }
 0x227   : > { %1357 = vrot.lane.b32.xlu1 %v5000_v46, %s2404_s9  ;;  %v3936_v2 = vpop.permute.xlu2 %1229  ;;  %v5006_v46 = vld [vmem:[#allocation50_spill] sm:$0xff] }
 0x228   : > { %v1190_v62 = vpop.permute.xlu0 %1189  ;;  %v1545_v54 = vsel %vm1513_vm3, %v5006_v46, %v5005_v16 }
 0x229   : > { %v1186_v19 = vpop.permute.xlu1 %1185  ;;  %v3946_v11 = vsel %vm1645_vm7, %v1643_v10, %v1190_v62  ;;  %v1578_v33 = vsel %vm1546_vm4, %v1545_v54, %v5009_v29  ;;  %v5012_v29 = vld [vmem:[#allocation3_spill] sm:$0xff] }
 0x22a   : > { %v3943_v4 = vsel %vm1645_vm7, %v1641_v9, %v1186_v19  ;;  %5004 = vst [vmem:[#allocation19_spill] sm:$0xff] %v3946_v11  ;;  %v5011_v9 = vld [vmem:[#allocation153_spill] sm:$0xff] }
 0x22b   : > { %v1611_v10 = vsel %vm1579_vm5, %v1578_v33, %v5011_v9  ;;  %v5014_v33 = vld [vmem:[#allocation154_spill] sm:$0xff] }
 0x22c   : > { %v1644_v62 = vsel %vm1612_vm6, %v1611_v10, %v3580_v40  ;;  %v5015_v40 = vld [vmem:[#allocation27_spill] sm:$0xff]  ;;  %v2381_v10 = vunpack.i.h.bf16 %v5008_v12 }
 0x22d   : > { %1237 = vrot.lane.b32.xlu2 %v5007_v23, %s2403_s8 }
 0x22e   : > { %1249 = vrot.lane.b32.xlu0 %v4952_v57, %s2403_s8 }
 0x22f   : > { %1465 = vrot.lane.b32.xlu1 %v3134_v26, %s2405_s10  ;;  %v3963_v19 = vpop.permute.xlu2 %1337  ;;  %v1514_v26 = vsel %vm1513_vm3, %v5012_v29, %v2380_v36  ;;  %v5016_v36 = vld [vmem:[#allocation20_spill] sm:$0xff] }
 0x230   : > { %v1322_v11 = vpop.permute.xlu0 %1321  ;;  %v1547_v57 = vsel %vm1546_vm4, %v1514_v26, %v2385_v22 }
 0x231   : > { %v1192_v16 = vpop.permute.xlu1 %1191  ;;  %v1580_v44 = vsel %vm1579_vm5, %v1547_v57, %v5013_v43  ;;  %v2386_v43 = vunpack.i.h.bf16 %v5010_v14  ;;  %v5017_v57 = vld [vmem:[#allocation2_spill] sm:$0xff]  ;;  %v5018_v14 = vld [vmem:[#allocation129_spill] sm:$0xff] }
 0x232   : > { %v3968_v54 = vsel %vm1645_vm7, %v1644_v62, %v1192_v16  ;;  %v1613_v9 = vsel %vm1612_vm6, %v1580_v44, %v5014_v33  ;;  %v1515_v33 = vsel %vm1513_vm3, %v5017_v57, %v2381_v10  ;;  %v5021_v10 = vld [vmem:[#allocation72_spill] sm:$0xff] }
 0x233   : > { %v1646_v62 = vsel %vm1645_vm7, %v1613_v9, %v3620_v20 }
 0x234   : > { %v1679_v44 = vsel %vm1678_vm8, %v1646_v62, %v3869_v48  ;;  %v5019_v48 = vld [vmem:[#allocation57_spill] sm:$0xff]  ;;  %v5020_v62 = vld [vmem:[#allocation63_spill] sm:$0xff] }
 0x235   : > { %1345 = vrot.lane.b32.xlu2 %v5015_v40, %s2404_s9  ;;  %v1712_v12 = vsel %vm1711_vm9, %v1679_v44, %v1322_v11 }
 0x236   : > { %1263 = vrot.lane.b32.xlu0 %v2766_v41, %s2403_s8  ;;  %v1548_v41 = vsel %vm1546_vm4, %v1515_v33, %v2386_v43  ;;  %v5022_v33 = vld [vmem:[#allocation70_spill] sm:$0xff] }
 0x237   : > { %1333 = vrot.lane.b32.xlu1 %v5016_v36, %s2404_s9  ;;  %v3989_v22 = vpop.permute.xlu2 %1231  ;;  %v1581_v9 = vsel %vm1579_vm5, %v1548_v41, %v5018_v14 }
 0x238   : > { %v1324_v26 = vpop.permute.xlu0 %1323  ;;  %v1614_v40 = vsel %vm1612_vm6, %v1581_v9, %v5019_v48  ;;  %v5025_v9 = vld [vmem:[#allocation130_spill] sm:$0xff] }
 0x239   : > { %v1418_v16 = vpop.permute.xlu1 %1417  ;;  %v1647_v11 = vsel %vm1645_vm7, %v1614_v40, %v3630_v56  ;;  %v5023_v56 = vld [vmem:[#allocation6_spill] sm:$0xff] }
 0x23a   : > { %v1745_v20 = vsel %vm1744_vm10, %v1712_v12, %v1418_v16  ;;  %v1680_v36 = vsel %vm1678_vm8, %v1647_v11, %v3904_v61  ;;  %v1516_v41 = vsel %vm1513_vm3, %v5023_v56, %v5022_v33  ;;  %v5026_v61 = vld [vmem:[#allocation53_spill] sm:$0xff]  ;;  %v5029_v11 = vld [vmem:[#allocation82_spill] sm:$0xff] }
 0x23b   : > { %2297 = vmatmul.msk.f32.vlgmr.msra.gmra.mxu0 %vm1786_vm11, %v1745_v20  ;;  %v1713_v44 = vsel %vm1711_vm9, %v1680_v36, %v1324_v26  ;;  %v5027_v26 = vld [vmem:[#allocation155_spill] sm:$0xff] }
 0x23d   : > { %1429 = vrot.lane.b32.xlu2 %v5020_v62, %s2405_s10  ;;  %v5028_v62 = vld [vmem:[#allocation41_spill] sm:$0xff] }
 0x23e   : > { %1441 = vrot.lane.b32.xlu0 %v5021_v10, %s2405_s10 }
 0x23f   : > { %1275 = vrot.lane.b32.xlu1 %v4962_v5, %s2403_s8  ;;  %v1340_v43 = vpop.permute.xlu2 %1339  ;;  %v5024_v5 = vld [vmem:[#allocation99_spill] sm:$0xff] }
 0x240   : > { %v1242_v16 = vpop.permute.xlu0 %1241  ;;  %v1549_v14 = vsel %vm1546_vm4, %v1516_v41, %v5024_v5  ;;  %v5031_v41 = vld [vmem:[#allocation104_spill] sm:$0xff] }
 0x241   : > { %v1420_v12 = vpop.permute.xlu1 %1419  ;;  %v1582_v48 = vsel %vm1579_vm5, %v1549_v14, %v5025_v9  ;;  %v5032_v9 = vld [vmem:[#allocation135_spill] sm:$0xff] }
 0x242   : > { %v1746_v20 = vsel %vm1744_vm10, %v1713_v44, %v1420_v12  ;;  %v1615_v40 = vsel %vm1612_vm6, %v1582_v48, %v5027_v26  ;;  %v5030_v44 = vld [vmem:[#allocation80_spill] sm:$0xff] }
 0x243   : > { %2298 = vmatmul.msk.f32.gmra.mxu0 %vm1786_vm11, %v1746_v20  ;;  %v1648_v10 = vsel %vm1645_vm7, %v1615_v40, %v3592_v7  ;;  %v1522_v12 = vsel %vm1513_vm3, %v2586_v30, %v5030_v44  ;;  %v5034_v40 = vld [vmem:[#allocation17_spill] sm:$0xff] }
 0x244   : > { %v1681_v20 = vsel %vm1678_vm8, %v1648_v10, %v3936_v2  ;;  %v1555_v5 = vsel %vm1546_vm4, %v1522_v12, %v5031_v41  ;;  %v5036_v10 = vld [vmem:[#allocation93_spill] sm:$0xff] }
 0x245   : > { %1371 = vrot.lane.b32.xlu2 %v5026_v61, %s2404_s9  ;;  %v1588_v48 = vsel %vm1579_vm5, %v1555_v5, %v5032_v9  ;;  %v5033_v61 = vld [vmem:[#allocation158_spill] sm:$0xff]  ;;  %v5037_v44 = vld [vmem:[#allocation113_spill] sm:$0xff] }
 0x246   : > { %1455 = vrot.lane.b32.xlu0 %v5029_v11, %s2405_s10  ;;  %v1621_v26 = vsel %vm1612_vm6, %v1588_v48, %v5033_v61  ;;  %v5040_v48 = vld [vmem:[#allocation31_spill] sm:$0xff] }
 0x247   : > { %1359 = vrot.lane.b32.xlu1 %v5028_v62, %s2404_s9  ;;  %v1436_v36 = vpop.permute.xlu2 %1435  ;;  %v1654_v30 = vsel %vm1645_vm7, %v1621_v26, %v3616_v63  ;;  %v5035_v62 = vld [vmem:[#allocation66_spill] sm:$0xff] }
 0x248   : > { %v1422_v56 = vpop.permute.xlu0 %1421  ;;  %v1687_v2 = vsel %vm1678_vm8, %v1654_v30, %v1242_v16  ;;  %v1523_v11 = vsel %vm1513_vm3, %v4967_v35, %v5035_v62  ;;  %v5038_v63 = vld [vmem:[#allocation22_spill] sm:$0xff]  ;;  %v5043_v62 = vld [vmem:[#allocation7_spill] sm:$0xff] }
 0x249   : > { %v1326_v33 = vpop.permute.xlu1 %1325  ;;  %v1556_v12 = vsel %vm1546_vm4, %v1523_v11, %v5037_v44  ;;  %v1720_v41 = vsel %vm1711_vm9, %v1687_v2, %v3963_v19  ;;  %v5039_v35 = vld [vmem:[#allocation78_spill] sm:$0xff]  ;;  %v5042_v2 = vld [vmem:[#allocation69_spill] sm:$0xff] }
 0x24a   : > { %v1714_v14 = vsel %vm1711_vm9, %v1681_v20, %v1326_v33  ;;  %v1589_v16 = vsel %vm1579_vm5, %v1556_v12, %v5038_v63  ;;  %v1517_v11 = vsel %vm1513_vm3, %v5043_v62, %v5042_v2  ;;  %v5045_v12 = vld [vmem:[#allocation13_spill] sm:$0xff]  ;;  %v5055_v2 = vld [vmem:[#allocation64_spill] sm:$0xff] }
 0x24b   : > { %v1747_v7 = vsel %vm1744_vm10, %v1714_v14, %v1422_v56  ;;  %v1622_v5 = vsel %vm1612_vm6, %v1589_v16, %v5039_v35  ;;  %v5047_v16 = vld [vmem:[#allocation62_spill] sm:$0xff] }
 0x24c   : > { %2299 = vmatmul.msk.f32.gmra.mxu0 %vm1786_vm11, %v1747_v7  ;;  %v5041_v7 = vld [vmem:[#allocation21_spill] sm:$0xff] }
 0x24d   : > { %1239 = vrot.lane.b32.xlu2 %v5034_v40, %s2403_s8 }
 0x24e   : > { %1251 = vrot.lane.b32.xlu0 %v2682_v31, %s2403_s8  ;;  %v1655_v31 = vsel %vm1645_vm7, %v1622_v5, %v3675_v55 }
 0x24f   : > { %1467 = vrot.lane.b32.xlu1 %v5036_v10, %s2405_s10  ;;  %v4059_v20 = vpop.permute.xlu2 %1233  ;;  %v5044_v10 = vld [vmem:[#allocation109_spill] sm:$0xff] }
 0x250   : > { %v1244_v56 = vpop.permute.xlu0 %1243  ;;  %v1550_v44 = vsel %vm1546_vm4, %v1517_v11, %v5044_v10 }
 0x251   : > { %v1434_v33 = vpop.permute.xlu1 %1433  ;;  %v1688_v9 = vsel %vm1678_vm8, %v1655_v31, %v1244_v56  ;;  %v1583_v63 = vsel %vm1579_vm5, %v1550_v44, %v5045_v12 }
 0x252   : > { %v1753_v14 = vsel %vm1744_vm10, %v1720_v41, %v1434_v33  ;;  %v1721_v19 = vsel %vm1711_vm9, %v1688_v9, %v1340_v43  ;;  %v5048_v33 = vld [vmem:[#allocation71_spill] sm:$0xff]  ;;  %v5049_v9 = vld [vmem:[#allocation81_spill] sm:$0xff] }
 0x253   : > { %2305 = vmatmul.msk.f32.vlgmr.msra.gmra.mxu1 %vm1786_vm11, %v1753_v14  ;;  %v1754_v55 = vsel %vm1744_vm10, %v1721_v19, %v1436_v36 }
 0x255   : > { %1347 = vrot.lane.b32.xlu2 %v5040_v48, %s2404_s9 }
 0x256   : > { %1265 = vrot.lane.b32.xlu0 %v4975_v3, %s2403_s8  ;;  %v5046_v3 = vld [vmem:[#allocation67_spill] sm:$0xff] }
 0x257   : > { %1335 = vrot.lane.b32.xlu1 %v5041_v7, %s2404_s9  ;;  %v1342_v61 = vpop.permute.xlu2 %1341  ;;  %v1616_v43 = vsel %vm1612_vm6, %v1583_v63, %v5046_v3  ;;  %v5051_v7 = vld [vmem:[#allocation52_spill] sm:$0xff] }
 0x258   : > { %v1258_v30 = vpop.permute.xlu0 %1257  ;;  %v1649_v36 = vsel %vm1645_vm7, %v1616_v43, %v3632_v1  ;;  %v1524_v1 = vsel %vm1513_vm3, %v5007_v23, %v5049_v9 }
 0x259   : > { %v1328_v26 = vpop.permute.xlu1 %1327  ;;  %v1682_v56 = vsel %vm1678_vm8, %v1649_v36, %v3989_v22  ;;  %v5052_v22 = vld [vmem:[#allocation136_spill] sm:$0xff]  ;;  %v1695_v23 = vsel %vm1678_vm8, %v3781_v45, %v1258_v30 }
 0x25a   : > { %v1715_v35 = vsel %vm1711_vm9, %v1682_v56, %v1328_v26  ;;  %v5053_v26 = vld [vmem:[#allocation40_spill] sm:$0xff]  ;;  %v5057_v56 = vld [vmem:[#allocation75_spill] sm:$0xff] }
 0x25b   : > { %2306 = vmatmul.msk.f32.gmra.mxu1 %vm1786_vm11, %v1754_v55  ;;  %v5054_v55 = vld [vmem:[#allocation84_spill] sm:$0xff] }
 0x25d   : > { %1431 = vrot.lane.b32.xlu2 %v5047_v16, %s2405_s10 }
 0x25e   : > { %1443 = vrot.lane.b32.xlu0 %v5048_v33, %s2405_s10 }
 0x25f   : > { %1277 = vrot.lane.b32.xlu1 %v4995_v59, %s2403_s8  ;;  %v1438_v41 = vpop.permute.xlu2 %1437  ;;  %v5050_v59 = vld [vmem:[#allocation114_spill] sm:$0xff] }
 0x260   : > { %v1354_v14 = vpop.permute.xlu0 %1353  ;;  %v1557_v48 = vsel %vm1546_vm4, %v1524_v1, %v5050_v59 }
 0x261   : > { %v1424_v5 = vpop.permute.xlu1 %1423  ;;  %v1590_v19 = vsel %vm1579_vm5, %v1557_v48, %v5052_v22  ;;  %v1728_v44 = vsel %vm1711_vm9, %v1695_v23, %v1354_v14  ;;  %v5065_v23 = vld [vmem:[#allocation58_spill] sm:$0xff] }
 0x262   : > { %v1748_v31 = vsel %vm1744_vm10, %v1715_v35, %v1424_v5  ;;  %v1623_v62 = vsel %vm1612_vm6, %v1590_v19, %v5055_v2  ;;  %v5058_v35 = vld [vmem:[#allocation110_spill] sm:$0xff]  ;;  %v5059_v5 = vld [vmem:[#allocation131_spill] sm:$0xff] }
 0x263   : > { %2300 = vmatmul.msk.f32.gmra.mxu0 %vm1786_vm11, %v1748_v31  ;;  %v1656_v10 = vsel %vm1645_vm7, %v1623_v62, %v3695_v52  ;;  %v5056_v52 = vld [vmem:[#allocation30_spill] sm:$0xff] }
 0x265   : > { %1373 = vrot.lane.b32.xlu2 %v5051_v7, %s2404_s9 }
 0x266   : > { %1457 = vrot.lane.b32.xlu0 %v5054_v55, %s2405_s10 }
 0x267   : > { %1361 = vrot.lane.b32.xlu1 %v5053_v26, %s2404_s9  ;;  %v1236_v11 = vpop.permute.xlu2 %1235 }
 0x268   : > { %v1246_v63 = vpop.permute.xlu0 %1245 }
 0x269   : > { %v1450_v12 = vpop.permute.xlu1 %1449  ;;  %v1689_v3 = vsel %vm1678_vm8, %v1656_v10, %v1246_v63  ;;  %v1519_v10 = vsel %vm1513_vm3, %v2511_v50, %v5065_v23  ;;  %v5067_v63 = vld [vmem:[#allocation133_spill] sm:$0xff] }
 0x26a   : > { %v1761_v43 = vsel %vm1744_vm10, %v1728_v44, %v1450_v12  ;;  %v1722_v16 = vsel %vm1711_vm9, %v1689_v3, %v1342_v61  ;;  %v1518_v61 = vsel %vm1513_vm3, %v2520_v53, %v5057_v56  ;;  %v5061_v53 = vld [vmem:[#allocation73_spill] sm:$0xff] }
 0x26b   : > { %2313 = vmatmul.msk.f32.vlgmr.msra.gmra.mxu2 %vm1786_vm11, %v1761_v43  ;;  %v1755_v36 = vsel %vm1744_vm10, %v1722_v16, %v1438_v41  ;;  %v1551_v41 = vsel %vm1546_vm4, %v1518_v61, %v5058_v35  ;;  %v5066_v44 = vld [vmem:[#allocation101_spill] sm:$0xff]  ;;  %v5069_v16 = vld [vmem:[#allocation96_spill] sm:$0xff] }
 0x26c   : > { %2307 = vmatmul.msk.f32.gmra.mxu1 %vm1786_vm11, %v1755_v36  ;;  %v1584_v14 = vsel %vm1579_vm5, %v1551_v41, %v5059_v5  ;;  %v1552_v12 = vsel %vm1546_vm4, %v1519_v10, %v5066_v44  ;;  %v5070_v36 = vld [vmem:[#allocation32_spill] sm:$0xff]  ;;  %v5073_v41 = vld [vmem:[#allocation107_spill] sm:$0xff] }
 0x26d   : > { %1253 = vrot.lane.b32.xlu2 %v4950_v38, %s2403_s8  ;;  %v5060_v38 = vld [vmem:[#allocation148_spill] sm:$0xff]  ;;  %v1585_v3 = vsel %vm1579_vm5, %v1552_v12, %v5067_v63  ;;  %v5082_v12 = vld [vmem:[#allocation161_spill] sm:$0xff] }
 0x26e   : > { %1349 = vrot.lane.b32.xlu0 %v5056_v52, %s2404_s9  ;;  %v1617_v31 = vsel %vm1612_vm6, %v1584_v14, %v5060_v38  ;;  %v5071_v52 = vld [vmem:[#allocation163_spill] sm:$0xff]  ;;  %v5074_v38 = vld [vmem:[#allocation138_spill] sm:$0xff]  ;;  %v5083_v63 = vld [vmem:[#allocation120_spill] sm:$0xff] }
 0x26f   : > { %1469 = vrot.lane.b32.xlu1 %v3137_v24, %s2405_s10  ;;  %v1344_v45 = vpop.permute.xlu2 %1343  ;;  %v1650_v24 = vsel %vm1645_vm7, %v1617_v31, %v3651_v27  ;;  %v5062_v27 = vld [vmem:[#allocation54_spill] sm:$0xff] }
 0x270   : > { %v1260_v33 = vpop.permute.xlu0 %1259  ;;  %v1683_v9 = vsel %vm1678_vm8, %v1650_v24, %v4059_v20 }
 0x271   : > { %v1330_v30 = vpop.permute.xlu1 %1329  ;;  %v1696_v20 = vsel %vm1678_vm8, %v3671_v0, %v1260_v33  ;;  %v5068_v0 = vld [vmem:[#allocation156_spill] sm:$0xff]  ;;  %v5072_v33 = vld [vmem:[#allocation86_spill] sm:$0xff] }
 0x272   : > { %v1716_v59 = vsel %vm1711_vm9, %v1683_v9, %v1330_v30  ;;  %v1618_v43 = vsel %vm1612_vm6, %v1585_v3, %v5068_v0  ;;  %v1525_v56 = vsel %vm1513_vm3, %v5034_v40, %v5072_v33  ;;  %v5076_v40 = vld [vmem:[#allocation164_spill] sm:$0xff]  ;;  %v5087_v33 = vld [vmem:[#allocation126_spill] sm:$0xff] }
 0x273   : > { %v1651_v50 = vsel %vm1645_vm7, %v1618_v43, %v5071_v52  ;;  %v1558_v5 = vsel %vm1546_vm4, %v1525_v56, %v5073_v41  ;;  %v5091_v41 = vld [vmem:[#allocation90_spill] sm:$0xff] }
 0x274   : > { %v1684_v61 = vsel %vm1678_vm8, %v1651_v50, %v1236_v11  ;;  %v1591_v31 = vsel %vm1579_vm5, %v1558_v5, %v5074_v38  ;;  %v5093_v38 = vld [vmem:[#allocation18_spill] sm:$0xff] }
 0x275   : > { %1279 = vrot.lane.b32.xlu2 %v5006_v46, %s2403_s8  ;;  %v5064_v46 = vld [vmem:[#allocation89_spill] sm:$0xff] }
 0x276   : > { %1445 = vrot.lane.b32.xlu0 %v5061_v53, %s2405_s10  ;;  %v5075_v53 = vld [vmem:[#allocation159_spill] sm:$0xff] }
 0x277   : > { %1267 = vrot.lane.b32.xlu1 %v4987_v42, %s2403_s8  ;;  %v1428_v1 = vpop.permute.xlu2 %1427  ;;  %v5063_v42 = vld [vmem:[#allocation43_spill] sm:$0xff]  ;;  %v1624_v9 = vsel %vm1612_vm6, %v1591_v31, %v5075_v53 }
 0x278   : > { %v1356_v7 = vpop.permute.xlu0 %1355  ;;  %v1657_v11 = vsel %vm1645_vm7, %v1624_v9, %v5076_v40  ;;  %v5094_v40 = vld [vmem:[#allocation115_spill] sm:$0xff] }
 0x279   : > { %v1426_v48 = vpop.permute.xlu1 %1425  ;;  %v1729_v26 = vsel %vm1711_vm9, %v1696_v20, %v1356_v7  ;;  %v5078_v7 = vld [vmem:[#allocation77_spill] sm:$0xff]  ;;  %v5079_v20 = vld [vmem:[#allocation144_spill] sm:$0xff] }
 0x27a   : > { %v1749_v22 = vsel %vm1744_vm10, %v1716_v59, %v1426_v48  ;;  %v5077_v48 = vld [vmem:[#allocation119_spill] sm:$0xff] }
 0x27b   : > { %2301 = vmatmul.msk.f32.gmra.mxu0 %vm1786_vm11, %v1749_v22 }
 0x27d   : > { %1375 = vrot.lane.b32.xlu2 %v5062_v27, %s2404_s9 }
 0x27e   : > { %1459 = vrot.lane.b32.xlu0 %v5064_v46, %s2405_s10 }
 0x27f   : > { %1363 = vrot.lane.b32.xlu1 %v5063_v42, %s2404_s9  ;;  %v1370_v19 = vpop.permute.xlu2 %1369 }
 0x280   : > { %v1248_v2 = vpop.permute.xlu0 %1247 }
 0x281   : > { %v1452_v55 = vpop.permute.xlu1 %1451  ;;  %v1690_v59 = vsel %vm1678_vm8, %v1657_v11, %v1248_v2 }
 0x282   : > { %v1762_v62 = vsel %vm1744_vm10, %v1729_v26, %v1452_v55  ;;  %v1723_v42 = vsel %vm1711_vm9, %v1690_v59, %v1344_v45  ;;  %v5080_v26 = vld [vmem:[#allocation48_spill] sm:$0xff] }
 0x283   : > { %2314 = vmatmul.msk.f32.gmra.mxu2 %vm1786_vm11, %v1762_v62 }
 0x285   : > { %1255 = vrot.lane.b32.xlu2 %v4965_v25, %s2403_s8 }
 0x286   : > { %1351 = vrot.lane.b32.xlu0 %v5070_v36, %s2404_s9  ;;  %v5084_v36 = vld [vmem:[#allocation61_spill] sm:$0xff] }
 0x287   : > { %1471 = vrot.lane.b32.xlu1 %v5069_v16, %s2405_s10  ;;  %v1238_v30 = vpop.permute.xlu2 %1237 }
 0x288   : > { %v1262_v35 = vpop.permute.xlu0 %1261 }
 0x289   : > { %v1332_v25 = vpop.permute.xlu1 %1331  ;;  %v1697_v2 = vsel %vm1678_vm8, %v3784_v6, %v1262_v35  ;;  %v5090_v35 = vld [vmem:[#allocation47_spill] sm:$0xff] }
 0x28a   : > { %v1717_v14 = vsel %vm1711_vm9, %v1684_v61, %v1332_v25  ;;  %v5088_v61 = vld [vmem:[#allocation143_spill] sm:$0xff]  ;;  %v5089_v25 = vld [vmem:[#allocation157_spill] sm:$0xff] }
 0x28b   : > { %v1750_v24 = vsel %vm1744_vm10, %v1717_v14, %v1428_v1  ;;  %v5092_v14 = vld [vmem:[#allocation68_spill] sm:$0xff] }
 0x28c   : > { %2302 = vmatmul.msk.f32.gmra.mxu0 %vm1786_vm11, %v1750_v24  ;;  %v1526_v31 = vsel %vm1513_vm3, %v5093_v38, %v5092_v14  ;;  %v5105_v38 = vld [vmem:[#allocation134_spill] sm:$0xff] }
 0x28d   : > { %1281 = vrot.lane.b32.xlu2 %v5077_v48, %s2403_s8  ;;  %v1559_v11 = vsel %vm1546_vm4, %v1526_v31, %v5094_v40  ;;  %v5106_v31 = vld [vmem:[#allocation151_spill] sm:$0xff] }
 0x28e   : > { %1447 = vrot.lane.b32.xlu0 %v5078_v7, %s2405_s10  ;;  %v5095_v7 = vld [vmem:[#allocation26_spill] sm:$0xff] }
 0x28f   : > { %1269 = vrot.lane.b32.xlu1 %v4948_v21, %s2403_s8  ;;  %v1346_v1 = vpop.permute.xlu2 %1345  ;;  %v5081_v21 = vld [vmem:[#allocation88_spill] sm:$0xff] }
 0x290   : > { %v1440_v27 = vpop.permute.xlu0 %1439 }
 0x291   : > { %v1274_v22 = vpop.permute.xlu1 %1273  ;;  %v1756_v46 = vsel %vm1744_vm10, %v1723_v42, %v1440_v27  ;;  %v5096_v27 = vld [vmem:[#allocation160_spill] sm:$0xff] }
 0x292   : > { %2308 = vmatmul.msk.f32.gmra.mxu1 %vm1786_vm11, %v1756_v46  ;;  %v1703_v44 = vsel %vm1678_vm8, %v3882_v37, %v1274_v22  ;;  %v5085_v37 = vld [vmem:[#allocation10_spill] sm:$0xff]  ;;  %v1592_v22 = vsel %vm1579_vm5, %v1559_v11, %v5095_v7 }
 0x293   : > { %v1736_v43 = vsel %vm1711_vm9, %v1703_v44, %v1370_v19  ;;  %v1520_v52 = vsel %vm1513_vm3, %v5085_v37, %v5084_v36  ;;  %v1625_v42 = vsel %vm1612_vm6, %v1592_v22, %v5096_v27 }
 0x295   : > { %1377 = vrot.lane.b32.xlu2 %v5079_v20, %s2404_s9  ;;  %v5097_v20 = vld [vmem:[#allocation162_spill] sm:$0xff] }
 0x296   : > { %1461 = vrot.lane.b32.xlu0 %v5081_v21, %s2405_s10 }
 0x297   : > { %1365 = vrot.lane.b32.xlu1 %v5080_v26, %s2404_s9  ;;  %v1430_v55 = vpop.permute.xlu2 %1429  ;;  %v5098_v26 = vld [vmem:[#allocation4_spill] sm:$0xff] }
 0x298   : > { %v1454_v23 = vpop.permute.xlu0 %1453 }
 0x299   : > { %v1358_v62 = vpop.permute.xlu1 %1357 }
 0x29a   : > { %v1730_v45 = vsel %vm1711_vm9, %v1697_v2, %v1358_v62 }
 0x29b   : > { %v1763_v10 = vsel %vm1744_vm10, %v1730_v45, %v1454_v23 }
 0x29c   : > { %2315 = vmatmul.msk.f32.gmra.mxu2 %vm1786_vm11, %v1763_v10 }
 0x29d   : > { %1271 = vrot.lane.b32.xlu2 %v4985_v49, %s2403_s8  ;;  %v5086_v49 = vld [vmem:[#allocation111_spill] sm:$0xff] }
 0x29e   : > { %1283 = vrot.lane.b32.xlu0 %v5083_v63, %s2403_s8  ;;  %v1553_v50 = vsel %vm1546_vm4, %v1520_v52, %v5086_v49 }
 0x29f   : > { %1473 = vrot.lane.b32.xlu1 %v5082_v12, %s2405_s10  ;;  %v1372_v6 = vpop.permute.xlu2 %1371  ;;  %v1586_v56 = vsel %vm1579_vm5, %v1553_v50, %v5087_v33 }
 0x2a0   : > { %v1250_v0 = vpop.permute.xlu0 %1249  ;;  %v1619_v19 = vsel %vm1612_vm6, %v1586_v56, %v5089_v25  ;;  %v5102_v25 = vld [vmem:[#allocation76_spill] sm:$0xff] }
 0x2a1   : > { %v1466_v3 = vpop.permute.xlu1 %1465  ;;  %v1652_v5 = vsel %vm1645_vm7, %v1619_v19, %v3653_v13  ;;  %v5103_v19 = vld [vmem:[#allocation8_spill] sm:$0xff] }
 0x2a2   : > { %v1769_v16 = vsel %vm1744_vm10, %v1736_v43, %v1466_v3  ;;  %v1685_v24 = vsel %vm1678_vm8, %v1652_v5, %v1238_v30  ;;  %v1658_v30 = vsel %vm1645_vm7, %v1625_v42, %v3697_v17  ;;  %v5101_v43 = vld [vmem:[#allocation56_spill] sm:$0xff] }
 0x2a3   : > { %2321 = vmatmul.msk.f32.vlgmr.msra.gmra.mxu3 %vm1786_vm11, %v1769_v16  ;;  %v1691_v46 = vsel %vm1678_vm8, %v1658_v30, %v1250_v0  ;;  %v5104_v5 = vld [vmem:[#allocation112_spill] sm:$0xff] }
 0x2a4   : > { %v1724_v2 = vsel %vm1711_vm9, %v1691_v46, %v1346_v1  ;;  %v5100_v1 = vld [vmem:[#allocation5_spill] sm:$0xff] }
 0x2a5   : > { %1379 = vrot.lane.b32.xlu2 %v5088_v61, %s2404_s9 }
 0x2a6   : > { %1463 = vrot.lane.b32.xlu0 %v5091_v41, %s2405_s10 }
 0x2a7   : > { %1367 = vrot.lane.b32.xlu1 %v5090_v35, %s2404_s9  ;;  %v1240_v59 = vpop.permute.xlu2 %1239  ;;  %v1521_v35 = vsel %vm1513_vm3, %v5103_v19, %v5102_v25 }
 0x2a8   : > { %v1264_v9 = vpop.permute.xlu0 %1263  ;;  %v1554_v14 = vsel %vm1546_vm4, %v1521_v35, %v5104_v5 }
 0x2a9   : > { %v1334_v53 = vpop.permute.xlu1 %1333  ;;  %v1698_v45 = vsel %vm1678_vm8, %v3835_v28, %v1264_v9 }
 0x2aa   : > { %v1718_v48 = vsel %vm1711_vm9, %v1685_v24, %v1334_v53 }
 0x2ab   : > { %v1751_v13 = vsel %vm1744_vm10, %v1718_v48, %v1430_v55 }
 0x2ac   : > { %2303 = vmatmul.msk.f32.gmra.mxu0 %vm1786_vm11, %v1751_v13 }
 0x2ad   : > { %1285 = vrot.lane.b32.xlu2 %v5012_v29, %s2403_s8  ;;  %v5099_v29 = vld [vmem:[#allocation55_spill] sm:$0xff] }
 0x2ae   : > { %1381 = vrot.lane.b32.xlu0 %v5098_v26, %s2404_s9 }
 0x2af   : > { %1475 = vrot.lane.b32.xlu1 %v5097_v20, %s2405_s10  ;;  %v1348_v17 = vpop.permute.xlu2 %1347 }
 0x2b0   : > { %v1442_v55 = vpop.permute.xlu0 %1441 }
 0x2b1   : > { %v1276_v21 = vpop.permute.xlu1 %1275  ;;  %v1757_v62 = vsel %vm1744_vm10, %v1724_v2, %v1442_v55 }
 0x2b2   : > { %2309 = vmatmul.msk.f32.gmra.mxu1 %vm1786_vm11, %v1757_v62  ;;  %v1704_v63 = vsel %vm1678_vm8, %v3911_v15, %v1276_v21 }
 0x2b3   : > { %v1737_v50 = vsel %vm1711_vm9, %v1704_v63, %v1372_v6  ;;  %v1587_v6 = vsel %vm1579_vm5, %v1554_v14, %v5105_v38 }
 0x2b4   : > { %v1620_v24 = vsel %vm1612_vm6, %v1587_v6, %v5106_v31 }
 0x2b5   : > { %1287 = vrot.lane.b32.xlu2 %v5017_v57, %s2403_s8  ;;  %v1653_v53 = vsel %vm1645_vm7, %v1620_v24, %v3673_v60 }
 0x2b6   : > { %1383 = vrot.lane.b32.xlu0 %v5100_v1, %s2404_s9  ;;  %v1686_v40 = vsel %vm1678_vm8, %v1653_v53, %v1240_v59 }
 0x2b7   : > { %1477 = vrot.lane.b32.xlu1 %v5099_v29, %s2405_s10  ;;  %v1432_v3 = vpop.permute.xlu2 %1431 }
 0x2b8   : > { %v1900_v23 = vpop.f32.mrf.mxu0  ;;  %v1456_v10 = vpop.permute.xlu0 %1455 }
 0x2b9   : > { %1996 = vst.msk [vmem:[%s4281_s12] sm:$0xff] %vm1513_vm3, %v1900_v23  ;;  %v1360_v57 = vpop.permute.xlu1 %1359  ;;  %v2097_v0 = vmul.f32 %v1900_v23, %v1900_v23  ;;  %v2028_v28 = vsel %vm1513_vm3, %v1900_v23, 0.0 }
 0x2ba   : > { %v1731_v44 = vsel %vm1711_vm9, %v1698_v45, %v1360_v57 }
 0x2bb   : > { %v1764_v12 = vsel %vm1744_vm10, %v1731_v44, %v1456_v10  ;;  %v2129_v56 = vsel %vm1513_vm3, %v2097_v0, 0.0 }
 0x2bc   : > { %2316 = vmatmul.msk.f32.gmra.mxu2 %vm1786_vm11, %v1764_v12 }
 0x2bf   : > { %1479 = vrot.lane.b32.xlu1 %v5101_v43, %s2405_s10  ;;  %v1374_v9 = vpop.permute.xlu2 %1373  ;;  %s235_s10 = scalar_lea.vmem %s4592_s5, %s2296_s22 }
 0x2c0   : > { %v1903_v16 = vpop.f32.mrf.mxu0  ;;  %v1252_v49 = vpop.permute.xlu0 %1251 }
 0x2c1   : > { %1997 = vst.msk [vmem:[%s4281_s12 + $0x8] sm:$0xff] %vm1513_vm3, %v1903_v16  ;;  %v2029_v36 = vsel %vm1513_vm3, %v1903_v16, 0.0  ;;  %v2098_v37 = vmul.f32 %v1903_v16, %v1903_v16  ;;  %v1468_v52 = vpop.permute.xlu1 %1467  ;;  %v1692_v59 = vsel %vm1678_vm8, %v3736_v47, %v1252_v49 }
 0x2c2   : > { %v2030_v33 = vadd.f32 %v2029_v36, %v2028_v28  ;;  %v1770_v15 = vsel %vm1744_vm10, %v1737_v50, %v1468_v52  ;;  %v1725_v55 = vsel %vm1711_vm9, %v1692_v59, %v1348_v17 }
 0x2c3   : > { %v2130_v61 = vsel %vm1513_vm3, %v2098_v37, 0.0  ;;  %2322 = vmatmul.msk.f32.gmra.mxu3 %vm1786_vm11, %v1770_v15 }
 0x2c4   : > { %v2131_v41 = vadd.f32 %v2130_v61, %v2129_v56 }
 0x2c7   : > { %v1254_v2 = vpop.permute.xlu2 %1253 }
 0x2c8   : > { %v1266_v27 = vpop.permute.xlu0 %1265  ;;  %v1693_v37 = vsel %vm1678_vm8, %v3649_v34, %v1254_v2 }
 0x2c9   : > { %v1336_v11 = vpop.permute.xlu1 %1335  ;;  %v1906_v48 = vpop.f32.mrf.mxu0  ;;  %v1699_v47 = vsel %vm1678_vm8, %v3693_v18, %v1266_v27 }
 0x2ca   : > { %v1719_v7 = vsel %vm1711_vm9, %v1686_v40, %v1336_v11  ;;  %1998 = vst.msk [vmem:[%s4281_s12 + $0x10] sm:$0xff] %vm1513_vm3, %v1906_v48  ;;  %v2031_v22 = vsel %vm1513_vm3, %v1906_v48, 0.0  ;;  %v2099_v13 = vmul.f32 %v1906_v48, %v1906_v48 }
 0x2cb   : > { %v2032_v42 = vadd.f32 %v2031_v22, %v2030_v33  ;;  %v1752_v30 = vsel %vm1744_vm10, %v1719_v7, %v1432_v3 }
 0x2cc   : > { %v2132_v60 = vsel %vm1513_vm3, %v2099_v13, 0.0  ;;  %2304 = vmatmul.msk.f32.gmra.mxu0 %vm1786_vm11, %v1752_v30 }
 0x2cd   : > { %v2133_v46 = vadd.f32 %v2132_v60, %v2131_v41 }
 0x2cf   : > { %v1280_v17 = vpop.permute.xlu2 %1279 }
 0x2d0   : > { %v4328_v20 = vpop.f32.mrf.mxu1  ;;  %v1444_v21 = vpop.permute.xlu0 %1443  ;;  %v1706_v5 = vsel %vm1678_vm8, %v3914_v32, %v1280_v17 }
 0x2d1   : > { %2004 = vst.msk [vmem:[%s4281_s12 + $0x40] sm:$0xff] %vm1513_vm3, %v4328_v20  ;;  %v1278_v26 = vpop.permute.xlu1 %1277  ;;  %v1758_v62 = vsel %vm1744_vm10, %v1725_v55, %v1444_v21 }
 0x2d2   : > { %2310 = vmatmul.msk.f32.gmra.mxu1 %vm1786_vm11, %v1758_v62  ;;  %v1705_v10 = vsel %vm1678_vm8, %v3775_v51, %v1278_v26 }
 0x2d3   : > { %v1738_v3 = vsel %vm1711_vm9, %v1705_v10, %v1374_v9 }
 0x2d7   : > { %v1376_v36 = vpop.permute.xlu2 %1375 }
 0x2d8   : > { %v4336_v29 = vpop.f32.mrf.mxu1  ;;  %v1458_v45 = vpop.permute.xlu0 %1457  ;;  %v1739_v38 = vsel %vm1711_vm9, %v1706_v5, %v1376_v36 }
 0x2d9   : > { %2005 = vst.msk [vmem:[%s4281_s12 + $0x48] sm:$0xff] %vm1513_vm3, %v4336_v29  ;;  %v1362_v1 = vpop.permute.xlu1 %1361 }
 0x2da   : > { %v1732_v23 = vsel %vm1711_vm9, %v1699_v47, %v1362_v1 }
 0x2db   : > { %v1765_v57 = vsel %vm1744_vm10, %v1732_v23, %v1458_v45 }
 0x2dc   : > { %2317 = vmatmul.msk.f32.gmra.mxu2 %vm1786_vm11, %v1765_v57 }
 0x2df   : > { %v1256_v34 = vpop.permute.xlu2 %1255 }
 0x2e0   : > { %v1909_v44 = vpop.f32.mrf.mxu0  ;;  %v1350_v43 = vpop.permute.xlu0 %1349  ;;  %v1694_v48 = vsel %vm1678_vm8, %v3739_v58, %v1256_v34  ;;  %v5109_v34 = vld [vmem:[#allocation19_spill] sm:$0xff] }
 0x2e1   : > { %1999 = vst.msk [vmem:[%s4281_s12 + $0x18] sm:$0xff] %vm1513_vm3, %v1909_v44  ;;  %v2033_v18 = vsel %vm1513_vm3, %v1909_v44, 0.0  ;;  %v2100_v12 = vmul.f32 %v1909_v44, %v1909_v44  ;;  %v1470_v63 = vpop.permute.xlu1 %1469  ;;  %v1726_v49 = vsel %vm1711_vm9, %v1693_v37, %v1350_v43 }
 0x2e2   : > { %v2034_v0 = vadd.f32 %v2033_v18, %v2032_v42  ;;  %v1771_v16 = vsel %vm1744_vm10, %v1738_v3, %v1470_v63  ;;  %v5107_v18 = vld [vmem:[#allocation74_spill] sm:$0xff] }
 0x2e3   : > { %v2134_v28 = vsel %vm1513_vm3, %v2100_v12, 0.0  ;;  %2323 = vmatmul.msk.f32.gmra.mxu3 %vm1786_vm11, %v1771_v16  ;;  %v5108_v16 = vld [vmem:[#allocation87_spill] sm:$0xff] }
 0x2e4   : > { %v2135_v51 = vadd.f32 %v2134_v28, %v2133_v46 }
 0x2e7   : > { %v1282_v40 = vpop.permute.xlu2 %1281 }
 0x2e8   : > { %v1446_v50 = vpop.permute.xlu0 %1445  ;;  %v1707_v23 = vsel %vm1678_vm8, %v3943_v4, %v1282_v40 }
 0x2e9   : > { %v1268_v52 = vpop.permute.xlu1 %1267  ;;  %v4358_v33 = vpop.f32.mrf.mxu1  ;;  %v1759_v15 = vsel %vm1744_vm10, %v1726_v49, %v1446_v50 }
 0x2ea   : > { %2006 = vst.msk [vmem:[%s4281_s12 + $0x50] sm:$0xff] %vm1513_vm3, %v4358_v33  ;;  %2311 = vmatmul.msk.f32.gmra.mxu1 %vm1786_vm11, %v1759_v15  ;;  %v1700_v61 = vsel %vm1678_vm8, %v3838_v8, %v1268_v52 }
 0x2ee   : > { %v4365_v56 = vpop.f32.mrf.mxu2 }
 0x2ef   : > { %2012 = vst.msk [vmem:[%s4281_s12 + $0x80] sm:$0xff] %vm1513_vm3, %v4365_v56  ;;  %v1378_v42 = vpop.permute.xlu2 %1377 }
 0x2f0   : > { %v1460_v35 = vpop.permute.xlu0 %1459  ;;  %v1740_v57 = vsel %vm1711_vm9, %v1707_v23, %v1378_v42 }
 0x2f1   : > { %v1364_v25 = vpop.permute.xlu1 %1363 }
 0x2f2   : > { %v1733_v19 = vsel %vm1711_vm9, %v1700_v61, %v1364_v25 }
 0x2f3   : > { %v1766_v41 = vsel %vm1744_vm10, %v1733_v19, %v1460_v35 }
 0x2f4   : > { %2318 = vmatmul.msk.f32.gmra.mxu2 %vm1786_vm11, %v1766_v41 }
 0x2f8   : > { %v1912_v14 = vpop.f32.mrf.mxu0  ;;  %v1352_v53 = vpop.permute.xlu0 %1351 }
 0x2f9   : > { %2000 = vst.msk [vmem:[%s4281_s12 + $0x20] sm:$0xff] %vm1513_vm3, %v1912_v14  ;;  %v2035_v6 = vsel %vm1513_vm3, %v1912_v14, 0.0  ;;  %v2101_v31 = vmul.f32 %v1912_v14, %v1912_v14  ;;  %v1472_v8 = vpop.permute.xlu1 %1471  ;;  %v1727_v22 = vsel %vm1711_vm9, %v1694_v48, %v1352_v53 }
 0x2fa   : > { %v2036_v24 = vadd.f32 %v2035_v6, %v2034_v0  ;;  %v1772_v9 = vsel %vm1744_vm10, %v1739_v38, %v1472_v8 }
 0x2fb   : > { %v2136_v11 = vsel %vm1513_vm3, %v2101_v31, 0.0  ;;  %2324 = vmatmul.msk.f32.gmra.mxu3 %vm1786_vm11, %v1772_v9 }
 0x2fc   : > { %v2137_v32 = vadd.f32 %v2136_v11, %v2135_v51 }
 0x300   : > { %v1448_v13 = vpop.permute.xlu0 %1447 }
 0x301   : > { %v1270_v7 = vpop.permute.xlu1 %1269  ;;  %v1760_v27 = vsel %vm1744_vm10, %v1727_v22, %v1448_v13  ;;  %v2105_v22 = vmul.f32 %v4328_v20, %v4328_v20 }
 0x302   : > { %2312 = vmatmul.msk.f32.gmra.mxu1 %vm1786_vm11, %v1760_v27  ;;  %v1701_v60 = vsel %vm1678_vm8, %v3879_v39, %v1270_v7  ;;  %v1272_v39 = vpop.permute.xlu2 %1271 }
 0x303   : > { %v1702_v12 = vsel %vm1678_vm8, %v5107_v18, %v1272_v39 }
 0x306   : > { %v4389_v30 = vpop.f32.mrf.mxu2 }
 0x307   : > { %2013 = vst.msk [vmem:[%s4281_s12 + $0x88] sm:$0xff] %vm1513_vm3, %v4389_v30 }
 0x308   : > { %v1462_v55 = vpop.permute.xlu0 %1461 }
 0x309   : > { %v1366_v46 = vpop.permute.xlu1 %1365  ;;  %v1915_v58 = vpop.f32.mrf.mxu0 }
 0x30a   : > { %v1734_v59 = vsel %vm1711_vm9, %v1701_v60, %v1366_v46  ;;  %2001 = vst.msk [vmem:[%s4281_s12 + $0x28] sm:$0xff] %vm1513_vm3, %v1915_v58  ;;  %v2037_v26 = vsel %vm1513_vm3, %v1915_v58, 0.0  ;;  %v2102_v21 = vmul.f32 %v1915_v58, %v1915_v58  ;;  %v1380_v63 = vpop.permute.xlu2 %1379  ;;  %v2043_v60 = vsel %vm1513_vm3, %v4328_v20, 0.0 }
 0x30b   : > { %v2038_v2 = vadd.f32 %v2037_v26, %v2036_v24  ;;  %v1767_v62 = vsel %vm1744_vm10, %v1734_v59, %v1462_v55  ;;  %v2106_v46 = vmul.f32 %v4336_v29, %v4336_v29  ;;  %v2045_v55 = vsel %vm1513_vm3, %v4336_v29, 0.0 }
 0x30c   : > { %v2138_v47 = vsel %vm1513_vm3, %v2102_v21, 0.0  ;;  %2319 = vmatmul.msk.f32.gmra.mxu2 %vm1786_vm11, %v1767_v62  ;;  %v2144_v21 = vsel %vm1513_vm3, %v2105_v22, 0.0 }
 0x30d   : > { %v2139_v1 = vadd.f32 %v2138_v47, %v2137_v32  ;;  %v2146_v20 = vsel %vm1513_vm3, %v2106_v46, 0.0 }
 0x30f   : > { %v4405_v45 = vpop.f32.mrf.mxu1 }
 0x310   : > { %2007 = vst.msk [vmem:[%s4281_s12 + $0x58] sm:$0xff] %vm1513_vm3, %v4405_v45  ;;  %v1284_v10 = vpop.permute.xlu0 %1283  ;;  %v2108_v39 = vmul.f32 %v4405_v45, %v4405_v45  ;;  %v2049_v29 = vsel %vm1513_vm3, %v4405_v45, 0.0 }
 0x311   : > { %v1474_v17 = vpop.permute.xlu1 %1473  ;;  %v1708_v28 = vsel %vm1678_vm8, %v5108_v16, %v1284_v10 }
 0x312   : > { %v1773_v44 = vsel %vm1744_vm10, %v1740_v57, %v1474_v17  ;;  %v1741_v37 = vsel %vm1711_vm9, %v1708_v28, %v1380_v63  ;;  %v1286_v49 = vpop.permute.xlu2 %1285 }
 0x313   : > { %2325 = vmatmul.msk.f32.gmra.mxu3 %vm1786_vm11, %v1773_v44  ;;  %v1709_v61 = vsel %vm1678_vm8, %v5109_v34, %v1286_v49 }
 0x318   : > { %v1464_v0 = vpop.permute.xlu0 %1463 }
 0x319   : > { %v1368_v4 = vpop.permute.xlu1 %1367 }
 0x31a   : > { %v1735_v3 = vsel %vm1711_vm9, %v1702_v12, %v1368_v4  ;;  %v1288_v31 = vpop.permute.xlu2 %1287 }
 0x31b   : > { %v1768_v43 = vsel %vm1744_vm10, %v1735_v3, %v1464_v0  ;;  %v1710_v53 = vsel %vm1678_vm8, %v3968_v54, %v1288_v31 }
 0x31c   : > { %2320 = vmatmul.msk.f32.gmra.mxu2 %vm1786_vm11, %v1768_v43 }
 0x31f   : > { %v4420_v51 = vpop.f32.mrf.mxu2 }
 0x320   : > { %2014 = vst.msk [vmem:[%s4281_s12 + $0x90] sm:$0xff] %vm1513_vm3, %v4420_v51  ;;  %v1382_v50 = vpop.permute.xlu0 %1381  ;;  %v2115_v22 = vmul.f32 %v4420_v51, %v4420_v51 }
 0x321   : > { %v1476_v36 = vpop.permute.xlu1 %1475  ;;  %v1742_v25 = vsel %vm1711_vm9, %v1709_v61, %v1382_v50 }
 0x322   : > { %v1774_v52 = vsel %vm1744_vm10, %v1741_v37, %v1476_v36 }
 0x323   : > { %2326 = vmatmul.msk.f32.gmra.mxu3 %vm1786_vm11, %v1774_v52 }
 0x326   : > { %v4428_v15 = vpop.f32.mrf.mxu3 }
 0x327   : > { %2020 = vst.msk [vmem:[%s4281_s12 + $0xc0] sm:$0xff] %vm1513_vm3, %v4428_v15 }
 0x328   : > { %v1384_v24 = vpop.permute.xlu0 %1383 }
 0x329   : > { %v1478_v19 = vpop.permute.xlu1 %1477  ;;  %v1918_v35 = vpop.f32.mrf.mxu0  ;;  %v1743_v40 = vsel %vm1711_vm9, %v1710_v53, %v1384_v24  ;;  %v2059_v24 = vsel %vm1513_vm3, %v4365_v56, 0.0  ;;  %v2114_v53 = vmul.f32 %v4389_v30, %v4389_v30 }
 0x32a   : > { %2002 = vst.msk [vmem:[%s4281_s12 + $0x30] sm:$0xff] %vm1513_vm3, %v1918_v35  ;;  %v2039_v41 = vsel %vm1513_vm3, %v1918_v35, 0.0  ;;  %v2103_v5 = vmul.f32 %v1918_v35, %v1918_v35  ;;  %v1775_v14 = vsel %vm1744_vm10, %v1742_v25, %v1478_v19 }
 0x32b   : > { %v2040_v38 = vadd.f32 %v2039_v41, %v2038_v2  ;;  %2327 = vmatmul.msk.f32.gmra.mxu3 %vm1786_vm11, %v1775_v14  ;;  %v2107_v2 = vmul.f32 %v4358_v33, %v4358_v33  ;;  %v2113_v14 = vmul.f32 %v4365_v56, %v4365_v56  ;;  %v2063_v56 = vsel %vm1513_vm3, %v4420_v51, 0.0 }
 0x32c   : > { %v2140_v6 = vsel %vm1513_vm3, %v2103_v5, 0.0 }
 0x32d   : > { %v2141_v8 = vadd.f32 %v2140_v6, %v2139_v1  ;;  %v2047_v1 = vsel %vm1513_vm3, %v4358_v33, 0.0  ;;  %v2148_v10 = vsel %vm1513_vm3, %v2107_v2, 0.0  ;;  %v2150_v33 = vsel %vm1513_vm3, %v2108_v39, 0.0 }
 0x32f   : > { %v1936_v9 = vpop.f32.mrf.mxu1 }
 0x330   : > { %2008 = vst.msk [vmem:[%s4281_s12 + $0x60] sm:$0xff] %vm1513_vm3, %v1936_v9  ;;  %v2109_v44 = vmul.f32 %v1936_v9, %v1936_v9  ;;  %v2051_v63 = vsel %vm1513_vm3, %v1936_v9, 0.0 }
 0x331   : > { %v1480_v11 = vpop.permute.xlu1 %1479 }
 0x332   : > { %v1776_v32 = vsel %vm1744_vm10, %v1743_v40, %v1480_v11  ;;  %v2152_v43 = vsel %vm1513_vm3, %v2109_v44, 0.0 }
 0x333   : > { %2328 = vmatmul.msk.f32.gmra.mxu3 %vm1786_vm11, %v1776_v32  ;;  %v2160_v32 = vsel %vm1513_vm3, %v2113_v14, 0.0 }
 0x33f   : > { %v4449_v48 = vpop.f32.mrf.mxu2 }
 0x340   : > { %2015 = vst.msk [vmem:[%s4281_s12 + $0x98] sm:$0xff] %vm1513_vm3, %v4449_v48 }
 0x346   : > { %v4454_v7 = vpop.f32.mrf.mxu3 }
 0x347   : > { %2021 = vst.msk [vmem:[%s4281_s12 + $0xc8] sm:$0xff] %vm1513_vm3, %v4454_v7 }
 0x349   : > { %v1921_v54 = vpop.f32.mrf.mxu0 }
 0x34a   : > { %2003 = vst.msk [vmem:[%s4281_s12 + $0x38] sm:$0xff] %vm1513_vm3, %v1921_v54  ;;  %v2041_v13 = vsel %vm1513_vm3, %v1921_v54, 0.0  ;;  %v2104_v27 = vmul.f32 %v1921_v54, %v1921_v54  ;;  %v2061_v54 = vsel %vm1513_vm3, %v4389_v30, 0.0  ;;  %v2065_v30 = vsel %vm1513_vm3, %v4449_v48, 0.0 }
 0x34b   : > { %v2042_v42 = vadd.f32 %v2041_v13, %v2040_v38 }
 0x34c   : > { %v2142_v58 = vsel %vm1513_vm3, %v2104_v27, 0.0 }
 0x34d   : > { %v2044_v59 = vadd.f32 %v2043_v60, %v2042_v42  ;;  %v2143_v26 = vadd.f32 %v2142_v58, %v2141_v8  ;;  %v2162_v42 = vsel %vm1513_vm3, %v2114_v53, 0.0  ;;  %v2116_v60 = vmul.f32 %v4449_v48, %v4449_v48 }
 0x34f   : > { %v2046_v62 = vadd.f32 %v2045_v55, %v2044_v59  ;;  %v2145_v47 = vadd.f32 %v2144_v21, %v2143_v26  ;;  %v1939_v17 = vpop.f32.mrf.mxu1  ;;  %v2164_v59 = vsel %vm1513_vm3, %v2115_v22, 0.0  ;;  %v2166_v2 = vsel %vm1513_vm3, %v2116_v60, 0.0 }
 0x350   : > { %2009 = vst.msk [vmem:[%s4281_s12 + $0x68] sm:$0xff] %vm1513_vm3, %v1939_v17  ;;  %v2110_v4 = vmul.f32 %v1939_v17, %v1939_v17  ;;  %v2053_v45 = vsel %vm1513_vm3, %v1939_v17, 0.0 }
 0x351   : > { %v2048_v23 = vadd.f32 %v2047_v1, %v2046_v62  ;;  %v2147_v57 = vadd.f32 %v2146_v20, %v2145_v47 }
 0x352   : > { %v2154_v36 = vsel %vm1513_vm3, %v2110_v4, 0.0  ;;  %v2121_v4 = vmul.f32 %v4428_v15, %v4428_v15 }
 0x353   : > { %v2149_v18 = vadd.f32 %v2148_v10, %v2147_v57  ;;  %v2050_v12 = vadd.f32 %v2049_v29, %v2048_v23 }
 0x355   : > { %v2052_v3 = vadd.f32 %v2051_v63, %v2050_v12  ;;  %v2151_v0 = vadd.f32 %v2150_v33, %v2149_v18 }
 0x357   : > { %v2054_v16 = vadd.f32 %v2053_v45, %v2052_v3  ;;  %v2153_v28 = vadd.f32 %v2152_v43, %v2151_v0 }
 0x359   : > { %v2155_v37 = vadd.f32 %v2154_v36, %v2153_v28  ;;  %v2122_v28 = vmul.f32 %v4454_v7, %v4454_v7 }
 0x35f   : > { %v1960_v52 = vpop.f32.mrf.mxu2 }
 0x360   : > { %2016 = vst.msk [vmem:[%s4281_s12 + $0xa0] sm:$0xff] %vm1513_vm3, %v1960_v52  ;;  %v2117_v26 = vmul.f32 %v1960_v52, %v1960_v52  ;;  %v2067_v62 = vsel %vm1513_vm3, %v1960_v52, 0.0 }
 0x362   : > { %v2168_v20 = vsel %vm1513_vm3, %v2117_v26, 0.0 }
 0x366   : > { %v4491_v49 = vpop.f32.mrf.mxu3 }
 0x367   : > { %2022 = vst.msk [vmem:[%s4281_s12 + $0xd0] sm:$0xff] %vm1513_vm3, %v4491_v49  ;;  %v1942_v50 = vpop.f32.mrf.mxu1 }
 0x368   : > { %2010 = vst.msk [vmem:[%s4281_s12 + $0x70] sm:$0xff] %vm1513_vm3, %v1942_v50  ;;  %v2111_v61 = vmul.f32 %v1942_v50, %v1942_v50  ;;  %v2055_v25 = vsel %vm1513_vm3, %v1942_v50, 0.0  ;;  %v2176_v50 = vsel %vm1513_vm3, %v2121_v4, 0.0 }
 0x369   : > { %v2056_v41 = vadd.f32 %v2055_v25, %v2054_v16  ;;  %v2075_v16 = vsel %vm1513_vm3, %v4428_v15, 0.0  ;;  %v2178_v15 = vsel %vm1513_vm3, %v2122_v28, 0.0 }
 0x36a   : > { %v2156_v35 = vsel %vm1513_vm3, %v2111_v61, 0.0  ;;  %v2123_v61 = vmul.f32 %v4491_v49, %v4491_v49 }
 0x36b   : > { %v2157_v31 = vadd.f32 %v2156_v35, %v2155_v37 }
 0x377   : > { %v1963_v34 = vpop.f32.mrf.mxu2 }
 0x378   : > { %2017 = vst.msk [vmem:[%s4281_s12 + $0xa8] sm:$0xff] %vm1513_vm3, %v1963_v34  ;;  %v2118_v48 = vmul.f32 %v1963_v34, %v1963_v34  ;;  %v2069_v57 = vsel %vm1513_vm3, %v1963_v34, 0.0  ;;  %v2077_v34 = vsel %vm1513_vm3, %v4454_v7, 0.0  ;;  %v2180_v7 = vsel %vm1513_vm3, %v2123_v61, 0.0 }
 0x37a   : > { %v2170_v29 = vsel %vm1513_vm3, %v2118_v48, 0.0 }
 0x37e   : > { %v4501_v19 = vpop.f32.mrf.mxu3 }
 0x37f   : > { %2023 = vst.msk [vmem:[%s4281_s12 + $0xd8] sm:$0xff] %vm1513_vm3, %v4501_v19  ;;  %v1945_v5 = vpop.f32.mrf.mxu1  ;;  %v2124_v14 = vmul.f32 %v4501_v19, %v4501_v19 }
 0x380   : > { %2011 = vst.msk [vmem:[%s4281_s12 + $0x78] sm:$0xff] %vm1513_vm3, %v1945_v5  ;;  %v2057_v38 = vsel %vm1513_vm3, %v1945_v5, 0.0  ;;  %v2112_v6 = vmul.f32 %v1945_v5, %v1945_v5 }
 0x381   : > { %v2058_v8 = vadd.f32 %v2057_v38, %v2056_v41  ;;  %v2079_v41 = vsel %vm1513_vm3, %v4491_v49, 0.0  ;;  %v2182_v53 = vsel %vm1513_vm3, %v2124_v14, 0.0 }
 0x382   : > { %v2158_v9 = vsel %vm1513_vm3, %v2112_v6, 0.0 }
 0x383   : > { %v2060_v40 = vadd.f32 %v2059_v24, %v2058_v8  ;;  %v2159_v11 = vadd.f32 %v2158_v9, %v2157_v31  ;;  %v2081_v31 = vsel %vm1513_vm3, %v4501_v19, 0.0 }
 0x385   : > { %v2062_v13 = vadd.f32 %v2061_v54, %v2060_v40  ;;  %v2161_v27 = vadd.f32 %v2160_v32, %v2159_v11 }
 0x387   : > { %v2064_v46 = vadd.f32 %v2063_v56, %v2062_v13  ;;  %v2163_v58 = vadd.f32 %v2162_v42, %v2161_v27 }
 0x389   : > { %v2165_v21 = vadd.f32 %v2164_v59, %v2163_v58  ;;  %v2066_v55 = vadd.f32 %v2065_v30, %v2064_v46 }
 0x38b   : > { %v2068_v51 = vadd.f32 %v2067_v62, %v2066_v55  ;;  %v2167_v47 = vadd.f32 %v2166_v2, %v2165_v21 }
 0x38d   : > { %v2169_v39 = vadd.f32 %v2168_v20, %v2167_v47  ;;  %v2070_v10 = vadd.f32 %v2069_v57, %v2068_v51 }
 0x38f   : > { %v1966_v1 = vpop.f32.mrf.mxu2  ;;  %v2171_v18 = vadd.f32 %v2170_v29, %v2169_v39 }
 0x390   : > { %2018 = vst.msk [vmem:[%s4281_s12 + $0xb0] sm:$0xff] %vm1513_vm3, %v1966_v1  ;;  %v2119_v17 = vmul.f32 %v1966_v1, %v1966_v1  ;;  %v2071_v44 = vsel %vm1513_vm3, %v1966_v1, 0.0 }
 0x391   : > { %v2072_v33 = vadd.f32 %v2071_v44, %v2070_v10 }
 0x392   : > { %v2172_v12 = vsel %vm1513_vm3, %v2119_v17, 0.0 }
 0x393   : > { %v2173_v43 = vadd.f32 %v2172_v12, %v2171_v18 }
 0x396   : > { %v1984_v23 = vpop.f32.mrf.mxu3 }
 0x397   : > { %2024 = vst.msk [vmem:[%s4281_s12 + $0xe0] sm:$0xff] %vm1513_vm3, %v1984_v23  ;;  %v2125_v9 = vmul.f32 %v1984_v23, %v1984_v23  ;;  %v2083_v40 = vsel %vm1513_vm3, %v1984_v23, 0.0 }
 0x399   : > { %v2184_v54 = vsel %vm1513_vm3, %v2125_v9, 0.0 }
 0x39f   : > { %v1969_v63 = vpop.f32.mrf.mxu2 }
 0x3a0   : > { %2019 = vst.msk [vmem:[%s4281_s12 + $0xb8] sm:$0xff] %vm1513_vm3, %v1969_v63  ;;  %v2073_v3 = vsel %vm1513_vm3, %v1969_v63, 0.0  ;;  %v2120_v0 = vmul.f32 %v1969_v63, %v1969_v63 }
 0x3a1   : > { %v2074_v45 = vadd.f32 %v2073_v3, %v2072_v33 }
 0x3a2   : > { %v2174_v36 = vsel %vm1513_vm3, %v2120_v0, 0.0 }
 0x3a3   : > { %v2076_v37 = vadd.f32 %v2075_v16, %v2074_v45  ;;  %v2175_v52 = vadd.f32 %v2174_v36, %v2173_v43 }
 0x3a5   : > { %v2078_v25 = vadd.f32 %v2077_v34, %v2076_v37  ;;  %v2177_v35 = vadd.f32 %v2176_v50, %v2175_v52 }
 0x3a6   : > { %v1987_v5 = vpop.f32.mrf.mxu3 }
 0x3a7   : > { %v2080_v38 = vadd.f32 %v2079_v41, %v2078_v25  ;;  %v2179_v6 = vadd.f32 %v2178_v15, %v2177_v35  ;;  %2025 = vst.msk [vmem:[%s4281_s12 + $0xe8] sm:$0xff] %vm1513_vm3, %v1987_v5  ;;  %v2126_v22 = vmul.f32 %v1987_v5, %v1987_v5  ;;  %v2085_v27 = vsel %vm1513_vm3, %v1987_v5, 0.0 }
 0x3a9   : > { %v2181_v8 = vadd.f32 %v2180_v7, %v2179_v6  ;;  %v2082_v24 = vadd.f32 %v2081_v31, %v2080_v38  ;;  %v2186_v56 = vsel %vm1513_vm3, %v2126_v22, 0.0 }
 0x3ab   : > { %v2183_v49 = vadd.f32 %v2182_v53, %v2181_v8  ;;  %v2084_v11 = vadd.f32 %v2083_v40, %v2082_v24 }
 0x3ad   : > { %v2185_v13 = vadd.f32 %v2184_v54, %v2183_v49  ;;  %v2086_v42 = vadd.f32 %v2085_v27, %v2084_v11 }
 0x3ae   : > { %v1990_v32 = vpop.f32.mrf.mxu3 }
 0x3af   : > { %2026 = vst.msk [vmem:[%s4281_s12 + $0xf0] sm:$0xff] %vm1513_vm3, %v1990_v32  ;;  %v2127_v19 = vmul.f32 %v1990_v32, %v1990_v32  ;;  %v2087_v60 = vsel %vm1513_vm3, %v1990_v32, 0.0  ;;  %v2187_v46 = vadd.f32 %v2186_v56, %v2185_v13 }
 0x3b0   : > { %v2088_v59 = vadd.f32 %v2087_v60, %v2086_v42 }
 0x3b1   : > { %v2188_v58 = vsel %vm1513_vm3, %v2127_v19, 0.0 }
 0x3b2   : > { %v2189_v55 = vadd.f32 %v2188_v58, %v2187_v46 }
 0x3b6   : > { %v1993_v30 = vpop.f32.mrf.mxu3 }
 0x3b7   : > { %2027 = vst.msk [vmem:[%s4281_s12 + $0xf8] sm:$0xff] %vm1513_vm3, %v1993_v30  ;;  %v2089_v26 = vsel %vm1513_vm3, %v1993_v30, 0.0  ;;  %v2128_v21 = vmul.f32 %v1993_v30, %v1993_v30 }
 0x3b8   : > { %v2090_v2 = vadd.f32 %v2089_v26, %v2088_v59 }
 0x3b9   : > { %v2190_v62 = vsel %vm1513_vm3, %v2128_v21, 0.0 }
 0x3ba   : > { %v2091_v51 = vrot.slane %v2090_v2, 4  ;;  %v2191_v47 = vadd.f32 %v2190_v62, %v2189_v55 }
 0x3bc   : > { %v2092_v20 = vadd.f32 %v2091_v51, %v2090_v2  ;;  %v2192_v1 = vrot.slane %v2191_v47, 4 }
 0x3be   : > { %v2093_v39 = vrot.slane %v2092_v20, 2  ;;  %v2193_v23 = vadd.f32 %v2192_v1, %v2191_v47 }
 0x3c0   : > { %v2094_v48 = vadd.f32 %v2093_v39, %v2092_v20  ;;  %v2194_v57 = vrot.slane %v2193_v23, 2 }
 0x3c2   : > { %v2095_v17 = vrot.slane %v2094_v48, 1  ;;  %v2195_v10 = vadd.f32 %v2194_v57, %v2193_v23 }
 0x3c4   : > { %v2196_v29 = vrot.slane %v2195_v10, 1  ;;  %v2096_v44 = vadd.f32 %v2095_v17, %v2094_v48 }
 0x3c6   : > { %v2197_v18 = vadd.f32 %v2196_v29, %v2195_v10 }
 0x3c8   : > { %v2198_v12 = vsel %vm405_vm0, %v2096_v44, %v2197_v18 }
 0x3c9   : > { %2200 = vst.msk [vmem:[%s235_s10] sm:$0x3] %vm2199_vm12, %v2198_v12 }
 0x3ca PF: > { %s16_s18 = sadd.s32 1, %s2395_s18  }
 0x3cb   : > { %p13_p4 = scmp.ge.s32.totalorder %s16_s18, 4  }
 0x3cd   :  { %15 = sbr.rel (!%p13_p4) target bundleno = 1 (0x1), region = 78 }

// kernel: encoder_forward.3
= control target key start
LH: loop header
LB: loop body
LE: loop exit
PB: predicated region body
PF: predicated region fallthrough
CT: control target
= control target key end

     0   :  { %s2255_s12 = smov 0   ;;  %s4323_s0 = inlined_call_operand.vmem [shape: f32[2,16,16,4], index: 0, kind: input, shape index: {}]   ;;  %s4324_s1 = inlined_call_operand.vmem [shape: f32[36,8], index: 1, kind: input, shape index: {}]   ;;  %s4325_s2 = inlined_call_operand.vmem [shape: f32[2,256,8], index: 2, kind: output, shape index: {0}]   ;;  %s4326_s3 = inlined_call_operand.vmem [shape: f32[2,2,8], index: 3, kind: output, shape index: {1}]  }
   0x1 LB: > { %s2129_s13 = sadd.s32 4294967295, %s2224_s12   ;;  %p2133_p0 = scmp.ge.s32.totalorder %s2224_s12, 1  ;;  %s2224_s12 = sphi %s2255_s12, %s14_s12  }
   0x2   : > { %p140_p1 = scmp.lt.s32.totalorder %s2224_s12, 3 }
   0x4   : > { %p141_p2 = pnand %p2133_p0, %p140_p1 }
   0x6   : > { %144 = sbr.rel (%p141_p2) target bundleno = 964 (0x3c4), region = 28 }
   0xb   : > { %vm247_vm0 = vcmask 1040384   ;;  %p168_p3 = scmp.lt.s32.totalorder %s2129_s13, 1  ;;  %v2226_v0 = vmov 0.0   ;;  %vm413_vm1 = vcmask 1046528   ;;  %s2227_s18 = smov 4   ;;  %vm494_vm2 = vcmask 1045504  }
   0xc   : > { %v2263_v1 = vrot.slane %v2226_v0, 7  ;;  %s2228_s19 = smov 8   ;;  %s2229_s20 = smov 12   ;;  %vm1355_vm3 = vcmask 31744   ;;  %vm1388_vm4 = vcmask 64512   ;;  %vm1421_vm5 = vcmask 97280  }
   0xd   : > { %s4848_s13 = smov (!%p168_p3, %s2129_s13), 1  ;;  %s2230_s21 = smov 16   ;;  %vm1454_vm6 = vcmask 130048   ;;  %vm1487_vm7 = vcmask 162816   ;;  %vm1721_vm8 = vcmask 1043456   ;;  %vm1520_vm9 = vcmask 195584  }
   0xe   : > { %4466 = vst [vmem:[#allocation2_spill] sm:$0xff] %v2263_v1  ;;  %v2269_v2 = vsel %vm247_vm0, 0.0, %v2263_v1  ;;  %v2273_v3 = vsel %vm247_vm0, %v2263_v1, 0.0  ;;  %v415_v4 = vrot.slane %v2263_v1, 1  ;;  %s2174_s14 = sshll.u32 %s4848_s13, 8  ;;  %s2231_s22 = smov 20  }
   0xf   : > { %4467 = vst [vmem:[#allocation3_spill] sm:$0xff] %v2269_v2  ;;  %v414_v5 = vrot.slane %v2269_v2, 1  ;;  %v417_v6 = vrot.slane %v2273_v3, 1  ;;  %s2284_s17 = scalar_lea.vmem %s4323_s0, %s2174_s14  ;;  %s2232_s23 = smov 24   ;;  %vm1553_vm10 = vcmask 228352   ;;  %vm1586_vm11 = vcmask 261120  }
  0x10   : > { %v184_v9 = vld [vmem:[%s2284_s17 + $0x10] sm:$0xff]  ;;  %v185_v10 = vld [vmem:[%s2284_s17 + $0x18] sm:$0xff]  ;;  %v182_v11 = vld [vmem:[%s2284_s17] sm:$0xff]  ;;  %s2233_s24 = smov 28   ;;  %s2234_s25 = smov 32   ;;  %vm1624_vm12 = vcmask 293888  }
  0x11   : > { %v2287_v7 = vsel %vm413_vm1, %v414_v5, %v415_v4  ;;  %v2290_v8 = vsel %vm413_vm1, %v415_v4, %v417_v6  ;;  %v253_v13 = vrot.slane %v184_v9, 7  ;;  %v254_v14 = vrot.slane %v185_v10, 7  ;;  %v183_v15 = vld [vmem:[%s2284_s17 + $0x8] sm:$0xff]  ;;  %v186_v17 = vld [vmem:[%s2284_s17 + $0x20] sm:$0xff]  ;;  %v188_v36 = vld [vmem:[%s2284_s17 + $0x30] sm:$0xff]  ;;  %s4017_s11 = scalar_lea.vmem %s4325_s2, %s2174_s14  ;;  %s2138_s14 = sshll.u32 %s4848_s13, 1 }
  0x12   : > { %4468 = vst [vmem:[#allocation4_spill] sm:$0xff] %v2287_v7  ;;  %v2208_v12 = vpack.i.bf16 %v2290_v8, %v2287_v7  ;;  %v250_v16 = vrot.slane %v182_v11, 7  ;;  %v187_v18 = vld [vmem:[%s2284_s17 + $0x28] sm:$0xff]  ;;  %v251_v19 = vrot.slane %v183_v15, 7  ;;  %v256_v20 = vrot.slane %v186_v17, 7  ;;  %v189_v37 = vld [vmem:[%s2284_s17 + $0x38] sm:$0xff] }
  0x13   : > { %4469 = vst [vmem:[#allocation5_spill] sm:$0xff] %v2290_v8  ;;  %v257_v21 = vrot.slane %v187_v18, 7  ;;  %v2302_v22 = vsel %vm247_vm0, %v253_v13, %v254_v14  ;;  %v2305_v23 = vsel %vm247_vm0, %v254_v14, 0.0  ;;  %v2311_v25 = vsel %vm247_vm0, 0.0, %v253_v13  ;;  %v190_v46 = vld [vmem:[%s2284_s17 + $0x40] sm:$0xff]  ;;  %v191_v47 = vld [vmem:[%s2284_s17 + $0x48] sm:$0xff] }
  0x14   : > { %2209 = vrot.lane.b32.xlu0 %v2208_v12, %s2227_s18  ;;  %4470 = vst [vmem:[#allocation6_spill] sm:$0xff] %v2302_v22  ;;  %v2308_v24 = vsel %vm247_vm0, 0.0, %v250_v16  ;;  %v425_v26 = vrot.slane %v2302_v22, 1  ;;  %v427_v27 = vrot.slane %v2305_v23, 1  ;;  %v2316_v28 = vsel %vm247_vm0, %v250_v16, %v251_v19  ;;  %v192_v55 = vld [vmem:[%s2284_s17 + $0x50] sm:$0xff]  ;;  %v193_v57 = vld [vmem:[%s2284_s17 + $0x58] sm:$0xff] }
  0x15   : > { %4471 = vst [vmem:[#allocation7_spill] sm:$0xff] %v2308_v24  ;;  %v2319_v29 = vsel %vm247_vm0, %v251_v19, 0.0  ;;  %v420_v30 = vrot.slane %v2316_v28, 1  ;;  %v419_v32 = vrot.slane %v2308_v24, 1  ;;  %v2325_v33 = vsel %vm247_vm0, %v256_v20, %v257_v21  ;;  %v194_v13 = vld [vmem:[%s2284_s17 + $0x60] sm:$0xff]  ;;  %v195_v15 = vld [vmem:[%s2284_s17 + $0x68] sm:$0xff] }
  0x16   : > { %4472 = vst [vmem:[#allocation8_spill] sm:$0xff] %v2311_v25  ;;  %v422_v31 = vrot.slane %v2319_v29, 1  ;;  %v2328_v34 = vsel %vm413_vm1, %v425_v26, %v427_v27  ;;  %v2331_v35 = vsel %vm247_vm0, 0.0, %v256_v20  ;;  %v430_v41 = vrot.slane %v2325_v33, 1  ;;  %v196_v27 = vld [vmem:[%s2284_s17 + $0x70] sm:$0xff]  ;;  %v205_v8 = vld [vmem:[%s2284_s17 + $0xb8] sm:$0xff] }
  0x17   : > { %4473 = vst [vmem:[#allocation9_spill] sm:$0xff] %v2316_v28  ;;  %597 = vrot.lane.b32.xlu2 %v2328_v34, %s2227_s18  ;;  %v2343_v39 = vsel %vm413_vm1, %v419_v32, %v420_v30  ;;  %v429_v40 = vrot.slane %v2331_v35, 1  ;;  %v424_v42 = vrot.slane %v2311_v25, 1  ;;  %v2349_v43 = vsel %vm247_vm0, %v257_v21, 0.0 }
  0x18   : > { %4474 = vst [vmem:[#allocation10_spill] sm:$0xff] %v2325_v33  ;;  %v2338_v38 = vsel %vm413_vm1, %v420_v30, %v422_v31  ;;  %v259_v44 = vrot.slane %v188_v36, 7  ;;  %v260_v45 = vrot.slane %v189_v37, 7  ;;  %v432_v50 = vrot.slane %v2349_v43, 1  ;;  %v197_v30 = vld [vmem:[%s2284_s17 + $0x78] sm:$0xff] }
  0x19   : > { %4475 = vst [vmem:[#allocation11_spill] sm:$0xff] %v2328_v34  ;;  %593 = vrot.lane.b32.xlu1 %v2338_v38, %s2227_s18  ;;  %v2356_v48 = vsel %vm413_vm1, %v429_v40, %v430_v41  ;;  %v2359_v49 = vsel %vm413_vm1, %v424_v42, %v425_v26  ;;  %v262_v53 = vrot.slane %v190_v46, 7  ;;  %v263_v54 = vrot.slane %v191_v47, 7  ;;  %v199_v46 = vld [vmem:[%s2284_s17 + $0x88] sm:$0xff] }
  0x1a   : > { %4476 = vst [vmem:[#allocation12_spill] sm:$0xff] %v2331_v35  ;;  %v2363_v51 = vsel %vm247_vm0, %v259_v44, %v260_v45  ;;  %v2366_v52 = vsel %vm247_vm0, %v260_v45, 0.0  ;;  %v2370_v56 = vsel %vm247_vm0, 0.0, %v259_v44  ;;  %v2378_v58 = vsel %vm413_vm1, %v430_v41, %v432_v50  ;;  %v198_v45 = vld [vmem:[%s2284_s17 + $0x80] sm:$0xff] }
  0x1b   : > { %4477 = vst [vmem:[#allocation13_spill] sm:$0xff] %v2363_v51  ;;  %v435_v59 = vrot.slane %v2363_v51, 1  ;;  %v437_v60 = vrot.slane %v2366_v52, 1  ;;  %v265_v61 = vrot.slane %v192_v55, 7  ;;  %v434_v62 = vrot.slane %v2370_v56, 1 }
  0x1c   : > { %591 = vrot.lane.b32.xlu0 %v2343_v39, %s2227_s18  ;;  %4478 = vst [vmem:[#allocation14_spill] sm:$0xff] %v2378_v58  ;;  %v2384_v63 = vsel %vm247_vm0, %v262_v53, %v263_v54  ;;  %v2387_v0 = vsel %vm247_vm0, 0.0, %v262_v53  ;;  %v266_v4 = vrot.slane %v193_v57, 7  ;;  %v2407_v14 = vsel %vm247_vm0, %v263_v54, 0.0 }
  0x1d   : > { %4479 = vst [vmem:[#allocation15_spill] sm:$0xff] %v2384_v63  ;;  %v2392_v5 = vsel %vm413_vm1, %v435_v59, %v437_v60  ;;  %v439_v6 = vrot.slane %v2387_v0, 1  ;;  %v440_v9 = vrot.slane %v2384_v63, 1  ;;  %v2397_v10 = vsel %vm413_vm1, %v434_v62, %v435_v59 }
  0x1e   : > { %4480 = vst [vmem:[#allocation16_spill] sm:$0xff] %v2387_v0  ;;  %v2400_v11 = vsel %vm247_vm0, %v265_v61, %v266_v4  ;;  %v2403_v12 = vsel %vm247_vm0, 0.0, %v265_v61  ;;  %v268_v19 = vrot.slane %v194_v13, 7  ;;  %v442_v20 = vrot.slane %v2407_v14, 1 }
  0x1f   : > { %599 = vrot.lane.b32.xlu2 %v2356_v48, %s2227_s18  ;;  %4481 = vst [vmem:[#allocation17_spill] sm:$0xff] %v2392_v5  ;;  %v2415_v16 = vsel %vm413_vm1, %v439_v6, %v440_v9  ;;  %v444_v17 = vrot.slane %v2403_v12, 1  ;;  %v445_v18 = vrot.slane %v2400_v11, 1  ;;  %v2421_v21 = vsel %vm247_vm0, %v266_v4, 0.0  ;;  %v200_v6 = vld [vmem:[%s2284_s17 + $0x90] sm:$0xff] }
  0x20   : > { %4482 = vst [vmem:[#allocation18_spill] sm:$0xff] %v2397_v10  ;;  %v269_v26 = vrot.slane %v195_v15, 7  ;;  %v447_v32 = vrot.slane %v2421_v21, 1  ;;  %v2432_v36 = vsel %vm247_vm0, 0.0, %v268_v19  ;;  %v271_v37 = vrot.slane %v196_v27, 7 }
  0x21   : > { %595 = vrot.lane.b32.xlu1 %v2359_v49, %s2227_s18  ;;  %4483 = vst [vmem:[#allocation19_spill] sm:$0xff] %v2403_v12  ;;  %v2428_v31 = vsel %vm413_vm1, %v444_v17, %v445_v18  ;;  %v2435_v40 = vsel %vm413_vm1, %v440_v9, %v442_v20  ;;  %v272_v44 = vrot.slane %v197_v30, 7  ;;  %v449_v54 = vrot.slane %v2432_v36, 1  ;;  %v201_v17 = vld [vmem:[%s2284_s17 + $0x98] sm:$0xff] }
  0x22   : > { %4484 = vst [vmem:[#allocation20_spill] sm:$0xff] %v2415_v16  ;;  %v2438_v41 = vsel %vm247_vm0, %v268_v19, %v269_v26  ;;  %v2441_v42 = vsel %vm247_vm0, %v269_v26, 0.0  ;;  %v2450_v47 = vsel %vm413_vm1, %v445_v18, %v447_v32  ;;  %v2459_v57 = vsel %vm247_vm0, 0.0, %v271_v37 }
  0x23   : > { %4485 = vst [vmem:[#allocation21_spill] sm:$0xff] %v2428_v31  ;;  %v450_v50 = vrot.slane %v2438_v41, 1  ;;  %v452_v53 = vrot.slane %v2441_v42, 1  ;;  %v2456_v55 = vsel %vm247_vm0, %v271_v37, %v272_v44  ;;  %v274_v59 = vrot.slane %v198_v45, 7  ;;  %v203_v45 = vld [vmem:[%s2284_s17 + $0xa8] sm:$0xff] }
  0x24   : > { %601 = vrot.lane.b32.xlu0 %v2378_v58, %s2227_s18  ;;  %4486 = vst [vmem:[#allocation22_spill] sm:$0xff] %v2435_v40  ;;  %v275_v60 = vrot.slane %v199_v46, 7  ;;  %v454_v62 = vrot.slane %v2459_v57, 1  ;;  %v455_v4 = vrot.slane %v2456_v55, 1  ;;  %v2480_v18 = vsel %vm247_vm0, %v272_v44, 0.0  ;;  %v202_v44 = vld [vmem:[%s2284_s17 + $0xa0] sm:$0xff] }
  0x25   : > { %4487 = vst [vmem:[#allocation23_spill] sm:$0xff] %v2450_v47  ;;  %v2464_v61 = vsel %vm413_vm1, %v450_v50, %v452_v53  ;;  %v2470_v9 = vsel %vm413_vm1, %v449_v54, %v450_v50  ;;  %v2476_v15 = vsel %vm247_vm0, 0.0, %v274_v59  ;;  %v277_v19 = vrot.slane %v200_v6, 7  ;;  %v204_v6 = vld [vmem:[%s2284_s17 + $0xb0] sm:$0xff] }
  0x26   : > { %4488 = vst [vmem:[#allocation24_spill] sm:$0xff] %v2459_v57  ;;  %v2473_v13 = vsel %vm247_vm0, %v274_v59, %v275_v60  ;;  %v2487_v20 = vsel %vm413_vm1, %v454_v62, %v455_v4  ;;  %v459_v26 = vrot.slane %v2476_v15, 1  ;;  %v278_v30 = vrot.slane %v201_v17, 7 }
  0x27   : > { %605 = vrot.lane.b32.xlu2 %v2392_v5, %s2227_s18  ;;  %4489 = vst [vmem:[#allocation25_spill] sm:$0xff] %v2464_v61  ;;  %v460_v27 = vrot.slane %v2473_v13, 1  ;;  %v457_v32 = vrot.slane %v2480_v18, 1  ;;  %v2493_v37 = vsel %vm247_vm0, %v275_v60, 0.0  ;;  %v280_v60 = vrot.slane %v202_v44, 7 }
  0x28   : > { %4490 = vst [vmem:[#allocation26_spill] sm:$0xff] %v2470_v9  ;;  %v462_v50 = vrot.slane %v2493_v37, 1  ;;  %v2504_v53 = vsel %vm247_vm0, %v277_v19, %v278_v30  ;;  %v2507_v54 = vsel %vm247_vm0, %v278_v30, 0.0  ;;  %v281_v62 = vrot.slane %v203_v45, 7 }
  0x29   : > { %603 = vrot.lane.b32.xlu1 %v2397_v10, %s2227_s18  ;;  %4491 = vst [vmem:[#allocation27_spill] sm:$0xff] %v2473_v13  ;;  %v2500_v46 = vsel %vm413_vm1, %v459_v26, %v460_v27  ;;  %v2510_v59 = vsel %vm413_vm1, %v455_v4, %v457_v32  ;;  %v2514_v17 = vsel %vm247_vm0, 0.0, %v277_v19  ;;  %v465_v26 = vrot.slane %v2504_v53, 1  ;;  %v211_v10 = vld [vmem:[%s2284_s17 + $0xe8] sm:$0xff] }
  0x2a   : > { %4492 = vst [vmem:[#allocation28_spill] sm:$0xff] %v2476_v15  ;;  %v467_v7 = vrot.slane %v2507_v54, 1  ;;  %v2524_v4 = vsel %vm413_vm1, %v460_v27, %v462_v50  ;;  %v283_v30 = vrot.slane %v204_v6, 7  ;;  %v464_v19 = vrot.slane %v2514_v17, 1 }
  0x2b   : > { %4493 = vst [vmem:[#allocation29_spill] sm:$0xff] %v2487_v20  ;;  %v2528_v32 = vsel %vm247_vm0, %v280_v60, %v281_v62  ;;  %v2531_v44 = vsel %vm247_vm0, 0.0, %v280_v60  ;;  %v284_v45 = vrot.slane %v205_v8, 7  ;;  %v2544_v6 = vsel %vm247_vm0, %v281_v62, 0.0 }
  0x2c   : > { %607 = vrot.lane.b32.xlu0 %v2415_v16, %s2227_s18  ;;  %4494 = vst [vmem:[#allocation30_spill] sm:$0xff] %v2500_v46  ;;  %v470_v27 = vrot.slane %v2528_v32, 1  ;;  %v2541_v50 = vsel %vm247_vm0, 0.0, %v283_v30  ;;  %v2547_v8 = vsel %vm413_vm1, %v464_v19, %v465_v26  ;;  %v496_v34 = vrot.slane %v2263_v1, 2 }
  0x2d   : > { %4495 = vst [vmem:[#allocation31_spill] sm:$0xff] %v2504_v53  ;;  %v2550_v60 = vsel %vm247_vm0, %v283_v30, %v284_v45  ;;  %vm2041_vm13 = vcmask 58368  }
  0x2e   : > { %4496 = vst [vmem:[#allocation32_spill] sm:$0xff] %v2510_v59 }
  0x2f   : > { %611 = vrot.lane.b32.xlu2 %v2428_v31, %s2227_s18  ;;  %4497 = vst [vmem:[#allocation33_spill] sm:$0xff] %v2524_v4 }
  0x30   : > { %4498 = vst [vmem:[#allocation34_spill] sm:$0xff] %v2531_v44 }
  0x31   : > { %609 = vrot.lane.b32.xlu1 %v2435_v40, %s2227_s18  ;;  %4500 = vst [vmem:[#allocation36_spill] sm:$0xff] %v2541_v50 }
  0x32   : > { %4501 = vst [vmem:[#allocation37_spill] sm:$0xff] %v2547_v8 }
  0x33   : > { %4502 = vst [vmem:[#allocation38_spill] sm:$0xff] %v2550_v60 }
  0x34   : > { %613 = vrot.lane.b32.xlu0 %v2450_v47, %s2227_s18  ;;  %v209_v47 = vld [vmem:[%s2284_s17 + $0xd8] sm:$0xff] }
  0x35   : > { %v290_v16 = vrot.slane %v209_v47, 7 }
  0x37   : > { %617 = vrot.lane.b32.xlu2 %v2464_v61, %s2227_s18  ;;  %v2565_v61 = vsel %vm247_vm0, %v284_v45, 0.0 }
  0x39   : > { %615 = vrot.lane.b32.xlu1 %v2470_v9, %s2227_s18  ;;  %v472_v9 = vrot.slane %v2544_v6, 1 }
  0x3c   : > { %619 = vrot.lane.b32.xlu0 %v2487_v20, %s2227_s18  ;;  %v474_v20 = vrot.slane %v2541_v50, 1 }
  0x3f   : > { %623 = vrot.lane.b32.xlu2 %v2500_v46, %s2227_s18  ;;  %v2536_v46 = vsel %vm413_vm1, %v465_v26, %v467_v7  ;;  %v206_v7 = vld [vmem:[%s2284_s17 + $0xc0] sm:$0xff]  ;;  %v475_v26 = vrot.slane %v2550_v60, 1 }
  0x40   : > { %4499 = vst [vmem:[#allocation35_spill] sm:$0xff] %v2536_v46  ;;  %v286_v30 = vrot.slane %v206_v7, 7 }
  0x41   : > { %621 = vrot.lane.b32.xlu1 %v2510_v59, %s2227_s18  ;;  %v469_v59 = vrot.slane %v2531_v44, 1  ;;  %v2572_v40 = vsel %vm413_vm1, %v474_v20, %v475_v26 }
  0x42   : > { %4504 = vst [vmem:[#allocation40_spill] sm:$0xff] %v2572_v40  ;;  %v2585_v45 = vsel %vm247_vm0, 0.0, %v286_v30 }
  0x43   : > { %v2561_v62 = vsel %vm413_vm1, %v469_v59, %v470_v27  ;;  %v2575_v59 = vsel %vm413_vm1, %v470_v27, %v472_v9  ;;  %4507 = vst [vmem:[#allocation43_spill] sm:$0xff] %v2585_v45 }
  0x44   : > { %625 = vrot.lane.b32.xlu0 %v2524_v4, %s2227_s18  ;;  %v207_v4 = vld [vmem:[%s2284_s17 + $0xc8] sm:$0xff]  ;;  %4503 = vst [vmem:[#allocation39_spill] sm:$0xff] %v2561_v62 }
  0x45   : > { %v287_v19 = vrot.slane %v207_v4, 7  ;;  %4505 = vst [vmem:[#allocation41_spill] sm:$0xff] %v2575_v59 }
  0x47   : > { %629 = vrot.lane.b32.xlu2 %v2536_v46, %s2227_s18  ;;  %v208_v46 = vld [vmem:[%s2284_s17 + $0xd0] sm:$0xff]  ;;  %v2579_v31 = vsel %vm247_vm0, %v286_v30, %v287_v19  ;;  %v2582_v4 = vsel %vm247_vm0, %v287_v19, 0.0  ;;  %v479_v30 = vrot.slane %v2585_v45, 1 }
  0x48   : > { %4506 = vst [vmem:[#allocation42_spill] sm:$0xff] %v2579_v31  ;;  %v289_v7 = vrot.slane %v208_v46, 7  ;;  %v480_v20 = vrot.slane %v2579_v31, 1  ;;  %v482_v27 = vrot.slane %v2582_v4, 1 }
  0x49   : > { %627 = vrot.lane.b32.xlu1 %v2547_v8, %s2227_s18  ;;  %v477_v8 = vrot.slane %v2565_v61, 1 }
  0x4a   : > { %v2600_v46 = vsel %vm247_vm0, %v289_v7, %v290_v16  ;;  %v2603_v47 = vsel %vm247_vm0, 0.0, %v289_v7  ;;  %v2613_v5 = vsel %vm413_vm1, %v479_v30, %v480_v20 }
  0x4b   : > { %v2594_v9 = vsel %vm413_vm1, %v475_v26, %v477_v8  ;;  %4509 = vst [vmem:[#allocation45_spill] sm:$0xff] %v2600_v46  ;;  %v2608_v8 = vsel %vm413_vm1, %v480_v20, %v482_v27  ;;  %v484_v26 = vrot.slane %v2603_v47, 1 }
  0x4c   : > { %631 = vrot.lane.b32.xlu0 %v2561_v62, %s2227_s18  ;;  %v210_v62 = vld [vmem:[%s2284_s17 + $0xe0] sm:$0xff]  ;;  %4508 = vst [vmem:[#allocation44_spill] sm:$0xff] %v2594_v9 }
  0x4d   : > { %4510 = vst [vmem:[#allocation46_spill] sm:$0xff] %v2603_v47  ;;  %v292_v19 = vrot.slane %v210_v62, 7 }
  0x4e   : > { %4511 = vst [vmem:[#allocation47_spill] sm:$0xff] %v2608_v8 }
  0x4f   : > { %635 = vrot.lane.b32.xlu2 %v2572_v40, %s2227_s18  ;;  %v293_v40 = vrot.slane %v211_v10, 7  ;;  %4512 = vst [vmem:[#allocation48_spill] sm:$0xff] %v2613_v5  ;;  %v2619_v7 = vsel %vm247_vm0, 0.0, %v292_v19  ;;  %v2622_v10 = vsel %vm247_vm0, %v290_v16, 0.0 }
  0x50   : > { %4514 = vst [vmem:[#allocation50_spill] sm:$0xff] %v2619_v7  ;;  %v489_v20 = vrot.slane %v2619_v7, 1  ;;  %v487_v30 = vrot.slane %v2622_v10, 1 }
  0x51   : > { %633 = vrot.lane.b32.xlu1 %v2575_v59, %s2227_s18  ;;  %v485_v59 = vrot.slane %v2600_v46, 1  ;;  %v2616_v58 = vsel %vm247_vm0, %v292_v19, %v293_v40  ;;  %v2635_v19 = vsel %vm247_vm0, %v293_v40, 0.0 }
  0x52   : > { %4513 = vst [vmem:[#allocation49_spill] sm:$0xff] %v2616_v58  ;;  %v490_v27 = vrot.slane %v2616_v58, 1 }
  0x53   : > { %v2629_v62 = vsel %vm413_vm1, %v484_v26, %v485_v59  ;;  %v498_v26 = vrot.slane %v2273_v3, 2  ;;  %v501_v3 = vrot.slane %v2316_v28, 2 }
  0x54   : > { %637 = vrot.lane.b32.xlu0 %v2594_v9, %s2227_s18  ;;  %4515 = vst [vmem:[#allocation51_spill] sm:$0xff] %v2629_v62  ;;  %v2640_v16 = vsel %vm413_vm1, %v489_v20, %v490_v27  ;;  %v495_v9 = vrot.slane %v2269_v2, 2  ;;  %v500_v20 = vrot.slane %v2308_v24, 2  ;;  %v513_v2 = vrot.slane %v2349_v43, 2 }
  0x55   : > { %4516 = vst [vmem:[#allocation52_spill] sm:$0xff] %v2640_v16  ;;  %v521_v43 = vrot.slane %v2384_v63, 2 }
  0x56   : > { %v2667_v1 = vsel %vm494_vm2, %v500_v20, %v501_v3  ;;  %v505_v20 = vrot.slane %v2311_v25, 2 }
  0x57   : > { %641 = vrot.lane.b32.xlu2 %v2608_v8, %s2227_s18  ;;  %v2645_v8 = vsel %vm413_vm1, %v485_v59, %v487_v30  ;;  %v2659_v59 = vsel %vm494_vm2, %v495_v9, %v496_v34  ;;  %v2662_v30 = vsel %vm494_vm2, %v496_v34, %v498_v26  ;;  %v506_v9 = vrot.slane %v2302_v22, 2 }
  0x58   : > { %4517 = vst [vmem:[#allocation53_spill] sm:$0xff] %v2645_v8  ;;  %v508_v26 = vrot.slane %v2305_v23, 2 }
  0x59   : > { %639 = vrot.lane.b32.xlu1 %v2613_v5, %s2227_s18  ;;  %v492_v5 = vrot.slane %v2635_v19, 1  ;;  %4519 = vst [vmem:[#allocation55_spill] sm:$0xff] %v2659_v59 }
  0x5a   : > { %4520 = vst [vmem:[#allocation56_spill] sm:$0xff] %v2662_v30 }
  0x5b   : > { %v2654_v40 = vsel %vm413_vm1, %v490_v27, %v492_v5  ;;  %v2213_v5 = vpack.i.bf16 %v2662_v30, %v2659_v59  ;;  %v503_v27 = vrot.slane %v2319_v29, 2  ;;  %v2684_v29 = vsel %vm494_vm2, %v506_v9, %v508_v26 }
  0x5c   : > { %643 = vrot.lane.b32.xlu0 %v2629_v62, %s2227_s18  ;;  %4518 = vst [vmem:[#allocation54_spill] sm:$0xff] %v2654_v40  ;;  %v510_v30 = vrot.slane %v2331_v35, 2  ;;  %v511_v59 = vrot.slane %v2325_v33, 2 }
  0x5d   : > { %v2676_v34 = vsel %vm494_vm2, %v501_v3, %v503_v27  ;;  %4521 = vst [vmem:[#allocation57_spill] sm:$0xff] %v2684_v29  ;;  %v515_v3 = vrot.slane %v2370_v56, 2  ;;  %v516_v27 = vrot.slane %v2363_v51, 2 }
  0x5e   : > { %v2696_v23 = vsel %vm494_vm2, %v510_v30, %v511_v59 }
  0x5f   : > { %647 = vrot.lane.b32.xlu2 %v2640_v16, %s2227_s18 }
  0x61   : > { %645 = vrot.lane.b32.xlu1 %v2645_v8, %s2227_s18 }
  0x64   : > { %649 = vrot.lane.b32.xlu0 %v2654_v40, %s2227_s18 }
  0x67   : > { %687 = vrot.lane.b32.xlu2 %v2667_v1, %s2228_s19 }
  0x69   : > { %2214 = vrot.lane.b32.xlu1 %v2213_v5, %s2228_s19  ;;  %v2689_v5 = vsel %vm494_vm2, %v505_v20, %v506_v9  ;;  %v2706_v9 = vsel %vm494_vm2, %v515_v3, %v516_v27  ;;  %v518_v20 = vrot.slane %v2366_v52, 2  ;;  %v520_v52 = vrot.slane %v2387_v0, 2 }
  0x6a   : > { %4523 = vst [vmem:[#allocation59_spill] sm:$0xff] %v2706_v9 }
  0x6b   : > { %v2717_v30 = vsel %vm494_vm2, %v516_v27, %v518_v20  ;;  %v2732_v27 = vsel %vm494_vm2, %v520_v52, %v521_v43  ;;  %v530_v20 = vrot.slane %v2432_v36, 2  ;;  %v533_v52 = vrot.slane %v2441_v42, 2 }
  0x6c   : > { %689 = vrot.lane.b32.xlu0 %v2676_v34, %s2228_s19  ;;  %4524 = vst [vmem:[#allocation60_spill] sm:$0xff] %v2717_v30  ;;  %v535_v42 = vrot.slane %v2459_v57, 2 }
  0x6d   : > { %4527 = vst [vmem:[#allocation63_spill] sm:$0xff] %v2732_v27 }
  0x6f   : > { %693 = vrot.lane.b32.xlu2 %v2684_v29, %s2228_s19  ;;  %v2710_v29 = vsel %vm494_vm2, %v511_v59, %v513_v2  ;;  %v525_v59 = vrot.slane %v2403_v12, 2 }
  0x71   : > { %691 = vrot.lane.b32.xlu1 %v2689_v5, %s2228_s19  ;;  %v2700_v26 = vpop.permute.xlu2 %597 }
  0x72   : > { %4522 = vst [vmem:[#allocation58_spill] sm:$0xff] %v2700_v26  ;;  %v523_v26 = vrot.slane %v2407_v14, 2 }
  0x74   : > { %695 = vrot.lane.b32.xlu0 %v2696_v23, %s2228_s19  ;;  %v2727_v2 = vsel %vm494_vm2, %v521_v43, %v523_v26  ;;  %v531_v26 = vrot.slane %v2438_v41, 2 }
  0x75   : > { %4526 = vst [vmem:[#allocation62_spill] sm:$0xff] %v2727_v2 }
  0x76   : > { %v2749_v43 = vsel %vm494_vm2, %v530_v20, %v531_v26  ;;  %v538_v20 = vrot.slane %v2480_v18, 2 }
  0x77   : > { %699 = vrot.lane.b32.xlu2 %v2706_v9, %s2228_s19  ;;  %v526_v9 = vrot.slane %v2400_v11, 2  ;;  %4530 = vst [vmem:[#allocation66_spill] sm:$0xff] %v2749_v43 }
  0x79   : > { %697 = vrot.lane.b32.xlu1 %v2710_v29, %s2228_s19  ;;  %v2721_v3 = vpop.permute.xlu2 %599  ;;  %v2739_v14 = vsel %vm494_vm2, %v525_v59, %v526_v9 }
  0x7a   : > { %4525 = vst [vmem:[#allocation61_spill] sm:$0xff] %v2721_v3 }
  0x7b   : > { %4528 = vst [vmem:[#allocation64_spill] sm:$0xff] %v2739_v14 }
  0x7c   : > { %701 = vrot.lane.b32.xlu0 %v2717_v30, %s2228_s19  ;;  %v528_v30 = vrot.slane %v2421_v21, 2  ;;  %v2762_v21 = vsel %vm494_vm2, %v531_v26, %v533_v52  ;;  %v541_v26 = vrot.slane %v2473_v13, 2 }
  0x7d   : > { %4532 = vst [vmem:[#allocation68_spill] sm:$0xff] %v2762_v21 }
  0x7e   : > { %v2755_v59 = vsel %vm494_vm2, %v526_v9, %v528_v30  ;;  %v540_v30 = vrot.slane %v2476_v15, 2 }
  0x7f   : > { %705 = vrot.lane.b32.xlu2 %v2727_v2, %s2228_s19 }
  0x81   : > { %703 = vrot.lane.b32.xlu1 %v2732_v27, %s2228_s19  ;;  %v2743_v3 = vpop.permute.xlu2 %605 }
  0x82   : > { %4529 = vst [vmem:[#allocation65_spill] sm:$0xff] %v2743_v3  ;;  %v536_v3 = vrot.slane %v2456_v55, 2 }
  0x84   : > { %707 = vrot.lane.b32.xlu0 %v2739_v14, %s2228_s19  ;;  %v2774_v9 = vsel %vm494_vm2, %v536_v3, %v538_v20  ;;  %v2781_v18 = vsel %vm494_vm2, %v535_v42, %v536_v3  ;;  %v545_v20 = vrot.slane %v2514_v17, 2  ;;  %v548_v42 = vrot.slane %v2507_v54, 2 }
  0x85   : > { %4535 = vst [vmem:[#allocation71_spill] sm:$0xff] %v2774_v9  ;;  %v550_v54 = vrot.slane %v2531_v44, 2 }
  0x86   : > { %v2752_v2 = vpop.permute.xlu0 %2209  ;;  %4537 = vst [vmem:[#allocation73_spill] sm:$0xff] %v2781_v18 }
  0x87   : > { %4531 = vst [vmem:[#allocation67_spill] sm:$0xff] %v2752_v2  ;;  %711 = vrot.lane.b32.xlu2 %v2749_v43, %s2228_s19 }
  0x89   : > { %709 = vrot.lane.b32.xlu1 %v2755_v59, %s2228_s19  ;;  %v2766_v14 = vpop.permute.xlu2 %611 }
  0x8a   : > { %4533 = vst [vmem:[#allocation69_spill] sm:$0xff] %v2766_v14  ;;  %v2788_v14 = vsel %vm494_vm2, %v540_v30, %v541_v26 }
  0x8b   : > { %v2769_v2 = vpop.permute.xlu1 %593  ;;  %4538 = vst [vmem:[#allocation74_spill] sm:$0xff] %v2788_v14 }
  0x8c   : > { %4534 = vst [vmem:[#allocation70_spill] sm:$0xff] %v2769_v2  ;;  %713 = vrot.lane.b32.xlu0 %v2762_v21, %s2228_s19  ;;  %v546_v2 = vrot.slane %v2504_v53, 2 }
  0x8e   : > { %v2778_v52 = vpop.permute.xlu0 %591  ;;  %v2800_v3 = vsel %vm494_vm2, %v545_v20, %v546_v2  ;;  %v553_v20 = vrot.slane %v2544_v6, 2 }
  0x8f   : > { %4536 = vst [vmem:[#allocation72_spill] sm:$0xff] %v2778_v52  ;;  %717 = vrot.lane.b32.xlu2 %v2774_v9, %s2228_s19  ;;  %v543_v52 = vrot.slane %v2493_v37, 2  ;;  %v2813_v37 = vsel %vm494_vm2, %v546_v2, %v548_v42  ;;  %v556_v2 = vrot.slane %v2550_v60, 2 }
  0x90   : > { %4541 = vst [vmem:[#allocation77_spill] sm:$0xff] %v2800_v3 }
  0x91   : > { %715 = vrot.lane.b32.xlu1 %v2781_v18, %s2228_s19  ;;  %v2792_v21 = vpop.permute.xlu2 %617  ;;  %v2806_v9 = vsel %vm494_vm2, %v541_v26, %v543_v52  ;;  %4544 = vst [vmem:[#allocation80_spill] sm:$0xff] %v2813_v37  ;;  %v555_v52 = vrot.slane %v2541_v50, 2 }
  0x92   : > { %4539 = vst [vmem:[#allocation75_spill] sm:$0xff] %v2792_v21 }
  0x93   : > { %v2795_v43 = vpop.permute.xlu1 %595  ;;  %4543 = vst [vmem:[#allocation79_spill] sm:$0xff] %v2806_v9 }
  0x94   : > { %4540 = vst [vmem:[#allocation76_spill] sm:$0xff] %v2795_v43  ;;  %719 = vrot.lane.b32.xlu0 %v2788_v14, %s2228_s19  ;;  %v551_v43 = vrot.slane %v2528_v32, 2 }
  0x96   : > { %v2803_v30 = vpop.permute.xlu0 %601  ;;  %v2825_v26 = vsel %vm494_vm2, %v551_v43, %v553_v20  ;;  %v2832_v6 = vsel %vm494_vm2, %v550_v54, %v551_v43  ;;  %v560_v20 = vrot.slane %v2585_v45, 2  ;;  %v563_v54 = vrot.slane %v2582_v4, 2 }
  0x97   : > { %4542 = vst [vmem:[#allocation78_spill] sm:$0xff] %v2803_v30  ;;  %723 = vrot.lane.b32.xlu2 %v2800_v3, %s2228_s19  ;;  %v565_v4 = vrot.slane %v2603_v47, 2 }
  0x98   : > { %4547 = vst [vmem:[#allocation83_spill] sm:$0xff] %v2825_v26 }
  0x99   : > { %721 = vrot.lane.b32.xlu1 %v2806_v9, %s2228_s19  ;;  %v2817_v21 = vpop.permute.xlu2 %623  ;;  %4549 = vst [vmem:[#allocation85_spill] sm:$0xff] %v2832_v6 }
  0x9a   : > { %4545 = vst [vmem:[#allocation81_spill] sm:$0xff] %v2817_v21  ;;  %v561_v21 = vrot.slane %v2579_v31, 2 }
  0x9b   : > { %v2820_v30 = vpop.permute.xlu1 %603 }
  0x9c   : > { %4546 = vst [vmem:[#allocation82_spill] sm:$0xff] %v2820_v30  ;;  %725 = vrot.lane.b32.xlu0 %v2813_v37, %s2228_s19  ;;  %v2839_v30 = vsel %vm494_vm2, %v555_v52, %v556_v2  ;;  %v2851_v43 = vsel %vm494_vm2, %v560_v20, %v561_v21  ;;  %v568_v20 = vrot.slane %v2622_v10, 2 }
  0x9d   : > { %4550 = vst [vmem:[#allocation86_spill] sm:$0xff] %v2839_v30 }
  0x9e   : > { %v2829_v42 = vpop.permute.xlu0 %607  ;;  %4553 = vst [vmem:[#allocation89_spill] sm:$0xff] %v2851_v43 }
  0x9f   : > { %4548 = vst [vmem:[#allocation84_spill] sm:$0xff] %v2829_v42  ;;  %729 = vrot.lane.b32.xlu2 %v2825_v26, %s2228_s19  ;;  %v558_v42 = vrot.slane %v2565_v61, 2  ;;  %v2864_v61 = vsel %vm494_vm2, %v561_v21, %v563_v54  ;;  %v571_v21 = vrot.slane %v2616_v58, 2 }
  0xa0   : > { %4556 = vst [vmem:[#allocation92_spill] sm:$0xff] %v2864_v61 }
  0xa1   : > { %727 = vrot.lane.b32.xlu1 %v2832_v6, %s2228_s19  ;;  %v2843_v37 = vpop.permute.xlu2 %629  ;;  %v2857_v26 = vsel %vm494_vm2, %v556_v2, %v558_v42  ;;  %v570_v42 = vrot.slane %v2619_v7, 2 }
  0xa2   : > { %4551 = vst [vmem:[#allocation87_spill] sm:$0xff] %v2843_v37 }
  0xa3   : > { %v2846_v3 = vpop.permute.xlu1 %609  ;;  %4555 = vst [vmem:[#allocation91_spill] sm:$0xff] %v2857_v26 }
  0xa4   : > { %4552 = vst [vmem:[#allocation88_spill] sm:$0xff] %v2846_v3  ;;  %731 = vrot.lane.b32.xlu0 %v2839_v30, %s2228_s19  ;;  %v566_v3 = vrot.slane %v2600_v46, 2 }
  0xa6   : > { %v2854_v52 = vpop.permute.xlu0 %613  ;;  %v2876_v2 = vsel %vm494_vm2, %v566_v3, %v568_v20  ;;  %v2883_v10 = vsel %vm494_vm2, %v565_v4, %v566_v3 }
  0xa7   : > { %4554 = vst [vmem:[#allocation90_spill] sm:$0xff] %v2854_v52  ;;  %735 = vrot.lane.b32.xlu2 %v2851_v43, %s2228_s19 }
  0xa8   : > { %4559 = vst [vmem:[#allocation95_spill] sm:$0xff] %v2876_v2 }
  0xa9   : > { %733 = vrot.lane.b32.xlu1 %v2857_v26, %s2228_s19  ;;  %v2868_v37 = vpop.permute.xlu2 %635  ;;  %4561 = vst [vmem:[#allocation97_spill] sm:$0xff] %v2883_v10 }
  0xaa   : > { %4557 = vst [vmem:[#allocation93_spill] sm:$0xff] %v2868_v37  ;;  %v2890_v37 = vsel %vm494_vm2, %v570_v42, %v571_v21 }
  0xab   : > { %v2871_v52 = vpop.permute.xlu1 %615 }
  0xac   : > { %4558 = vst [vmem:[#allocation94_spill] sm:$0xff] %v2871_v52  ;;  %737 = vrot.lane.b32.xlu0 %v2864_v61, %s2228_s19  ;;  %v573_v52 = vrot.slane %v2635_v19, 2 }
  0xae   : > { %v2880_v54 = vpop.permute.xlu0 %619  ;;  %v2902_v4 = vsel %vm494_vm2, %v571_v21, %v573_v52 }
  0xaf   : > { %4560 = vst [vmem:[#allocation96_spill] sm:$0xff] %v2880_v54  ;;  %741 = vrot.lane.b32.xlu2 %v2876_v2, %s2228_s19 }
  0xb0   : > { %4564 = vst [vmem:[#allocation100_spill] sm:$0xff] %v2902_v4 }
  0xb1   : > { %739 = vrot.lane.b32.xlu1 %v2883_v10, %s2228_s19  ;;  %v2892_v20 = vpop.permute.xlu2 %641 }
  0xb2   : > { %4562 = vst [vmem:[#allocation98_spill] sm:$0xff] %v2892_v20 }
  0xb3   : > { %v2895_v61 = vpop.permute.xlu1 %621 }
  0xb4   : > { %743 = vrot.lane.b32.xlu0 %v2890_v37, %s2228_s19 }
  0xb6   : > { %v2899_v3 = vpop.permute.xlu0 %625 }
  0xb7   : > { %4563 = vst [vmem:[#allocation99_spill] sm:$0xff] %v2899_v3  ;;  %779 = vrot.lane.b32.xlu2 %v2308_v24, %s2229_s20 }
  0xb9   : > { %745 = vrot.lane.b32.xlu1 %v2902_v4, %s2228_s19  ;;  %v2908_v42 = vpop.permute.xlu2 %647 }
  0xba   : > { %4565 = vst [vmem:[#allocation101_spill] sm:$0xff] %v2908_v42 }
  0xbb   : > { %v2910_v19 = vpop.permute.xlu1 %627 }
  0xbc   : > { %781 = vrot.lane.b32.xlu0 %v2316_v28, %s2229_s20 }
  0xbe   : > { %v2914_v20 = vpop.permute.xlu0 %631 }
  0xbf   : > { %4566 = vst [vmem:[#allocation102_spill] sm:$0xff] %v2914_v20  ;;  %785 = vrot.lane.b32.xlu2 %v2302_v22, %s2229_s20 }
  0xc1   : > { %783 = vrot.lane.b32.xlu1 %v2311_v25, %s2229_s20  ;;  %v2920_v52 = vpop.permute.xlu2 %687 }
  0xc2   : > { %4567 = vst [vmem:[#allocation103_spill] sm:$0xff] %v2920_v52 }
  0xc3   : > { %v2922_v21 = vpop.permute.xlu1 %633 }
  0xc4   : > { %787 = vrot.lane.b32.xlu0 %v2331_v35, %s2229_s20 }
  0xc6   : > { %v2926_v24 = vpop.permute.xlu0 %637 }
  0xc7   : > { %4568 = vst [vmem:[#allocation104_spill] sm:$0xff] %v2926_v24  ;;  %791 = vrot.lane.b32.xlu2 %v2370_v56, %s2229_s20 }
  0xc9   : > { %789 = vrot.lane.b32.xlu1 %v2325_v33, %s2229_s20  ;;  %v2932_v28 = vpop.permute.xlu2 %693 }
  0xca   : > { %4569 = vst [vmem:[#allocation105_spill] sm:$0xff] %v2932_v28 }
  0xcb   : > { %v2934_v42 = vpop.permute.xlu1 %639 }
  0xcc   : > { %4570 = vst [vmem:[#allocation106_spill] sm:$0xff] %v2934_v42  ;;  %793 = vrot.lane.b32.xlu0 %v2363_v51, %s2229_s20  ;;  %v4622_v42 = vld [vmem:[#allocation33_spill] sm:$0xff] }
  0xce   : > { %v2938_v52 = vpop.permute.xlu0 %643 }
  0xcf   : > { %4571 = vst [vmem:[#allocation107_spill] sm:$0xff] %v2938_v52  ;;  %797 = vrot.lane.b32.xlu2 %v2384_v63, %s2229_s20 }
  0xd1   : > { %795 = vrot.lane.b32.xlu1 %v2387_v0, %s2229_s20  ;;  %v2944_v24 = vpop.permute.xlu2 %699 }
  0xd2   : > { %4572 = vst [vmem:[#allocation108_spill] sm:$0xff] %v2944_v24 }
  0xd3   : > { %v2946_v20 = vpop.permute.xlu1 %645 }
  0xd4   : > { %4573 = vst [vmem:[#allocation109_spill] sm:$0xff] %v2946_v20  ;;  %799 = vrot.lane.b32.xlu0 %v2403_v12, %s2229_s20 }
  0xd6   : > { %v2950_v28 = vpop.permute.xlu0 %649 }
  0xd7   : > { %4574 = vst [vmem:[#allocation110_spill] sm:$0xff] %v2950_v28  ;;  %803 = vrot.lane.b32.xlu2 %v2432_v36, %s2229_s20 }
  0xd9   : > { %801 = vrot.lane.b32.xlu1 %v2400_v11, %s2229_s20  ;;  %v2956_v52 = vpop.permute.xlu2 %705 }
  0xda   : > { %4575 = vst [vmem:[#allocation111_spill] sm:$0xff] %v2956_v52 }
  0xdb   : > { %v2958_v63 = vpop.permute.xlu1 %2214 }
  0xdc   : > { %4576 = vst [vmem:[#allocation112_spill] sm:$0xff] %v2958_v63  ;;  %805 = vrot.lane.b32.xlu0 %v2438_v41, %s2229_s20 }
  0xde   : > { %v2962_v24 = vpop.permute.xlu0 %689 }
  0xdf   : > { %4577 = vst [vmem:[#allocation113_spill] sm:$0xff] %v2962_v24  ;;  %809 = vrot.lane.b32.xlu2 %v2456_v55, %s2229_s20 }
  0xe1   : > { %807 = vrot.lane.b32.xlu1 %v2459_v57, %s2229_s20  ;;  %v2968_v0 = vpop.permute.xlu2 %711  ;;  %v4610_v57 = vld [vmem:[#allocation23_spill] sm:$0xff] }
  0xe3   : > { %v2970_v28 = vpop.permute.xlu1 %691 }
  0xe4   : > { %4578 = vst [vmem:[#allocation114_spill] sm:$0xff] %v2970_v28  ;;  %811 = vrot.lane.b32.xlu0 %v2476_v15, %s2229_s20 }
  0xe6   : > { %v2974_v52 = vpop.permute.xlu0 %695 }
  0xe7   : > { %4579 = vst [vmem:[#allocation115_spill] sm:$0xff] %v2974_v52  ;;  %815 = vrot.lane.b32.xlu2 %v2514_v17, %s2229_s20 }
  0xe9   : > { %813 = vrot.lane.b32.xlu1 %v2473_v13, %s2229_s20  ;;  %v2980_v24 = vpop.permute.xlu2 %717 }
  0xeb   : > { %v2982_v63 = vpop.permute.xlu1 %697 }
  0xec   : > { %4580 = vst [vmem:[#allocation116_spill] sm:$0xff] %v2982_v63  ;;  %817 = vrot.lane.b32.xlu0 %v2504_v53, %s2229_s20  ;;  %v4634_v53 = vld [vmem:[#allocation44_spill] sm:$0xff] }
  0xee   : > { %v2986_v28 = vpop.permute.xlu0 %701 }
  0xef   : > { %4581 = vst [vmem:[#allocation117_spill] sm:$0xff] %v2986_v28  ;;  %821 = vrot.lane.b32.xlu2 %v2528_v32, %s2229_s20 }
  0xf1   : > { %819 = vrot.lane.b32.xlu1 %v2531_v44, %s2229_s20  ;;  %v2992_v52 = vpop.permute.xlu2 %723 }
  0xf3   : > { %v2994_v51 = vpop.permute.xlu1 %703 }
  0xf4   : > { %4582 = vst [vmem:[#allocation118_spill] sm:$0xff] %v2994_v51  ;;  %823 = vrot.lane.b32.xlu0 %v2541_v50, %s2229_s20  ;;  %v212_v51 = vld [vmem:[%s2284_s17 + $0xf0] sm:$0xff] }
  0xf6   : > { %v2998_v63 = vpop.permute.xlu0 %707 }
  0xf7   : > { %4583 = vst [vmem:[#allocation119_spill] sm:$0xff] %v2998_v63  ;;  %827 = vrot.lane.b32.xlu2 %v2585_v45, %s2229_s20  ;;  %v295_v63 = vrot.slane %v212_v51, 7 }
  0xf9   : > { %825 = vrot.lane.b32.xlu1 %v2550_v60, %s2229_s20  ;;  %v3004_v28 = vpop.permute.xlu2 %729  ;;  %v3020_v60 = vld [vmem:[%s2284_s17 + $0xf8] sm:$0xff]  ;;  %s181_s17 = scalar_lea.vmem %s4326_s3, %s2138_s14 }
  0xfa   : > { %v4433_v20 = vrot.slane %v3020_v60, 7 }
  0xfb   : > { %v3006_v13 = vpop.permute.xlu1 %709 }
  0xfc   : > { %829 = vrot.lane.b32.xlu0 %v2579_v31, %s2229_s20  ;;  %v3027_v31 = vsel %vm247_vm0, 0.0, %v295_v63  ;;  %v3039_v51 = vsel %vm247_vm0, %v295_v63, %v4433_v20 }
  0xfd   : > { %4586 = vst [vmem:[#allocation122_spill] sm:$0xff] %v3027_v31 }
  0xfe   : > { %v3010_v44 = vpop.permute.xlu0 %713  ;;  %4588 = vst [vmem:[#allocation124_spill] sm:$0xff] %v3039_v51 }
  0xff   : > { %833 = vrot.lane.b32.xlu2 %v2600_v46, %s2229_s20 }
 0x101   : > { %831 = vrot.lane.b32.xlu1 %v2603_v47, %s2229_s20  ;;  %v3017_v50 = vpop.permute.xlu2 %735 }
 0x102   : > { %4584 = vst [vmem:[#allocation120_spill] sm:$0xff] %v3017_v50 }
 0x103   : > { %v3022_v3 = vpop.permute.xlu1 %715 }
 0x104   : > { %4585 = vst [vmem:[#allocation121_spill] sm:$0xff] %v3022_v3  ;;  %835 = vrot.lane.b32.xlu0 %v2619_v7, %s2229_s20  ;;  %v4604_v3 = vld [vmem:[#allocation20_spill] sm:$0xff] }
 0x106   : > { %v3030_v15 = vpop.permute.xlu0 %719 }
 0x107   : > { %4587 = vst [vmem:[#allocation123_spill] sm:$0xff] %v3030_v15  ;;  %839 = vrot.lane.b32.xlu2 %v3027_v31, %s2229_s20 }
 0x109   : > { %837 = vrot.lane.b32.xlu1 %v2616_v58, %s2229_s20  ;;  %v3041_v47 = vpop.permute.xlu2 %741 }
 0x10a   : > { %4589 = vst [vmem:[#allocation125_spill] sm:$0xff] %v3041_v47 }
 0x10b   : > { %v3043_v7 = vpop.permute.xlu1 %721 }
 0x10c   : > { %4590 = vst [vmem:[#allocation126_spill] sm:$0xff] %v3043_v7  ;;  %841 = vrot.lane.b32.xlu0 %v3039_v51, %s2229_s20 }
 0x10e   : > { %v3047_v46 = vpop.permute.xlu0 %725 }
 0x10f   : > { %4591 = vst [vmem:[#allocation127_spill] sm:$0xff] %v3047_v46  ;;  %877 = vrot.lane.b32.xlu2 %v2338_v38, %s2230_s21  ;;  %v4595_v46 = vld [vmem:[#allocation11_spill] sm:$0xff] }
 0x111   : > { %875 = vrot.lane.b32.xlu1 %v2343_v39, %s2230_s21  ;;  %v3053_v58 = vpop.permute.xlu2 %779  ;;  %v4598_v39 = vld [vmem:[#allocation14_spill] sm:$0xff] }
 0x112   : > { %4592 = vst [vmem:[#allocation128_spill] sm:$0xff] %v3053_v58 }
 0x113   : > { %v3055_v63 = vpop.permute.xlu1 %727 }
 0x114   : > { %4593 = vst [vmem:[#allocation129_spill] sm:$0xff] %v3055_v63  ;;  %879 = vrot.lane.b32.xlu0 %v2359_v49, %s2230_s21  ;;  %v4600_v63 = vld [vmem:[#allocation17_spill] sm:$0xff] }
 0x116   : > { %v3059_v20 = vpop.permute.xlu0 %731 }
 0x117   : > { %4594 = vst [vmem:[#allocation130_spill] sm:$0xff] %v3059_v20  ;;  %883 = vrot.lane.b32.xlu2 %v2356_v48, %s2230_s21  ;;  %v4601_v20 = vld [vmem:[#allocation18_spill] sm:$0xff] }
 0x119   : > { %881 = vrot.lane.b32.xlu1 %v4595_v46, %s2230_s21  ;;  %v3065_v7 = vpop.permute.xlu2 %785 }
 0x11a   : > { %4596 = vst [vmem:[#allocation11_spill] sm:$0xff] %v3065_v7 }
 0x11b   : > { %v3067_v38 = vpop.permute.xlu1 %733 }
 0x11c   : > { %4597 = vst [vmem:[#allocation131_spill] sm:$0xff] %v3067_v38  ;;  %885 = vrot.lane.b32.xlu0 %v4598_v39, %s2230_s21  ;;  %v4606_v38 = vld [vmem:[#allocation21_spill] sm:$0xff] }
 0x11e   : > { %v3071_v58 = vpop.permute.xlu0 %737 }
 0x11f   : > { %4599 = vst [vmem:[#allocation14_spill] sm:$0xff] %v3071_v58  ;;  %889 = vrot.lane.b32.xlu2 %v4600_v63, %s2230_s21  ;;  %v4607_v58 = vld [vmem:[#allocation22_spill] sm:$0xff] }
 0x121   : > { %887 = vrot.lane.b32.xlu1 %v4601_v20, %s2230_s21  ;;  %v3077_v47 = vpop.permute.xlu2 %791 }
 0x122   : > { %4602 = vst [vmem:[#allocation18_spill] sm:$0xff] %v3077_v47 }
 0x123   : > { %v3079_v15 = vpop.permute.xlu1 %739 }
 0x124   : > { %4603 = vst [vmem:[#allocation132_spill] sm:$0xff] %v3079_v15  ;;  %891 = vrot.lane.b32.xlu0 %v4604_v3, %s2230_s21  ;;  %v4612_v15 = vld [vmem:[#allocation25_spill] sm:$0xff]  ;;  %v4613_v3 = vld [vmem:[#allocation26_spill] sm:$0xff] }
 0x126   : > { %v3083_v7 = vpop.permute.xlu0 %743 }
 0x127   : > { %4605 = vst [vmem:[#allocation133_spill] sm:$0xff] %v3083_v7  ;;  %895 = vrot.lane.b32.xlu2 %v4606_v38, %s2230_s21 }
 0x129   : > { %893 = vrot.lane.b32.xlu1 %v4607_v58, %s2230_s21  ;;  %v3089_v50 = vpop.permute.xlu2 %797  ;;  %v4616_v58 = vld [vmem:[#allocation29_spill] sm:$0xff] }
 0x12a   : > { %4608 = vst [vmem:[#allocation21_spill] sm:$0xff] %v3089_v50 }
 0x12b   : > { %v3091_v63 = vpop.permute.xlu1 %745 }
 0x12c   : > { %4609 = vst [vmem:[#allocation134_spill] sm:$0xff] %v3091_v63  ;;  %897 = vrot.lane.b32.xlu0 %v4610_v57, %s2230_s21  ;;  %v4618_v63 = vld [vmem:[#allocation30_spill] sm:$0xff] }
 0x12e   : > { %v3095_v47 = vpop.permute.xlu0 %781 }
 0x12f   : > { %4611 = vst [vmem:[#allocation23_spill] sm:$0xff] %v3095_v47  ;;  %901 = vrot.lane.b32.xlu2 %v4612_v15, %s2230_s21  ;;  %v4619_v47 = vld [vmem:[#allocation32_spill] sm:$0xff] }
 0x131   : > { %899 = vrot.lane.b32.xlu1 %v4613_v3, %s2230_s21  ;;  %v3101_v7 = vpop.permute.xlu2 %803 }
 0x132   : > { %4614 = vst [vmem:[#allocation26_spill] sm:$0xff] %v3101_v7 }
 0x133   : > { %v3103_v54 = vpop.permute.xlu1 %783 }
 0x134   : > { %4615 = vst [vmem:[#allocation135_spill] sm:$0xff] %v3103_v54  ;;  %903 = vrot.lane.b32.xlu0 %v4616_v58, %s2230_s21  ;;  %v4624_v54 = vld [vmem:[#allocation35_spill] sm:$0xff] }
 0x136   : > { %v3107_v50 = vpop.permute.xlu0 %787 }
 0x137   : > { %4617 = vst [vmem:[#allocation136_spill] sm:$0xff] %v3107_v50  ;;  %907 = vrot.lane.b32.xlu2 %v4618_v63, %s2230_s21  ;;  %v4625_v50 = vld [vmem:[#allocation37_spill] sm:$0xff] }
 0x139   : > { %905 = vrot.lane.b32.xlu1 %v4619_v47, %s2230_s21  ;;  %v3113_v45 = vpop.permute.xlu2 %809  ;;  %v4628_v47 = vld [vmem:[#allocation39_spill] sm:$0xff] }
 0x13a   : > { %4620 = vst [vmem:[#allocation137_spill] sm:$0xff] %v3113_v45 }
 0x13b   : > { %v3115_v15 = vpop.permute.xlu1 %789 }
 0x13c   : > { %4621 = vst [vmem:[#allocation138_spill] sm:$0xff] %v3115_v15  ;;  %909 = vrot.lane.b32.xlu0 %v4622_v42, %s2230_s21  ;;  %v4630_v15 = vld [vmem:[#allocation40_spill] sm:$0xff] }
 0x13e   : > { %v3119_v7 = vpop.permute.xlu0 %793 }
 0x13f   : > { %4623 = vst [vmem:[#allocation139_spill] sm:$0xff] %v3119_v7  ;;  %913 = vrot.lane.b32.xlu2 %v4624_v54, %s2230_s21  ;;  %v4631_v7 = vld [vmem:[#allocation41_spill] sm:$0xff] }
 0x141   : > { %911 = vrot.lane.b32.xlu1 %v4625_v50, %s2230_s21  ;;  %v3125_v58 = vpop.permute.xlu2 %815 }
 0x142   : > { %4626 = vst [vmem:[#allocation37_spill] sm:$0xff] %v3125_v58 }
 0x143   : > { %v3127_v63 = vpop.permute.xlu1 %795 }
 0x144   : > { %4627 = vst [vmem:[#allocation140_spill] sm:$0xff] %v3127_v63  ;;  %915 = vrot.lane.b32.xlu0 %v4628_v47, %s2230_s21  ;;  %v4635_v63 = vld [vmem:[#allocation47_spill] sm:$0xff] }
 0x146   : > { %v3131_v45 = vpop.permute.xlu0 %799 }
 0x147   : > { %4629 = vst [vmem:[#allocation141_spill] sm:$0xff] %v3131_v45  ;;  %919 = vrot.lane.b32.xlu2 %v4630_v15, %s2230_s21  ;;  %v4636_v45 = vld [vmem:[#allocation48_spill] sm:$0xff] }
 0x149   : > { %917 = vrot.lane.b32.xlu1 %v4631_v7, %s2230_s21  ;;  %v3137_v42 = vpop.permute.xlu2 %821 }
 0x14a   : > { %4632 = vst [vmem:[#allocation142_spill] sm:$0xff] %v3137_v42 }
 0x14b   : > { %v3139_v54 = vpop.permute.xlu1 %801 }
 0x14c   : > { %4633 = vst [vmem:[#allocation143_spill] sm:$0xff] %v3139_v54  ;;  %921 = vrot.lane.b32.xlu0 %v4634_v53, %s2230_s21  ;;  %v4639_v54 = vrot.slane %v3020_v60, 7 }
 0x14e   : > { %v3143_v58 = vpop.permute.xlu0 %805  ;;  %v3160_v53 = vsel %vm247_vm0, %v4639_v54, 0.0 }
 0x14f   : > { %925 = vrot.lane.b32.xlu2 %v4635_v63, %s2230_s21  ;;  %v578_v63 = vrot.slane %v3039_v51, 1 }
 0x151   : > { %923 = vrot.lane.b32.xlu1 %v4636_v45, %s2230_s21  ;;  %v3149_v47 = vpop.permute.xlu2 %827  ;;  %v580_v45 = vrot.slane %v3160_v53, 1 }
 0x152   : > { %4637 = vst [vmem:[#allocation144_spill] sm:$0xff] %v3149_v47 }
 0x153   : > { %v3151_v15 = vpop.permute.xlu1 %807  ;;  %v3176_v60 = vsel %vm413_vm1, %v578_v63, %v580_v45 }
 0x154   : > { %927 = vrot.lane.b32.xlu0 %v2629_v62, %s2230_s21  ;;  %v577_v62 = vrot.slane %v3027_v31, 1  ;;  %4641 = vst [vmem:[#allocation147_spill] sm:$0xff] %v3176_v60 }
 0x156   : > { %v3155_v7 = vpop.permute.xlu0 %811 }
 0x157   : > { %4638 = vst [vmem:[#allocation145_spill] sm:$0xff] %v3155_v7  ;;  %931 = vrot.lane.b32.xlu2 %v2640_v16, %s2230_s21  ;;  %v3181_v16 = vsel %vm413_vm1, %v577_v62, %v578_v63 }
 0x158   : > { %4643 = vst [vmem:[#allocation149_spill] sm:$0xff] %v3181_v16 }
 0x159   : > { %929 = vrot.lane.b32.xlu1 %v2645_v8, %s2230_s21  ;;  %v3168_v47 = vpop.permute.xlu2 %833 }
 0x15a   : > { %4640 = vst [vmem:[#allocation146_spill] sm:$0xff] %v3168_v47 }
 0x15b   : > { %v3171_v42 = vpop.permute.xlu1 %813 }
 0x15c   : > { %933 = vrot.lane.b32.xlu0 %v2654_v40, %s2230_s21 }
 0x15e   : > { %v3178_v54 = vpop.permute.xlu0 %817 }
 0x15f   : > { %4642 = vst [vmem:[#allocation148_spill] sm:$0xff] %v3178_v54  ;;  %937 = vrot.lane.b32.xlu2 %v3176_v60, %s2230_s21  ;;  %v4647_v60 = vld [vmem:[#allocation57_spill] sm:$0xff]  ;;  %v4655_v54 = vld [vmem:[#allocation62_spill] sm:$0xff] }
 0x161   : > { %935 = vrot.lane.b32.xlu1 %v3181_v16, %s2230_s21  ;;  %v3187_v8 = vpop.permute.xlu2 %839 }
 0x162   : > { %4644 = vst [vmem:[#allocation150_spill] sm:$0xff] %v3187_v8  ;;  %v4652_v8 = vld [vmem:[#allocation60_spill] sm:$0xff] }
 0x163   : > { %v3189_v47 = vpop.permute.xlu1 %819 }
 0x164   : > { %971 = vrot.lane.b32.xlu0 %v2667_v1, %s2231_s22 }
 0x166   : > { %v3193_v45 = vpop.permute.xlu0 %823 }
 0x167   : > { %4645 = vst [vmem:[#allocation151_spill] sm:$0xff] %v3193_v45  ;;  %975 = vrot.lane.b32.xlu2 %v2689_v5, %s2231_s22 }
 0x169   : > { %973 = vrot.lane.b32.xlu1 %v2676_v34, %s2231_s22  ;;  %v3199_v62 = vpop.permute.xlu2 %877  ;;  %v4650_v34 = vld [vmem:[#allocation59_spill] sm:$0xff] }
 0x16a   : > { %4646 = vst [vmem:[#allocation152_spill] sm:$0xff] %v3199_v62 }
 0x16b   : > { %v3201_v63 = vpop.permute.xlu1 %825 }
 0x16c   : > { %977 = vrot.lane.b32.xlu0 %v4647_v60, %s2231_s22 }
 0x16e   : > { %v3205_v16 = vpop.permute.xlu0 %829 }
 0x16f   : > { %4648 = vst [vmem:[#allocation57_spill] sm:$0xff] %v3205_v16  ;;  %981 = vrot.lane.b32.xlu2 %v2710_v29, %s2231_s22 }
 0x171   : > { %979 = vrot.lane.b32.xlu1 %v2696_v23, %s2231_s22  ;;  %v3211_v1 = vpop.permute.xlu2 %883 }
 0x172   : > { %4649 = vst [vmem:[#allocation153_spill] sm:$0xff] %v3211_v1 }
 0x173   : > { %v3213_v40 = vpop.permute.xlu1 %831 }
 0x174   : > { %983 = vrot.lane.b32.xlu0 %v4650_v34, %s2231_s22  ;;  %v4664_v34 = vld [vmem:[#allocation71_spill] sm:$0xff] }
 0x176   : > { %v3217_v62 = vpop.permute.xlu0 %835 }
 0x177   : > { %4651 = vst [vmem:[#allocation154_spill] sm:$0xff] %v3217_v62  ;;  %987 = vrot.lane.b32.xlu2 %v2732_v27, %s2231_s22  ;;  %v4657_v62 = vld [vmem:[#allocation64_spill] sm:$0xff] }
 0x179   : > { %985 = vrot.lane.b32.xlu1 %v4652_v8, %s2231_s22  ;;  %v3223_v16 = vpop.permute.xlu2 %889  ;;  %v4660_v8 = vld [vmem:[#allocation66_spill] sm:$0xff] }
 0x17a   : > { %4653 = vst [vmem:[#allocation155_spill] sm:$0xff] %v3223_v16 }
 0x17b   : > { %v3225_v45 = vpop.permute.xlu1 %837 }
 0x17c   : > { %4654 = vst [vmem:[#allocation156_spill] sm:$0xff] %v3225_v45  ;;  %989 = vrot.lane.b32.xlu0 %v4655_v54, %s2231_s22  ;;  %v4662_v54 = vld [vmem:[#allocation68_spill] sm:$0xff] }
 0x17e   : > { %v3229_v1 = vpop.permute.xlu0 %841 }
 0x17f   : > { %4656 = vst [vmem:[#allocation157_spill] sm:$0xff] %v3229_v1  ;;  %993 = vrot.lane.b32.xlu2 %v2755_v59, %s2231_s22 }
 0x181   : > { %991 = vrot.lane.b32.xlu1 %v4657_v62, %s2231_s22  ;;  %v3235_v7 = vpop.permute.xlu2 %895 }
 0x182   : > { %4658 = vst [vmem:[#allocation64_spill] sm:$0xff] %v3235_v7 }
 0x183   : > { %v3237_v27 = vpop.permute.xlu1 %875 }
 0x184   : > { %4659 = vst [vmem:[#allocation158_spill] sm:$0xff] %v3237_v27  ;;  %995 = vrot.lane.b32.xlu0 %v4660_v8, %s2231_s22  ;;  %v4667_v27 = vld [vmem:[#allocation77_spill] sm:$0xff] }
 0x186   : > { %v3241_v16 = vpop.permute.xlu0 %879 }
 0x187   : > { %4661 = vst [vmem:[#allocation66_spill] sm:$0xff] %v3241_v16  ;;  %999 = vrot.lane.b32.xlu2 %v2781_v18, %s2231_s22 }
 0x189   : > { %997 = vrot.lane.b32.xlu1 %v4662_v54, %s2231_s22  ;;  %v3247_v1 = vpop.permute.xlu2 %901 }
 0x18b   : > { %v3249_v45 = vpop.permute.xlu1 %881 }
 0x18c   : > { %4663 = vst [vmem:[#allocation159_spill] sm:$0xff] %v3249_v45  ;;  %1001 = vrot.lane.b32.xlu0 %v4664_v34, %s2231_s22 }
 0x18e   : > { %v3253_v7 = vpop.permute.xlu0 %885 }
 0x18f   : > { %4665 = vst [vmem:[#allocation160_spill] sm:$0xff] %v3253_v7  ;;  %1005 = vrot.lane.b32.xlu2 %v2806_v9, %s2231_s22  ;;  %v4669_v7 = vld [vmem:[#allocation80_spill] sm:$0xff] }
 0x191   : > { %1003 = vrot.lane.b32.xlu1 %v2788_v14, %s2231_s22  ;;  %v3259_v16 = vpop.permute.xlu2 %907  ;;  %v4671_v14 = vld [vmem:[#allocation83_spill] sm:$0xff] }
 0x193   : > { %v3261_v18 = vpop.permute.xlu1 %887 }
 0x194   : > { %4666 = vst [vmem:[#allocation161_spill] sm:$0xff] %v3261_v18  ;;  %1007 = vrot.lane.b32.xlu0 %v4667_v27, %s2231_s22 }
 0x196   : > { %v3265_v54 = vpop.permute.xlu0 %891 }
 0x197   : > { %4668 = vst [vmem:[#allocation77_spill] sm:$0xff] %v3265_v54  ;;  %1011 = vrot.lane.b32.xlu2 %v2832_v6, %s2231_s22 }
 0x199   : > { %1009 = vrot.lane.b32.xlu1 %v4669_v7, %s2231_s22  ;;  %v3271_v34 = vpop.permute.xlu2 %913 }
 0x19b   : > { %v3273_v9 = vpop.permute.xlu1 %893 }
 0x19c   : > { %4670 = vst [vmem:[#allocation80_spill] sm:$0xff] %v3273_v9  ;;  %1013 = vrot.lane.b32.xlu0 %v4671_v14, %s2231_s22  ;;  %v4674_v9 = vld [vmem:[#allocation92_spill] sm:$0xff] }
 0x19e   : > { %v3277_v45 = vpop.permute.xlu0 %897 }
 0x19f   : > { %4672 = vst [vmem:[#allocation162_spill] sm:$0xff] %v3277_v45  ;;  %1017 = vrot.lane.b32.xlu2 %v2857_v26, %s2231_s22 }
 0x1a1   : > { %1015 = vrot.lane.b32.xlu1 %v2839_v30, %s2231_s22  ;;  %v3283_v18 = vpop.permute.xlu2 %919  ;;  %v582_v30 = vrot.slane %v3027_v31, 2 }
 0x1a3   : > { %v3285_v54 = vpop.permute.xlu1 %899 }
 0x1a4   : > { %4673 = vst [vmem:[#allocation163_spill] sm:$0xff] %v3285_v54  ;;  %1019 = vrot.lane.b32.xlu0 %v2851_v43, %s2231_s22  ;;  %v583_v54 = vrot.slane %v3039_v51, 2 }
 0x1a6   : > { %v904_v6 = vpop.permute.xlu0 %903 }
 0x1a7   : > { %1023 = vrot.lane.b32.xlu2 %v2883_v10, %s2231_s22  ;;  %v585_v10 = vrot.slane %v3160_v53, 2 }
 0x1a9   : > { %1021 = vrot.lane.b32.xlu1 %v4674_v9, %s2231_s22  ;;  %v3293_v45 = vpop.permute.xlu2 %925  ;;  %v3308_v9 = vsel %vm494_vm2, %v582_v30, %v583_v54  ;;  %v3320_v31 = vsel %vm494_vm2, %v583_v54, %v585_v10 }
 0x1aa   : > { %4675 = vst [vmem:[#allocation164_spill] sm:$0xff] %v3308_v9 }
 0x1ab   : > { %v3295_v26 = vpop.permute.xlu1 %905  ;;  %4676 = vst [vmem:[#allocation165_spill] sm:$0xff] %v3320_v31 }
 0x1ac   : > { %1025 = vrot.lane.b32.xlu0 %v2876_v2, %s2231_s22 }
 0x1ae   : > { %v3301_v14 = vpop.permute.xlu0 %909 }
 0x1af   : > { %1029 = vrot.lane.b32.xlu2 %v2902_v4, %s2231_s22 }
 0x1b1   : > { %1027 = vrot.lane.b32.xlu1 %v2890_v37, %s2231_s22  ;;  %v3310_v43 = vpop.permute.xlu2 %931 }
 0x1b3   : > { %v3313_v2 = vpop.permute.xlu1 %911 }
 0x1b4   : > { %1031 = vrot.lane.b32.xlu0 %v3308_v9, %s2231_s22 }
 0x1b6   : > { %v3317_v51 = vpop.permute.xlu0 %915 }
 0x1b7   : > { %1067 = vrot.lane.b32.xlu2 %v2311_v25, %s2232_s23 }
 0x1b9   : > { %1033 = vrot.lane.b32.xlu1 %v3320_v31, %s2231_s22  ;;  %v3326_v30 = vpop.permute.xlu2 %937 }
 0x1bb   : > { %v3328_v53 = vpop.permute.xlu1 %917 }
 0x1bc   : > { %1163 = vrot.lane.b32.xlu0 %v2359_v49, %s2233_s24 }
 0x1be   : > { %v3332_v9 = vpop.permute.xlu0 %921 }
 0x1bf   : > { %1069 = vrot.lane.b32.xlu2 %v2302_v22, %s2232_s23 }
 0x1c1   : > { %1259 = vrot.lane.b32.xlu1 %v2689_v5, %s2234_s25  ;;  %v3338_v10 = vpop.permute.xlu2 %975 }
 0x1c3   : > { %v3340_v54 = vpop.permute.xlu1 %923 }
 0x1c4   : > { %1165 = vrot.lane.b32.xlu0 %v4595_v46, %s2233_s24 }
 0x1c6   : > { %v3344_v31 = vpop.permute.xlu0 %927 }
 0x1c7   : > { %1071 = vrot.lane.b32.xlu2 %v2331_v35, %s2232_s23 }
 0x1c9   : > { %1261 = vrot.lane.b32.xlu1 %v4647_v60, %s2234_s25  ;;  %v3350_v49 = vpop.permute.xlu2 %981 }
 0x1ca   : > { %4677 = vst [vmem:[#allocation166_spill] sm:$0xff] %v3350_v49  ;;  %v4679_v49 = vld [vmem:[#allocation94_spill] sm:$0xff] }
 0x1cb   : > { %v3352_v4 = vpop.permute.xlu1 %929 }
 0x1cc   : > { %1083 = vrot.lane.b32.xlu0 %v2403_v12, %s2232_s23 }
 0x1ce   : > { %v3356_v5 = vpop.permute.xlu0 %933 }
 0x1cf   : > { %1179 = vrot.lane.b32.xlu2 %v4606_v38, %s2233_s24 }
 0x1d1   : > { %1167 = vrot.lane.b32.xlu1 %v2356_v48, %s2233_s24  ;;  %v3362_v46 = vpop.permute.xlu2 %987 }
 0x1d3   : > { %v3364_v35 = vpop.permute.xlu1 %935 }
 0x1d4   : > { %1263 = vrot.lane.b32.xlu0 %v2696_v23, %s2234_s25  ;;  %v1370_v23 = vsel %vm1355_vm3, %v2432_v36, %v4679_v49 }
 0x1d6   : > { %v3368_v60 = vpop.permute.xlu0 %971 }
 0x1d7   : > { %1073 = vrot.lane.b32.xlu2 %v2325_v33, %s2232_s23  ;;  %v1403_v33 = vsel %vm1388_vm4, %v1370_v23, %v2968_v0 }
 0x1d9   : > { %1275 = vrot.lane.b32.xlu1 %v4657_v62, %s2234_s25  ;;  %v3374_v12 = vpop.permute.xlu2 %993  ;;  %v1436_v62 = vsel %vm1421_vm5, %v1403_v33, %v3151_v15  ;;  %v1373_v33 = vsel %vm1355_vm3, %v2456_v55, %v2895_v61 }
 0x1da   : > { %4678 = vst [vmem:[#allocation167_spill] sm:$0xff] %v3374_v12  ;;  %v1469_v12 = vsel %vm1454_vm6, %v1436_v62, %v904_v6 }
 0x1db   : > { %v3376_v38 = vpop.permute.xlu1 %973 }
 0x1dc   : > { %1085 = vrot.lane.b32.xlu0 %v2400_v11, %s2232_s23 }
 0x1de   : > { %v3380_v48 = vpop.permute.xlu0 %977 }
 0x1df   : > { %1181 = vrot.lane.b32.xlu2 %v4610_v57, %s2233_s24  ;;  %v1406_v57 = vsel %vm1388_vm4, %v1373_v33, %v2980_v24 }
 0x1e1   : > { %1169 = vrot.lane.b32.xlu1 %v4598_v39, %s2233_s24  ;;  %v1000_v22 = vpop.permute.xlu2 %999 }
 0x1e2   : > { %v3395_v49 = vsel %vm1487_vm7, %v1469_v12, %v1000_v22  ;;  %v1439_v22 = vsel %vm1421_vm5, %v1406_v57, %v3171_v42  ;;  %v4683_v57 = vld [vmem:[#allocation137_spill] sm:$0xff] }
 0x1e3   : > { %v3397_v25 = vpop.permute.xlu1 %979  ;;  %v1472_v12 = vsel %vm1454_vm6, %v1439_v22, %v3301_v14 }
 0x1e4   : > { %1099 = vrot.lane.b32.xlu0 %v2514_v17, %s2232_s23 }
 0x1e6   : > { %v3401_v0 = vpop.permute.xlu0 %983 }
 0x1e7   : > { %1277 = vrot.lane.b32.xlu2 %v2755_v59, %s2234_s25  ;;  %v1376_v59 = vsel %vm1355_vm3, %v2514_v17, %v2910_v19 }
 0x1e9   : > { %1265 = vrot.lane.b32.xlu1 %v2710_v29, %s2234_s25  ;;  %v1006_v15 = vpop.permute.xlu2 %1005  ;;  %v1409_v29 = vsel %vm1388_vm4, %v1376_v59, %v2992_v52  ;;  %v4680_v52 = vld [vmem:[#allocation90_spill] sm:$0xff]  ;;  %v4685_v59 = vld [vmem:[#allocation43_spill] sm:$0xff] }
 0x1ea   : > { %v3417_v6 = vsel %vm1487_vm7, %v1472_v12, %v1006_v15  ;;  %v1442_v14 = vsel %vm1421_vm5, %v1409_v29, %v3189_v47  ;;  %v1379_v47 = vsel %vm1355_vm3, %v2528_v32, %v2922_v21  ;;  %v4684_v15 = vld [vmem:[#allocation106_spill] sm:$0xff] }
 0x1eb   : > { %v3419_v61 = vpop.permute.xlu1 %985  ;;  %v1382_v29 = vsel %vm1355_vm3, %v4685_v59, %v4684_v15 }
 0x1ec   : > { %1195 = vrot.lane.b32.xlu0 %v4625_v50, %s2233_s24  ;;  %v1475_v50 = vsel %vm1454_vm6, %v1442_v14, %v3317_v51  ;;  %v1412_v51 = vsel %vm1388_vm4, %v1379_v47, %v3004_v28  ;;  %v4681_v28 = vld [vmem:[#allocation75_spill] sm:$0xff]  ;;  %v4688_v47 = vld [vmem:[#allocation120_spill] sm:$0xff] }
 0x1ee   : > { %v3423_v24 = vpop.permute.xlu0 %989 }
 0x1ef   : > { %1075 = vrot.lane.b32.xlu2 %v2370_v56, %s2232_s23 }
 0x1f1   : > { %1291 = vrot.lane.b32.xlu1 %v4667_v27, %s2234_s25  ;;  %v1012_v42 = vpop.permute.xlu2 %1011  ;;  %v1369_v27 = vsel %vm1355_vm3, %v2400_v11, %v4680_v52  ;;  %v1415_v52 = vsel %vm1388_vm4, %v1382_v29, %v4688_v47  ;;  %v4697_v29 = vld [vmem:[#allocation109_spill] sm:$0xff] }
 0x1f2   : > { %v3439_v39 = vsel %vm1487_vm7, %v1475_v50, %v1012_v42  ;;  %v1402_v23 = vsel %vm1388_vm4, %v1369_v27, %v3006_v13  ;;  %v4687_v50 = vld [vmem:[#allocation24_spill] sm:$0xff]  ;;  %v4689_v27 = vld [vmem:[#allocation121_spill] sm:$0xff] }
 0x1f3   : > { %v3441_v17 = vpop.permute.xlu1 %991  ;;  %v1435_v21 = vsel %vm1421_vm5, %v1402_v23, %v3143_v58  ;;  %v4690_v23 = vld [vmem:[#allocation59_spill] sm:$0xff] }
 0x1f4   : > { %1087 = vrot.lane.b32.xlu0 %v2432_v36, %s2232_s23  ;;  %v1445_v36 = vsel %vm1421_vm5, %v1412_v51, %v3201_v63  ;;  %v1468_v13 = vsel %vm1454_vm6, %v1435_v21, %v3247_v1  ;;  %v1448_v51 = vsel %vm1421_vm5, %v1415_v52, %v3213_v40  ;;  %v4699_v52 = vld [vmem:[#allocation99_spill] sm:$0xff] }
 0x1f5   : > { %v1478_v11 = vsel %vm1454_vm6, %v1445_v36, %v3332_v9  ;;  %v4682_v9 = vld [vmem:[#allocation31_spill] sm:$0xff]  ;;  %v4691_v36 = vld [vmem:[#allocation145_spill] sm:$0xff] }
 0x1f6   : > { %v3445_v19 = vpop.permute.xlu0 %995 }
 0x1f7   : > { %1183 = vrot.lane.b32.xlu2 %v4613_v3, %s2233_s24  ;;  %v1371_v3 = vsel %vm1355_vm3, %v2438_v41, %v4681_v28  ;;  %v4692_v28 = vld [vmem:[#allocation81_spill] sm:$0xff] }
 0x1f9   : > { %1171 = vrot.lane.b32.xlu1 %v4601_v20, %s2233_s24  ;;  %v1018_v62 = vpop.permute.xlu2 %1017  ;;  %v1404_v20 = vsel %vm1388_vm4, %v1371_v3, %v3010_v44  ;;  %v4686_v44 = vld [vmem:[#allocation96_spill] sm:$0xff] }
 0x1fa   : > { %v3473_v33 = vsel %vm1487_vm7, %v1478_v11, %v1018_v62  ;;  %v1437_v22 = vsel %vm1421_vm5, %v1404_v20, %v4683_v57  ;;  %v1372_v42 = vsel %vm1355_vm3, %v4687_v50, %v4686_v44  ;;  %v1481_v11 = vsel %vm1454_vm6, %v1448_v51, %v3344_v31  ;;  %v4693_v3 = vld [vmem:[#allocation28_spill] sm:$0xff]  ;;  %v4694_v20 = vld [vmem:[#allocation123_spill] sm:$0xff]  ;;  %v4698_v44 = vld [vmem:[#allocation45_spill] sm:$0xff] }
 0x1fb   : > { %v998_v63 = vpop.permute.xlu1 %997  ;;  %v1470_v12 = vsel %vm1454_vm6, %v1437_v22, %v3295_v26  ;;  %v1405_v26 = vsel %vm1388_vm4, %v1372_v42, %v4689_v27  ;;  %v4695_v31 = vld [vmem:[#allocation35_spill] sm:$0xff]  ;;  %v1385_v42 = vsel %vm1355_vm3, %v4698_v44, %v4697_v29  ;;  %v4701_v51 = vld [vmem:[#allocation125_spill] sm:$0xff] }
 0x1fc   : > { %v3478_v58 = vsel %vm1487_vm7, %v1468_v13, %v998_v63  ;;  %1101 = vrot.lane.b32.xlu0 %v4682_v9, %s2232_s23  ;;  %v1438_v21 = vsel %vm1421_vm5, %v1405_v26, %v4691_v36  ;;  %v4700_v27 = vld [vmem:[#allocation27_spill] sm:$0xff]  ;;  %v4702_v36 = vld [vmem:[#allocation13_spill] sm:$0xff] }
 0x1fd   : > { %v1471_v13 = vsel %vm1454_vm6, %v1438_v21, %v3259_v16  ;;  %v1375_v26 = vsel %vm1355_vm3, %v4700_v27, %v4699_v52  ;;  %v4703_v21 = vld [vmem:[#allocation126_spill] sm:$0xff] }
 0x1fe   : > { %v1002_v1 = vpop.permute.xlu0 %1001 }
 0x1ff   : > { %v3490_v14 = vsel %vm1487_vm7, %v1470_v12, %v1002_v1  ;;  %1279 = vrot.lane.b32.xlu2 %v4660_v8, %s2234_s25  ;;  %v1374_v8 = vsel %vm1355_vm3, %v4693_v3, %v4692_v28  ;;  %v4696_v12 = vld [vmem:[#allocation37_spill] sm:$0xff]  ;;  %v4705_v28 = vld [vmem:[#allocation148_spill] sm:$0xff] }
 0x200   : > { %v1407_v57 = vsel %vm1388_vm4, %v1374_v8, %v4694_v20  ;;  %v4706_v20 = vld [vmem:[#allocation87_spill] sm:$0xff] }
 0x201   : > { %1267 = vrot.lane.b32.xlu1 %v4690_v23, %s2234_s25  ;;  %v1024_v62 = vpop.permute.xlu2 %1023  ;;  %v1440_v1 = vsel %vm1421_vm5, %v1407_v57, %v4696_v12  ;;  %v1418_v23 = vsel %vm1388_vm4, %v1385_v42, %v4701_v51  ;;  %v1377_v57 = vsel %vm1355_vm3, %v4682_v9, %v4706_v20  ;;  %v4708_v9 = vld [vmem:[#allocation142_spill] sm:$0xff]  ;;  %v4715_v20 = vld [vmem:[#allocation93_spill] sm:$0xff] }
 0x202   : > { %v3515_v63 = vsel %vm1487_vm7, %v1481_v11, %v1024_v62  ;;  %v1473_v15 = vsel %vm1454_vm6, %v1440_v1, %v3313_v2  ;;  %v1408_v2 = vsel %vm1388_vm4, %v1375_v26, %v4703_v21  ;;  %v4704_v11 = vld [vmem:[#allocation156_spill] sm:$0xff]  ;;  %v4709_v51 = vld [vmem:[#allocation102_spill] sm:$0xff] }
 0x203   : > { %v1004_v40 = vpop.permute.xlu1 %1003  ;;  %v1451_v62 = vsel %vm1421_vm5, %v1418_v23, %v4704_v11  ;;  %v1441_v8 = vsel %vm1421_vm5, %v1408_v2, %v4705_v28  ;;  %v4710_v23 = vld [vmem:[#allocation34_spill] sm:$0xff]  ;;  %v4711_v2 = vld [vmem:[#allocation25_spill] sm:$0xff]  ;;  %v1620_v28 = vld [vmem:[%s4324_s1 + $0x8] sm:$0xff] }
 0x204   : > { %v3520_v22 = vsel %vm1487_vm7, %v1471_v13, %v1004_v40  ;;  %1197 = vrot.lane.b32.xlu0 %v4695_v31, %s2233_s24  ;;  %v1484_v13 = vsel %vm1454_vm6, %v1451_v62, %v3356_v5  ;;  %v1474_v31 = vsel %vm1454_vm6, %v1441_v8, %v3271_v34  ;;  %v1622_v34 = vld [vmem:[%s4324_s1 + $0x18] sm:$0xff]  ;;  %v1378_v21 = vsel %vm1355_vm3, %v4710_v23, %v4709_v51  ;;  %v4714_v8 = vld [vmem:[#allocation151_spill] sm:$0xff] }
 0x205   : > { %v4713_v62 = vld [vmem:[#allocation17_spill] sm:$0xff] }
 0x206   : > { %v1008_v16 = vpop.permute.xlu0 %1007 }
 0x207   : > { %v3532_v47 = vsel %vm1487_vm7, %v1473_v15, %v1008_v16  ;;  %1077 = vrot.lane.b32.xlu2 %v4702_v36, %s2232_s23  ;;  %v4707_v15 = vld [vmem:[#allocation127_spill] sm:$0xff] }
 0x208   : > { %v1410_v5 = vsel %vm1388_vm4, %v1377_v57, %v4707_v15  ;;  %v4716_v57 = vld [vmem:[#allocation36_spill] sm:$0xff]  ;;  %v1619_v15 = vld [vmem:[%s4324_s1] sm:$0xff] }
 0x209   : > { %1293 = vrot.lane.b32.xlu1 %v4669_v7, %s2234_s25  ;;  %v1030_v40 = vpop.permute.xlu2 %1029  ;;  %v1623_v7 = vld [vmem:[%s4324_s1 + $0x20] sm:$0xf]  ;;  %v1443_v29 = vsel %vm1421_vm5, %v1410_v5, %v4708_v9 }
 0x20a   : > { %v3557_v12 = vsel %vm1487_vm7, %v1484_v13, %v1030_v40  ;;  %2139 = vmatpush.msk.msra.mxu0 %vm1721_vm8, %v1623_v7  ;;  %2176 = vmatpush.msk.msra.mxu1 %vm1721_vm8, %v1623_v7  ;;  %v1476_v42 = vsel %vm1454_vm6, %v1443_v29, %v3328_v53  ;;  %v4712_v53 = vld [vmem:[#allocation129_spill] sm:$0xff]  ;;  %v4717_v5 = vld [vmem:[#allocation130_spill] sm:$0xff] }
 0x20b   : > { %v1010_v1 = vpop.permute.xlu1 %1009  ;;  %2177 = vmatpush.msk.msra.mxu2 %vm1721_vm8, %v1623_v7  ;;  %2178 = vmatpush.msk.msra.mxu3 %vm1721_vm8, %v1623_v7  ;;  %v1411_v11 = vsel %vm1388_vm4, %v1378_v21, %v4712_v53  ;;  %v4719_v21 = vld [vmem:[#allocation104_spill] sm:$0xff] }
 0x20c   : > { %v3565_v16 = vsel %vm1487_vm7, %v1474_v31, %v1010_v1  ;;  %1089 = vrot.lane.b32.xlu0 %v2438_v41, %s2232_s23  ;;  %1737 = vmatpush.msra.mxu0 %v1622_v34  ;;  %v1621_v41 = vld [vmem:[%s4324_s1 + $0x10] sm:$0xff]  ;;  %v1444_v13 = vsel %vm1421_vm5, %v1411_v11, %v4714_v8  ;;  %v1380_v31 = vsel %vm1355_vm3, %v4716_v57, %v4715_v20  ;;  %v4722_v11 = vld [vmem:[#allocation131_spill] sm:$0xff]  ;;  %v4723_v8 = vld [vmem:[#allocation46_spill] sm:$0xff] }
 0x20d   : > { %2179 = vmatpush.msra.mxu1 %v1622_v34  ;;  %2180 = vmatpush.msra.mxu2 %v1622_v34  ;;  %v1477_v1 = vsel %vm1454_vm6, %v1444_v13, %v3283_v18  ;;  %v1413_v9 = vsel %vm1388_vm4, %v1380_v31, %v4717_v5  ;;  %v4725_v20 = vld [vmem:[#allocation98_spill] sm:$0xff] }
 0x20e   : > { %v1014_v52 = vpop.permute.xlu0 %1013  ;;  %1738 = vmatpush.msra.mxu0 %v1621_v41  ;;  %2181 = vmatpush.msra.mxu3 %v1622_v34  ;;  %v4726_v31 = vld [vmem:[#allocation42_spill] sm:$0xff] }
 0x20f   : > { %v3577_v26 = vsel %vm1487_vm7, %v1476_v42, %v1014_v52  ;;  %1185 = vrot.lane.b32.xlu2 %v4711_v2, %s2233_s24  ;;  %2182 = vmatpush.msra.mxu1 %v1621_v41  ;;  %v4718_v42 = vld [vmem:[#allocation144_spill] sm:$0xff]  ;;  %v4720_v2 = vld [vmem:[#allocation38_spill] sm:$0xff] }
 0x210   : > { %1739 = vmatpush.msra.mxu0 %v1620_v28  ;;  %2183 = vmatpush.msra.mxu2 %v1621_v41  ;;  %v1446_v18 = vsel %vm1421_vm5, %v1413_v9, %v4718_v42  ;;  %v1381_v53 = vsel %vm1355_vm3, %v4720_v2, %v4719_v21  ;;  %v4727_v5 = vld [vmem:[#allocation14_spill] sm:$0xff] }
 0x211   : > { %1173 = vrot.lane.b32.xlu1 %v4713_v62, %s2233_s24  ;;  %v3596_v40 = vpop.permute.xlu2 %1067  ;;  %2185 = vmatpush.msra.mxu1 %v1620_v28  ;;  %v1479_v52 = vsel %vm1454_vm6, %v1446_v18, %v3340_v54  ;;  %v1414_v62 = vsel %vm1388_vm4, %v1381_v53, %v4722_v11  ;;  %v4724_v54 = vld [vmem:[#allocation57_spill] sm:$0xff]  ;;  %v4728_v18 = vld [vmem:[#allocation68_spill] sm:$0xff]  ;;  %v4731_v11 = vld [vmem:[#allocation51_spill] sm:$0xff] }
 0x212   : > { %1740 = vmatpush.msra.mxu0 %v1619_v15  ;;  %2186 = vmatpush.msra.mxu2 %v1620_v28 }
 0x213   : > { %v1016_v7 = vpop.permute.xlu1 %1015  ;;  %2188 = vmatpush.msra.mxu1 %v1619_v15  ;;  %2184 = vmatpush.msra.mxu3 %v1621_v41  ;;  %v1447_v41 = vsel %vm1421_vm5, %v1414_v62, %v4724_v54  ;;  %v4732_v62 = vld [vmem:[#allocation132_spill] sm:$0xff] }
 0x214   : > { %v3609_v29 = vsel %vm1487_vm7, %v1477_v1, %v1016_v7  ;;  %1103 = vrot.lane.b32.xlu0 %v4710_v23, %s2232_s23  ;;  %2189 = vmatpush.msra.mxu2 %v1619_v15  ;;  %v4721_v23 = vld [vmem:[#allocation60_spill] sm:$0xff]  ;;  %v1383_v1 = vsel %vm1355_vm3, %v4726_v31, %v4725_v20  ;;  %v1480_v7 = vsel %vm1454_vm6, %v1447_v41, %v3293_v45  ;;  %v4730_v45 = vld [vmem:[#allocation107_spill] sm:$0xff]  ;;  %v4734_v20 = vld [vmem:[#allocation154_spill] sm:$0xff] }
 0x215   : > { %2187 = vmatpush.msra.mxu3 %v1620_v28  ;;  %v1416_v9 = vsel %vm1388_vm4, %v1383_v1, %v4727_v5  ;;  %v4733_v41 = vld [vmem:[#allocation39_spill] sm:$0xff] }
 0x216   : > { %v1020_v51 = vpop.permute.xlu0 %1019 }
 0x217   : > { %v3618_v34 = vsel %vm1487_vm7, %v1479_v52, %v1020_v51  ;;  %1269 = vrot.lane.b32.xlu2 %v4721_v23, %s2234_s25  ;;  %2190 = vmatpush.msra.mxu3 %v1619_v15  ;;  %v4729_v52 = vld [vmem:[#allocation146_spill] sm:$0xff]  ;;  %v1384_v23 = vsel %vm1355_vm3, %v4723_v8, %v4730_v45 }
 0x218   : > { %v1449_v15 = vsel %vm1421_vm5, %v1416_v9, %v4729_v52  ;;  %v1417_v54 = vsel %vm1388_vm4, %v1384_v23, %v4732_v62 }
 0x219   : > { %1115 = vrot.lane.b32.xlu1 %v4723_v8, %s2232_s23  ;;  %v3631_v13 = vpop.permute.xlu2 %1069  ;;  %v1482_v51 = vsel %vm1454_vm6, %v1449_v15, %v3352_v4  ;;  %v1450_v4 = vsel %vm1421_vm5, %v1417_v54, %v4734_v20  ;;  %v4742_v54 = vld [vmem:[#allocation49_spill] sm:$0xff]  ;;  %v4743_v20 = vld [vmem:[#allocation16_spill] sm:$0xff] }
 0x21a   : > { %v1483_v8 = vsel %vm1454_vm6, %v1450_v4, %v3310_v43  ;;  %v4741_v43 = vld [vmem:[#allocation110_spill] sm:$0xff]  ;;  %v4744_v4 = vld [vmem:[#allocation67_spill] sm:$0xff] }
 0x21b   : > { %v1022_v28 = vpop.permute.xlu1 %1021 }
 0x21c   : > { %v3641_v42 = vsel %vm1487_vm7, %v1480_v7, %v1022_v28  ;;  %1281 = vrot.lane.b32.xlu0 %v4728_v18, %s2234_s25  ;;  %v4735_v7 = vld [vmem:[#allocation101_spill] sm:$0xff]  ;;  %v4736_v28 = vld [vmem:[#allocation50_spill] sm:$0xff] }
 0x21d   : > { %v1386_v5 = vsel %vm1355_vm3, %v4736_v28, %v4735_v7  ;;  %v4737_v18 = vld [vmem:[#allocation133_spill] sm:$0xff]  ;;  %v2211_v7 = vunpack.i.l.bf16 %v4744_v4 }
 0x21e   : > { %v1026_v21 = vpop.permute.xlu0 %1025  ;;  %v1419_v52 = vsel %vm1388_vm4, %v1386_v5, %v4737_v18  ;;  %v4745_v5 = vld [vmem:[#allocation134_spill] sm:$0xff] }
 0x21f   : > { %v3650_v53 = vsel %vm1487_vm7, %v1482_v51, %v1026_v21  ;;  %1211 = vrot.lane.b32.xlu2 %v4731_v11, %s2233_s24  ;;  %v4738_v51 = vld [vmem:[#allocation85_spill] sm:$0xff]  ;;  %v4739_v21 = vld [vmem:[#allocation150_spill] sm:$0xff] }
 0x220   : > { %v1452_v45 = vsel %vm1421_vm5, %v1419_v52, %v4739_v21  ;;  %v4748_v52 = vld [vmem:[#allocation157_spill] sm:$0xff] }
 0x221   : > { %1199 = vrot.lane.b32.xlu1 %v4733_v41, %s2233_s24  ;;  %v3663_v1 = vpop.permute.xlu2 %1071  ;;  %v1485_v23 = vsel %vm1454_vm6, %v1452_v45, %v3364_v35  ;;  %v1387_v41 = vsel %vm1355_vm3, %v4742_v54, %v4741_v43  ;;  %v4747_v35 = vld [vmem:[#allocation112_spill] sm:$0xff]  ;;  %v4749_v43 = vld [vmem:[#allocation3_spill] sm:$0xff] }
 0x222   : > { %v2216_v18 = vunpack.i.l.bf16 %v4747_v35 }
 0x223   : > { %v1028_v9 = vpop.permute.xlu1 %1027 }
 0x224   : > { %v3673_v15 = vsel %vm1487_vm7, %v1483_v8, %v1028_v9  ;;  %1295 = vrot.lane.b32.xlu0 %v4738_v51, %s2234_s25  ;;  %v1420_v8 = vsel %vm1388_vm4, %v1387_v41, %v4745_v5  ;;  %v4746_v9 = vld [vmem:[#allocation97_spill] sm:$0xff]  ;;  %v1356_v41 = vsel %vm1355_vm3, %v4749_v43, %v2211_v7  ;;  %v4753_v7 = vld [vmem:[#allocation20_spill] sm:$0xff] }
 0x225   : > { %v1453_v51 = vsel %vm1421_vm5, %v1420_v8, %v4748_v52  ;;  %v1389_v5 = vsel %vm1388_vm4, %v1356_v41, %v2216_v18  ;;  %v4751_v52 = vld [vmem:[#allocation158_spill] sm:$0xff]  ;;  %v2217_v18 = vunpack.i.h.bf16 %v4747_v35 }
 0x226   : > { %v1032_v11 = vpop.permute.xlu0 %1031  ;;  %v1486_v45 = vsel %vm1454_vm6, %v1453_v51, %v3326_v30  ;;  %v4752_v51 = vld [vmem:[#allocation29_spill] sm:$0xff] }
 0x227   : > { %v3682_v62 = vsel %vm1487_vm7, %v1485_v23, %v1032_v11  ;;  %1079 = vrot.lane.b32.xlu2 %v4743_v20, %s2232_s23 }
 0x228   : > { %4740 = vst [vmem:[#allocation94_spill] sm:$0xff] %v3682_v62  ;;  %v4750_v62 = vld [vmem:[#allocation128_spill] sm:$0xff] }
 0x229   : > { %1307 = vrot.lane.b32.xlu1 %v4746_v9, %s2234_s25  ;;  %v3697_v21 = vpop.permute.xlu2 %1179  ;;  %v1422_v8 = vsel %vm1421_vm5, %v1389_v5, %v4750_v62 }
 0x22a   : > { %v1455_v30 = vsel %vm1454_vm6, %v1422_v8, %v4751_v52 }
 0x22b   : > { %v1034_v23 = vpop.permute.xlu1 %1033 }
 0x22c   : > { %v3702_v11 = vsel %vm1487_vm7, %v1486_v45, %v1034_v23  ;;  %1091 = vrot.lane.b32.xlu0 %v4687_v50, %s2232_s23  ;;  %v2212_v45 = vunpack.i.h.bf16 %v4744_v4  ;;  %v1488_v50 = vsel %vm1487_vm7, %v1455_v30, %v3368_v60  ;;  %v4754_v4 = vld [vmem:[#allocation2_spill] sm:$0xff] }
 0x22d   : > { %v1521_v62 = vsel %vm1520_vm9, %v1488_v50, %v3596_v40  ;;  %v4755_v40 = vld [vmem:[#allocation23_spill] sm:$0xff] }
 0x22e   : > { %v1164_v9 = vpop.permute.xlu0 %1163  ;;  %v1357_v8 = vsel %vm1355_vm3, %v4754_v4, %v2212_v45  ;;  %v4757_v50 = vld [vmem:[#allocation63_spill] sm:$0xff] }
 0x22f   : > { %1187 = vrot.lane.b32.xlu2 %v4752_v51, %s2233_s24  ;;  %v1554_v41 = vsel %vm1553_vm10, %v1521_v62, %v1164_v9  ;;  %v1390_v35 = vsel %vm1388_vm4, %v1357_v8, %v2217_v18  ;;  %v4756_v51 = vld [vmem:[#allocation152_spill] sm:$0xff] }
 0x230   : > { %v1423_v30 = vsel %vm1421_vm5, %v1390_v35, %v4755_v40  ;;  %v4759_v8 = vld [vmem:[#allocation72_spill] sm:$0xff] }
 0x231   : > { %1175 = vrot.lane.b32.xlu1 %v4753_v7, %s2233_s24  ;;  %v3723_v23 = vpop.permute.xlu2 %1073  ;;  %v1456_v9 = vsel %vm1454_vm6, %v1423_v30, %v4756_v51  ;;  %v4764_v30 = vld [vmem:[#allocation135_spill] sm:$0xff] }
 0x233   : > { %v1260_v5 = vpop.permute.xlu1 %1259 }
 0x234   : > { %1105 = vrot.lane.b32.xlu0 %v2528_v32, %s2232_s23  ;;  %v1587_v60 = vsel %vm1586_vm11, %v1554_v41, %v1260_v5  ;;  %v1489_v32 = vsel %vm1487_vm7, %v1456_v9, %v3376_v38  ;;  %v4758_v41 = vld [vmem:[#allocation73_spill] sm:$0xff]  ;;  %v4760_v38 = vld [vmem:[#allocation7_spill] sm:$0xff] }
 0x235   : > { %2140 = vmatmul.msk.f32.vlgmr.msra.gmra.mxu0 %vm1624_vm12, %v1587_v60  ;;  %v1522_v45 = vsel %vm1520_vm9, %v1489_v32, %v3631_v13  ;;  %v1358_v35 = vsel %vm1355_vm3, %v4760_v38, %v4759_v8  ;;  %v4762_v13 = vld [vmem:[#allocation103_spill] sm:$0xff] }
 0x236   : > { %v1166_v52 = vpop.permute.xlu0 %1165  ;;  %v1391_v40 = vsel %vm1388_vm4, %v1358_v35, %v4762_v13  ;;  %v4768_v38 = vld [vmem:[#allocation83_spill] sm:$0xff]  ;;  %v4769_v35 = vld [vmem:[#allocation140_spill] sm:$0xff] }
 0x237   : > { %1271 = vrot.lane.b32.xlu2 %v4757_v50, %s2234_s25  ;;  %v1555_v18 = vsel %vm1553_vm10, %v1522_v45, %v1166_v52  ;;  %v4763_v52 = vld [vmem:[#allocation41_spill] sm:$0xff]  ;;  %v1424_v51 = vsel %vm1421_vm5, %v1391_v40, %v4764_v30  ;;  %v4765_v50 = vld [vmem:[#allocation82_spill] sm:$0xff] }
 0x238   : > { %v1364_v32 = vsel %vm1355_vm3, %v2370_v56, %v4765_v50  ;;  %v4766_v45 = vld [vmem:[#allocation66_spill] sm:$0xff]  ;;  %v4770_v56 = vld [vmem:[#allocation77_spill] sm:$0xff] }
 0x239   : > { %1117 = vrot.lane.b32.xlu1 %v4698_v44, %s2232_s23  ;;  %v1182_v7 = vpop.permute.xlu2 %1181  ;;  %v4761_v44 = vld [vmem:[#allocation53_spill] sm:$0xff] }
 0x23b   : > { %v1262_v62 = vpop.permute.xlu1 %1261 }
 0x23c   : > { %1283 = vrot.lane.b32.xlu0 %v4758_v41, %s2234_s25  ;;  %v1588_v5 = vsel %vm1586_vm11, %v1555_v18, %v1262_v62  ;;  %v1457_v18 = vsel %vm1454_vm6, %v1424_v51, %v4766_v45  ;;  %v4767_v41 = vld [vmem:[#allocation108_spill] sm:$0xff]  ;;  %v4773_v45 = vld [vmem:[#allocation65_spill] sm:$0xff] }
 0x23d   : > { %2141 = vmatmul.msk.f32.gmra.mxu0 %vm1624_vm12, %v1588_v5  ;;  %v1397_v5 = vsel %vm1388_vm4, %v1364_v32, %v4767_v41  ;;  %v1490_v8 = vsel %vm1487_vm7, %v1457_v18, %v3338_v10  ;;  %v4771_v32 = vld [vmem:[#allocation15_spill] sm:$0xff]  ;;  %v1365_v18 = vsel %vm1355_vm3, %v4702_v36, %v4773_v45  ;;  %v4774_v41 = vld [vmem:[#allocation117_spill] sm:$0xff] }
 0x23e   : > { %v1084_v60 = vpop.permute.xlu0 %1083  ;;  %v1523_v13 = vsel %vm1520_vm9, %v1490_v8, %v3663_v1  ;;  %v4772_v1 = vld [vmem:[#allocation95_spill] sm:$0xff]  ;;  %v4775_v8 = vld [vmem:[#allocation21_spill] sm:$0xff] }
 0x23f   : > { %1213 = vrot.lane.b32.xlu2 %v4761_v44, %s2233_s24  ;;  %v1430_v44 = vsel %vm1421_vm5, %v1397_v5, %v4769_v35  ;;  %v4781_v45 = vld [vmem:[#allocation113_spill] sm:$0xff] }
 0x240   : > { %v1463_v40 = vsel %vm1454_vm6, %v1430_v44, %v4770_v56  ;;  %v4776_v44 = vld [vmem:[#allocation80_spill] sm:$0xff] }
 0x241   : > { %1201 = vrot.lane.b32.xlu1 %v4763_v52, %s2233_s24  ;;  %v1278_v9 = vpop.permute.xlu2 %1277  ;;  %v1496_v51 = vsel %vm1487_vm7, %v1463_v40, %v3362_v46  ;;  %v1398_v46 = vsel %vm1388_vm4, %v1365_v18, %v4774_v41 }
 0x242   : > { %v1529_v50 = vsel %vm1520_vm9, %v1496_v51, %v1084_v60 }
 0x243   : > { %v1168_v62 = vpop.permute.xlu1 %1167  ;;  %v1562_v60 = vsel %vm1553_vm10, %v1529_v50, %v3697_v21  ;;  %v4777_v21 = vld [vmem:[#allocation32_spill] sm:$0xff]  ;;  %v4779_v50 = vld [vmem:[#allocation70_spill] sm:$0xff] }
 0x244   : > { %1297 = vrot.lane.b32.xlu0 %v4768_v38, %s2234_s25  ;;  %v1556_v52 = vsel %vm1553_vm10, %v1523_v13, %v1168_v62  ;;  %v1431_v38 = vsel %vm1421_vm5, %v1398_v46, %v4775_v8  ;;  %v4782_v46 = vld [vmem:[#allocation11_spill] sm:$0xff] }
 0x245   : > { %v1464_v36 = vsel %vm1454_vm6, %v1431_v38, %v4776_v44 }
 0x246   : > { %v1264_v30 = vpop.permute.xlu0 %1263  ;;  %v1497_v13 = vsel %vm1487_vm7, %v1464_v36, %v3423_v24  ;;  %v4780_v24 = vld [vmem:[#allocation9_spill] sm:$0xff]  ;;  %v4785_v36 = vld [vmem:[#allocation71_spill] sm:$0xff] }
 0x247   : > { %v1589_v10 = vsel %vm1586_vm11, %v1556_v52, %v1264_v30  ;;  %1081 = vrot.lane.b32.xlu2 %v4771_v32, %s2232_s23  ;;  %v4778_v52 = vld [vmem:[#allocation22_spill] sm:$0xff] }
 0x248   : > { %2142 = vmatmul.msk.f32.gmra.mxu0 %vm1624_vm12, %v1589_v10 }
 0x249   : > { %1309 = vrot.lane.b32.xlu1 %v4772_v1, %s2234_s25  ;;  %v3791_v62 = vpop.permute.xlu2 %1075  ;;  %v1359_v1 = vsel %vm1355_vm3, %v4780_v24, %v4779_v50  ;;  %v4790_v24 = vld [vmem:[#allocation141_spill] sm:$0xff] }
 0x24a   : > { %v1392_v18 = vsel %vm1388_vm4, %v1359_v1, %v4781_v45  ;;  %v4791_v45 = vld [vmem:[#allocation86_spill] sm:$0xff] }
 0x24b   : > { %v1276_v5 = vpop.permute.xlu1 %1275 }
 0x24c   : > { %1093 = vrot.lane.b32.xlu0 %v2456_v55, %s2232_s23  ;;  %v1595_v35 = vsel %vm1586_vm11, %v1562_v60, %v1276_v5  ;;  %v4783_v5 = vld [vmem:[#allocation159_spill] sm:$0xff] }
 0x24d   : > { %2148 = vmatmul.msk.f32.vlgmr.msra.gmra.mxu1 %vm1624_vm12, %v1595_v35 }
 0x24e   : > { %v1086_v56 = vpop.permute.xlu0 %1085 }
 0x24f   : > { %v1530_v40 = vsel %vm1520_vm9, %v1497_v13, %v1086_v56  ;;  %1189 = vrot.lane.b32.xlu2 %v4777_v21, %s2233_s24 }
 0x250   : > { %v1563_v55 = vsel %vm1553_vm10, %v1530_v40, %v1182_v7  ;;  %v1425_v7 = vsel %vm1421_vm5, %v1392_v18, %v4782_v46  ;;  %v4788_v40 = vld [vmem:[#allocation84_spill] sm:$0xff] }
 0x251   : > { %1177 = vrot.lane.b32.xlu1 %v4778_v52, %s2233_s24  ;;  %v1184_v30 = vpop.permute.xlu2 %1183  ;;  %v1596_v10 = vsel %vm1586_vm11, %v1563_v55, %v1278_v9  ;;  %v1458_v60 = vsel %vm1454_vm6, %v1425_v7, %v4783_v5  ;;  %v4789_v55 = vld [vmem:[#allocation118_spill] sm:$0xff]  ;;  %v4792_v46 = vld [vmem:[#allocation64_spill] sm:$0xff] }
 0x252   : > { %v1491_v9 = vsel %vm1487_vm7, %v1458_v60, %v3380_v48  ;;  %v4786_v48 = vld [vmem:[#allocation52_spill] sm:$0xff] }
 0x253   : > { %v1170_v51 = vpop.permute.xlu1 %1169  ;;  %v1524_v8 = vsel %vm1520_vm9, %v1491_v9, %v3723_v23  ;;  %v1366_v23 = vsel %vm1355_vm3, %v4743_v20, %v4788_v40 }
 0x254   : > { %1107 = vrot.lane.b32.xlu0 %v4716_v57, %s2232_s23  ;;  %v4784_v57 = vld [vmem:[#allocation62_spill] sm:$0xff]  ;;  %v1557_v35 = vsel %vm1553_vm10, %v1524_v8, %v1170_v51  ;;  %v1399_v51 = vsel %vm1388_vm4, %v1366_v23, %v4789_v55 }
 0x255   : > { %2149 = vmatmul.msk.f32.gmra.mxu1 %vm1624_vm12, %v1596_v10  ;;  %v1432_v1 = vsel %vm1421_vm5, %v1399_v51, %v4790_v24  ;;  %v4793_v8 = vld [vmem:[#allocation30_spill] sm:$0xff] }
 0x256   : > { %v1100_v41 = vpop.permute.xlu0 %1099  ;;  %v1465_v20 = vsel %vm1454_vm6, %v1432_v1, %v4792_v46  ;;  %v4799_v55 = vld [vmem:[#allocation74_spill] sm:$0xff]  ;;  %v4802_v1 = vld [vmem:[#allocation91_spill] sm:$0xff] }
 0x257   : > { %1273 = vrot.lane.b32.xlu2 %v4784_v57, %s2234_s25  ;;  %v1537_v21 = vsel %vm1520_vm9, %v3520_v22, %v1100_v41  ;;  %v1498_v22 = vsel %vm1487_vm7, %v1465_v20, %v3441_v17  ;;  %v4794_v17 = vld [vmem:[#allocation76_spill] sm:$0xff]  ;;  %v4804_v46 = vld [vmem:[#allocation6_spill] sm:$0xff] }
 0x259   : > { %1119 = vrot.lane.b32.xlu1 %v4736_v28, %s2232_s23  ;;  %v1280_v38 = vpop.permute.xlu2 %1279  ;;  %v4787_v28 = vld [vmem:[#allocation40_spill] sm:$0xff] }
 0x25b   : > { %v1266_v44 = vpop.permute.xlu1 %1265 }
 0x25c   : > { %1285 = vrot.lane.b32.xlu0 %v4785_v36, %s2234_s25  ;;  %v1590_v13 = vsel %vm1586_vm11, %v1557_v35, %v1266_v44  ;;  %v4795_v35 = vld [vmem:[#allocation8_spill] sm:$0xff]  ;;  %v4796_v36 = vld [vmem:[#allocation114_spill] sm:$0xff] }
 0x25d   : > { %2143 = vmatmul.msk.f32.gmra.mxu0 %vm1624_vm12, %v1590_v13  ;;  %v1360_v44 = vsel %vm1355_vm3, %v4795_v35, %v4794_v17  ;;  %v4797_v13 = vld [vmem:[#allocation136_spill] sm:$0xff]  ;;  %v4809_v17 = vld [vmem:[#allocation166_spill] sm:$0xff] }
 0x25e   : > { %v1196_v56 = vpop.permute.xlu0 %1195 }
 0x25f   : > { %1215 = vrot.lane.b32.xlu2 %v4786_v48, %s2233_s24  ;;  %v1570_v10 = vsel %vm1553_vm10, %v1537_v21, %v1196_v56  ;;  %v4798_v56 = vld [vmem:[#allocation153_spill] sm:$0xff] }
 0x261   : > { %1203 = vrot.lane.b32.xlu1 %v4787_v28, %s2233_s24  ;;  %v1078_v52 = vpop.permute.xlu2 %1077 }
 0x263   : > { %v1292_v50 = vpop.permute.xlu1 %1291 }
 0x264   : > { %1299 = vrot.lane.b32.xlu0 %v4791_v45, %s2234_s25  ;;  %v1603_v18 = vsel %vm1586_vm11, %v1570_v10, %v1292_v50 }
 0x265   : > { %2156 = vmatmul.msk.f32.vlgmr.msra.gmra.mxu2 %vm1624_vm12, %v1603_v18  ;;  %v4803_v18 = vld [vmem:[#allocation58_spill] sm:$0xff] }
 0x266   : > { %v1088_v41 = vpop.permute.xlu0 %1087  ;;  %v1361_v20 = vsel %vm1355_vm3, %v4804_v46, %v4803_v18 }
 0x267   : > { %v1531_v7 = vsel %vm1520_vm9, %v1498_v22, %v1088_v41  ;;  %1095 = vrot.lane.b32.xlu2 %v4693_v3, %s2232_s23  ;;  %v1393_v3 = vsel %vm1388_vm4, %v1360_v44, %v4796_v36  ;;  %v4805_v41 = vld [vmem:[#allocation105_spill] sm:$0xff] }
 0x268   : > { %v1564_v5 = vsel %vm1553_vm10, %v1531_v7, %v1184_v30  ;;  %v1394_v7 = vsel %vm1388_vm4, %v1361_v20, %v4805_v41  ;;  %v4820_v20 = vld [vmem:[#allocation89_spill] sm:$0xff] }
 0x269   : > { %1311 = vrot.lane.b32.xlu1 %v2890_v37, %s2234_s25  ;;  %v1597_v60 = vsel %vm1586_vm11, %v1564_v5, %v1280_v38  ;;  %v1186_v57 = vpop.permute.xlu2 %1185  ;;  %v1426_v37 = vsel %vm1421_vm5, %v1393_v3, %v4797_v13  ;;  %v4810_v13 = vld [vmem:[#allocation33_spill] sm:$0xff] }
 0x26a   : > { %2150 = vmatmul.msk.f32.gmra.mxu1 %vm1624_vm12, %v1597_v60  ;;  %v1459_v38 = vsel %vm1454_vm6, %v1426_v37, %v4798_v56  ;;  %v4807_v60 = vld [vmem:[#allocation160_spill] sm:$0xff] }
 0x26b   : > { %v1172_v9 = vpop.permute.xlu1 %1171  ;;  %v1492_v48 = vsel %vm1487_vm7, %v1459_v38, %v3397_v25  ;;  %v4800_v25 = vld [vmem:[#allocation54_spill] sm:$0xff]  ;;  %v4811_v37 = vld [vmem:[#allocation88_spill] sm:$0xff] }
 0x26c   : > { %1191 = vrot.lane.b32.xlu0 %v4793_v8, %s2233_s24  ;;  %v1525_v28 = vsel %vm1520_vm9, %v1492_v48, %v3791_v62  ;;  %v4808_v8 = vld [vmem:[#allocation100_spill] sm:$0xff]  ;;  %v1367_v56 = vsel %vm1355_vm3, %v4771_v32, %v4811_v37  ;;  %v4812_v48 = vld [vmem:[#allocation111_spill] sm:$0xff]  ;;  %v4828_v37 = vld [vmem:[#allocation161_spill] sm:$0xff] }
 0x26d   : > { %v1558_v23 = vsel %vm1553_vm10, %v1525_v28, %v1172_v9  ;;  %v1400_v28 = vsel %vm1388_vm4, %v1367_v56, %v4812_v48 }
 0x26e   : > { %v1102_v30 = vpop.permute.xlu0 %1101 }
 0x26f   : > { %1121 = vrot.lane.b32.xlu2 %v4742_v54, %s2232_s23  ;;  %v1538_v62 = vsel %vm1520_vm9, %v3417_v6, %v1102_v30  ;;  %v4806_v6 = vld [vmem:[#allocation138_spill] sm:$0xff] }
 0x270   : > { %v1427_v5 = vsel %vm1421_vm5, %v1394_v7, %v4806_v6 }
 0x271   : > { %1109 = vrot.lane.b32.xlu1 %v4720_v2, %s2232_s23  ;;  %v1270_v40 = vpop.permute.xlu2 %1269  ;;  %v4801_v2 = vld [vmem:[#allocation44_spill] sm:$0xff]  ;;  %v1460_v9 = vsel %vm1454_vm6, %v1427_v5, %v4807_v60 }
 0x272   : > { %v1493_v35 = vsel %vm1487_vm7, %v1460_v9, %v4809_v17  ;;  %v4821_v5 = vld [vmem:[#allocation164_spill] sm:$0xff] }
 0x273   : > { %v1268_v21 = vpop.permute.xlu1 %1267  ;;  %v1526_v36 = vsel %vm1520_vm9, %v1493_v35, %v1078_v52  ;;  %v4824_v35 = vld [vmem:[#allocation12_spill] sm:$0xff] }
 0x274   : > { %1287 = vrot.lane.b32.xlu0 %v4799_v55, %s2234_s25  ;;  %v1591_v51 = vsel %vm1586_vm11, %v1558_v23, %v1268_v21  ;;  %v4813_v23 = vld [vmem:[#allocation143_spill] sm:$0xff]  ;;  %v4814_v21 = vld [vmem:[#allocation122_spill] sm:$0xff] }
 0x275   : > { %2144 = vmatmul.msk.f32.gmra.mxu0 %vm1624_vm12, %v1591_v51  ;;  %v1433_v52 = vsel %vm1421_vm5, %v1400_v28, %v4813_v23  ;;  %v4815_v55 = vld [vmem:[#allocation162_spill] sm:$0xff] }
 0x276   : > { %v1198_v54 = vpop.permute.xlu0 %1197  ;;  %v1466_v51 = vsel %vm1454_vm6, %v1433_v52, %v4815_v55 }
 0x277   : > { %1217 = vrot.lane.b32.xlu2 %v4800_v25, %s2233_s24  ;;  %v1571_v50 = vsel %vm1553_vm10, %v1538_v62, %v1198_v54  ;;  %v4817_v62 = vld [vmem:[#allocation79_spill] sm:$0xff] }
 0x279   : > { %1205 = vrot.lane.b32.xlu1 %v4801_v2, %s2233_s24  ;;  %v1212_v10 = vpop.permute.xlu2 %1211 }
 0x27b   : > { %v1294_v24 = vpop.permute.xlu1 %1293 }
 0x27c   : > { %1301 = vrot.lane.b32.xlu0 %v4802_v1, %s2234_s25  ;;  %v1604_v45 = vsel %vm1586_vm11, %v1571_v50, %v1294_v24 }
 0x27d   : > { %2157 = vmatmul.msk.f32.gmra.mxu2 %vm1624_vm12, %v1604_v45  ;;  %v4818_v45 = vld [vmem:[#allocation149_spill] sm:$0xff] }
 0x27e   : > { %v1090_v22 = vpop.permute.xlu0 %1089 }
 0x27f   : > { %1097 = vrot.lane.b32.xlu2 %v4700_v27, %s2232_s23 }
 0x281   : > { %1313 = vrot.lane.b32.xlu1 %v4808_v8, %s2234_s25  ;;  %v1080_v44 = vpop.permute.xlu2 %1079  ;;  %v4822_v8 = vld [vmem:[#allocation124_spill] sm:$0xff] }
 0x283   : > { %v1174_v3 = vpop.permute.xlu1 %1173 }
 0x284   : > { %v1559_v30 = vsel %vm1553_vm10, %v1526_v36, %v1174_v3  ;;  %1193 = vrot.lane.b32.xlu0 %v4810_v13, %s2233_s24  ;;  %v4825_v3 = vld [vmem:[#allocation115_spill] sm:$0xff]  ;;  %v4826_v13 = vld [vmem:[#allocation18_spill] sm:$0xff] }
 0x285   : > { %v1592_v27 = vsel %vm1586_vm11, %v1559_v30, %v1270_v40  ;;  %v4816_v40 = vld [vmem:[#allocation167_spill] sm:$0xff] }
 0x286   : > { %2145 = vmatmul.msk.f32.gmra.mxu0 %vm1624_vm12, %v1592_v27  ;;  %v1104_v38 = vpop.permute.xlu0 %1103  ;;  %v1499_v32 = vsel %vm1487_vm7, %v1466_v51, %v4816_v40  ;;  %v4831_v40 = vld [vmem:[#allocation69_spill] sm:$0xff] }
 0x287   : > { %1123 = vrot.lane.b32.xlu2 %v4814_v21, %s2232_s23  ;;  %v1532_v25 = vsel %vm1520_vm9, %v1499_v32, %v1090_v22  ;;  %v1539_v22 = vsel %vm1520_vm9, %v3532_v47, %v1104_v38  ;;  %v4829_v38 = vld [vmem:[#allocation47_spill] sm:$0xff]  ;;  %v4830_v21 = vld [vmem:[#allocation92_spill] sm:$0xff] }
 0x288   : > { %v1565_v24 = vsel %vm1553_vm10, %v1532_v25, %v1186_v57  ;;  %v4832_v32 = vld [vmem:[#allocation19_spill] sm:$0xff] }
 0x289   : > { %1111 = vrot.lane.b32.xlu1 %v4685_v59, %s2232_s23  ;;  %v1188_v54 = vpop.permute.xlu2 %1187  ;;  %v4819_v59 = vld [vmem:[#allocation48_spill] sm:$0xff]  ;;  %v1368_v25 = vsel %vm1355_vm3, %v4832_v32, %v4831_v40  ;;  %v4845_v40 = vld [vmem:[#allocation155_spill] sm:$0xff] }
 0x28b   : > { %v1116_v2 = vpop.permute.xlu1 %1115 }
 0x28c   : > { %1289 = vrot.lane.b32.xlu0 %v4817_v62, %s2234_s25  ;;  %v1545_v6 = vsel %vm1520_vm9, %v3618_v34, %v1116_v2  ;;  %v4823_v34 = vld [vmem:[#allocation61_spill] sm:$0xff]  ;;  %v4833_v62 = vld [vmem:[#allocation119_spill] sm:$0xff] }
 0x28d   : > { %v1578_v47 = vsel %vm1553_vm10, %v1545_v6, %v1212_v10  ;;  %v4827_v10 = vld [vmem:[#allocation147_spill] sm:$0xff]  ;;  %v4839_v6 = vld [vmem:[#allocation5_spill] sm:$0xff] }
 0x28e   : > { %v1282_v50 = vpop.permute.xlu0 %1281 }
 0x28f   : > { %v1598_v1 = vsel %vm1586_vm11, %v1565_v24, %v1282_v50  ;;  %1219 = vrot.lane.b32.xlu2 %v4818_v45, %s2233_s24  ;;  %v4835_v24 = vld [vmem:[#allocation163_spill] sm:$0xff]  ;;  %v4836_v45 = vld [vmem:[#allocation165_spill] sm:$0xff] }
 0x290   : > { %2151 = vmatmul.msk.f32.gmra.mxu1 %vm1624_vm12, %v1598_v1 }
 0x291   : > { %1207 = vrot.lane.b32.xlu1 %v4819_v59, %s2233_s24  ;;  %v1272_v18 = vpop.permute.xlu2 %1271 }
 0x293   : > { %v1200_v46 = vpop.permute.xlu1 %1199 }
 0x294   : > { %1303 = vrot.lane.b32.xlu0 %v4820_v20, %s2234_s25  ;;  %v1572_v57 = vsel %vm1553_vm10, %v1539_v22, %v1200_v46  ;;  %v4837_v20 = vld [vmem:[#allocation4_spill] sm:$0xff] }
 0x296   : > { %v1296_v41 = vpop.permute.xlu0 %1295 }
 0x297   : > { %v1605_v7 = vsel %vm1586_vm11, %v1572_v57, %v1296_v41  ;;  %1113 = vrot.lane.b32.xlu2 %v4726_v31, %s2232_s23  ;;  %v1362_v31 = vsel %vm1355_vm3, %v4824_v35, %v4823_v34  ;;  %v4840_v35 = vld [vmem:[#allocation56_spill] sm:$0xff] }
 0x298   : > { %2158 = vmatmul.msk.f32.gmra.mxu2 %vm1624_vm12, %v1605_v7  ;;  %v1395_v30 = vsel %vm1388_vm4, %v1362_v31, %v4825_v3 }
 0x299   : > { %1315 = vrot.lane.b32.xlu1 %v4821_v5, %s2234_s25  ;;  %v1214_v60 = vpop.permute.xlu2 %1213  ;;  %v1428_v27 = vsel %vm1421_vm5, %v1395_v30, %v4826_v13 }
 0x29a   : > { %v1461_v56 = vsel %vm1454_vm6, %v1428_v27, %v4828_v37 }
 0x29b   : > { %v1308_v9 = vpop.permute.xlu1 %1307  ;;  %v1494_v48 = vsel %vm1487_vm7, %v1461_v56, %v3401_v0  ;;  %v1401_v0 = vsel %vm1388_vm4, %v1368_v25, %v4833_v62  ;;  %v4841_v56 = vld [vmem:[#allocation78_spill] sm:$0xff] }
 0x29c   : > { %1125 = vrot.lane.b32.xlu0 %v4822_v8, %s2232_s23  ;;  %v1611_v17 = vsel %vm1586_vm11, %v1578_v47, %v1308_v9  ;;  %v1527_v28 = vsel %vm1520_vm9, %v1494_v48, %v1080_v44  ;;  %v4834_v44 = vld [vmem:[#allocation26_spill] sm:$0xff] }
 0x29d   : > { %2164 = vmatmul.msk.f32.vlgmr.msra.gmra.mxu3 %vm1624_vm12, %v1611_v17  ;;  %v1434_v50 = vsel %vm1421_vm5, %v1401_v0, %v4834_v44 }
 0x29e   : > { %v1092_v36 = vpop.permute.xlu0 %1091  ;;  %v1467_v1 = vsel %vm1454_vm6, %v1434_v50, %v4835_v24 }
 0x29f   : > { %1221 = vrot.lane.b32.xlu2 %v4827_v10, %s2233_s24  ;;  %v1500_v59 = vsel %vm1487_vm7, %v1467_v1, %v3445_v19  ;;  %v4838_v19 = vld [vmem:[#allocation55_spill] sm:$0xff] }
 0x2a1   : > { %1209 = vrot.lane.b32.xlu1 %v4829_v38, %s2233_s24  ;;  %v1082_v55 = vpop.permute.xlu2 %1081  ;;  %v4842_v38 = vld [vmem:[#allocation10_spill] sm:$0xff] }
 0x2a2   : > { %v1363_v48 = vsel %vm1355_vm3, %v4842_v38, %v4841_v56 }
 0x2a3   : > { %v1176_v23 = vpop.permute.xlu1 %1175 }
 0x2a4   : > { %v1560_v52 = vsel %vm1553_vm10, %v1527_v28, %v1176_v23  ;;  %1305 = vrot.lane.b32.xlu0 %v4830_v21, %s2234_s25 }
 0x2a5   : > { %v1593_v51 = vsel %vm1586_vm11, %v1560_v52, %v1272_v18  ;;  %v1533_v18 = vsel %vm1520_vm9, %v1500_v59, %v1092_v36  ;;  %v4843_v52 = vld [vmem:[#allocation116_spill] sm:$0xff] }
 0x2a6   : > { %2146 = vmatmul.msk.f32.gmra.mxu0 %vm1624_vm12, %v1593_v51  ;;  %v1106_v2 = vpop.permute.xlu0 %1105  ;;  %v1566_v57 = vsel %vm1553_vm10, %v1533_v18, %v1188_v54  ;;  %v1396_v21 = vsel %vm1388_vm4, %v1363_v48, %v4843_v52 }
 0x2a7   : > { %1127 = vrot.lane.b32.xlu2 %v4749_v43, %s2232_s23 }
 0x2a9   : > { %1317 = vrot.lane.b32.xlu1 %v4836_v45, %s2234_s25  ;;  %v1190_v41 = vpop.permute.xlu2 %1189 }
 0x2ab   : > { %v1118_v46 = vpop.permute.xlu1 %1117 }
 0x2ac   : > { %1223 = vrot.lane.b32.xlu0 %v4837_v20, %s2233_s24  ;;  %v1546_v8 = vsel %vm1520_vm9, %v3641_v42, %v1118_v46 }
 0x2ad   : > { %v1579_v13 = vsel %vm1553_vm10, %v1546_v8, %v1214_v60  ;;  %v4844_v60 = vld [vmem:[#allocation139_spill] sm:$0xff] }
 0x2ae   : > { %v1284_v22 = vpop.permute.xlu0 %1283  ;;  %v1429_v51 = vsel %vm1421_vm5, %v1396_v21, %v4844_v60 }
 0x2af   : > { %v1599_v43 = vsel %vm1586_vm11, %v1566_v57, %v1284_v22  ;;  %1129 = vrot.lane.b32.xlu2 %v4754_v4, %s2232_s23  ;;  %v1540_v4 = vsel %vm1520_vm9, %v3565_v16, %v1106_v2  ;;  %v1462_v32 = vsel %vm1454_vm6, %v1429_v51, %v4845_v40 }
 0x2b0   : > { %2152 = vmatmul.msk.f32.gmra.mxu1 %vm1624_vm12, %v1599_v43  ;;  %v1495_v25 = vsel %vm1487_vm7, %v1462_v32, %v3419_v61 }
 0x2b1   : > { %1319 = vrot.lane.b32.xlu1 %v4838_v19, %s2234_s25  ;;  %v1274_v34 = vpop.permute.xlu2 %1273  ;;  %v1528_v2 = vsel %vm1520_vm9, %v1495_v25, %v1082_v55 }
 0x2b2   : > { %v1742_v54 = vpop.f32.mrf.mxu0 }
 0x2b3   : > { %1838 = vst.msk [vmem:[%s4017_s11] sm:$0xff] %vm1388_vm4, %v1742_v54  ;;  %v1202_v7 = vpop.permute.xlu1 %1201  ;;  %v1939_v17 = vmul.f32 %v1742_v54, %v1742_v54  ;;  %v1870_v36 = vsel %vm1388_vm4, %v1742_v54, 0.0 }
 0x2b4   : > { %1225 = vrot.lane.b32.xlu0 %v4839_v6, %s2233_s24  ;;  %v1573_v5 = vsel %vm1553_vm10, %v1540_v4, %v1202_v7 }
 0x2b5   : > { %v1971_v10 = vsel %vm1388_vm4, %v1939_v17, 0.0 }
 0x2b6   : > { %v1298_v9 = vpop.permute.xlu0 %1297 }
 0x2b7   : > { %v1606_v47 = vsel %vm1586_vm11, %v1573_v5, %v1298_v9 }
 0x2b8   : > { %2159 = vmatmul.msk.f32.gmra.mxu2 %vm1624_vm12, %v1606_v47 }
 0x2b9   : > { %1321 = vrot.lane.b32.xlu1 %v4840_v35, %s2234_s25  ;;  %v1216_v62 = vpop.permute.xlu2 %1215 }
 0x2ba   : > { %v1745_v31 = vpop.f32.mrf.mxu0 }
 0x2bb   : > { %1839 = vst.msk [vmem:[%s4017_s11 + $0x8] sm:$0xff] %vm1388_vm4, %v1745_v31  ;;  %v1871_v16 = vsel %vm1388_vm4, %v1745_v31, 0.0  ;;  %v1940_v3 = vmul.f32 %v1745_v31, %v1745_v31  ;;  %v1310_v30 = vpop.permute.xlu1 %1309 }
 0x2bc   : > { %v1872_v27 = vadd.f32 %v1871_v16, %v1870_v36  ;;  %v1612_v42 = vsel %vm1586_vm11, %v1579_v13, %v1310_v30 }
 0x2bd   : > { %v1972_v37 = vsel %vm1388_vm4, %v1940_v3, 0.0  ;;  %2165 = vmatmul.msk.f32.gmra.mxu3 %vm1624_vm12, %v1612_v42 }
 0x2be   : > { %v1973_v28 = vadd.f32 %v1972_v37, %v1971_v10  ;;  %v1094_v23 = vpop.permute.xlu0 %1093 }
 0x2bf   : > { %v1534_v20 = vsel %vm1520_vm9, %v3478_v58, %v1094_v23 }
 0x2c0   : > { %v1567_v19 = vsel %vm1553_vm10, %v1534_v20, %v1190_v41 }
 0x2c1   : > { %v1096_v57 = vpop.permute.xlu2 %1095 }
 0x2c3   : > { %v1178_v0 = vpop.permute.xlu1 %1177 }
 0x2c4   : > { %v1561_v44 = vsel %vm1553_vm10, %v1528_v2, %v1178_v0 }
 0x2c5   : > { %v1748_v50 = vpop.f32.mrf.mxu0  ;;  %v1594_v24 = vsel %vm1586_vm11, %v1561_v44, %v1274_v34 }
 0x2c6   : > { %1840 = vst.msk [vmem:[%s4017_s11 + $0x10] sm:$0xff] %vm1388_vm4, %v1748_v50  ;;  %v1873_v1 = vsel %vm1388_vm4, %v1748_v50, 0.0  ;;  %v1941_v45 = vmul.f32 %v1748_v50, %v1748_v50  ;;  %2147 = vmatmul.msk.f32.gmra.mxu0 %vm1624_vm12, %v1594_v24  ;;  %v1108_v59 = vpop.permute.xlu0 %1107 }
 0x2c7   : > { %v1874_v61 = vadd.f32 %v1873_v1, %v1872_v27  ;;  %v1541_v58 = vsel %vm1520_vm9, %v3439_v39, %v1108_v59  ;;  %v1535_v27 = vsel %vm1520_vm9, %v3395_v49, %v1096_v57 }
 0x2c8   : > { %v1974_v55 = vsel %vm1388_vm4, %v1941_v45, 0.0 }
 0x2c9   : > { %v1975_v18 = vadd.f32 %v1974_v55, %v1973_v28  ;;  %v1122_v9 = vpop.permute.xlu2 %1121 }
 0x2ca   : > { %v4062_v46 = vpop.f32.mrf.mxu1  ;;  %v1548_v60 = vsel %vm1520_vm9, %v3650_v53, %v1122_v9 }
 0x2cb   : > { %1846 = vst.msk [vmem:[%s4017_s11 + $0x40] sm:$0xff] %vm1388_vm4, %v4062_v46  ;;  %v1120_v22 = vpop.permute.xlu1 %1119 }
 0x2cc   : > { %v1547_v41 = vsel %vm1520_vm9, %v3515_v63, %v1120_v22 }
 0x2cd   : > { %v1580_v39 = vsel %vm1553_vm10, %v1547_v41, %v1216_v62 }
 0x2ce   : > { %v1286_v43 = vpop.permute.xlu0 %1285 }
 0x2cf   : > { %v1600_v54 = vsel %vm1586_vm11, %v1567_v19, %v1286_v43 }
 0x2d0   : > { %2153 = vmatmul.msk.f32.gmra.mxu1 %vm1624_vm12, %v1600_v54 }
 0x2d1   : > { %v1218_v30 = vpop.permute.xlu2 %1217 }
 0x2d2   : > { %v4072_v7 = vpop.f32.mrf.mxu1  ;;  %v1581_v40 = vsel %vm1553_vm10, %v1548_v60, %v1218_v30 }
 0x2d3   : > { %1847 = vst.msk [vmem:[%s4017_s11 + $0x48] sm:$0xff] %vm1388_vm4, %v4072_v7  ;;  %v1204_v6 = vpop.permute.xlu1 %1203 }
 0x2d4   : > { %v1574_v4 = vsel %vm1553_vm10, %v1541_v58, %v1204_v6 }
 0x2d6   : > { %v1300_v5 = vpop.permute.xlu0 %1299 }
 0x2d7   : > { %v1607_v47 = vsel %vm1586_vm11, %v1574_v4, %v1300_v5 }
 0x2d8   : > { %2160 = vmatmul.msk.f32.gmra.mxu2 %vm1624_vm12, %v1607_v47 }
 0x2d9   : > { %v1098_v48 = vpop.permute.xlu2 %1097 }
 0x2da   : > { %v1751_v8 = vpop.f32.mrf.mxu0  ;;  %v1536_v1 = vsel %vm1520_vm9, %v3490_v14, %v1098_v48 }
 0x2db   : > { %1841 = vst.msk [vmem:[%s4017_s11 + $0x18] sm:$0xff] %vm1388_vm4, %v1751_v8  ;;  %v1875_v17 = vsel %vm1388_vm4, %v1751_v8, 0.0  ;;  %v1942_v34 = vmul.f32 %v1751_v8, %v1751_v8  ;;  %v1312_v35 = vpop.permute.xlu1 %1311 }
 0x2dc   : > { %v1876_v31 = vadd.f32 %v1875_v17, %v1874_v61  ;;  %v1613_v36 = vsel %vm1586_vm11, %v1580_v39, %v1312_v35 }
 0x2dd   : > { %v1976_v16 = vsel %vm1388_vm4, %v1942_v34, 0.0  ;;  %2166 = vmatmul.msk.f32.gmra.mxu3 %vm1624_vm12, %v1613_v36 }
 0x2de   : > { %v1977_v63 = vadd.f32 %v1976_v16, %v1975_v18  ;;  %v1192_v3 = vpop.permute.xlu0 %1191 }
 0x2df   : > { %v1568_v42 = vsel %vm1553_vm10, %v1535_v27, %v1192_v3 }
 0x2e1   : > { %v1124_v0 = vpop.permute.xlu2 %1123 }
 0x2e2   : > { %v1549_v47 = vsel %vm1520_vm9, %v3673_v15, %v1124_v0 }
 0x2e3   : > { %v1110_v13 = vpop.permute.xlu1 %1109 }
 0x2e4   : > { %v1542_v28 = vsel %vm1520_vm9, %v3577_v26, %v1110_v13 }
 0x2e6   : > { %v1288_v10 = vpop.permute.xlu0 %1287 }
 0x2e7   : > { %v4094_v37 = vpop.f32.mrf.mxu1  ;;  %v1601_v56 = vsel %vm1586_vm11, %v1568_v42, %v1288_v10 }
 0x2e8   : > { %1848 = vst.msk [vmem:[%s4017_s11 + $0x50] sm:$0xff] %vm1388_vm4, %v4094_v37  ;;  %v4100_v38 = vpop.f32.mrf.mxu2  ;;  %2154 = vmatmul.msk.f32.gmra.mxu1 %vm1624_vm12, %v1601_v56 }
 0x2e9   : > { %1854 = vst.msk [vmem:[%s4017_s11 + $0x80] sm:$0xff] %vm1388_vm4, %v4100_v38  ;;  %v1220_v61 = vpop.permute.xlu2 %1219 }
 0x2ea   : > { %v1582_v41 = vsel %vm1553_vm10, %v1549_v47, %v1220_v61  ;;  %v1885_v61 = vsel %vm1388_vm4, %v4062_v46, 0.0 }
 0x2eb   : > { %v1206_v49 = vpop.permute.xlu1 %1205 }
 0x2ec   : > { %v1575_v23 = vsel %vm1553_vm10, %v1542_v28, %v1206_v49 }
 0x2ee   : > { %v1302_v52 = vpop.permute.xlu0 %1301 }
 0x2ef   : > { %v1608_v21 = vsel %vm1586_vm11, %v1575_v23, %v1302_v52 }
 0x2f0   : > { %2161 = vmatmul.msk.f32.gmra.mxu2 %vm1624_vm12, %v1608_v21 }
 0x2f1   : > { %v1114_v9 = vpop.permute.xlu2 %1113 }
 0x2f2   : > { %v1754_v51 = vpop.f32.mrf.mxu0  ;;  %v1544_v15 = vsel %vm1520_vm9, %v3473_v33, %v1114_v9 }
 0x2f3   : > { %1842 = vst.msk [vmem:[%s4017_s11 + $0x20] sm:$0xff] %vm1388_vm4, %v1754_v51  ;;  %v1877_v32 = vsel %vm1388_vm4, %v1754_v51, 0.0  ;;  %v1943_v25 = vmul.f32 %v1754_v51, %v1754_v51  ;;  %v1314_v2 = vpop.permute.xlu1 %1313 }
 0x2f4   : > { %v1878_v26 = vadd.f32 %v1877_v32, %v1876_v31  ;;  %v1614_v62 = vsel %vm1586_vm11, %v1581_v40, %v1314_v2 }
 0x2f5   : > { %v1978_v44 = vsel %vm1388_vm4, %v1943_v25, 0.0  ;;  %2167 = vmatmul.msk.f32.gmra.mxu3 %vm1624_vm12, %v1614_v62 }
 0x2f6   : > { %v1979_v53 = vadd.f32 %v1978_v44, %v1977_v63  ;;  %v1194_v50 = vpop.permute.xlu0 %1193 }
 0x2f7   : > { %v1569_v45 = vsel %vm1553_vm10, %v1536_v1, %v1194_v50 }
 0x2f9   : > { %v1222_v35 = vpop.permute.xlu2 %1221 }
 0x2fb   : > { %v1112_v24 = vpop.permute.xlu1 %1111 }
 0x2fc   : > { %v1543_v43 = vsel %vm1520_vm9, %v3609_v29, %v1112_v24  ;;  %v1947_v24 = vmul.f32 %v4062_v46, %v4062_v46 }
 0x2fe   : > { %v1290_v59 = vpop.permute.xlu0 %1289 }
 0x2ff   : > { %v1602_v55 = vsel %vm1586_vm11, %v1569_v45, %v1290_v59 }
 0x300   : > { %v4124_v18 = vpop.f32.mrf.mxu2  ;;  %2155 = vmatmul.msk.f32.gmra.mxu1 %vm1624_vm12, %v1602_v55  ;;  %v1948_v55 = vmul.f32 %v4072_v7, %v4072_v7 }
 0x301   : > { %1855 = vst.msk [vmem:[%s4017_s11 + $0x88] sm:$0xff] %vm1388_vm4, %v4124_v18  ;;  %v1128_v27 = vpop.permute.xlu2 %1127 }
 0x302   : > { %v1988_v46 = vsel %vm1388_vm4, %v1948_v55, 0.0 }
 0x303   : > { %v1208_v20 = vpop.permute.xlu1 %1207  ;;  %v1757_v22 = vpop.f32.mrf.mxu0 }
 0x304   : > { %1843 = vst.msk [vmem:[%s4017_s11 + $0x28] sm:$0xff] %vm1388_vm4, %v1757_v22  ;;  %v1879_v57 = vsel %vm1388_vm4, %v1757_v22, 0.0  ;;  %v1944_v14 = vmul.f32 %v1757_v22, %v1757_v22  ;;  %v1576_v54 = vsel %vm1553_vm10, %v1543_v43, %v1208_v20  ;;  %v1887_v43 = vsel %vm1388_vm4, %v4072_v7, 0.0 }
 0x305   : > { %v1880_v19 = vadd.f32 %v1879_v57, %v1878_v26 }
 0x306   : > { %v1980_v6 = vsel %vm1388_vm4, %v1944_v14, 0.0  ;;  %v1304_v58 = vpop.permute.xlu0 %1303  ;;  %v1986_v14 = vsel %vm1388_vm4, %v1947_v24, 0.0 }
 0x307   : > { %v1981_v4 = vadd.f32 %v1980_v6, %v1979_v53  ;;  %v1609_v5 = vsel %vm1586_vm11, %v1576_v54, %v1304_v58  ;;  %v1889_v58 = vsel %vm1388_vm4, %v4094_v37, 0.0 }
 0x308   : > { %2162 = vmatmul.msk.f32.gmra.mxu2 %vm1624_vm12, %v1609_v5 }
 0x309   : > { %v1130_v40 = vpop.permute.xlu2 %1129 }
 0x30a   : > { %v1552_v2 = vsel %vm1520_vm9, %v3702_v11, %v1130_v40 }
 0x30b   : > { %v1316_v8 = vpop.permute.xlu1 %1315 }
 0x30c   : > { %v1615_v29 = vsel %vm1586_vm11, %v1582_v41, %v1316_v8 }
 0x30d   : > { %2168 = vmatmul.msk.f32.gmra.mxu3 %vm1624_vm12, %v1615_v29  ;;  %v4144_v17 = vpop.f32.mrf.mxu1 }
 0x30e   : > { %1849 = vst.msk [vmem:[%s4017_s11 + $0x58] sm:$0xff] %vm1388_vm4, %v4144_v17  ;;  %v1126_v34 = vpop.permute.xlu0 %1125  ;;  %v1891_v7 = vsel %vm1388_vm4, %v4144_v17, 0.0 }
 0x30f   : > { %v1550_v63 = vsel %vm1520_vm9, %v3557_v12, %v1126_v34  ;;  %v4846_v12 = vld [vmem:[#allocation94_spill] sm:$0xff] }
 0x310   : > { %v1583_v13 = vsel %vm1553_vm10, %v1550_v63, %v1222_v35  ;;  %v1551_v56 = vsel %vm1520_vm9, %v4846_v12, %v1128_v27 }
 0x313   : > { %v1210_v39 = vpop.permute.xlu1 %1209 }
 0x314   : > { %v1577_v31 = vsel %vm1553_vm10, %v1544_v15, %v1210_v39 }
 0x316   : > { %v1306_v36 = vpop.permute.xlu0 %1305 }
 0x317   : > { %v1610_v16 = vsel %vm1586_vm11, %v1577_v31, %v1306_v36 }
 0x318   : > { %2163 = vmatmul.msk.f32.gmra.mxu2 %vm1624_vm12, %v1610_v16 }
 0x31b   : > { %v1318_v3 = vpop.permute.xlu1 %1317  ;;  %v4156_v30 = vpop.f32.mrf.mxu2 }
 0x31c   : > { %1856 = vst.msk [vmem:[%s4017_s11 + $0x90] sm:$0xff] %vm1388_vm4, %v4156_v30  ;;  %v1616_v33 = vsel %vm1586_vm11, %v1583_v13, %v1318_v3  ;;  %v1957_v24 = vmul.f32 %v4156_v30, %v4156_v30 }
 0x31d   : > { %2169 = vmatmul.msk.f32.gmra.mxu3 %vm1624_vm12, %v1616_v33 }
 0x31e   : > { %v1224_v42 = vpop.permute.xlu0 %1223 }
 0x31f   : > { %v1584_v48 = vsel %vm1553_vm10, %v1551_v56, %v1224_v42 }
 0x320   : > { %v4164_v10 = vpop.f32.mrf.mxu3 }
 0x321   : > { %1862 = vst.msk [vmem:[%s4017_s11 + $0xc0] sm:$0xff] %vm1388_vm4, %v4164_v10 }
 0x323   : > { %v1320_v49 = vpop.permute.xlu1 %1319  ;;  %v1760_v28 = vpop.f32.mrf.mxu0 }
 0x324   : > { %1844 = vst.msk [vmem:[%s4017_s11 + $0x30] sm:$0xff] %vm1388_vm4, %v1760_v28  ;;  %v1881_v23 = vsel %vm1388_vm4, %v1760_v28, 0.0  ;;  %v1945_v52 = vmul.f32 %v1760_v28, %v1760_v28  ;;  %v1617_v21 = vsel %vm1586_vm11, %v1584_v48, %v1320_v49 }
 0x325   : > { %v1882_v60 = vadd.f32 %v1881_v23, %v1880_v19  ;;  %2170 = vmatmul.msk.f32.gmra.mxu3 %vm1624_vm12, %v1617_v21  ;;  %v1949_v19 = vmul.f32 %v4094_v37, %v4094_v37  ;;  %v1955_v21 = vmul.f32 %v4100_v38, %v4100_v38 }
 0x326   : > { %v1982_v51 = vsel %vm1388_vm4, %v1945_v52, 0.0  ;;  %v1226_v25 = vpop.permute.xlu0 %1225 }
 0x327   : > { %v1983_v32 = vadd.f32 %v1982_v51, %v1981_v4  ;;  %v1585_v26 = vsel %vm1553_vm10, %v1552_v2, %v1226_v25  ;;  %v1950_v4 = vmul.f32 %v4144_v17, %v4144_v17  ;;  %v1990_v47 = vsel %vm1388_vm4, %v1949_v19, 0.0 }
 0x328   : > { %v1901_v25 = vsel %vm1388_vm4, %v4100_v38, 0.0  ;;  %v1956_v2 = vmul.f32 %v4124_v18, %v4124_v18 }
 0x329   : > { %v1992_v35 = vsel %vm1388_vm4, %v1950_v4, 0.0 }
 0x32a   : > { %v2004_v38 = vsel %vm1388_vm4, %v1956_v2, 0.0 }
 0x32b   : > { %v1322_v62 = vpop.permute.xlu1 %1321 }
 0x32c   : > { %v1618_v0 = vsel %vm1586_vm11, %v1585_v26, %v1322_v62 }
 0x32d   : > { %2171 = vmatmul.msk.f32.gmra.mxu3 %vm1624_vm12, %v1618_v0  ;;  %v1778_v44 = vpop.f32.mrf.mxu1 }
 0x32e   : > { %1850 = vst.msk [vmem:[%s4017_s11 + $0x60] sm:$0xff] %vm1388_vm4, %v1778_v44  ;;  %v1951_v41 = vmul.f32 %v1778_v44, %v1778_v44  ;;  %v1893_v37 = vsel %vm1388_vm4, %v1778_v44, 0.0  ;;  %v2002_v44 = vsel %vm1388_vm4, %v1955_v21, 0.0 }
 0x330   : > { %v1994_v17 = vsel %vm1388_vm4, %v1951_v41, 0.0 }
 0x33b   : > { %v4185_v53 = vpop.f32.mrf.mxu2 }
 0x33c   : > { %1857 = vst.msk [vmem:[%s4017_s11 + $0x98] sm:$0xff] %vm1388_vm4, %v4185_v53 }
 0x340   : > { %v4190_v50 = vpop.f32.mrf.mxu3 }
 0x341   : > { %1863 = vst.msk [vmem:[%s4017_s11 + $0xc8] sm:$0xff] %vm1388_vm4, %v4190_v50 }
 0x343   : > { %v1763_v11 = vpop.f32.mrf.mxu0 }
 0x344   : > { %1845 = vst.msk [vmem:[%s4017_s11 + $0x38] sm:$0xff] %vm1388_vm4, %v1763_v11  ;;  %v1883_v1 = vsel %vm1388_vm4, %v1763_v11, 0.0  ;;  %v1946_v45 = vmul.f32 %v1763_v11, %v1763_v11  ;;  %v1903_v11 = vsel %vm1388_vm4, %v4124_v18, 0.0  ;;  %v1907_v18 = vsel %vm1388_vm4, %v4185_v53, 0.0 }
 0x345   : > { %v1884_v59 = vadd.f32 %v1883_v1, %v1882_v60 }
 0x346   : > { %v1984_v20 = vsel %vm1388_vm4, %v1946_v45, 0.0 }
 0x347   : > { %v1886_v22 = vadd.f32 %v1885_v61, %v1884_v59  ;;  %v1985_v57 = vadd.f32 %v1984_v20, %v1983_v32  ;;  %v1905_v59 = vsel %vm1388_vm4, %v4156_v30, 0.0  ;;  %v1958_v61 = vmul.f32 %v4185_v53, %v4185_v53 }
 0x349   : > { %v1888_v54 = vadd.f32 %v1887_v43, %v1886_v22  ;;  %v1987_v6 = vadd.f32 %v1986_v14, %v1985_v57  ;;  %v2006_v22 = vsel %vm1388_vm4, %v1957_v24, 0.0  ;;  %v2008_v43 = vsel %vm1388_vm4, %v1958_v61, 0.0 }
 0x34b   : > { %v1890_v5 = vadd.f32 %v1889_v58, %v1888_v54  ;;  %v1989_v9 = vadd.f32 %v1988_v46, %v1987_v6 }
 0x34d   : > { %v1991_v8 = vadd.f32 %v1990_v47, %v1989_v9  ;;  %v1781_v29 = vpop.f32.mrf.mxu1  ;;  %v1892_v34 = vadd.f32 %v1891_v7, %v1890_v5 }
 0x34e   : > { %1851 = vst.msk [vmem:[%s4017_s11 + $0x68] sm:$0xff] %vm1388_vm4, %v1781_v29  ;;  %v1895_v39 = vsel %vm1388_vm4, %v1781_v29, 0.0  ;;  %v1952_v27 = vmul.f32 %v1781_v29, %v1781_v29 }
 0x34f   : > { %v1894_v15 = vadd.f32 %v1893_v37, %v1892_v34  ;;  %v1993_v31 = vadd.f32 %v1992_v35, %v1991_v8 }
 0x350   : > { %v1996_v56 = vsel %vm1388_vm4, %v1952_v27, 0.0 }
 0x351   : > { %v1896_v36 = vadd.f32 %v1895_v39, %v1894_v15  ;;  %v1995_v16 = vadd.f32 %v1994_v17, %v1993_v31  ;;  %v1963_v39 = vmul.f32 %v4164_v10, %v4164_v10 }
 0x353   : > { %v1997_v28 = vadd.f32 %v1996_v56, %v1995_v16  ;;  %v1917_v16 = vsel %vm1388_vm4, %v4164_v10, 0.0  ;;  %v1919_v56 = vsel %vm1388_vm4, %v4190_v50, 0.0 }
 0x35b   : > { %v1802_v63 = vpop.f32.mrf.mxu2 }
 0x35c   : > { %1858 = vst.msk [vmem:[%s4017_s11 + $0xa0] sm:$0xff] %vm1388_vm4, %v1802_v63  ;;  %v1909_v19 = vsel %vm1388_vm4, %v1802_v63, 0.0  ;;  %v1959_v46 = vmul.f32 %v1802_v63, %v1802_v63  ;;  %v1964_v63 = vmul.f32 %v4190_v50, %v4190_v50 }
 0x35e   : > { %v2010_v4 = vsel %vm1388_vm4, %v1959_v46, 0.0  ;;  %v2020_v10 = vsel %vm1388_vm4, %v1964_v63, 0.0 }
 0x360   : > { %v4226_v3 = vpop.f32.mrf.mxu3 }
 0x361   : > { %1864 = vst.msk [vmem:[%s4017_s11 + $0xd0] sm:$0xff] %vm1388_vm4, %v4226_v3 }
 0x365   : > { %v1784_v13 = vpop.f32.mrf.mxu1 }
 0x366   : > { %1852 = vst.msk [vmem:[%s4017_s11 + $0x70] sm:$0xff] %vm1388_vm4, %v1784_v13  ;;  %v1953_v42 = vmul.f32 %v1784_v13, %v1784_v13  ;;  %v1897_v48 = vsel %vm1388_vm4, %v1784_v13, 0.0 }
 0x367   : > { %v1898_v23 = vadd.f32 %v1897_v48, %v1896_v36  ;;  %v1965_v48 = vmul.f32 %v4226_v3, %v4226_v3 }
 0x368   : > { %v1998_v49 = vsel %vm1388_vm4, %v1953_v42, 0.0  ;;  %v2018_v42 = vsel %vm1388_vm4, %v1963_v39, 0.0 }
 0x369   : > { %v1999_v40 = vadd.f32 %v1998_v49, %v1997_v28  ;;  %v2022_v50 = vsel %vm1388_vm4, %v1965_v48, 0.0 }
 0x373   : > { %v1805_v33 = vpop.f32.mrf.mxu2 }
 0x374   : > { %1859 = vst.msk [vmem:[%s4017_s11 + $0xa8] sm:$0xff] %vm1388_vm4, %v1805_v33  ;;  %v1960_v5 = vmul.f32 %v1805_v33, %v1805_v33  ;;  %v1911_v9 = vsel %vm1388_vm4, %v1805_v33, 0.0 }
 0x376   : > { %v2012_v41 = vsel %vm1388_vm4, %v1960_v5, 0.0 }
 0x378   : > { %v4235_v12 = vpop.f32.mrf.mxu3 }
 0x379   : > { %1865 = vst.msk [vmem:[%s4017_s11 + $0xd8] sm:$0xff] %vm1388_vm4, %v4235_v12  ;;  %v1966_v21 = vmul.f32 %v4235_v12, %v4235_v12 }
 0x37d   : > { %v1787_v52 = vpop.f32.mrf.mxu1 }
 0x37e   : > { %1853 = vst.msk [vmem:[%s4017_s11 + $0x78] sm:$0xff] %vm1388_vm4, %v1787_v52  ;;  %v1899_v60 = vsel %vm1388_vm4, %v1787_v52, 0.0  ;;  %v1954_v51 = vmul.f32 %v1787_v52, %v1787_v52  ;;  %v1921_v52 = vsel %vm1388_vm4, %v4226_v3, 0.0 }
 0x37f   : > { %v1900_v32 = vadd.f32 %v1899_v60, %v1898_v23 }
 0x380   : > { %v2000_v26 = vsel %vm1388_vm4, %v1954_v51, 0.0 }
 0x381   : > { %v1902_v62 = vadd.f32 %v1901_v25, %v1900_v32  ;;  %v2001_v0 = vadd.f32 %v2000_v26, %v1999_v40  ;;  %v1923_v40 = vsel %vm1388_vm4, %v4235_v12, 0.0  ;;  %v2024_v26 = vsel %vm1388_vm4, %v1966_v21, 0.0 }
 0x383   : > { %v1904_v1 = vadd.f32 %v1903_v11, %v1902_v62  ;;  %v2003_v45 = vadd.f32 %v2002_v44, %v2001_v0 }
 0x385   : > { %v1906_v55 = vadd.f32 %v1905_v59, %v1904_v1  ;;  %v2005_v20 = vadd.f32 %v2004_v38, %v2003_v45 }
 0x387   : > { %v2007_v57 = vadd.f32 %v2006_v22, %v2005_v20  ;;  %v1908_v14 = vadd.f32 %v1907_v18, %v1906_v55 }
 0x389   : > { %v1910_v54 = vadd.f32 %v1909_v19, %v1908_v14  ;;  %v2009_v6 = vadd.f32 %v2008_v43, %v2007_v57 }
 0x38b   : > { %v1808_v30 = vpop.f32.mrf.mxu2  ;;  %v2011_v53 = vadd.f32 %v2010_v4, %v2009_v6  ;;  %v1912_v7 = vadd.f32 %v1911_v9, %v1910_v54 }
 0x38c   : > { %1860 = vst.msk [vmem:[%s4017_s11 + $0xb0] sm:$0xff] %vm1388_vm4, %v1808_v30  ;;  %v1961_v47 = vmul.f32 %v1808_v30, %v1808_v30  ;;  %v1913_v8 = vsel %vm1388_vm4, %v1808_v30, 0.0 }
 0x38d   : > { %v2013_v29 = vadd.f32 %v2012_v41, %v2011_v53  ;;  %v1914_v35 = vadd.f32 %v1913_v8, %v1912_v7 }
 0x38e   : > { %v2014_v34 = vsel %vm1388_vm4, %v1961_v47, 0.0 }
 0x38f   : > { %v2015_v17 = vadd.f32 %v2014_v34, %v2013_v29 }
 0x390   : > { %v1826_v58 = vpop.f32.mrf.mxu3 }
 0x391   : > { %1866 = vst.msk [vmem:[%s4017_s11 + $0xe0] sm:$0xff] %vm1388_vm4, %v1826_v58  ;;  %v1967_v32 = vmul.f32 %v1826_v58, %v1826_v58  ;;  %v1925_v62 = vsel %vm1388_vm4, %v1826_v58, 0.0 }
 0x393   : > { %v2026_v11 = vsel %vm1388_vm4, %v1967_v32, 0.0 }
 0x39b   : > { %v1811_v37 = vpop.f32.mrf.mxu2 }
 0x39c   : > { %1861 = vst.msk [vmem:[%s4017_s11 + $0xb8] sm:$0xff] %vm1388_vm4, %v1811_v37  ;;  %v1915_v15 = vsel %vm1388_vm4, %v1811_v37, 0.0  ;;  %v1962_v31 = vmul.f32 %v1811_v37, %v1811_v37 }
 0x39d   : > { %v1916_v36 = vadd.f32 %v1915_v15, %v1914_v35 }
 0x39e   : > { %v2016_v13 = vsel %vm1388_vm4, %v1962_v31, 0.0 }
 0x39f   : > { %v1918_v33 = vadd.f32 %v1917_v16, %v1916_v36  ;;  %v2017_v27 = vadd.f32 %v2016_v13, %v2015_v17 }
 0x3a0   : > { %v1829_v49 = vpop.f32.mrf.mxu3 }
 0x3a1   : > { %v1920_v28 = vadd.f32 %v1919_v56, %v1918_v33  ;;  %v2019_v23 = vadd.f32 %v2018_v42, %v2017_v27  ;;  %1867 = vst.msk [vmem:[%s4017_s11 + $0xe8] sm:$0xff] %vm1388_vm4, %v1829_v49  ;;  %v1968_v24 = vmul.f32 %v1829_v49, %v1829_v49  ;;  %v1927_v45 = vsel %vm1388_vm4, %v1829_v49, 0.0 }
 0x3a3   : > { %v1922_v60 = vadd.f32 %v1921_v52, %v1920_v28  ;;  %v2021_v51 = vadd.f32 %v2020_v10, %v2019_v23  ;;  %v2028_v38 = vsel %vm1388_vm4, %v1968_v24, 0.0 }
 0x3a5   : > { %v2023_v25 = vadd.f32 %v2022_v50, %v2021_v51  ;;  %v1924_v2 = vadd.f32 %v1923_v40, %v1922_v60 }
 0x3a7   : > { %v2025_v0 = vadd.f32 %v2024_v26, %v2023_v25  ;;  %v1926_v3 = vadd.f32 %v1925_v62, %v1924_v2 }
 0x3a8   : > { %v1832_v44 = vpop.f32.mrf.mxu3 }
 0x3a9   : > { %1868 = vst.msk [vmem:[%s4017_s11 + $0xf0] sm:$0xff] %vm1388_vm4, %v1832_v44  ;;  %v2027_v1 = vadd.f32 %v2026_v11, %v2025_v0  ;;  %v1928_v12 = vadd.f32 %v1927_v45, %v1926_v3  ;;  %v1969_v59 = vmul.f32 %v1832_v44, %v1832_v44  ;;  %v1929_v55 = vsel %vm1388_vm4, %v1832_v44, 0.0 }
 0x3ab   : > { %v2029_v61 = vadd.f32 %v2028_v38, %v2027_v1  ;;  %v1930_v20 = vadd.f32 %v1929_v55, %v1928_v12  ;;  %v2030_v18 = vsel %vm1388_vm4, %v1969_v59, 0.0 }
 0x3ad   : > { %v2031_v43 = vadd.f32 %v2030_v18, %v2029_v61 }
 0x3b0   : > { %v1835_v22 = vpop.f32.mrf.mxu3 }
 0x3b1   : > { %1869 = vst.msk [vmem:[%s4017_s11 + $0xf8] sm:$0xff] %vm1388_vm4, %v1835_v22  ;;  %v1931_v57 = vsel %vm1388_vm4, %v1835_v22, 0.0  ;;  %v1970_v14 = vmul.f32 %v1835_v22, %v1835_v22 }
 0x3b2   : > { %v1932_v19 = vadd.f32 %v1931_v57, %v1930_v20 }
 0x3b3   : > { %v2032_v54 = vsel %vm1388_vm4, %v1970_v14, 0.0 }
 0x3b4   : > { %v1933_v6 = vrot.slane %v1932_v19, 4  ;;  %v2033_v30 = vadd.f32 %v2032_v54, %v2031_v43 }
 0x3b6   : > { %v1934_v46 = vadd.f32 %v1933_v6, %v1932_v19  ;;  %v2034_v58 = vrot.slane %v2033_v30, 4 }
 0x3b8   : > { %v1935_v4 = vrot.slane %v1934_v46, 2  ;;  %v2035_v5 = vadd.f32 %v2034_v58, %v2033_v30 }
 0x3ba   : > { %v1936_v53 = vadd.f32 %v1935_v4, %v1934_v46  ;;  %v2036_v9 = vrot.slane %v2035_v5, 2 }
 0x3bc   : > { %v1937_v47 = vrot.slane %v1936_v53, 1  ;;  %v2037_v7 = vadd.f32 %v2036_v9, %v2035_v5 }
 0x3be   : > { %v2038_v41 = vrot.slane %v2037_v7, 1  ;;  %v1938_v8 = vadd.f32 %v1937_v47, %v1936_v53 }
 0x3c0   : > { %v2039_v29 = vadd.f32 %v2038_v41, %v2037_v7 }
 0x3c2   : > { %v2040_v34 = vsel %vm247_vm0, %v1938_v8, %v2039_v29 }
 0x3c3   : > { %2042 = vst.msk [vmem:[%s181_s17] sm:$0x3] %vm2041_vm13, %v2040_v34 }
 0x3c4 PF: > { %s14_s12 = sadd.s32 1, %s2224_s12  }
 0x3c5   : > { %p11_p4 = scmp.ge.s32.totalorder %s14_s12, 4  }
 0x3c7   :  { %13 = sbr.rel (!%p11_p4) target bundleno = 1 (0x1), region = 70 }

// kernel: encoder_forward.5
= control target key start
LH: loop header
LB: loop body
LE: loop exit
PB: predicated region body
PF: predicated region fallthrough
CT: control target
= control target key end

     0   :  { %s3208_s15 = smov 0   ;;  %s8268_s0 = inlined_call_operand.vmem [shape: f32[2,256,8], index: 0, kind: input, shape index: {}]   ;;  %s8269_s1 = inlined_call_operand.vmem [shape: f32[1,8], index: 1, kind: input, shape index: {}]   ;;  %s8270_s2 = inlined_call_operand.vmem [shape: f32[1,8], index: 2, kind: input, shape index: {}]   ;;  %s8271_s3 = inlined_call_operand.vmem [shape: f32[2,8,8,8], index: 3, kind: output, shape index: {0}]   ;;  %s8272_s4 = inlined_call_operand.vmem [shape: s32[2,8,8,8], index: 4, kind: output, shape index: {1}]  }
   0x1 LB: > { %s2949_s16 = sadd.s32 4294967295, %s3177_s15   ;;  %p2953_p0 = scmp.ge.s32.totalorder %s3177_s15, 1  ;;  %s3177_s15 = sphi %s3208_s15, %s15_s15  }
   0x2   : > { %p165_p1 = scmp.lt.s32.totalorder %s3177_s15, 3 }
   0x4   : > { %p166_p2 = pnand %p2953_p0, %p165_p1 }
   0x6   : > { %169 = sbr.rel (%p166_p2) target bundleno = 736 (0x2e0), region = 32 }
   0xb   : > { %p196_p3 = scmp.lt.s32.totalorder %s2949_s16, 1  ;;  %v3227_v0 = vld [vmem:[%s8269_s1] ss:$0 sm:$0xff] }
   0xc   : > { %v3236_v5 = vld [vmem:[%s8270_s2] ss:$0 sm:$0xff] }
   0xd   : > { %s11581_s16 = smov (!%p196_p3, %s2949_s16), 1 }
   0xe   : > { %s3154_s17 = sshll.u32 %s11581_s16, 8  ;;  %s3155_s25 = sshll.u32 %s11581_s16, 6 }
   0xf   : > { %s3222_s20 = scalar_lea.vmem %s8268_s0, %s3154_s17  ;;  %s8011_s28 = scalar_lea.vmem %s8271_s3, %s3155_s25 }
  0x10   : > { %v211_v1 = vld [vmem:[%s3222_s20] sm:$0xff]  ;;  %v212_v2 = vld [vmem:[%s3222_s20 + $0x8] sm:$0xff]  ;;  %v213_v3 = vld [vmem:[%s3222_s20 + $0x10] sm:$0xff]  ;;  %s8163_s5 = scalar_lea.vmem %s8272_s4, %s3155_s25 }
  0x11   : > { %v214_v4 = vld [vmem:[%s3222_s20 + $0x18] sm:$0xff]  ;;  %v215_v6 = vld [vmem:[%s3222_s20 + $0x20] sm:$0xff]  ;;  %v216_v7 = vld [vmem:[%s3222_s20 + $0x28] sm:$0xff]  ;;  %v247_v9 = vmul.f32 %v3227_v0, %v211_v1  ;;  %v248_v13 = vmul.f32 %v3227_v0, %v212_v2  ;;  %v249_v17 = vmul.f32 %v3227_v0, %v213_v3 }
  0x12   : > { %v217_v8 = vld [vmem:[%s3222_s20 + $0x30] sm:$0xff]  ;;  %v218_v10 = vld [vmem:[%s3222_s20 + $0x38] sm:$0xff]  ;;  %v219_v11 = vld [vmem:[%s3222_s20 + $0x40] sm:$0xff]  ;;  %v250_v21 = vmul.f32 %v3227_v0, %v214_v4  ;;  %v251_v22 = vmul.f32 %v3227_v0, %v215_v6  ;;  %v252_v23 = vmul.f32 %v3227_v0, %v216_v7 }
  0x13   : > { %v220_v12 = vld [vmem:[%s3222_s20 + $0x48] sm:$0xff]  ;;  %v221_v14 = vld [vmem:[%s3222_s20 + $0x50] sm:$0xff]  ;;  %v222_v15 = vld [vmem:[%s3222_s20 + $0x58] sm:$0xff]  ;;  %v253_v24 = vmul.f32 %v3227_v0, %v217_v8  ;;  %v254_v28 = vmul.f32 %v3227_v0, %v218_v10  ;;  %v255_v29 = vmul.f32 %v3227_v0, %v219_v11  ;;  %v3264_v31 = vadd.f32 %v3236_v5, %v247_v9 }
  0x14   : > { %v223_v16 = vld [vmem:[%s3222_s20 + $0x60] sm:$0xff]  ;;  %v224_v18 = vld [vmem:[%s3222_s20 + $0x68] sm:$0xff]  ;;  %v225_v19 = vld [vmem:[%s3222_s20 + $0x70] sm:$0xff]  ;;  %v256_v30 = vmul.f32 %v3227_v0, %v220_v12  ;;  %v257_v35 = vmul.f32 %v3227_v0, %v221_v14  ;;  %v258_v36 = vmul.f32 %v3227_v0, %v222_v15  ;;  %v284_v38 = vadd.f32 %v3236_v5, %v248_v13 }
  0x15   : > { %v226_v20 = vld [vmem:[%s3222_s20 + $0x78] sm:$0xff]  ;;  %v227_v25 = vld [vmem:[%s3222_s20 + $0x80] sm:$0xff]  ;;  %v228_v26 = vld [vmem:[%s3222_s20 + $0x88] sm:$0xff]  ;;  %v259_v37 = vmul.f32 %v3227_v0, %v223_v16  ;;  %v260_v42 = vmul.f32 %v3227_v0, %v224_v18  ;;  %v261_v43 = vmul.f32 %v3227_v0, %v225_v19  ;;  %v285_v45 = vadd.f32 %v3236_v5, %v249_v17 }
  0x16   : > { %v229_v27 = vld [vmem:[%s3222_s20 + $0x90] sm:$0xff]  ;;  %v230_v32 = vld [vmem:[%s3222_s20 + $0x98] sm:$0xff]  ;;  %v231_v33 = vld [vmem:[%s3222_s20 + $0xa0] sm:$0xff]  ;;  %v262_v44 = vmul.f32 %v3227_v0, %v226_v20  ;;  %v263_v49 = vmul.f32 %v3227_v0, %v227_v25  ;;  %v264_v50 = vmul.f32 %v3227_v0, %v228_v26  ;;  %v286_v52 = vadd.f32 %v3236_v5, %v250_v21 }
  0x17   : > { %v232_v34 = vld [vmem:[%s3222_s20 + $0xa8] sm:$0xff]  ;;  %v233_v39 = vld [vmem:[%s3222_s20 + $0xb0] sm:$0xff]  ;;  %v234_v40 = vld [vmem:[%s3222_s20 + $0xb8] sm:$0xff]  ;;  %v265_v51 = vmul.f32 %v3227_v0, %v229_v27  ;;  %v266_v56 = vmul.f32 %v3227_v0, %v230_v32  ;;  %v267_v57 = vmul.f32 %v3227_v0, %v231_v33  ;;  %v287_v59 = vadd.f32 %v3236_v5, %v251_v22 }
  0x18   : > { %v235_v41 = vld [vmem:[%s3222_s20 + $0xc0] sm:$0xff]  ;;  %v236_v46 = vld [vmem:[%s3222_s20 + $0xc8] sm:$0xff]  ;;  %v237_v47 = vld [vmem:[%s3222_s20 + $0xd0] sm:$0xff]  ;;  %v268_v58 = vmul.f32 %v3227_v0, %v232_v34  ;;  %v269_v61 = vmul.f32 %v3227_v0, %v233_v39  ;;  %v270_v62 = vmul.f32 %v3227_v0, %v234_v40  ;;  %v288_v1 = vadd.f32 %v3236_v5, %v252_v23 }
  0x19   : > { %v238_v48 = vld [vmem:[%s3222_s20 + $0xd8] sm:$0xff]  ;;  %v239_v53 = vld [vmem:[%s3222_s20 + $0xe0] sm:$0xff]  ;;  %v240_v54 = vld [vmem:[%s3222_s20 + $0xe8] sm:$0xff]  ;;  %v271_v63 = vmul.f32 %v3227_v0, %v235_v41  ;;  %v272_v2 = vmul.f32 %v3227_v0, %v236_v46  ;;  %v273_v3 = vmul.f32 %v3227_v0, %v237_v47  ;;  %v289_v6 = vadd.f32 %v3236_v5, %v253_v24 }
  0x1a   : > { %v241_v55 = vld [vmem:[%s3222_s20 + $0xf0] sm:$0xff]  ;;  %v242_v60 = vld [vmem:[%s3222_s20 + $0xf8] sm:$0xff]  ;;  %v274_v4 = vmul.f32 %v3227_v0, %v238_v48  ;;  %v275_v7 = vmul.f32 %v3227_v0, %v239_v53  ;;  %v276_v8 = vmul.f32 %v3227_v0, %v240_v54  ;;  %v290_v10 = vadd.f32 %v3236_v5, %v254_v28 }
  0x1b   : > { %v277_v9 = vmul.f32 %v3227_v0, %v241_v55  ;;  %v278_v11 = vmul.f32 %v3227_v0, %v242_v60  ;;  %v291_v12 = vadd.f32 %v3236_v5, %v255_v29  ;;  %v292_v13 = vadd.f32 %v3236_v5, %v256_v30 }
  0x1c   : > { %v293_v14 = vadd.f32 %v3236_v5, %v257_v35  ;;  %v294_v15 = vadd.f32 %v3236_v5, %v258_v36  ;;  %v295_v16 = vadd.f32 %v3236_v5, %v259_v37  ;;  %v296_v17 = vadd.f32 %v3236_v5, %v260_v42 }
  0x1d   : > { %v297_v18 = vadd.f32 %v3236_v5, %v261_v43  ;;  %v298_v19 = vadd.f32 %v3236_v5, %v262_v44  ;;  %v299_v20 = vadd.f32 %v3236_v5, %v263_v49  ;;  %v300_v0 = vadd.f32 %v3236_v5, %v264_v50 }
  0x1e   : > { %v301_v21 = vadd.f32 %v3236_v5, %v265_v51  ;;  %v302_v22 = vadd.f32 %v3236_v5, %v266_v56  ;;  %v303_v23 = vadd.f32 %v3236_v5, %v267_v57  ;;  %v304_v24 = vadd.f32 %v3236_v5, %v268_v58 }
  0x1f   : > { %v305_v25 = vadd.f32 %v3236_v5, %v269_v61  ;;  %v306_v26 = vadd.f32 %v3236_v5, %v270_v62  ;;  %v307_v27 = vadd.f32 %v3236_v5, %v271_v63  ;;  %v308_v28 = vadd.f32 %v3236_v5, %v272_v2 }
  0x20   : > { %v309_v29 = vadd.f32 %v3236_v5, %v273_v3  ;;  %v310_v30 = vadd.f32 %v3236_v5, %v274_v4  ;;  %v311_v32 = vadd.f32 %v3236_v5, %v275_v7  ;;  %v312_v33 = vadd.f32 %v3236_v5, %v276_v8 }
  0x21   : > { %v313_v34 = vadd.f32 %v3236_v5, %v277_v9  ;;  %v314_v35 = vadd.f32 %v3236_v5, %v278_v11  ;;  %v3333_v36 = vmax.f32 %v3264_v31, 0.0  ;;  %v3335_v37 = vmax.f32 %v284_v38, 0.0 }
  0x22   : > { %v3337_v39 = vmax.f32 %v285_v45, 0.0  ;;  %v3339_v40 = vmax.f32 %v286_v52, 0.0  ;;  %v3341_v41 = vmax.f32 %v287_v59, 0.0  ;;  %v3343_v42 = vmax.f32 %v288_v1, 0.0 }
  0x23   : > { %9088 = vst [vmem:[#allocation2_spill] sm:$0xff] %v3333_v36  ;;  %v3345_v43 = vmax.f32 %v289_v6, 0.0  ;;  %v3347_v44 = vmax.f32 %v290_v10, 0.0  ;;  %v3349_v46 = vmax.f32 %v291_v12, 0.0  ;;  %v3351_v5 = vmax.f32 %v292_v13, 0.0 }
  0x24   : > { %9089 = vst [vmem:[#allocation3_spill] sm:$0xff] %v3335_v37  ;;  %v3353_v31 = vmax.f32 %v293_v14, 0.0  ;;  %v3355_v38 = vmax.f32 %v294_v15, 0.0  ;;  %v3357_v45 = vmax.f32 %v295_v16, 0.0  ;;  %v3359_v47 = vmax.f32 %v296_v17, 0.0 }
  0x25   : > { %9090 = vst [vmem:[#allocation4_spill] sm:$0xff] %v3337_v39  ;;  %v3361_v48 = vmax.f32 %v297_v18, 0.0  ;;  %v3363_v49 = vmax.f32 %v298_v19, 0.0  ;;  %v3365_v50 = vmax.f32 %v299_v20, 0.0  ;;  %v3367_v51 = vmax.f32 %v300_v0, 0.0 }
  0x26   : > { %9091 = vst [vmem:[#allocation5_spill] sm:$0xff] %v3339_v40  ;;  %v3369_v52 = vmax.f32 %v301_v21, 0.0  ;;  %v3371_v53 = vmax.f32 %v302_v22, 0.0  ;;  %v3373_v54 = vmax.f32 %v303_v23, 0.0  ;;  %v3375_v55 = vmax.f32 %v304_v24, 0.0 }
  0x27   : > { %9092 = vst [vmem:[#allocation6_spill] sm:$0xff] %v3341_v41  ;;  %v3377_v56 = vmax.f32 %v305_v25, 0.0  ;;  %v3379_v57 = vmax.f32 %v306_v26, 0.0  ;;  %v3381_v58 = vmax.f32 %v307_v27, 0.0  ;;  %v3383_v59 = vmax.f32 %v308_v28, 0.0 }
  0x28   : > { %9093 = vst [vmem:[#allocation7_spill] sm:$0xff] %v3343_v42  ;;  %v3385_v60 = vmax.f32 %v309_v29, 0.0  ;;  %v3387_v61 = vmax.f32 %v310_v30, 0.0  ;;  %v3389_v62 = vmax.f32 %v311_v32, 0.0  ;;  %v3391_v63 = vmax.f32 %v312_v33, 0.0 }
  0x29   : > { %9094 = vst [vmem:[#allocation8_spill] sm:$0xff] %v3345_v43  ;;  %v3393_v1 = vmax.f32 %v313_v34, 0.0  ;;  %v3395_v2 = vmax.f32 %v314_v35, 0.0  ;;  %v3398_v3 = vrot.slane %v3333_v36, 2  ;;  %v3401_v4 = vrot.slane %v3333_v36, 4 }
  0x2a   : > { %9095 = vst [vmem:[#allocation9_spill] sm:$0xff] %v3347_v44  ;;  %v3404_v6 = vrot.slane %v3333_v36, 6  ;;  %v3407_v7 = vrot.slane %v3335_v37, 2  ;;  %v3410_v8 = vrot.slane %v3335_v37, 4  ;;  %v3413_v9 = vrot.slane %v3335_v37, 6 }
  0x2b   : > { %9096 = vst [vmem:[#allocation10_spill] sm:$0xff] %v3349_v46  ;;  %v3416_v10 = vrot.slane %v3341_v41, 2  ;;  %v3419_v11 = vrot.slane %v3341_v41, 4  ;;  %v3422_v12 = vrot.slane %v3341_v41, 6  ;;  %v3425_v13 = vrot.slane %v3343_v42, 2 }
  0x2c   : > { %9097 = vst [vmem:[#allocation11_spill] sm:$0xff] %v3351_v5  ;;  %v3428_v14 = vrot.slane %v3343_v42, 4  ;;  %v3431_v15 = vrot.slane %v3343_v42, 6  ;;  %v3434_v16 = vrot.slane %v3349_v46, 2  ;;  %v3437_v17 = vrot.slane %v3349_v46, 4 }
  0x2d   : > { %9098 = vst [vmem:[#allocation12_spill] sm:$0xff] %v3353_v31  ;;  %v3440_v18 = vrot.slane %v3349_v46, 6  ;;  %v3443_v19 = vrot.slane %v3351_v5, 2  ;;  %v3446_v20 = vrot.slane %v3351_v5, 4  ;;  %v3449_v0 = vrot.slane %v3351_v5, 6 }
  0x2e   : > { %9099 = vst [vmem:[#allocation13_spill] sm:$0xff] %v3355_v38  ;;  %v3452_v21 = vrot.slane %v3357_v45, 2  ;;  %v3455_v22 = vrot.slane %v3357_v45, 4  ;;  %v3458_v23 = vrot.slane %v3357_v45, 6  ;;  %v3461_v24 = vrot.slane %v3359_v47, 2 }
  0x2f   : > { %9100 = vst [vmem:[#allocation14_spill] sm:$0xff] %v3357_v45  ;;  %v3464_v25 = vrot.slane %v3359_v47, 4  ;;  %v3467_v26 = vrot.slane %v3359_v47, 6  ;;  %v3470_v27 = vrot.slane %v3365_v50, 2  ;;  %v3473_v28 = vrot.slane %v3365_v50, 4 }
  0x30   : > { %9101 = vst [vmem:[#allocation15_spill] sm:$0xff] %v3359_v47  ;;  %v3476_v29 = vrot.slane %v3365_v50, 6  ;;  %v3479_v30 = vrot.slane %v3367_v51, 2  ;;  %v3482_v32 = vrot.slane %v3367_v51, 4  ;;  %v3485_v33 = vrot.slane %v3367_v51, 6 }
  0x31   : > { %9102 = vst [vmem:[#allocation16_spill] sm:$0xff] %v3361_v48  ;;  %v3488_v34 = vrot.slane %v3373_v54, 2  ;;  %v3491_v35 = vrot.slane %v3373_v54, 4 }
  0x32   : > { %9103 = vst [vmem:[#allocation17_spill] sm:$0xff] %v3363_v49 }
  0x33   : > { %9104 = vst [vmem:[#allocation18_spill] sm:$0xff] %v3365_v50 }
  0x34   : > { %9105 = vst [vmem:[#allocation19_spill] sm:$0xff] %v3367_v51 }
  0x35   : > { %9106 = vst [vmem:[#allocation20_spill] sm:$0xff] %v3369_v52 }
  0x36   : > { %9107 = vst [vmem:[#allocation21_spill] sm:$0xff] %v3371_v53 }
  0x37   : > { %9108 = vst [vmem:[#allocation22_spill] sm:$0xff] %v3373_v54 }
  0x38   : > { %9109 = vst [vmem:[#allocation23_spill] sm:$0xff] %v3375_v55 }
  0x39   : > { %9110 = vst [vmem:[#allocation24_spill] sm:$0xff] %v3377_v56 }
  0x3a   : > { %9111 = vst [vmem:[#allocation25_spill] sm:$0xff] %v3379_v57 }
  0x3b   : > { %9112 = vst [vmem:[#allocation26_spill] sm:$0xff] %v3381_v58 }
  0x3c   : > { %9113 = vst [vmem:[#allocation27_spill] sm:$0xff] %v3383_v59 }
  0x3d   : > { %9114 = vst [vmem:[#allocation28_spill] sm:$0xff] %v3385_v60 }
  0x3e   : > { %9115 = vst [vmem:[#allocation29_spill] sm:$0xff] %v3387_v61 }
  0x3f   : > { %9116 = vst [vmem:[#allocation30_spill] sm:$0xff] %v3389_v62 }
  0x40   : > { %9117 = vst [vmem:[#allocation31_spill] sm:$0xff] %v3391_v63 }
  0x41   : > { %9118 = vst [vmem:[#allocation32_spill] sm:$0xff] %v3393_v1 }
  0x42   : > { %9119 = vst [vmem:[#allocation33_spill] sm:$0xff] %v3395_v2 }
  0x43   : > { %9120 = vst [vmem:[#allocation34_spill] sm:$0xff] %v3398_v3 }
  0x44   : > { %9121 = vst [vmem:[#allocation35_spill] sm:$0xff] %v3401_v4 }
  0x45   : > { %9122 = vst [vmem:[#allocation36_spill] sm:$0xff] %v3404_v6 }
  0x46   : > { %9123 = vst [vmem:[#allocation37_spill] sm:$0xff] %v3407_v7 }
  0x47   : > { %9124 = vst [vmem:[#allocation38_spill] sm:$0xff] %v3410_v8 }
  0x48   : > { %9125 = vst [vmem:[#allocation39_spill] sm:$0xff] %v3413_v9 }
  0x49   : > { %9126 = vst [vmem:[#allocation40_spill] sm:$0xff] %v3416_v10 }
  0x4a   : > { %9127 = vst [vmem:[#allocation41_spill] sm:$0xff] %v3419_v11 }
  0x4b   : > { %9128 = vst [vmem:[#allocation42_spill] sm:$0xff] %v3422_v12 }
  0x4c   : > { %9129 = vst [vmem:[#allocation43_spill] sm:$0xff] %v3425_v13 }
  0x4d   : > { %9130 = vst [vmem:[#allocation44_spill] sm:$0xff] %v3428_v14 }
  0x4e   : > { %9131 = vst [vmem:[#allocation45_spill] sm:$0xff] %v3431_v15 }
  0x4f   : > { %9132 = vst [vmem:[#allocation46_spill] sm:$0xff] %v3434_v16 }
  0x50   : > { %9133 = vst [vmem:[#allocation47_spill] sm:$0xff] %v3437_v17 }
  0x51   : > { %9134 = vst [vmem:[#allocation48_spill] sm:$0xff] %v3440_v18 }
  0x52   : > { %9135 = vst [vmem:[#allocation49_spill] sm:$0xff] %v3443_v19 }
  0x53   : > { %9136 = vst [vmem:[#allocation50_spill] sm:$0xff] %v3446_v20 }
  0x54   : > { %9137 = vst [vmem:[#allocation51_spill] sm:$0xff] %v3449_v0 }
  0x55   : > { %9138 = vst [vmem:[#allocation52_spill] sm:$0xff] %v3452_v21 }
  0x56   : > { %9139 = vst [vmem:[#allocation53_spill] sm:$0xff] %v3455_v22 }
  0x57   : > { %9140 = vst [vmem:[#allocation54_spill] sm:$0xff] %v3458_v23 }
  0x58   : > { %9141 = vst [vmem:[#allocation55_spill] sm:$0xff] %v3461_v24 }
  0x59   : > { %9142 = vst [vmem:[#allocation56_spill] sm:$0xff] %v3464_v25 }
  0x5a   : > { %9143 = vst [vmem:[#allocation57_spill] sm:$0xff] %v3467_v26 }
  0x5b   : > { %9144 = vst [vmem:[#allocation58_spill] sm:$0xff] %v3470_v27 }
  0x5c   : > { %9145 = vst [vmem:[#allocation59_spill] sm:$0xff] %v3473_v28  ;;  %v3494_v28 = vrot.slane %v3373_v54, 6 }
  0x5d   : > { %9146 = vst [vmem:[#allocation60_spill] sm:$0xff] %v3476_v29  ;;  %v3497_v29 = vrot.slane %v3375_v55, 2 }
  0x5e   : > { %9147 = vst [vmem:[#allocation61_spill] sm:$0xff] %v3479_v30  ;;  %v3500_v30 = vrot.slane %v3375_v55, 4 }
  0x5f   : > { %9148 = vst [vmem:[#allocation62_spill] sm:$0xff] %v3482_v32  ;;  %v3503_v32 = vrot.slane %v3375_v55, 6 }
  0x60   : > { %9149 = vst [vmem:[#allocation63_spill] sm:$0xff] %v3485_v33  ;;  %v3506_v33 = vrot.slane %v3381_v58, 2 }
  0x61   : > { %9150 = vst [vmem:[#allocation64_spill] sm:$0xff] %v3488_v34  ;;  %v3509_v34 = vrot.slane %v3381_v58, 4 }
  0x62   : > { %9151 = vst [vmem:[#allocation65_spill] sm:$0xff] %v3491_v35  ;;  %v3512_v35 = vrot.slane %v3381_v58, 6 }
  0x63   : > { %9152 = vst [vmem:[#allocation66_spill] sm:$0xff] %v3494_v28  ;;  %v3515_v28 = vrot.slane %v3383_v59, 2 }
  0x64   : > { %9153 = vst [vmem:[#allocation67_spill] sm:$0xff] %v3497_v29  ;;  %v3518_v29 = vrot.slane %v3383_v59, 4 }
  0x65   : > { %9154 = vst [vmem:[#allocation68_spill] sm:$0xff] %v3500_v30  ;;  %v3521_v30 = vrot.slane %v3383_v59, 6 }
  0x66   : > { %9155 = vst [vmem:[#allocation69_spill] sm:$0xff] %v3503_v32  ;;  %v3524_v32 = vrot.slane %v3389_v62, 2 }
  0x67   : > { %9156 = vst [vmem:[#allocation70_spill] sm:$0xff] %v3506_v33  ;;  %v3527_v33 = vrot.slane %v3389_v62, 4 }
  0x68   : > { %9157 = vst [vmem:[#allocation71_spill] sm:$0xff] %v3509_v34  ;;  %v3530_v34 = vrot.slane %v3389_v62, 6 }
  0x69   : > { %9158 = vst [vmem:[#allocation72_spill] sm:$0xff] %v3512_v35  ;;  %v3533_v35 = vrot.slane %v3391_v63, 2 }
  0x6a   : > { %9159 = vst [vmem:[#allocation73_spill] sm:$0xff] %v3515_v28  ;;  %v3536_v28 = vrot.slane %v3391_v63, 4 }
  0x6b   : > { %9160 = vst [vmem:[#allocation74_spill] sm:$0xff] %v3518_v29  ;;  %v3539_v29 = vrot.slane %v3391_v63, 6 }
  0x6c   : > { %9161 = vst [vmem:[#allocation75_spill] sm:$0xff] %v3521_v30  ;;  %v3542_v30 = vrot.slane %v3337_v39, 2 }
  0x6d   : > { %9162 = vst [vmem:[#allocation76_spill] sm:$0xff] %v3524_v32  ;;  %v3545_v32 = vrot.slane %v3337_v39, 4 }
  0x6e   : > { %9163 = vst [vmem:[#allocation77_spill] sm:$0xff] %v3527_v33  ;;  %v3548_v33 = vrot.slane %v3337_v39, 6 }
  0x6f   : > { %9164 = vst [vmem:[#allocation78_spill] sm:$0xff] %v3530_v34  ;;  %v3551_v34 = vrot.slane %v3339_v40, 2 }
  0x70   : > { %9165 = vst [vmem:[#allocation79_spill] sm:$0xff] %v3533_v35  ;;  %v3554_v35 = vrot.slane %v3339_v40, 4 }
  0x71   : > { %9166 = vst [vmem:[#allocation80_spill] sm:$0xff] %v3536_v28  ;;  %v3557_v28 = vrot.slane %v3339_v40, 6  ;;  %v9227_v40 = vld [vmem:[#allocation70_spill] sm:$0xff] }
  0x72   : > { %9167 = vst [vmem:[#allocation81_spill] sm:$0xff] %v3539_v29  ;;  %v3560_v29 = vrot.slane %v3345_v43, 2 }
  0x73   : > { %9168 = vst [vmem:[#allocation82_spill] sm:$0xff] %v3542_v30  ;;  %v3563_v30 = vrot.slane %v3345_v43, 4  ;;  %v9232_v55 = vld [vmem:[#allocation75_spill] sm:$0xff] }
  0x74   : > { %9169 = vst [vmem:[#allocation83_spill] sm:$0xff] %v3545_v32  ;;  %v3566_v32 = vrot.slane %v3345_v43, 6 }
  0x75   : > { %9170 = vst [vmem:[#allocation84_spill] sm:$0xff] %v3548_v33  ;;  %v3569_v33 = vrot.slane %v3347_v44, 2  ;;  %v9234_v43 = vld [vmem:[#allocation77_spill] sm:$0xff] }
  0x76   : > { %9171 = vst [vmem:[#allocation85_spill] sm:$0xff] %v3551_v34  ;;  %v3572_v34 = vrot.slane %v3347_v44, 4  ;;  %v9235_v58 = vld [vmem:[#allocation78_spill] sm:$0xff] }
  0x77   : > { %9172 = vst [vmem:[#allocation86_spill] sm:$0xff] %v3554_v35  ;;  %v3575_v35 = vrot.slane %v3347_v44, 6  ;;  %v9233_v44 = vld [vmem:[#allocation76_spill] sm:$0xff]  ;;  %v9236_v39 = vld [vmem:[#allocation79_spill] sm:$0xff] }
  0x78   : > { %9173 = vst [vmem:[#allocation87_spill] sm:$0xff] %v3557_v28  ;;  %v3578_v28 = vrot.slane %v3353_v31, 2  ;;  %v9237_v54 = vld [vmem:[#allocation80_spill] sm:$0xff] }
  0x79   : > { %9174 = vst [vmem:[#allocation88_spill] sm:$0xff] %v3560_v29  ;;  %v3581_v29 = vrot.slane %v3353_v31, 4  ;;  %v9238_v59 = vld [vmem:[#allocation81_spill] sm:$0xff] }
  0x7a   : > { %9175 = vst [vmem:[#allocation89_spill] sm:$0xff] %v3563_v30  ;;  %v3584_v30 = vrot.slane %v3353_v31, 6  ;;  %v9224_v31 = vld [vmem:[#allocation67_spill] sm:$0xff] }
  0x7b   : > { %9176 = vst [vmem:[#allocation90_spill] sm:$0xff] %v3566_v32  ;;  %v3587_v32 = vrot.slane %v3355_v38, 2 }
  0x7c   : > { %9177 = vst [vmem:[#allocation91_spill] sm:$0xff] %v3569_v33  ;;  %v3590_v33 = vrot.slane %v3355_v38, 4 }
  0x7d   : > { %9178 = vst [vmem:[#allocation92_spill] sm:$0xff] %v3572_v34  ;;  %v3593_v34 = vrot.slane %v3355_v38, 6  ;;  %v9231_v38 = vld [vmem:[#allocation74_spill] sm:$0xff] }
  0x7e   : > { %9179 = vst [vmem:[#allocation93_spill] sm:$0xff] %v3575_v35  ;;  %v3596_v35 = vrot.slane %v3361_v48, 2 }
  0x7f   : > { %9180 = vst [vmem:[#allocation94_spill] sm:$0xff] %v3578_v28  ;;  %v3599_v28 = vrot.slane %v3361_v48, 4 }
  0x80   : > { %9181 = vst [vmem:[#allocation95_spill] sm:$0xff] %v3581_v29  ;;  %v3602_v29 = vrot.slane %v3361_v48, 6  ;;  %v9230_v48 = vld [vmem:[#allocation73_spill] sm:$0xff] }
  0x81   : > { %9182 = vst [vmem:[#allocation96_spill] sm:$0xff] %v3584_v30  ;;  %v3605_v30 = vrot.slane %v3363_v49, 2 }
  0x82   : > { %9183 = vst [vmem:[#allocation97_spill] sm:$0xff] %v3587_v32  ;;  %v3608_v32 = vrot.slane %v3363_v49, 4 }
  0x83   : > { %9184 = vst [vmem:[#allocation98_spill] sm:$0xff] %v3590_v33  ;;  %v3611_v33 = vrot.slane %v3363_v49, 6  ;;  %v9221_v49 = vld [vmem:[#allocation64_spill] sm:$0xff] }
  0x84   : > { %9185 = vst [vmem:[#allocation99_spill] sm:$0xff] %v3593_v34  ;;  %v3614_v34 = vrot.slane %v3369_v52, 2 }
  0x85   : > { %9186 = vst [vmem:[#allocation100_spill] sm:$0xff] %v3596_v35  ;;  %v3617_v35 = vrot.slane %v3369_v52, 4 }
  0x86   : > { %9187 = vst [vmem:[#allocation101_spill] sm:$0xff] %v3599_v28  ;;  %v3620_v28 = vrot.slane %v3369_v52, 6  ;;  %v9220_v52 = vld [vmem:[#allocation63_spill] sm:$0xff] }
  0x87   : > { %9188 = vst [vmem:[#allocation102_spill] sm:$0xff] %v3602_v29  ;;  %v3623_v29 = vrot.slane %v3371_v53, 2 }
  0x88   : > { %9189 = vst [vmem:[#allocation103_spill] sm:$0xff] %v3605_v30  ;;  %v3626_v30 = vrot.slane %v3371_v53, 4 }
  0x89   : > { %9190 = vst [vmem:[#allocation104_spill] sm:$0xff] %v3608_v32  ;;  %v3629_v32 = vrot.slane %v3371_v53, 6  ;;  %v9219_v53 = vld [vmem:[#allocation62_spill] sm:$0xff] }
  0x8a   : > { %9191 = vst [vmem:[#allocation105_spill] sm:$0xff] %v3611_v33  ;;  %v3632_v33 = vrot.slane %v3377_v56, 2 }
  0x8b   : > { %9192 = vst [vmem:[#allocation106_spill] sm:$0xff] %v3614_v34  ;;  %v3635_v34 = vrot.slane %v3377_v56, 4 }
  0x8c   : > { %9193 = vst [vmem:[#allocation107_spill] sm:$0xff] %v3617_v35  ;;  %v3638_v35 = vrot.slane %v3377_v56, 6  ;;  %v9218_v56 = vld [vmem:[#allocation61_spill] sm:$0xff] }
  0x8d   : > { %9194 = vst [vmem:[#allocation108_spill] sm:$0xff] %v3620_v28  ;;  %v3641_v28 = vrot.slane %v3379_v57, 2 }
  0x8e   : > { %9195 = vst [vmem:[#allocation109_spill] sm:$0xff] %v3623_v29  ;;  %v3644_v29 = vrot.slane %v3379_v57, 4 }
  0x8f   : > { %9196 = vst [vmem:[#allocation110_spill] sm:$0xff] %v3626_v30  ;;  %v3647_v30 = vrot.slane %v3379_v57, 6  ;;  %v9217_v57 = vld [vmem:[#allocation60_spill] sm:$0xff] }
  0x90   : > { %9197 = vst [vmem:[#allocation111_spill] sm:$0xff] %v3629_v32  ;;  %v3650_v32 = vrot.slane %v3385_v60, 2 }
  0x91   : > { %9198 = vst [vmem:[#allocation112_spill] sm:$0xff] %v3632_v33  ;;  %v3653_v33 = vrot.slane %v3385_v60, 4 }
  0x92   : > { %9199 = vst [vmem:[#allocation113_spill] sm:$0xff] %v3635_v34  ;;  %v3656_v34 = vrot.slane %v3385_v60, 6 }
  0x93   : > { %9200 = vst [vmem:[#allocation114_spill] sm:$0xff] %v3638_v35  ;;  %v3659_v35 = vrot.slane %v3387_v61, 2 }
  0x94   : > { %9201 = vst [vmem:[#allocation115_spill] sm:$0xff] %v3641_v28  ;;  %v3662_v28 = vrot.slane %v3387_v61, 4 }
  0x95   : > { %9202 = vst [vmem:[#allocation116_spill] sm:$0xff] %v3644_v29  ;;  %v3665_v29 = vrot.slane %v3387_v61, 6  ;;  %v9245_v61 = vrot.slane %v3404_v6, 9 }
  0x96   : > { %9203 = vst [vmem:[#allocation117_spill] sm:$0xff] %v3647_v30  ;;  %v3668_v30 = vrot.slane %v3393_v1, 2 }
  0x97   : > { %9204 = vst [vmem:[#allocation118_spill] sm:$0xff] %v3650_v32  ;;  %v3671_v32 = vrot.slane %v3393_v1, 4 }
  0x98   : > { %9205 = vst [vmem:[#allocation119_spill] sm:$0xff] %v3653_v33  ;;  %v3674_v33 = vrot.slane %v3393_v1, 6  ;;  %v9239_v1 = vrot.slane %v3333_v36, 9 }
  0x99   : > { %9206 = vst [vmem:[#allocation120_spill] sm:$0xff] %v3656_v34  ;;  %v3677_v34 = vrot.slane %v3395_v2, 2 }
  0x9a   : > { %9207 = vst [vmem:[#allocation121_spill] sm:$0xff] %v3659_v35  ;;  %v3680_v35 = vrot.slane %v3395_v2, 4 }
  0x9b   : > { %9208 = vst [vmem:[#allocation122_spill] sm:$0xff] %v3662_v28  ;;  %v3683_v28 = vrot.slane %v3395_v2, 6  ;;  %v9216_v2 = vld [vmem:[#allocation59_spill] sm:$0xff] }
  0x9c   : > { %9209 = vst [vmem:[#allocation123_spill] sm:$0xff] %v3665_v29 }
  0x9d   : > { %9210 = vst [vmem:[#allocation124_spill] sm:$0xff] %v3668_v30  ;;  %v3767_v30 = vmax.f32 %v3404_v6, %v9245_v61  ;;  %v9255_v6 = vrot.slane %v3341_v41, 9 }
  0x9e   : > { %9211 = vst [vmem:[#allocation125_spill] sm:$0xff] %v3671_v32  ;;  %v9247_v32 = vrot.slane %v3335_v37, 9 }
  0x9f   : > { %9212 = vst [vmem:[#allocation126_spill] sm:$0xff] %v3674_v33  ;;  %v3752_v33 = vmax.f32 %v3333_v36, %v9239_v1 }
  0xa0   : > { %9213 = vst [vmem:[#allocation127_spill] sm:$0xff] %v3677_v34  ;;  %v9241_v34 = vrot.slane %v3398_v3, 9  ;;  %v3772_v1 = vmax.f32 %v3335_v37, %v9247_v32  ;;  %v3792_v32 = vmax.f32 %v3341_v41, %v9255_v6  ;;  %v9257_v37 = vrot.slane %v3416_v10, 9 }
  0xa1   : > { %9214 = vst [vmem:[#allocation128_spill] sm:$0xff] %v3680_v35  ;;  %v9249_v35 = vrot.slane %v3407_v7, 9  ;;  %v9265_v41 = vrot.slane %v3425_v13, 9 }
  0xa2   : > { %9215 = vst [vmem:[#allocation129_spill] sm:$0xff] %v3683_v28  ;;  %v3757_v60 = vmax.f32 %v3398_v3, %v9241_v34  ;;  %v9243_v28 = vrot.slane %v3401_v4, 9  ;;  %v9251_v3 = vrot.slane %v3410_v8, 9 }
  0xa3   : > { %9240 = vst [vmem:[#allocation130_spill] sm:$0xff] %v3752_v33  ;;  %v3777_v34 = vmax.f32 %v3407_v7, %v9249_v35  ;;  %v3797_v35 = vmax.f32 %v3416_v10, %v9257_v37  ;;  %v9259_v7 = vrot.slane %v3419_v11, 9  ;;  %v3817_v37 = vmax.f32 %v3425_v13, %v9265_v41  ;;  %v9430_v33 = vld [vmem:[#allocation121_spill] sm:$0xff] }
  0xa4   : > { %9242 = vst [vmem:[#allocation131_spill] sm:$0xff] %v3757_v60  ;;  %v3762_v29 = vmax.f32 %v3401_v4, %v9243_v28  ;;  %v3782_v28 = vmax.f32 %v3410_v8, %v9251_v3  ;;  %v9253_v4 = vrot.slane %v3413_v9, 9  ;;  %v9261_v8 = vrot.slane %v3422_v12, 9 }
  0xa5   : > { %9246 = vst [vmem:[#allocation133_spill] sm:$0xff] %v3767_v30  ;;  %v3802_v3 = vmax.f32 %v3419_v11, %v9259_v7  ;;  %v9267_v10 = vrot.slane %v3428_v14, 9  ;;  %v9269_v11 = vrot.slane %v3431_v15, 9  ;;  %v9275_v13 = vrot.slane %v3437_v17, 9 }
  0xa6   : > { %9244 = vst [vmem:[#allocation132_spill] sm:$0xff] %v3762_v29  ;;  %v3787_v61 = vmax.f32 %v3413_v9, %v9253_v4  ;;  %v3807_v4 = vmax.f32 %v3422_v12, %v9261_v8  ;;  %v9263_v9 = vrot.slane %v3343_v42, 9  ;;  %v9271_v12 = vrot.slane %v3349_v46, 9 }
  0xa7   : > { %9248 = vst [vmem:[#allocation134_spill] sm:$0xff] %v3772_v1  ;;  %v3822_v7 = vmax.f32 %v3428_v14, %v9267_v10  ;;  %v3827_v8 = vmax.f32 %v3431_v15, %v9269_v11  ;;  %v3842_v10 = vmax.f32 %v3437_v17, %v9275_v13  ;;  %v9277_v14 = vrot.slane %v3440_v18, 9  ;;  %v9437_v1 = vld [vmem:[#allocation33_spill] sm:$0xff]  ;;  %v9438_v30 = vld [vmem:[#allocation127_spill] sm:$0xff] }
  0xa8   : > { %9250 = vst [vmem:[#allocation135_spill] sm:$0xff] %v3777_v34  ;;  %v3812_v6 = vmax.f32 %v3343_v42, %v9263_v9  ;;  %v3832_v9 = vmax.f32 %v3349_v46, %v9271_v12  ;;  %v9273_v42 = vrot.slane %v3434_v16, 9  ;;  %v9279_v15 = vrot.slane %v3351_v5, 9  ;;  %v9436_v34 = vld [vmem:[#allocation126_spill] sm:$0xff]  ;;  %v9439_v29 = vld [vmem:[#allocation128_spill] sm:$0xff] }
  0xa9   : > { %9252 = vst [vmem:[#allocation136_spill] sm:$0xff] %v3782_v28  ;;  %v3847_v11 = vmax.f32 %v3440_v18, %v9277_v14  ;;  %v9281_v46 = vrot.slane %v3443_v19, 9  ;;  %v9285_v17 = vrot.slane %v3449_v0, 9  ;;  %v9287_v18 = vrot.slane %v3357_v45, 9  ;;  %v9435_v28 = vld [vmem:[#allocation125_spill] sm:$0xff] }
  0xaa   : > { %9254 = vst [vmem:[#allocation137_spill] sm:$0xff] %v3787_v61  ;;  %v3837_v41 = vmax.f32 %v3434_v16, %v9273_v42  ;;  %v3852_v12 = vmax.f32 %v3351_v5, %v9279_v15  ;;  %v9283_v16 = vrot.slane %v3446_v20, 9  ;;  %v9289_v5 = vrot.slane %v3452_v21, 9  ;;  %v9434_v61 = vld [vmem:[#allocation124_spill] sm:$0xff]  ;;  %v9440_v60 = vld [vmem:[#allocation129_spill] sm:$0xff] }
  0xab   : > { %9256 = vst [vmem:[#allocation138_spill] sm:$0xff] %v3792_v32  ;;  %v3857_v42 = vmax.f32 %v3443_v19, %v9281_v46  ;;  %v3867_v14 = vmax.f32 %v3449_v0, %v9285_v17  ;;  %v3872_v15 = vmax.f32 %v3357_v45, %v9287_v18  ;;  %v9291_v19 = vrot.slane %v3455_v22, 9  ;;  %v9433_v32 = vld [vmem:[#allocation32_spill] sm:$0xff] }
  0xac   : > { %9258 = vst [vmem:[#allocation139_spill] sm:$0xff] %v3797_v35  ;;  %v3862_v13 = vmax.f32 %v3446_v20, %v9283_v16  ;;  %v3877_v46 = vmax.f32 %v3452_v21, %v9289_v5  ;;  %v9293_v20 = vrot.slane %v3458_v23, 9  ;;  %v9295_v0 = vrot.slane %v3359_v47, 9  ;;  %v9432_v35 = vld [vmem:[#allocation123_spill] sm:$0xff] }
  0xad   : > { %9260 = vst [vmem:[#allocation140_spill] sm:$0xff] %v3802_v3  ;;  %v3882_v16 = vmax.f32 %v3455_v22, %v9291_v19  ;;  %v9297_v45 = vrot.slane %v3461_v24, 9  ;;  %v9299_v21 = vrot.slane %v3464_v25, 9  ;;  %v9301_v22 = vrot.slane %v3467_v26, 9  ;;  %v9431_v3 = vld [vmem:[#allocation122_spill] sm:$0xff] }
  0xae   : > { %9262 = vst [vmem:[#allocation141_spill] sm:$0xff] %v3807_v4  ;;  %v3887_v17 = vmax.f32 %v3458_v23, %v9293_v20  ;;  %v3892_v18 = vmax.f32 %v3359_v47, %v9295_v0  ;;  %v9303_v23 = vrot.slane %v3365_v50, 9  ;;  %v9305_v47 = vrot.slane %v3470_v27, 9  ;;  %v9419_v4 = vld [vmem:[#allocation113_spill] sm:$0xff] }
  0xaf   : > { %9264 = vst [vmem:[#allocation142_spill] sm:$0xff] %v3812_v6  ;;  %v3897_v5 = vmax.f32 %v3461_v24, %v9297_v45  ;;  %v3902_v19 = vmax.f32 %v3464_v25, %v9299_v21  ;;  %v3907_v20 = vmax.f32 %v3467_v26, %v9301_v22  ;;  %v9307_v24 = vrot.slane %v9216_v2, 9  ;;  %v9418_v6 = vld [vmem:[#allocation112_spill] sm:$0xff] }
  0xb0   : > { %9266 = vst [vmem:[#allocation143_spill] sm:$0xff] %v3817_v37  ;;  %v3912_v0 = vmax.f32 %v3365_v50, %v9303_v23  ;;  %v3917_v45 = vmax.f32 %v3470_v27, %v9305_v47  ;;  %v9309_v25 = vrot.slane %v9217_v57, 9  ;;  %v9311_v26 = vrot.slane %v3367_v51, 9  ;;  %v9417_v37 = vld [vmem:[#allocation24_spill] sm:$0xff] }
  0xb1   : > { %9268 = vst [vmem:[#allocation144_spill] sm:$0xff] %v3822_v7  ;;  %v3922_v21 = vmax.f32 %v9216_v2, %v9307_v24  ;;  %v9313_v50 = vrot.slane %v9218_v56, 9  ;;  %v9315_v27 = vrot.slane %v9219_v53, 9  ;;  %v9317_v2 = vrot.slane %v9220_v52, 9  ;;  %v9416_v7 = vld [vmem:[#allocation111_spill] sm:$0xff] }
  0xb2   : > { %9270 = vst [vmem:[#allocation145_spill] sm:$0xff] %v3827_v8  ;;  %v3927_v22 = vmax.f32 %v9217_v57, %v9309_v25  ;;  %v3932_v23 = vmax.f32 %v3367_v51, %v9311_v26  ;;  %v9319_v57 = vld [vmem:[#allocation22_spill] sm:$0xff]  ;;  %v9322_v51 = vrot.slane %v9221_v49, 9 }
  0xb3   : > { %9272 = vst [vmem:[#allocation146_spill] sm:$0xff] %v3832_v9  ;;  %v3937_v47 = vmax.f32 %v9218_v56, %v9313_v50  ;;  %v3942_v24 = vmax.f32 %v9219_v53, %v9315_v27  ;;  %v3947_v25 = vmax.f32 %v9220_v52, %v9317_v2  ;;  %v9320_v36 = vrot.slane %v9319_v57, 9  ;;  %v9324_v56 = vld [vmem:[#allocation65_spill] sm:$0xff]  ;;  %v9327_v53 = vld [vmem:[#allocation66_spill] sm:$0xff]  ;;  %v9330_v52 = vld [vmem:[#allocation23_spill] sm:$0xff] }
  0xb4   : > { %9274 = vst [vmem:[#allocation147_spill] sm:$0xff] %v3837_v41  ;;  %v3957_v50 = vmax.f32 %v9221_v49, %v9322_v51  ;;  %v9335_v49 = vld [vmem:[#allocation68_spill] sm:$0xff]  ;;  %v9413_v41 = vld [vmem:[#allocation21_spill] sm:$0xff]  ;;  %v9415_v8 = vld [vmem:[#allocation110_spill] sm:$0xff] }
  0xb5   : > { %9276 = vst [vmem:[#allocation148_spill] sm:$0xff] %v3842_v10  ;;  %v3952_v26 = vmax.f32 %v9319_v57, %v9320_v36  ;;  %v9333_v57 = vrot.slane %v9224_v31, 9  ;;  %v9412_v10 = vld [vmem:[#allocation108_spill] sm:$0xff]  ;;  %v9414_v9 = vld [vmem:[#allocation109_spill] sm:$0xff] }
  0xb6   : > { %9278 = vst [vmem:[#allocation149_spill] sm:$0xff] %v3847_v11  ;;  %v9411_v11 = vld [vmem:[#allocation107_spill] sm:$0xff] }
  0xb7   : > { %9280 = vst [vmem:[#allocation150_spill] sm:$0xff] %v3852_v12  ;;  %v3977_v51 = vmax.f32 %v9224_v31, %v9333_v57  ;;  %v9346_v31 = vld [vmem:[#allocation71_spill] sm:$0xff]  ;;  %v9410_v12 = vld [vmem:[#allocation106_spill] sm:$0xff] }
  0xb8   : > { %9282 = vst [vmem:[#allocation151_spill] sm:$0xff] %v3857_v42  ;;  %v9409_v42 = vld [vmem:[#allocation20_spill] sm:$0xff] }
  0xb9   : > { %9284 = vst [vmem:[#allocation152_spill] sm:$0xff] %v3862_v13  ;;  %v9408_v13 = vld [vmem:[#allocation105_spill] sm:$0xff] }
  0xba   : > { %9286 = vst [vmem:[#allocation153_spill] sm:$0xff] %v3867_v14  ;;  %v9407_v14 = vld [vmem:[#allocation104_spill] sm:$0xff] }
  0xbb   : > { %9288 = vst [vmem:[#allocation154_spill] sm:$0xff] %v3872_v15  ;;  %v9406_v15 = vld [vmem:[#allocation103_spill] sm:$0xff] }
  0xbc   : > { %9290 = vst [vmem:[#allocation155_spill] sm:$0xff] %v3877_v46  ;;  %v9405_v46 = vld [vmem:[#allocation17_spill] sm:$0xff] }
  0xbd   : > { %9292 = vst [vmem:[#allocation156_spill] sm:$0xff] %v3882_v16  ;;  %v9404_v16 = vld [vmem:[#allocation102_spill] sm:$0xff] }
  0xbe   : > { %9294 = vst [vmem:[#allocation157_spill] sm:$0xff] %v3887_v17  ;;  %v9403_v17 = vld [vmem:[#allocation101_spill] sm:$0xff] }
  0xbf   : > { %9296 = vst [vmem:[#allocation158_spill] sm:$0xff] %v3892_v18  ;;  %v9402_v18 = vld [vmem:[#allocation100_spill] sm:$0xff] }
  0xc0   : > { %9298 = vst [vmem:[#allocation159_spill] sm:$0xff] %v3897_v5  ;;  %v9401_v5 = vld [vmem:[#allocation16_spill] sm:$0xff] }
  0xc1   : > { %9300 = vst [vmem:[#allocation160_spill] sm:$0xff] %v3902_v19  ;;  %v9400_v19 = vld [vmem:[#allocation99_spill] sm:$0xff] }
  0xc2   : > { %9302 = vst [vmem:[#allocation161_spill] sm:$0xff] %v3907_v20  ;;  %v9399_v20 = vld [vmem:[#allocation98_spill] sm:$0xff] }
  0xc3   : > { %9304 = vst [vmem:[#allocation162_spill] sm:$0xff] %v3912_v0  ;;  %v9398_v0 = vld [vmem:[#allocation97_spill] sm:$0xff] }
  0xc4   : > { %9306 = vst [vmem:[#allocation163_spill] sm:$0xff] %v3917_v45  ;;  %v9397_v45 = vld [vmem:[#allocation13_spill] sm:$0xff] }
  0xc5   : > { %9308 = vst [vmem:[#allocation164_spill] sm:$0xff] %v3922_v21  ;;  %v9396_v21 = vld [vmem:[#allocation96_spill] sm:$0xff] }
  0xc6   : > { %9310 = vst [vmem:[#allocation165_spill] sm:$0xff] %v3927_v22  ;;  %v9395_v22 = vld [vmem:[#allocation95_spill] sm:$0xff] }
  0xc7   : > { %9312 = vst [vmem:[#allocation166_spill] sm:$0xff] %v3932_v23  ;;  %v9394_v23 = vld [vmem:[#allocation94_spill] sm:$0xff] }
  0xc8   : > { %9314 = vst [vmem:[#allocation167_spill] sm:$0xff] %v3937_v47  ;;  %v9325_v47 = vrot.slane %v9324_v56, 9 }
  0xc9   : > { %9316 = vst [vmem:[#allocation168_spill] sm:$0xff] %v3942_v24  ;;  %v9328_v24 = vrot.slane %v9327_v53, 9 }
  0xca   : > { %9318 = vst [vmem:[#allocation169_spill] sm:$0xff] %v3947_v25  ;;  %v3962_v27 = vmax.f32 %v9324_v56, %v9325_v47  ;;  %v9331_v25 = vrot.slane %v9330_v52, 9  ;;  %v9338_v56 = vld [vmem:[#allocation69_spill] sm:$0xff] }
  0xcb   : > { %9321 = vst [vmem:[#allocation170_spill] sm:$0xff] %v3952_v26  ;;  %v3967_v2 = vmax.f32 %v9327_v53, %v9328_v24  ;;  %v9341_v53 = vld [vmem:[#allocation26_spill] sm:$0xff]  ;;  %v9393_v26 = vld [vmem:[#allocation12_spill] sm:$0xff] }
  0xcc   : > { %9323 = vst [vmem:[#allocation171_spill] sm:$0xff] %v3957_v50  ;;  %v3972_v36 = vmax.f32 %v9330_v52, %v9331_v25  ;;  %v9336_v50 = vrot.slane %v9335_v49, 9  ;;  %v9344_v52 = vrot.slane %v9227_v40, 9 }
  0xcd   : > { %9326 = vst [vmem:[#allocation172_spill] sm:$0xff] %v3962_v27  ;;  %v9339_v27 = vrot.slane %v9338_v56, 9 }
  0xce   : > { %9329 = vst [vmem:[#allocation173_spill] sm:$0xff] %v3967_v2  ;;  %v3982_v47 = vmax.f32 %v9335_v49, %v9336_v50  ;;  %v9342_v2 = vrot.slane %v9341_v53, 9  ;;  %v3997_v57 = vmax.f32 %v9227_v40, %v9344_v52  ;;  %v9349_v49 = vld [vmem:[#allocation72_spill] sm:$0xff]  ;;  %v9357_v40 = vrot.slane %v9231_v38, 9 }
  0xcf   : > { %9332 = vst [vmem:[#allocation174_spill] sm:$0xff] %v3972_v36  ;;  %v3987_v24 = vmax.f32 %v9338_v56, %v9339_v27  ;;  %v9352_v56 = vld [vmem:[#allocation27_spill] sm:$0xff]  ;;  %v9392_v36 = vld [vmem:[#allocation93_spill] sm:$0xff] }
  0xd0   : > { %9334 = vst [vmem:[#allocation175_spill] sm:$0xff] %v3977_v51  ;;  %v3992_v25 = vmax.f32 %v9341_v53, %v9342_v2  ;;  %v9347_v51 = vrot.slane %v9346_v31, 9  ;;  %v9355_v53 = vrot.slane %v9230_v48, 9 }
  0xd1   : > { %9337 = vst [vmem:[#allocation176_spill] sm:$0xff] %v3982_v47  ;;  %v9350_v47 = vrot.slane %v9349_v49, 9 }
  0xd2   : > { %9340 = vst [vmem:[#allocation177_spill] sm:$0xff] %v3987_v24  ;;  %v4002_v50 = vmax.f32 %v9346_v31, %v9347_v51  ;;  %v9353_v24 = vrot.slane %v9352_v56, 9  ;;  %v4017_v52 = vmax.f32 %v9230_v48, %v9355_v53  ;;  %v4022_v51 = vmax.f32 %v9231_v38, %v9357_v40 }
  0xd3   : > { %9343 = vst [vmem:[#allocation178_spill] sm:$0xff] %v3992_v25  ;;  %v4007_v27 = vmax.f32 %v9349_v49, %v9350_v47  ;;  %v9359_v31 = vrot.slane %v9232_v55, 9  ;;  %v9361_v49 = vrot.slane %v3389_v62, 9  ;;  %v9365_v48 = vrot.slane %v9234_v43, 9  ;;  %v9391_v25 = vld [vmem:[#allocation92_spill] sm:$0xff] }
  0xd4   : > { %9345 = vst [vmem:[#allocation179_spill] sm:$0xff] %v3997_v57  ;;  %v4012_v2 = vmax.f32 %v9352_v56, %v9353_v24  ;;  %v9363_v56 = vrot.slane %v9233_v44, 9  ;;  %v9367_v38 = vrot.slane %v9235_v58, 9  ;;  %v9390_v57 = vld [vmem:[#allocation91_spill] sm:$0xff] }
  0xd5   : > { %9348 = vst [vmem:[#allocation180_spill] sm:$0xff] %v4002_v50  ;;  %v4027_v47 = vmax.f32 %v9232_v55, %v9359_v31  ;;  %v4032_v24 = vmax.f32 %v3389_v62, %v9361_v49  ;;  %v4042_v40 = vmax.f32 %v9234_v43, %v9365_v48  ;;  %v9369_v55 = vrot.slane %v3391_v63, 9  ;;  %v9389_v50 = vld [vmem:[#allocation9_spill] sm:$0xff] }
  0xd6   : > { %9351 = vst [vmem:[#allocation181_spill] sm:$0xff] %v4007_v27  ;;  %v4037_v53 = vmax.f32 %v9233_v44, %v9363_v56  ;;  %v4047_v31 = vmax.f32 %v9235_v58, %v9367_v38  ;;  %v9371_v62 = vrot.slane %v9236_v39, 9  ;;  %v9373_v44 = vrot.slane %v9237_v54, 9  ;;  %v9377_v58 = vld [vmem:[#allocation4_spill] sm:$0xff]  ;;  %v9388_v27 = vld [vmem:[#allocation90_spill] sm:$0xff] }
  0xd7   : > { %9354 = vst [vmem:[#allocation182_spill] sm:$0xff] %v4012_v2  ;;  %v4052_v49 = vmax.f32 %v3391_v63, %v9369_v55  ;;  %v9375_v43 = vrot.slane %v9238_v59, 9  ;;  %v9379_v63 = vld [vmem:[#allocation83_spill] sm:$0xff] }
  0xd8   : > { %9356 = vst [vmem:[#allocation183_spill] sm:$0xff] %v4017_v52  ;;  %v4057_v56 = vmax.f32 %v9236_v39, %v9371_v62  ;;  %v4062_v48 = vmax.f32 %v9237_v54, %v9373_v44  ;;  %v9381_v62 = vld [vmem:[#allocation5_spill] sm:$0xff]  ;;  %v9384_v54 = vld [vmem:[#allocation87_spill] sm:$0xff]  ;;  %v9385_v52 = vld [vmem:[#allocation8_spill] sm:$0xff]  ;;  %v9441_v39 = vrot.slane %v9377_v58, 9 }
  0xd9   : > { %9358 = vst [vmem:[#allocation184_spill] sm:$0xff] %v4022_v51  ;;  %v4067_v38 = vmax.f32 %v9238_v59, %v9375_v43  ;;  %v9383_v51 = vld [vmem:[#allocation86_spill] sm:$0xff]  ;;  %v9386_v43 = vld [vmem:[#allocation88_spill] sm:$0xff]  ;;  %v9443_v59 = vrot.slane %v9379_v63, 9 }
  0xda   : > { %9360 = vst [vmem:[#allocation185_spill] sm:$0xff] %v4027_v47  ;;  %v4136_v47 = vmax.f32 %v9377_v58, %v9441_v39 }
  0xdb   : > { %9362 = vst [vmem:[#allocation186_spill] sm:$0xff] %v4032_v24  ;;  %v9445_v24 = vrot.slane %v9381_v62, 9 }
  0xdc   : > { %9364 = vst [vmem:[#allocation187_spill] sm:$0xff] %v4037_v53  ;;  %v9380_v53 = vld [vmem:[#allocation84_spill] sm:$0xff] }
  0xdd   : > { %9366 = vst [vmem:[#allocation188_spill] sm:$0xff] %v4042_v40  ;;  %v9378_v40 = vld [vmem:[#allocation82_spill] sm:$0xff]  ;;  %v9444_v55 = vrot.slane %v9380_v53, 9  ;;  %v4156_v39 = vmax.f32 %v9381_v62, %v9445_v24  ;;  %v9450_v62 = vrot.slane %v9386_v43, 9 }
  0xde   : > { %9368 = vst [vmem:[#allocation189_spill] sm:$0xff] %v4047_v31  ;;  %v9442_v44 = vrot.slane %v9378_v40, 9  ;;  %v4146_v31 = vmax.f32 %v9379_v63, %v9443_v59  ;;  %v9448_v63 = vrot.slane %v9384_v54, 9 }
  0xdf   : > { %9370 = vst [vmem:[#allocation190_spill] sm:$0xff] %v4052_v49  ;;  %v4151_v49 = vmax.f32 %v9380_v53, %v9444_v55  ;;  %v9449_v53 = vrot.slane %v9385_v52, 9 }
  0xe0   : > { %9372 = vst [vmem:[#allocation191_spill] sm:$0xff] %v4057_v56  ;;  %v9382_v56 = vld [vmem:[#allocation85_spill] sm:$0xff]  ;;  %v4171_v55 = vmax.f32 %v9384_v54, %v9448_v63  ;;  %v9453_v54 = vrot.slane %v9389_v50, 9 }
  0xe1   : > { %9374 = vst [vmem:[#allocation192_spill] sm:$0xff] %v4062_v48  ;;  %v4141_v48 = vmax.f32 %v9378_v40, %v9442_v44  ;;  %v9446_v2 = vrot.slane %v9382_v56, 9  ;;  %v9447_v40 = vrot.slane %v9383_v51, 9  ;;  %v4176_v24 = vmax.f32 %v9385_v52, %v9449_v53 }
  0xe2   : > { %9376 = vst [vmem:[#allocation193_spill] sm:$0xff] %v4067_v38  ;;  %v9387_v38 = vld [vmem:[#allocation89_spill] sm:$0xff]  ;;  %v4196_v53 = vmax.f32 %v9389_v50, %v9453_v54  ;;  %v9454_v52 = vrot.slane %v9390_v57, 9  ;;  %v9458_v50 = vrot.slane %v9394_v23, 9 }
  0xe3   : > { %v4161_v44 = vmax.f32 %v9382_v56, %v9446_v2  ;;  %v4166_v59 = vmax.f32 %v9383_v51, %v9447_v40  ;;  %v4181_v2 = vmax.f32 %v9386_v43, %v9450_v62  ;;  %v9451_v56 = vrot.slane %v9387_v38, 9 }
  0xe4   : > { %v9452_v51 = vrot.slane %v9388_v27, 9  ;;  %v4201_v62 = vmax.f32 %v9390_v57, %v9454_v52  ;;  %v9455_v43 = vrot.slane %v9391_v25, 9  ;;  %v4221_v52 = vmax.f32 %v9394_v23, %v9458_v50 }
  0xe5   : > { %v4186_v40 = vmax.f32 %v9387_v38, %v9451_v56  ;;  %v9456_v38 = vrot.slane %v9392_v36, 9  ;;  %v9459_v57 = vrot.slane %v9395_v22, 9  ;;  %v9463_v23 = vrot.slane %v9399_v20, 9 }
  0xe6   : > { %v4191_v63 = vmax.f32 %v9388_v27, %v9452_v51  ;;  %v4206_v56 = vmax.f32 %v9391_v25, %v9455_v43  ;;  %v9457_v27 = vrot.slane %v9393_v26, 9  ;;  %v9460_v25 = vrot.slane %v9396_v21, 9 }
  0xe7   : > { %v4211_v51 = vmax.f32 %v9392_v36, %v9456_v38  ;;  %v4226_v43 = vmax.f32 %v9395_v22, %v9459_v57  ;;  %v9461_v36 = vrot.slane %v9397_v45, 9  ;;  %v4246_v57 = vmax.f32 %v9399_v20, %v9463_v23 }
  0xe8   : > { %v4216_v54 = vmax.f32 %v9393_v26, %v9457_v27  ;;  %v4231_v38 = vmax.f32 %v9396_v21, %v9460_v25  ;;  %v9462_v26 = vrot.slane %v9398_v0, 9  ;;  %v9464_v22 = vrot.slane %v9400_v19, 9 }
  0xe9   : > { %v4236_v27 = vmax.f32 %v9397_v45, %v9461_v36  ;;  %v9465_v21 = vrot.slane %v9401_v5, 9  ;;  %v9466_v45 = vrot.slane %v9402_v18, 9  ;;  %v9468_v20 = vrot.slane %v9404_v16, 9 }
  0xea   : > { %v4241_v50 = vmax.f32 %v9398_v0, %v9462_v26  ;;  %v4251_v25 = vmax.f32 %v9400_v19, %v9464_v22  ;;  %v9467_v0 = vrot.slane %v9403_v17, 9  ;;  %v9469_v19 = vrot.slane %v9405_v46, 9 }
  0xeb   : > { %v4256_v36 = vmax.f32 %v9401_v5, %v9465_v21  ;;  %v4261_v26 = vmax.f32 %v9402_v18, %v9466_v45  ;;  %v4271_v22 = vmax.f32 %v9404_v16, %v9468_v20  ;;  %v9470_v5 = vrot.slane %v9406_v15, 9 }
  0xec   : > { %v4266_v23 = vmax.f32 %v9403_v17, %v9467_v0  ;;  %v4276_v21 = vmax.f32 %v9405_v46, %v9469_v19  ;;  %v9471_v18 = vrot.slane %v9407_v14, 9  ;;  %v9472_v17 = vrot.slane %v9408_v13, 9 }
  0xed   : > { %v4281_v45 = vmax.f32 %v9406_v15, %v9470_v5  ;;  %v9473_v16 = vrot.slane %v9409_v42, 9  ;;  %v9474_v46 = vrot.slane %v9410_v12, 9  ;;  %v9475_v15 = vrot.slane %v9411_v11, 9 }
  0xee   : > { %v4286_v0 = vmax.f32 %v9407_v14, %v9471_v18  ;;  %v4291_v20 = vmax.f32 %v9408_v13, %v9472_v17  ;;  %v9476_v14 = vrot.slane %v9412_v10, 9  ;;  %v9477_v13 = vrot.slane %v9413_v41, 9 }
  0xef   : > { %v4296_v19 = vmax.f32 %v9409_v42, %v9473_v16  ;;  %v4301_v5 = vmax.f32 %v9410_v12, %v9474_v46  ;;  %v4306_v18 = vmax.f32 %v9411_v11, %v9475_v15  ;;  %v9478_v42 = vrot.slane %v9414_v9, 9 }
  0xf0   : > { %v4311_v17 = vmax.f32 %v9412_v10, %v9476_v14  ;;  %v4316_v16 = vmax.f32 %v9413_v41, %v9477_v13  ;;  %v9479_v12 = vrot.slane %v9415_v8, 9  ;;  %v9480_v11 = vrot.slane %v9416_v7, 9 }
  0xf1   : > { %v4321_v46 = vmax.f32 %v9414_v9, %v9478_v42  ;;  %v9482_v10 = vrot.slane %v9417_v37, 9  ;;  %v9484_v41 = vrot.slane %v9418_v6, 9  ;;  %v9486_v9 = vrot.slane %v9419_v4, 9 }
  0xf2   : > { %v4326_v15 = vmax.f32 %v9415_v8, %v9479_v12  ;;  %v4331_v14 = vmax.f32 %v9416_v7, %v9480_v11  ;;  %v9488_v8 = vld [vmem:[#allocation114_spill] sm:$0xff]  ;;  %v9491_v7 = vld [vmem:[#allocation25_spill] sm:$0xff] }
  0xf3   : > { %v4336_v13 = vmax.f32 %v9417_v37, %v9482_v10  ;;  %v4341_v42 = vmax.f32 %v9418_v6, %v9484_v41  ;;  %v4346_v12 = vmax.f32 %v9419_v4, %v9486_v9  ;;  %v9489_v58 = vrot.slane %v9488_v8, 9  ;;  %v9494_v37 = vld [vmem:[#allocation115_spill] sm:$0xff]  ;;  %v9497_v6 = vld [vmem:[#allocation116_spill] sm:$0xff]  ;;  %v9500_v4 = vld [vmem:[#allocation117_spill] sm:$0xff] }
  0xf4   : > { %9481 = vst [vmem:[#allocation194_spill] sm:$0xff] %v4331_v14  ;;  %v9492_v14 = vrot.slane %v9491_v7, 9 }
  0xf5   : > { %9483 = vst [vmem:[#allocation195_spill] sm:$0xff] %v4336_v13  ;;  %v4351_v11 = vmax.f32 %v9488_v8, %v9489_v58  ;;  %v9495_v13 = vrot.slane %v9494_v37, 9  ;;  %v9503_v8 = vld [vmem:[#allocation28_spill] sm:$0xff] }
  0xf6   : > { %9485 = vst [vmem:[#allocation196_spill] sm:$0xff] %v4341_v42  ;;  %v4356_v10 = vmax.f32 %v9491_v7, %v9492_v14  ;;  %v9498_v42 = vrot.slane %v9497_v6, 9  ;;  %v9505_v7 = vld [vmem:[#allocation118_spill] sm:$0xff] }
  0xf7   : > { %9487 = vst [vmem:[#allocation197_spill] sm:$0xff] %v4346_v12  ;;  %v4361_v41 = vmax.f32 %v9494_v37, %v9495_v13  ;;  %v9501_v12 = vrot.slane %v9500_v4, 9  ;;  %v9507_v37 = vld [vmem:[#allocation119_spill] sm:$0xff] }
  0xf8   : > { %9490 = vst [vmem:[#allocation198_spill] sm:$0xff] %v4351_v11  ;;  %v4366_v9 = vmax.f32 %v9497_v6, %v9498_v42  ;;  %v9504_v11 = vrot.slane %v9503_v8, 9  ;;  %v9509_v6 = vld [vmem:[#allocation120_spill] sm:$0xff] }
  0xf9   : > { %9493 = vst [vmem:[#allocation199_spill] sm:$0xff] %v4356_v10  ;;  %v4371_v58 = vmax.f32 %v9500_v4, %v9501_v12  ;;  %v9506_v10 = vrot.slane %v9505_v7, 9  ;;  %v9511_v4 = vld [vmem:[#allocation29_spill] sm:$0xff] }
  0xfa   : > { %9496 = vst [vmem:[#allocation200_spill] sm:$0xff] %v4361_v41  ;;  %v4376_v14 = vmax.f32 %v9503_v8, %v9504_v11  ;;  %v9508_v41 = vrot.slane %v9507_v37, 9  ;;  %v9513_v8 = vrot.slane %v9430_v33, 9 }
  0xfb   : > { %9499 = vst [vmem:[#allocation201_spill] sm:$0xff] %v4366_v9  ;;  %v4381_v13 = vmax.f32 %v9505_v7, %v9506_v10  ;;  %v9510_v9 = vrot.slane %v9509_v6, 9  ;;  %v9514_v7 = vrot.slane %v9431_v3, 9 }
  0xfc   : > { %9502 = vst [vmem:[#allocation202_spill] sm:$0xff] %v4371_v58  ;;  %v4386_v42 = vmax.f32 %v9507_v37, %v9508_v41  ;;  %v9512_v58 = vrot.slane %v9511_v4, 9  ;;  %v4401_v10 = vmax.f32 %v9430_v33, %v9513_v8  ;;  %v9515_v37 = vrot.slane %v9432_v35, 9 }
  0xfd   : > { %v4391_v12 = vmax.f32 %v9509_v6, %v9510_v9  ;;  %v4406_v41 = vmax.f32 %v9431_v3, %v9514_v7  ;;  %v9516_v6 = vrot.slane %v9433_v32, 9  ;;  %v9518_v33 = vrot.slane %v9435_v28, 9 }
  0xfe   : > { %v4396_v11 = vmax.f32 %v9511_v4, %v9512_v58  ;;  %v4411_v9 = vmax.f32 %v9432_v35, %v9515_v37  ;;  %v9517_v4 = vrot.slane %v9434_v61, 9  ;;  %v9519_v3 = vrot.slane %v9436_v34, 9 }
  0xff   : > { %v4416_v58 = vmax.f32 %v9433_v32, %v9516_v6  ;;  %v4426_v7 = vmax.f32 %v9435_v28, %v9518_v33  ;;  %v9521_v35 = vrot.slane %v9437_v1, 9  ;;  %v9522_v32 = vrot.slane %v9438_v30, 9 }
 0x100   : > { %v4421_v8 = vmax.f32 %v9434_v61, %v9517_v4  ;;  %v4431_v37 = vmax.f32 %v9436_v34, %v9519_v3  ;;  %v9523_v61 = vrot.slane %v9439_v29, 9  ;;  %v9525_v28 = vrot.slane %v9440_v60, 9  ;;  %v9526_v34 = vld [vmem:[#allocation130_spill] sm:$0xff] }
 0x101   : > { %v4436_v6 = vmax.f32 %v9437_v1, %v9521_v35  ;;  %v4441_v4 = vmax.f32 %v9438_v30, %v9522_v32  ;;  %v9528_v35 = vld [vmem:[#allocation131_spill] sm:$0xff]  ;;  %v9530_v32 = vld [vmem:[#allocation132_spill] sm:$0xff] }
 0x102   : > { %9520 = vst [vmem:[#allocation203_spill] sm:$0xff] %v4431_v37  ;;  %v4446_v33 = vmax.f32 %v9439_v29, %v9523_v61  ;;  %v4451_v3 = vmax.f32 %v9440_v60, %v9525_v28  ;;  %v4455_v37 = vmax.f32 %v9526_v34, %v4136_v47  ;;  %v4459_v1 = vmax.f32 %v9528_v35, %v4141_v48  ;;  %v9532_v61 = vld [vmem:[#allocation133_spill] sm:$0xff]  ;;  %v9536_v60 = vld [vmem:[#allocation135_spill] sm:$0xff]  ;;  %v9538_v47 = vld [vmem:[#allocation136_spill] sm:$0xff] }
 0x103   : > { %v4463_v30 = vmax.f32 %v9530_v32, %v4146_v31  ;;  %v4467_v29 = vmax.f32 %v9532_v61, %v4151_v49  ;;  %v4475_v34 = vmax.f32 %v9536_v60, %v4161_v44  ;;  %v4479_v48 = vmax.f32 %v9538_v47, %v4166_v59  ;;  %v9540_v35 = vld [vmem:[#allocation137_spill] sm:$0xff]  ;;  %v9542_v32 = vld [vmem:[#allocation138_spill] sm:$0xff]  ;;  %v9544_v61 = vld [vmem:[#allocation139_spill] sm:$0xff] }
 0x104   : > { %9524 = vst [vmem:[#allocation204_spill] sm:$0xff] %v4446_v33  ;;  %v9534_v33 = vld [vmem:[#allocation134_spill] sm:$0xff]  ;;  %v4483_v31 = vmax.f32 %v9540_v35, %v4171_v55  ;;  %v4487_v49 = vmax.f32 %v9542_v32, %v4176_v24  ;;  %v9548_v44 = vld [vmem:[#allocation141_spill] sm:$0xff]  ;;  %v9552_v35 = vld [vmem:[#allocation143_spill] sm:$0xff] }
 0x105   : > { %9527 = vst [vmem:[#allocation130_spill] sm:$0xff] %v4455_v37  ;;  %v4471_v28 = vmax.f32 %v9534_v33, %v4156_v39  ;;  %v4491_v39 = vmax.f32 %v9544_v61, %v4181_v2  ;;  %v9546_v33 = vld [vmem:[#allocation140_spill] sm:$0xff]  ;;  %v4499_v59 = vmax.f32 %v9548_v44, %v4191_v63  ;;  %v9550_v47 = vld [vmem:[#allocation142_spill] sm:$0xff]  ;;  %v4507_v24 = vmax.f32 %v9552_v35, %v4201_v62  ;;  %v9556_v61 = vld [vmem:[#allocation145_spill] sm:$0xff] }
 0x106   : > { %9529 = vst [vmem:[#allocation131_spill] sm:$0xff] %v4459_v1  ;;  %v4495_v60 = vmax.f32 %v9546_v33, %v4186_v40  ;;  %v4503_v55 = vmax.f32 %v9550_v47, %v4196_v53  ;;  %v9554_v32 = vld [vmem:[#allocation144_spill] sm:$0xff]  ;;  %v4515_v40 = vmax.f32 %v9556_v61, %v4211_v51  ;;  %v9558_v33 = vld [vmem:[#allocation146_spill] sm:$0xff]  ;;  %v9560_v44 = vld [vmem:[#allocation147_spill] sm:$0xff] }
 0x107   : > { %9531 = vst [vmem:[#allocation132_spill] sm:$0xff] %v4463_v30  ;;  %v4511_v2 = vmax.f32 %v9554_v32, %v4206_v56  ;;  %v4519_v63 = vmax.f32 %v9558_v33, %v4216_v54  ;;  %v4523_v53 = vmax.f32 %v9560_v44, %v4221_v52  ;;  %v9562_v47 = vld [vmem:[#allocation148_spill] sm:$0xff]  ;;  %v9564_v35 = vld [vmem:[#allocation149_spill] sm:$0xff]  ;;  %v9566_v32 = vld [vmem:[#allocation150_spill] sm:$0xff]  ;;  %v1147_v33 = vlaneseq }
 0x108   : > { %9533 = vst [vmem:[#allocation133_spill] sm:$0xff] %v4467_v29  ;;  %v4527_v62 = vmax.f32 %v9562_v47, %v4226_v43  ;;  %v4531_v56 = vmax.f32 %v9564_v35, %v4231_v38  ;;  %v4535_v51 = vmax.f32 %v9566_v32, %v4236_v27  ;;  %v9568_v61 = vld [vmem:[#allocation151_spill] sm:$0xff]  ;;  %v9570_v52 = vld [vmem:[#allocation152_spill] sm:$0xff]  ;;  %v9572_v43 = vld [vmem:[#allocation153_spill] sm:$0xff] }
 0x109   : > { %9535 = vst [vmem:[#allocation134_spill] sm:$0xff] %v4471_v28  ;;  %v4539_v54 = vmax.f32 %v9568_v61, %v4241_v50  ;;  %v4543_v44 = vmax.f32 %v9570_v52, %v4246_v57  ;;  %v4547_v47 = vmax.f32 %v9572_v43, %v4251_v25  ;;  %v9574_v38 = vld [vmem:[#allocation154_spill] sm:$0xff]  ;;  %v9576_v27 = vld [vmem:[#allocation155_spill] sm:$0xff]  ;;  %v9578_v50 = vld [vmem:[#allocation156_spill] sm:$0xff] }
 0x10a   : > { %9537 = vst [vmem:[#allocation135_spill] sm:$0xff] %v4475_v34  ;;  %v4551_v35 = vmax.f32 %v9574_v38, %v4256_v36  ;;  %v4555_v32 = vmax.f32 %v9576_v27, %v4261_v26  ;;  %v4559_v61 = vmax.f32 %v9578_v50, %v4266_v23  ;;  %v9582_v52 = vld [vmem:[#allocation158_spill] sm:$0xff]  ;;  %v9584_v43 = vld [vmem:[#allocation159_spill] sm:$0xff]  ;;  %v9586_v38 = vld [vmem:[#allocation160_spill] sm:$0xff] }
 0x10b   : > { %9539 = vst [vmem:[#allocation136_spill] sm:$0xff] %v4479_v48  ;;  %v4567_v25 = vmax.f32 %v9582_v52, %v4276_v21  ;;  %v4571_v36 = vmax.f32 %v9584_v43, %v4281_v45  ;;  %v4575_v26 = vmax.f32 %v9586_v38, %v4286_v0  ;;  %v9588_v27 = vld [vmem:[#allocation161_spill] sm:$0xff]  ;;  %v9590_v50 = vld [vmem:[#allocation162_spill] sm:$0xff]  ;;  %v9594_v52 = vld [vmem:[#allocation164_spill] sm:$0xff] }
 0x10c   : > { %9541 = vst [vmem:[#allocation137_spill] sm:$0xff] %v4483_v31  ;;  %v4579_v23 = vmax.f32 %v9588_v27, %v4291_v20  ;;  %v4591_v45 = vmax.f32 %v9594_v52, %v4306_v18  ;;  %v9596_v43 = vld [vmem:[#allocation165_spill] sm:$0xff]  ;;  %v9598_v38 = vld [vmem:[#allocation166_spill] sm:$0xff]  ;;  %v1148_v27 = vshrl.u32 %v1147_v33, 7 }
 0x10d   : > { %9543 = vst [vmem:[#allocation138_spill] sm:$0xff] %v4487_v49  ;;  %v4595_v0 = vmax.f32 %v9596_v43, %v4311_v17  ;;  %v4599_v20 = vmax.f32 %v9598_v38, %v4316_v16  ;;  %v9605_v18 = vld [vmem:[#allocation169_spill] sm:$0xff]  ;;  %v9608_v17 = vld [vmem:[#allocation170_spill] sm:$0xff]  ;;  %v9611_v16 = vld [vmem:[#allocation171_spill] sm:$0xff] }
 0x10e   : > { %9545 = vst [vmem:[#allocation139_spill] sm:$0xff] %v4491_v39  ;;  %v9613_v33 = vld [vmem:[#allocation197_spill] sm:$0xff] }
 0x10f   : > { %9547 = vst [vmem:[#allocation140_spill] sm:$0xff] %v4495_v60 }
 0x110   : > { %9549 = vst [vmem:[#allocation141_spill] sm:$0xff] %v4499_v59 }
 0x111   : > { %9551 = vst [vmem:[#allocation142_spill] sm:$0xff] %v4503_v55 }
 0x112   : > { %9553 = vst [vmem:[#allocation143_spill] sm:$0xff] %v4507_v24 }
 0x113   : > { %9555 = vst [vmem:[#allocation144_spill] sm:$0xff] %v4511_v2 }
 0x114   : > { %9557 = vst [vmem:[#allocation145_spill] sm:$0xff] %v4515_v40 }
 0x115   : > { %9559 = vst [vmem:[#allocation146_spill] sm:$0xff] %v4519_v63 }
 0x116   : > { %9561 = vst [vmem:[#allocation147_spill] sm:$0xff] %v4523_v53 }
 0x117   : > { %9563 = vst [vmem:[#allocation148_spill] sm:$0xff] %v4527_v62 }
 0x118   : > { %9565 = vst [vmem:[#allocation149_spill] sm:$0xff] %v4531_v56 }
 0x119   : > { %9567 = vst [vmem:[#allocation150_spill] sm:$0xff] %v4535_v51 }
 0x11a   : > { %9569 = vst [vmem:[#allocation151_spill] sm:$0xff] %v4539_v54  ;;  %v9580_v54 = vld [vmem:[#allocation157_spill] sm:$0xff] }
 0x11b   : > { %9571 = vst [vmem:[#allocation152_spill] sm:$0xff] %v4543_v44  ;;  %v4563_v57 = vmax.f32 %v9580_v54, %v4271_v22  ;;  %v4583_v22 = vmax.f32 %v9590_v50, %v4296_v19  ;;  %v9592_v54 = vld [vmem:[#allocation163_spill] sm:$0xff] }
 0x11c   : > { %9573 = vst [vmem:[#allocation153_spill] sm:$0xff] %v4547_v47  ;;  %v4587_v21 = vmax.f32 %v9592_v54, %v4301_v5  ;;  %v9600_v19 = vld [vmem:[#allocation167_spill] sm:$0xff]  ;;  %v9602_v5 = vld [vmem:[#allocation168_spill] sm:$0xff] }
 0x11d   : > { %9575 = vst [vmem:[#allocation154_spill] sm:$0xff] %v4551_v35  ;;  %v4603_v50 = vmax.f32 %v9600_v19, %v4321_v46  ;;  %v4607_v54 = vmax.f32 %v9602_v5, %v4326_v15  ;;  %v9616_v19 = vld [vmem:[#allocation198_spill] sm:$0xff]  ;;  %v9619_v5 = vld [vmem:[#allocation199_spill] sm:$0xff] }
 0x11e   : > { %9577 = vst [vmem:[#allocation155_spill] sm:$0xff] %v4555_v32 }
 0x11f   : > { %9579 = vst [vmem:[#allocation156_spill] sm:$0xff] %v4559_v61 }
 0x120   : > { %9581 = vst [vmem:[#allocation157_spill] sm:$0xff] %v4563_v57 }
 0x121   : > { %9583 = vst [vmem:[#allocation158_spill] sm:$0xff] %v4567_v25 }
 0x122   : > { %9585 = vst [vmem:[#allocation159_spill] sm:$0xff] %v4571_v36 }
 0x123   : > { %9587 = vst [vmem:[#allocation160_spill] sm:$0xff] %v4575_v26 }
 0x124   : > { %9589 = vst [vmem:[#allocation161_spill] sm:$0xff] %v4579_v23 }
 0x125   : > { %9591 = vst [vmem:[#allocation162_spill] sm:$0xff] %v4583_v22 }
 0x126   : > { %9593 = vst [vmem:[#allocation163_spill] sm:$0xff] %v4587_v21  ;;  %v9604_v21 = vld [vmem:[#allocation194_spill] sm:$0xff] }
 0x127   : > { %9595 = vst [vmem:[#allocation164_spill] sm:$0xff] %v4591_v45  ;;  %v4611_v52 = vmax.f32 %v9605_v18, %v9604_v21  ;;  %v9607_v45 = vld [vmem:[#allocation195_spill] sm:$0xff]  ;;  %v9622_v18 = vld [vmem:[#allocation200_spill] sm:$0xff] }
 0x128   : > { %9597 = vst [vmem:[#allocation165_spill] sm:$0xff] %v4595_v0  ;;  %v4615_v43 = vmax.f32 %v9608_v17, %v9607_v45  ;;  %v9610_v0 = vld [vmem:[#allocation196_spill] sm:$0xff]  ;;  %v9625_v17 = vld [vmem:[#allocation201_spill] sm:$0xff] }
 0x129   : > { %9599 = vst [vmem:[#allocation166_spill] sm:$0xff] %v4599_v20  ;;  %v4619_v38 = vmax.f32 %v9611_v16, %v9610_v0  ;;  %v9614_v20 = vld [vmem:[#allocation172_spill] sm:$0xff]  ;;  %v9628_v16 = vld [vmem:[#allocation202_spill] sm:$0xff] }
 0x12a   : > { %9601 = vst [vmem:[#allocation167_spill] sm:$0xff] %v4603_v50  ;;  %v4623_v46 = vmax.f32 %v9614_v20, %v9613_v33  ;;  %v9617_v50 = vld [vmem:[#allocation173_spill] sm:$0xff]  ;;  %v9631_v33 = vld [vmem:[#allocation178_spill] sm:$0xff] }
 0x12b   : > { %9603 = vst [vmem:[#allocation168_spill] sm:$0xff] %v4607_v54  ;;  %v4627_v15 = vmax.f32 %v9617_v50, %v9616_v19  ;;  %v9620_v54 = vld [vmem:[#allocation174_spill] sm:$0xff]  ;;  %v4647_v50 = vmax.f32 %v9631_v33, %v4376_v14  ;;  %v9633_v19 = vld [vmem:[#allocation179_spill] sm:$0xff] }
 0x12c   : > { %9606 = vst [vmem:[#allocation194_spill] sm:$0xff] %v4611_v52  ;;  %v4631_v21 = vmax.f32 %v9620_v54, %v9619_v5  ;;  %v9623_v52 = vld [vmem:[#allocation175_spill] sm:$0xff]  ;;  %v4651_v54 = vmax.f32 %v9633_v19, %v4381_v13  ;;  %v9635_v5 = vld [vmem:[#allocation180_spill] sm:$0xff] }
 0x12d   : > { %9609 = vst [vmem:[#allocation169_spill] sm:$0xff] %v4615_v43  ;;  %v4635_v45 = vmax.f32 %v9623_v52, %v9622_v18  ;;  %v9626_v43 = vld [vmem:[#allocation176_spill] sm:$0xff]  ;;  %v4655_v52 = vmax.f32 %v9635_v5, %v4386_v42  ;;  %v9637_v18 = vld [vmem:[#allocation181_spill] sm:$0xff]  ;;  %v9642_v14 = vld [vmem:[#allocation183_spill] sm:$0xff] }
 0x12e   : > { %9612 = vst [vmem:[#allocation195_spill] sm:$0xff] %v4619_v38  ;;  %v4639_v0 = vmax.f32 %v9626_v43, %v9625_v17  ;;  %v9629_v38 = vld [vmem:[#allocation177_spill] sm:$0xff]  ;;  %v4659_v43 = vmax.f32 %v9637_v18, %v4391_v12  ;;  %v4661_v17 = vmul.u32 2, %v1148_v27  ;;  %v4669_v33 = vmax.f32 %v9642_v14, %v4401_v10  ;;  %v9644_v13 = vld [vmem:[#allocation184_spill] sm:$0xff]  ;;  %v9648_v12 = vld [vmem:[#allocation186_spill] sm:$0xff] }
 0x12f   : > { %9615 = vst [vmem:[#allocation170_spill] sm:$0xff] %v4623_v46  ;;  %v4643_v20 = vmax.f32 %v9629_v38, %v9628_v16  ;;  %v9640_v38 = vld [vmem:[#allocation182_spill] sm:$0xff]  ;;  %v4673_v19 = vmax.f32 %v9644_v13, %v4406_v41  ;;  %v9646_v42 = vld [vmem:[#allocation185_spill] sm:$0xff]  ;;  %v4681_v27 = vmax.f32 %v9648_v12, %v4416_v58  ;;  %v9650_v18 = vld [vmem:[#allocation187_spill] sm:$0xff] }
 0x130   : > { %9618 = vst [vmem:[#allocation196_spill] sm:$0xff] %v4627_v15  ;;  %v4665_v16 = vmax.f32 %v9640_v38, %v4396_v11  ;;  %v4677_v5 = vmax.f32 %v9646_v42, %v4411_v9  ;;  %v4685_v11 = vmax.f32 %v9650_v18, %v4421_v8  ;;  %v9652_v38 = vld [vmem:[#allocation188_spill] sm:$0xff]  ;;  %v9654_v14 = vld [vmem:[#allocation203_spill] sm:$0xff]  ;;  %v9657_v13 = vld [vmem:[#allocation190_spill] sm:$0xff] }
 0x131   : > { %9621 = vst [vmem:[#allocation171_spill] sm:$0xff] %v4631_v21  ;;  %v4689_v10 = vmax.f32 %v9652_v38, %v4426_v7  ;;  %v4697_v9 = vmax.f32 %v9657_v13, %v4436_v6  ;;  %v9659_v42 = vld [vmem:[#allocation191_spill] sm:$0xff]  ;;  %v9661_v12 = vld [vmem:[#allocation204_spill] sm:$0xff]  ;;  %v9664_v18 = vld [vmem:[#allocation193_spill] sm:$0xff]  ;;  %v4712_v38 = vadd.s32 32, %v4661_v17  ;;  %v4718_v6 = vadd.s32 96, %v4661_v17 }
 0x132   : > { %9624 = vst [vmem:[#allocation197_spill] sm:$0xff] %v4635_v45  ;;  %v4701_v58 = vmax.f32 %v9659_v42, %v4441_v4  ;;  %v4709_v7 = vmax.f32 %v9664_v18, %v4451_v3  ;;  %v4721_v4 = vadd.s32 128, %v4661_v17  ;;  %v4730_v3 = vadd.s32 224, %v4661_v17 }
 0x133   : > { %9627 = vst [vmem:[#allocation172_spill] sm:$0xff] %v4639_v0  ;;  %v1549_v13 = vadd.s32 16, %v4661_v17  ;;  %v3180_v45 = vmov 842150450  }
 0x134   : > { %9630 = vst [vmem:[#allocation198_spill] sm:$0xff] %v4643_v20 }
 0x135   : > { %9632 = vst [vmem:[#allocation173_spill] sm:$0xff] %v4647_v50 }
 0x136   : > { %9634 = vst [vmem:[#allocation199_spill] sm:$0xff] %v4651_v54 }
 0x137   : > { %9636 = vst [vmem:[#allocation174_spill] sm:$0xff] %v4655_v52 }
 0x138   : > { %9638 = vst [vmem:[#allocation200_spill] sm:$0xff] %v4659_v43 }
 0x139   : > { %9639 = vst [vmem:[#allocation175_spill] sm:$0xff] %v4661_v17 }
 0x13a   : > { %9641 = vst [vmem:[#allocation201_spill] sm:$0xff] %v4665_v16 }
 0x13b   : > { %9643 = vst [vmem:[#allocation176_spill] sm:$0xff] %v4669_v33  ;;  %v9655_v33 = vld [vmem:[#allocation189_spill] sm:$0xff] }
 0x13c   : > { %9645 = vst [vmem:[#allocation202_spill] sm:$0xff] %v4673_v19  ;;  %v4693_v41 = vmax.f32 %v9655_v33, %v9654_v14  ;;  %v4715_v33 = vadd.s32 64, %v4661_v17  ;;  %v4724_v14 = vadd.s32 160, %v4661_v17 }
 0x13d   : > { %9647 = vst [vmem:[#allocation177_spill] sm:$0xff] %v4677_v5  ;;  %v3181_v5 = vmov 1414812756  }
 0x13e   : > { %9649 = vst [vmem:[#allocation178_spill] sm:$0xff] %v4681_v27  ;;  %v9662_v27 = vld [vmem:[#allocation192_spill] sm:$0xff] }
 0x13f   : > { %9651 = vst [vmem:[#allocation179_spill] sm:$0xff] %v4685_v11  ;;  %v4705_v8 = vmax.f32 %v9662_v27, %v9661_v12  ;;  %v4727_v27 = vadd.s32 192, %v4661_v17 }
 0x140   : > { %9653 = vst [vmem:[#allocation180_spill] sm:$0xff] %v4689_v10 }
 0x141   : > { %9656 = vst [vmem:[#allocation181_spill] sm:$0xff] %v4693_v41  ;;  %v4828_v41 = vadd.s32 1, %v1549_v13 }
 0x142   : > { %9658 = vst [vmem:[#allocation182_spill] sm:$0xff] %v4697_v9 }
 0x143   : > { %9660 = vst [vmem:[#allocation183_spill] sm:$0xff] %v4701_v58 }
 0x144   : > { %9663 = vst [vmem:[#allocation184_spill] sm:$0xff] %v4705_v8 }
 0x145   : > { %9665 = vst [vmem:[#allocation185_spill] sm:$0xff] %v4709_v7 }
 0x146   : > { %9666 = vst [vmem:[#allocation186_spill] sm:$0xff] %v4712_v38 }
 0x147   : > { %9667 = vst [vmem:[#allocation187_spill] sm:$0xff] %v4715_v33 }
 0x148   : > { %9668 = vst [vmem:[#allocation188_spill] sm:$0xff] %v4718_v6  ;;  %v4797_v6 = vadd.s32 1, %v4661_v17 }
 0x149   : > { %9669 = vst [vmem:[#allocation203_spill] sm:$0xff] %v4721_v4  ;;  %v4800_v4 = vadd.s32 1, %v4712_v38 }
 0x14a   : > { %9670 = vst [vmem:[#allocation189_spill] sm:$0xff] %v4724_v14  ;;  %v9687_v14 = vmov %v4715_v33 }
 0x14b   : > { %9671 = vst [vmem:[#allocation190_spill] sm:$0xff] %v4727_v27  ;;  %v4803_v33 = vadd.s32 1, %v9687_v14 }
 0x14c   : > { %9672 = vst [vmem:[#allocation191_spill] sm:$0xff] %v4730_v3 }
 0x14d   : > { %9685 = vst [vmem:[#allocation204_spill] sm:$0xff] %v4797_v6 }
 0x14e   : > { %9686 = vst [vmem:[#allocation192_spill] sm:$0xff] %v4800_v4  ;;  %v1550_v4 = vadd.s32 16, %v4712_v38  ;;  %v1574_v38 = vunpack.c.l.s4 %v3181_v5 }
 0x14f   : > { %9688 = vst [vmem:[#allocation193_spill] sm:$0xff] %v4803_v33  ;;  %v9689_v27 = vld [vmem:[#allocation188_spill] sm:$0xff]  ;;  %v1551_v33 = vadd.s32 16, %v9687_v14 }
 0x150   : > { %v4806_v10 = vadd.s32 1, %v9689_v27  ;;  %v9691_v3 = vld [vmem:[#allocation203_spill] sm:$0xff]  ;;  %v4830_v19 = vadd.s32 1, %v1550_v4  ;;  %v4842_v16 = vunpack.c.0.s8 %v1574_v38 }
 0x151   : > { %v4810_v42 = vadd.s32 1, %v9691_v3  ;;  %v9693_v12 = vld [vmem:[#allocation189_spill] sm:$0xff]  ;;  %v1553_v17 = vadd.s32 16, %v9691_v3  ;;  %v4832_v14 = vadd.s32 1, %v1551_v33  ;;  %v3182_v3 = vmov 1987475062  }
 0x152   : > { %9690 = vst [vmem:[#allocation205_spill] sm:$0xff] %v4806_v10  ;;  %v4813_v8 = vadd.s32 1, %v9693_v12  ;;  %v9695_v18 = vld [vmem:[#allocation190_spill] sm:$0xff]  ;;  %v1552_v10 = vadd.s32 16, %v9689_v27  ;;  %v1554_v9 = vadd.s32 16, %v9693_v12  ;;  %v1578_v12 = vunpack.c.l.s4 %v3182_v3 }
 0x153   : > { %9692 = vst [vmem:[#allocation206_spill] sm:$0xff] %v4810_v42  ;;  %v4816_v7 = vadd.s32 1, %v9695_v18  ;;  %v9697_v6 = vld [vmem:[#allocation191_spill] sm:$0xff]  ;;  %v1555_v42 = vadd.s32 16, %v9695_v18  ;;  %v4836_v46 = vadd.s32 1, %v1553_v17  ;;  %v4883_v21 = vperm.slane %v1551_v33, %v4842_v16 }
 0x154   : > { %9694 = vst [vmem:[#allocation207_spill] sm:$0xff] %v4813_v8  ;;  %v4819_v58 = vadd.s32 1, %v9697_v6  ;;  %v1556_v8 = vadd.s32 16, %v9697_v6  ;;  %v4834_v27 = vadd.s32 1, %v1552_v10  ;;  %v4850_v43 = vunpack.c.0.s8 %v1578_v12 }
 0x155   : > { %9696 = vst [vmem:[#allocation208_spill] sm:$0xff] %v4816_v7  ;;  %v3179_v7 = vmov 269488144   ;;  %v4871_v12 = vperm.slane %v1550_v4, %v4842_v16  ;;  %v4990_v24 = vperm.slane %v4828_v41, %v4842_v16 }
 0x156   : > { %9698 = vst [vmem:[#allocation209_spill] sm:$0xff] %v4819_v58  ;;  %v1566_v11 = vunpack.c.l.s4 %v3179_v7  ;;  %v1570_v58 = vunpack.c.l.s4 %v3180_v45  ;;  %v4844_v7 = vadd.s32 1, %v1554_v9  ;;  %v4846_v45 = vadd.s32 1, %v1555_v42 }
 0x157   : > { %9701 = vst [vmem:[#allocation212_spill] sm:$0xff] %v4842_v16  ;;  %v4848_v5 = vadd.s32 1, %v1556_v8  ;;  %v4865_v38 = vperm.slane %v1549_v13, %v4850_v43  ;;  %v4874_v50 = vperm.slane %v1550_v4, %v4850_v43  ;;  %v4898_v36 = vperm.slane %v1552_v10, %v4850_v43 }
 0x158   : > { %v4838_v18 = vunpack.c.0.s8 %v1566_v11  ;;  %v4840_v6 = vunpack.c.0.s8 %v1570_v58  ;;  %9703 = vst [vmem:[#allocation214_spill] sm:$0xff] %v4850_v43  ;;  %v4859_v11 = vperm.slane %v1549_v13, %v4842_v16  ;;  %v4910_v61 = vperm.slane %v1553_v17, %v4850_v43 }
 0x159   : > { %9702 = vst [vmem:[#allocation213_spill] sm:$0xff] %v4848_v5  ;;  %v4922_v47 = vperm.slane %v1554_v9, %v4850_v43  ;;  %v4934_v23 = vperm.slane %v1555_v42, %v4850_v43  ;;  %v4946_v56 = vperm.slane %v1556_v8, %v4850_v43  ;;  %v4994_v5 = vperm.slane %v4828_v41, %v4850_v43 }
 0x15a   : > { %9699 = vst [vmem:[#allocation210_spill] sm:$0xff] %v4838_v18  ;;  %v4853_v52 = vperm.slane %v1549_v13, %v4838_v18  ;;  %v4856_v3 = vperm.slane %v1549_v13, %v4840_v6  ;;  %v4862_v58 = vperm.slane %v1550_v4, %v4838_v18  ;;  %v4868_v54 = vperm.slane %v1550_v4, %v4840_v6 }
 0x15b   : > { %9700 = vst [vmem:[#allocation211_spill] sm:$0xff] %v4840_v6  ;;  %v4877_v20 = vperm.slane %v1551_v33, %v4838_v18  ;;  %v4880_v0 = vperm.slane %v1551_v33, %v4840_v6  ;;  %v4886_v13 = vperm.slane %v1551_v33, %v4850_v43  ;;  %v4889_v15 = vperm.slane %v1552_v10, %v4838_v18 }
 0x15c   : > { %9704 = vst [vmem:[#allocation215_spill] sm:$0xff] %v4862_v58  ;;  %v4892_v26 = vperm.slane %v1552_v10, %v4840_v6  ;;  %v4895_v4 = vperm.slane %v1552_v10, %v4842_v16  ;;  %v4901_v25 = vperm.slane %v1553_v17, %v4838_v18  ;;  %v4904_v57 = vperm.slane %v1553_v17, %v4840_v6 }
 0x15d   : > { %9705 = vst [vmem:[#allocation216_spill] sm:$0xff] %v4868_v54  ;;  %v4907_v33 = vperm.slane %v1553_v17, %v4842_v16  ;;  %v4913_v32 = vperm.slane %v1554_v9, %v4838_v18  ;;  %v4916_v35 = vperm.slane %v1554_v9, %v4840_v6  ;;  %v4919_v10 = vperm.slane %v1554_v9, %v4842_v16 }
 0x15e   : > { %9706 = vst [vmem:[#allocation217_spill] sm:$0xff] %v4871_v12  ;;  %v4925_v44 = vperm.slane %v1555_v42, %v4838_v18  ;;  %v4928_v22 = vperm.slane %v1555_v42, %v4840_v6  ;;  %v4931_v17 = vperm.slane %v1555_v42, %v4842_v16  ;;  %v4937_v60 = vperm.slane %v1556_v8, %v4838_v18 }
 0x15f   : > { %9707 = vst [vmem:[#allocation218_spill] sm:$0xff] %v4874_v50  ;;  %v4940_v51 = vperm.slane %v1556_v8, %v4840_v6  ;;  %v4943_v9 = vperm.slane %v1556_v8, %v4842_v16  ;;  %v4982_v63 = vperm.slane %v4828_v41, %v4838_v18  ;;  %v4986_v40 = vperm.slane %v4828_v41, %v4840_v6  ;;  %v9757_v50 = vld [vmem:[#allocation90_spill] sm:$0xff] }
 0x160   : > { %9708 = vst [vmem:[#allocation219_spill] sm:$0xff] %v4877_v20  ;;  %v4998_v62 = vperm.slane %v4830_v19, %v4838_v18  ;;  %v5002_v53 = vperm.slane %v4830_v19, %v4840_v6  ;;  %v5006_v8 = vperm.slane %v4830_v19, %v4842_v16  ;;  %v5010_v55 = vperm.slane %v4830_v19, %v4850_v43  ;;  %v9756_v20 = vld [vmem:[#allocation89_spill] sm:$0xff] }
 0x161   : > { %9709 = vst [vmem:[#allocation220_spill] sm:$0xff] %v4880_v0  ;;  %v5014_v41 = vperm.slane %v4832_v14, %v4838_v18  ;;  %v5018_v2 = vperm.slane %v4832_v14, %v4840_v6  ;;  %v5022_v42 = vperm.slane %v4832_v14, %v4842_v16  ;;  %v5030_v19 = vperm.slane %v4834_v27, %v4838_v18  ;;  %v9755_v0 = vld [vmem:[#allocation140_spill] sm:$0xff]  ;;  %v9758_v12 = vld [vmem:[#allocation213_spill] sm:$0xff] }
 0x162   : > { %9710 = vst [vmem:[#allocation221_spill] sm:$0xff] %v4883_v21  ;;  %v9754_v21 = vld [vmem:[#allocation88_spill] sm:$0xff]  ;;  %vm1495_vm10 = vcmp.eq.f32.partialorder %v9756_v20, %v9755_v0  ;;  %vm1496_vm11 = vcmp.eq.f32.partialorder %v9757_v50, %v4499_v59  ;;  %v5118_v54 = vperm.slane %v9758_v12, %v4838_v18  ;;  %v9793_v0 = vld [vmem:[#allocation157_spill] sm:$0xff]  ;;  %v9794_v20 = vld [vmem:[#allocation102_spill] sm:$0xff] }
 0x163   : > { %9711 = vst [vmem:[#allocation222_spill] sm:$0xff] %v4886_v13  ;;  %v9753_v13 = vld [vmem:[#allocation8_spill] sm:$0xff]  ;;  %vm1494_vm9 = vcmp.eq.f32.partialorder %v9754_v21, %v4491_v39  ;;  %v5130_v39 = vperm.slane %v9758_v12, %v4850_v43  ;;  %v9818_v21 = vld [vmem:[#allocation111_spill] sm:$0xff]  ;;  %v9826_v50 = vld [vmem:[#allocation114_spill] sm:$0xff] }
 0x164   : > { %9712 = vst [vmem:[#allocation223_spill] sm:$0xff] %v4889_v15  ;;  %v5106_v15 = vperm.slane %v4846_v45, %v4850_v43  ;;  %vm1493_vm8 = vcmp.eq.f32.partialorder %v9753_v13, %v4487_v49  ;;  %v5126_v49 = vperm.slane %v9758_v12, %v4842_v16  ;;  %v9809_v13 = vld [vmem:[#allocation165_spill] sm:$0xff]  ;;  %v9825_v59 = vld [vmem:[#allocation196_spill] sm:$0xff] }
 0x165   : > { %9713 = vst [vmem:[#allocation224_spill] sm:$0xff] %v4892_v26  ;;  %v5102_v26 = vperm.slane %v4846_v45, %v4842_v16 }
 0x166   : > { %9714 = vst [vmem:[#allocation225_spill] sm:$0xff] %v4895_v4  ;;  %v5094_v4 = vperm.slane %v4846_v45, %v4838_v18 }
 0x167   : > { %9715 = vst [vmem:[#allocation226_spill] sm:$0xff] %v4898_v36  ;;  %v9748_v36 = vld [vmem:[#allocation87_spill] sm:$0xff] }
 0x168   : > { %9716 = vst [vmem:[#allocation227_spill] sm:$0xff] %v4901_v25  ;;  %v9747_v25 = vld [vmem:[#allocation86_spill] sm:$0xff]  ;;  %vm1492_vm7 = vcmp.eq.f32.partialorder %v9748_v36, %v4483_v31  ;;  %v9802_v36 = vld [vmem:[#allocation105_spill] sm:$0xff] }
 0x169   : > { %9717 = vst [vmem:[#allocation228_spill] sm:$0xff] %v4904_v57  ;;  %v9746_v57 = vld [vmem:[#allocation85_spill] sm:$0xff]  ;;  %vm1491_vm6 = vcmp.eq.f32.partialorder %v9747_v25, %v4479_v48  ;;  %v9868_v48 = vld [vmem:[#allocation123_spill] sm:$0xff] }
 0x16a   : > { %9718 = vst [vmem:[#allocation229_spill] sm:$0xff] %v4907_v33  ;;  %v9745_v33 = vld [vmem:[#allocation5_spill] sm:$0xff]  ;;  %vm1490_vm5 = vcmp.eq.f32.partialorder %v9746_v57, %v4475_v34  ;;  %v9865_v34 = vld [vmem:[#allocation202_spill] sm:$0xff] }
 0x16b   : > { %9719 = vst [vmem:[#allocation230_spill] sm:$0xff] %v4910_v61  ;;  %v5082_v61 = vperm.slane %v4844_v7, %v4850_v43  ;;  %vm1489_vm4 = vcmp.eq.f32.partialorder %v9745_v33, %v4471_v28  ;;  %v9856_v33 = vrot.slane %v4994_v5, 1  ;;  %v9857_v28 = vrot.slane %v4865_v38, 1  ;;  %v9862_v57 = vld [vmem:[#allocation29_spill] sm:$0xff] }
 0x16c   : > { %9720 = vst [vmem:[#allocation231_spill] sm:$0xff] %v4913_v32  ;;  %v5078_v32 = vperm.slane %v4844_v7, %v4842_v16  ;;  %v9867_v25 = vld [vmem:[#allocation177_spill] sm:$0xff] }
 0x16d   : > { %9721 = vst [vmem:[#allocation232_spill] sm:$0xff] %v4916_v35  ;;  %v5070_v35 = vperm.slane %v4844_v7, %v4838_v18 }
 0x16e   : > { %9722 = vst [vmem:[#allocation233_spill] sm:$0xff] %v4919_v10  ;;  %v9740_v10 = vld [vmem:[#allocation84_spill] sm:$0xff] }
 0x16f   : > { %9723 = vst [vmem:[#allocation234_spill] sm:$0xff] %v4922_v47  ;;  %v9739_v47 = vld [vmem:[#allocation83_spill] sm:$0xff]  ;;  %vm1488_vm3 = vcmp.eq.f32.partialorder %v9740_v10, %v4467_v29 }
 0x170   : > { %9724 = vst [vmem:[#allocation235_spill] sm:$0xff] %v4925_v44  ;;  %v9737_v44 = vld [vmem:[#allocation4_spill] sm:$0xff]  ;;  %vm1487_vm2 = vcmp.eq.f32.partialorder %v9739_v47, %v4463_v30 }
 0x171   : > { %9725 = vst [vmem:[#allocation236_spill] sm:$0xff] %v4928_v22  ;;  %v5058_v22 = vperm.slane %v4836_v46, %v4850_v43  ;;  %vm1485_vm0 = vcmp.eq.f32.partialorder %v9737_v44, %v4455_v37  ;;  %v9840_v44 = vrot.slane %v4986_v40, 1  ;;  %v9841_v37 = vrot.slane %v4856_v3, 1  ;;  %v9849_v47 = vld [vmem:[#allocation200_spill] sm:$0xff] }
 0x172   : > { %9726 = vst [vmem:[#allocation237_spill] sm:$0xff] %v4931_v17  ;;  %v5054_v17 = vperm.slane %v4836_v46, %v4842_v16  ;;  %v5241_v31 = vsel %vm1485_vm0, %v4853_v52, %v4982_v63  ;;  %v9850_v30 = vld [vmem:[#allocation120_spill] sm:$0xff] }
 0x173   : > { %9727 = vst [vmem:[#allocation238_spill] sm:$0xff] %v4934_v23  ;;  %v5050_v23 = vperm.slane %v4836_v46, %v4840_v6 }
 0x174   : > { %9728 = vst [vmem:[#allocation239_spill] sm:$0xff] %v4937_v60  ;;  %v5042_v60 = vperm.slane %v4834_v27, %v4850_v43 }
 0x175   : > { %9729 = vst [vmem:[#allocation240_spill] sm:$0xff] %v4940_v51  ;;  %v5038_v51 = vperm.slane %v4834_v27, %v4842_v16  ;;  %v9837_v16 = vrot.slane %v4853_v52, 1  ;;  %v9843_v52 = vld [vmem:[#allocation173_spill] sm:$0xff] }
 0x176   : > { %9730 = vst [vmem:[#allocation241_spill] sm:$0xff] %v4943_v9  ;;  %v5034_v9 = vperm.slane %v4834_v27, %v4840_v6  ;;  %v9738_v27 = vld [vmem:[#allocation82_spill] sm:$0xff] }
 0x177   : > { %9731 = vst [vmem:[#allocation242_spill] sm:$0xff] %v4946_v56  ;;  %v5026_v56 = vperm.slane %v4832_v14, %v4850_v43  ;;  %v5046_v14 = vperm.slane %v4836_v46, %v4838_v18  ;;  %vm1486_vm1 = vcmp.eq.f32.partialorder %v9738_v27, %v4459_v1  ;;  %v5074_v46 = vperm.slane %v4844_v7, %v4840_v6  ;;  %v9801_v43 = vld [vmem:[#allocation161_spill] sm:$0xff]  ;;  %v9817_v18 = vld [vmem:[#allocation194_spill] sm:$0xff]  ;;  %v9844_v27 = vld [vmem:[#allocation28_spill] sm:$0xff] }
 0x178   : > { %9732 = vst [vmem:[#allocation243_spill] sm:$0xff] %v5038_v51  ;;  %v5098_v7 = vperm.slane %v4846_v45, %v4840_v6  ;;  %v5122_v45 = vperm.slane %v9758_v12, %v4840_v6  ;;  %v9804_v51 = vld [vmem:[#allocation20_spill] sm:$0xff]  ;;  %v9836_v12 = vrot.slane %v4982_v63, 1  ;;  %v5266_v63 = vsel %vm1488_vm3, %v9841_v37, %v9840_v44  ;;  %v9847_v1 = vld [vmem:[#allocation174_spill] sm:$0xff] }
 0x179   : > { %9733 = vst [vmem:[#allocation244_spill] sm:$0xff] %v5042_v60  ;;  %v9810_v6 = vld [vmem:[#allocation108_spill] sm:$0xff]  ;;  %v9834_v60 = vld [vmem:[#allocation117_spill] sm:$0xff]  ;;  %vm1533_vm0 = vcmp.eq.f32.partialorder %v9844_v27, %v9843_v52  ;;  %v9852_v37 = vrot.slane %v4990_v24, 1  ;;  %v5297_v44 = vsel %vm1491_vm6, %v4865_v38, %v4994_v5  ;;  %v9869_v5 = vld [vmem:[#allocation215_spill] sm:$0xff]  ;;  %v9882_v38 = vrot.slane %v5002_v53, 1 }
 0x17a   : > { %9734 = vst [vmem:[#allocation245_spill] sm:$0xff] %v5050_v23  ;;  %v9833_v23 = vld [vmem:[#allocation198_spill] sm:$0xff]  ;;  %v5250_v58 = vsel %vm1486_vm1, %v9837_v16, %v9836_v12  ;;  %v9845_v16 = vld [vmem:[#allocation199_spill] sm:$0xff]  ;;  %v5321_v29 = vsel %vm1493_vm8, %v9869_v5, %v4998_v62  ;;  %v10155_v52 = vld [vmem:[#allocation193_spill] sm:$0xff] }
 0x17b   : > { %9735 = vst [vmem:[#allocation246_spill] sm:$0xff] %v5054_v17  ;;  %v9812_v17 = vld [vmem:[#allocation21_spill] sm:$0xff]  ;;  %v9846_v12 = vld [vmem:[#allocation118_spill] sm:$0xff] }
 0x17c   : > { %9736 = vst [vmem:[#allocation247_spill] sm:$0xff] %v5058_v22  ;;  %v9811_v22 = vld [vmem:[#allocation166_spill] sm:$0xff]  ;;  %vm1534_vm1 = vcmp.eq.f32.partialorder %v9846_v12, %v9845_v16  ;;  %v10097_v12 = vld [vmem:[#allocation237_spill] sm:$0xff] }
 0x17d   : > { %9741 = vst [vmem:[#allocation4_spill] sm:$0xff] %v5070_v35  ;;  %v9832_v35 = vld [vmem:[#allocation116_spill] sm:$0xff] }
 0x17e   : > { %9742 = vst [vmem:[#allocation82_spill] sm:$0xff] %v5074_v46  ;;  %v9831_v46 = vld [vmem:[#allocation172_spill] sm:$0xff] }
 0x17f   : > { %9743 = vst [vmem:[#allocation83_spill] sm:$0xff] %v5078_v32  ;;  %v9820_v32 = vld [vmem:[#allocation24_spill] sm:$0xff]  ;;  %vm1531_vm14 = vcmp.eq.f32.partialorder %v9832_v35, %v9831_v46 }
 0x180   : > { %9744 = vst [vmem:[#allocation84_spill] sm:$0xff] %v5082_v61  ;;  %v9819_v61 = vld [vmem:[#allocation169_spill] sm:$0xff] }
 0x181   : > { %9749 = vst [vmem:[#allocation5_spill] sm:$0xff] %v5094_v4  ;;  %v9830_v4 = vld [vmem:[#allocation115_spill] sm:$0xff] }
 0x182   : > { %9750 = vst [vmem:[#allocation85_spill] sm:$0xff] %v5098_v7  ;;  %v9829_v7 = vld [vmem:[#allocation197_spill] sm:$0xff] }
 0x183   : > { %9751 = vst [vmem:[#allocation86_spill] sm:$0xff] %v5102_v26  ;;  %v9828_v26 = vld [vmem:[#allocation25_spill] sm:$0xff]  ;;  %vm1530_vm13 = vcmp.eq.f32.partialorder %v9830_v4, %v9829_v7  ;;  %v10085_v4 = vld [vmem:[#allocation235_spill] sm:$0xff] }
 0x184   : > { %9752 = vst [vmem:[#allocation248_spill] sm:$0xff] %v5106_v15  ;;  %v9827_v15 = vld [vmem:[#allocation171_spill] sm:$0xff] }
 0x185   : > { %9759 = vst [vmem:[#allocation213_spill] sm:$0xff] %v5118_v54  ;;  %vm1529_vm12 = vcmp.eq.f32.partialorder %v9828_v26, %v9827_v15  ;;  %v9887_v54 = vld [vmem:[#allocation178_spill] sm:$0xff]  ;;  %v10160_v15 = vld [vmem:[#allocation205_spill] sm:$0xff] }
 0x186   : > { %9760 = vst [vmem:[#allocation249_spill] sm:$0xff] %v5122_v45 }
 0x187   : > { %9761 = vst [vmem:[#allocation250_spill] sm:$0xff] %v5126_v49 }
 0x188   : > { %9762 = vst [vmem:[#allocation251_spill] sm:$0xff] %v5130_v39  ;;  %v5257_v39 = vsel %vm1487_vm2, %v4856_v3, %v4986_v40  ;;  %vm1536_vm2 = vcmp.eq.f32.partialorder %v9850_v30, %v9849_v47  ;;  %v5281_v40 = vsel %vm1489_vm4, %v4859_v11, %v4990_v24  ;;  %v9853_v3 = vrot.slane %v4859_v11, 1  ;;  %v9888_v24 = vld [vmem:[#allocation32_spill] sm:$0xff]  ;;  %v10103_v30 = vld [vmem:[#allocation238_spill] sm:$0xff] }
 0x189   : > { %9835 = vst [vmem:[#allocation102_spill] sm:$0xff] %v5241_v31  ;;  %v5306_v11 = vsel %vm1492_vm7, %v9857_v28, %v9856_v33  ;;  %v9873_v28 = vrot.slane %v4998_v62, 1  ;;  %v9874_v33 = vrot.slane %v9869_v5, 1  ;;  %v9902_v62 = vld [vmem:[#allocation91_spill] sm:$0xff]  ;;  %v9908_v31 = vld [vmem:[#allocation144_spill] sm:$0xff] }
 0x18a   : > { %9838 = vst [vmem:[#allocation105_spill] sm:$0xff] %v5250_v58  ;;  %v9848_v58 = vld [vmem:[#allocation119_spill] sm:$0xff]  ;;  %v5290_v10 = vsel %vm1490_vm5, %v9853_v3, %v9852_v37  ;;  %v9863_v37 = vld [vmem:[#allocation176_spill] sm:$0xff]  ;;  %v9864_v3 = vld [vmem:[#allocation121_spill] sm:$0xff] }
 0x18b   : > { %9839 = vst [vmem:[#allocation20_spill] sm:$0xff] %v5257_v39  ;;  %vm1535_vm15 = vcmp.eq.f32.partialorder %v9848_v58, %v9847_v1  ;;  %vm1538_vm4 = vcmp.eq.f32.partialorder %v9864_v3, %v9863_v37  ;;  %v9878_v39 = vld [vmem:[#allocation216_spill] sm:$0xff]  ;;  %v10110_v3 = vld [vmem:[#allocation239_spill] sm:$0xff]  ;;  %v10149_v1 = vld [vmem:[#allocation210_spill] sm:$0xff] }
 0x18c   : > { %9842 = vst [vmem:[#allocation108_spill] sm:$0xff] %v5266_v63  ;;  %v5330_v63 = vsel %vm1494_vm9, %v9874_v33, %v9873_v28  ;;  %v5337_v45 = vsel %vm1495_vm10, %v9878_v39, %v5002_v53  ;;  %v9895_v53 = vld [vmem:[#allocation217_spill] sm:$0xff]  ;;  %v9917_v33 = vld [vmem:[#allocation182_spill] sm:$0xff] }
 0x18d   : > { %9851 = vst [vmem:[#allocation21_spill] sm:$0xff] %v5281_v40  ;;  %v9861_v40 = vld [vmem:[#allocation201_spill] sm:$0xff] }
 0x18e   : > { %9854 = vst [vmem:[#allocation111_spill] sm:$0xff] %v5290_v10  ;;  %vm1537_vm3 = vcmp.eq.f32.partialorder %v9862_v57, %v9861_v40  ;;  %v9866_v10 = vld [vmem:[#allocation122_spill] sm:$0xff]  ;;  %v10119_v37 = vld [vmem:[#allocation249_spill] sm:$0xff] }
 0x18f   : > { %9855 = vst [vmem:[#allocation24_spill] sm:$0xff] %v5297_v44  ;;  %vm1539_vm5 = vcmp.eq.f32.partialorder %v9866_v10, %v9865_v34  ;;  %v9883_v44 = vrot.slane %v9878_v39, 1  ;;  %v9896_v39 = vld [vmem:[#allocation9_spill] sm:$0xff]  ;;  %v10115_v34 = vld [vmem:[#allocation124_spill] sm:$0xff]  ;;  %v10127_v40 = vld [vmem:[#allocation126_spill] sm:$0xff] }
 0x190   : > { %9860 = vst [vmem:[#allocation114_spill] sm:$0xff] %v5306_v11  ;;  %v9906_v11 = vld [vmem:[#allocation218_spill] sm:$0xff] }
 0x191   : > { %9872 = vst [vmem:[#allocation25_spill] sm:$0xff] %v5321_v29  ;;  %v5346_v5 = vsel %vm1496_vm11, %v9883_v44, %v9882_v38  ;;  %v9900_v44 = vrot.slane %v5006_v8, 1  ;;  %v9901_v38 = vrot.slane %v9895_v53, 1  ;;  %v10131_v47 = vld [vmem:[#allocation250_spill] sm:$0xff] }
 0x192   : > { %9877 = vst [vmem:[#allocation115_spill] sm:$0xff] %v5330_v63  ;;  %v9907_v63 = vld [vmem:[#allocation92_spill] sm:$0xff] }
 0x193   : > { %9881 = vst [vmem:[#allocation116_spill] sm:$0xff] %v5337_v45  ;;  %v9897_v45 = vld [vmem:[#allocation142_spill] sm:$0xff]  ;;  %vm9909_vm10 = vcmp.eq.f32.partialorder %v9907_v63, %v9908_v31  ;;  %v9938_v63 = vld [vmem:[#allocation148_spill] sm:$0xff] }
 0x194   : > { %9886 = vst [vmem:[#allocation117_spill] sm:$0xff] %v5346_v5  ;;  %vm9898_vm6 = vcmp.eq.f32.partialorder %v9896_v39, %v9897_v45  ;;  %v9903_v5 = vld [vmem:[#allocation143_spill] sm:$0xff]  ;;  %v5377_v49 = vsel %vm9909_vm10, %v9906_v11, %v5010_v55  ;;  %v9911_v39 = vrot.slane %v5010_v55, 1  ;;  %v9912_v45 = vrot.slane %v9906_v11, 1  ;;  %v9926_v11 = vld [vmem:[#allocation12_spill] sm:$0xff] }
 0x195   : > { %v5361_v29 = vsel %vm9898_vm6, %v9895_v53, %v5006_v8  ;;  %vm9904_vm11 = vcmp.eq.f32.partialorder %v9902_v62, %v9903_v5  ;;  %9910 = vst [vmem:[#allocation119_spill] sm:$0xff] %v5377_v49  ;;  %v9914_v8 = vld [vmem:[#allocation145_spill] sm:$0xff]  ;;  %v9921_v5 = vld [vmem:[#allocation184_spill] sm:$0xff]  ;;  %v9925_v55 = vld [vmem:[#allocation219_spill] sm:$0xff] }
 0x196   : > { %9899 = vst [vmem:[#allocation28_spill] sm:$0xff] %v5361_v29  ;;  %v5370_v28 = vsel %vm9904_vm11, %v9901_v38, %v9900_v44  ;;  %v9913_v29 = vld [vmem:[#allocation93_spill] sm:$0xff]  ;;  %v9919_v44 = vld [vmem:[#allocation183_spill] sm:$0xff]  ;;  %v9927_v49 = vld [vmem:[#allocation146_spill] sm:$0xff] }
 0x197   : > { %9905 = vst [vmem:[#allocation118_spill] sm:$0xff] %v5370_v28  ;;  %vm9915_vm6 = vcmp.eq.f32.partialorder %v9913_v29, %v9914_v8  ;;  %v9918_v62 = vld [vmem:[#allocation33_spill] sm:$0xff]  ;;  %v9920_v38 = vld [vmem:[#allocation127_spill] sm:$0xff]  ;;  %v9922_v28 = vld [vmem:[#allocation128_spill] sm:$0xff]  ;;  %vm9928_vm7 = vcmp.eq.f32.partialorder %v9926_v11, %v9927_v49  ;;  %v9941_v11 = vrot.slane %v5018_v2, 1 }
 0x198   : > { %v5386_v53 = vsel %vm9915_vm6, %v9912_v45, %v9911_v39  ;;  %vm1545_vm11 = vcmp.eq.f32.partialorder %v9918_v62, %v9917_v33  ;;  %vm1546_vm9 = vcmp.eq.f32.partialorder %v9920_v38, %v9919_v44  ;;  %vm1547_vm8 = vcmp.eq.f32.partialorder %v9922_v28, %v9921_v5  ;;  %v9932_v8 = vld [vmem:[#allocation94_spill] sm:$0xff]  ;;  %v9936_v5 = vld [vmem:[#allocation220_spill] sm:$0xff]  ;;  %v9937_v28 = vld [vmem:[#allocation95_spill] sm:$0xff] }
 0x199   : > { %9916 = vst [vmem:[#allocation120_spill] sm:$0xff] %v5386_v53  ;;  %v5401_v29 = vsel %vm9928_vm7, %v9925_v55, %v5014_v41  ;;  %v9930_v45 = vrot.slane %v5014_v41, 1  ;;  %v9931_v39 = vrot.slane %v9925_v55, 1  ;;  %v9933_v53 = vld [vmem:[#allocation147_spill] sm:$0xff]  ;;  %vm9939_vm10 = vcmp.eq.f32.partialorder %v9937_v28, %v9938_v63  ;;  %v9944_v41 = vld [vmem:[#allocation149_spill] sm:$0xff]  ;;  %v10150_v38 = vld [vmem:[#allocation204_spill] sm:$0xff] }
 0x19a   : > { %9929 = vst [vmem:[#allocation87_spill] sm:$0xff] %v5401_v29  ;;  %vm9934_vm6 = vcmp.eq.f32.partialorder %v9932_v8, %v9933_v53  ;;  %v5417_v31 = vsel %vm9939_vm10, %v9936_v5, %v5018_v2  ;;  %v9942_v49 = vrot.slane %v9936_v5, 1  ;;  %v9943_v29 = vld [vmem:[#allocation96_spill] sm:$0xff]  ;;  %v9947_v8 = vld [vmem:[#allocation221_spill] sm:$0xff]  ;;  %v9952_v28 = vrot.slane %v5022_v42, 1  ;;  %v9955_v2 = vld [vmem:[#allocation151_spill] sm:$0xff] }
 0x19b   : > { %v5410_v44 = vsel %vm9934_vm6, %v9931_v39, %v9930_v45  ;;  %9940 = vst [vmem:[#allocation121_spill] sm:$0xff] %v5417_v31  ;;  %vm9945_vm7 = vcmp.eq.f32.partialorder %v9943_v29, %v9944_v41  ;;  %v9948_v45 = vld [vmem:[#allocation13_spill] sm:$0xff]  ;;  %v9949_v39 = vld [vmem:[#allocation150_spill] sm:$0xff]  ;;  %v9953_v63 = vrot.slane %v9947_v8, 1 }
 0x19c   : > { %9935 = vst [vmem:[#allocation29_spill] sm:$0xff] %v5410_v44  ;;  %v5426_v55 = vsel %vm9945_vm7, %v9942_v49, %v9941_v11  ;;  %vm9950_vm6 = vcmp.eq.f32.partialorder %v9948_v45, %v9949_v39  ;;  %v9954_v31 = vld [vmem:[#allocation97_spill] sm:$0xff]  ;;  %v9958_v29 = vld [vmem:[#allocation222_spill] sm:$0xff]  ;;  %v9960_v11 = vld [vmem:[#allocation152_spill] sm:$0xff]  ;;  %v9963_v45 = vrot.slane %v5026_v56, 1 }
 0x19d   : > { %9946 = vst [vmem:[#allocation122_spill] sm:$0xff] %v5426_v55  ;;  %v5433_v53 = vsel %vm9950_vm6, %v9947_v8, %v5022_v42  ;;  %vm9956_vm10 = vcmp.eq.f32.partialorder %v9954_v31, %v9955_v2  ;;  %v9959_v49 = vld [vmem:[#allocation98_spill] sm:$0xff]  ;;  %v9964_v39 = vrot.slane %v9958_v29, 1  ;;  %v9966_v42 = vld [vmem:[#allocation153_spill] sm:$0xff]  ;;  %v9969_v31 = vld [vmem:[#allocation223_spill] sm:$0xff] }
 0x19e   : > { %9951 = vst [vmem:[#allocation123_spill] sm:$0xff] %v5433_v53  ;;  %v5442_v5 = vsel %vm9956_vm10, %v9953_v63, %v9952_v28  ;;  %vm9961_vm7 = vcmp.eq.f32.partialorder %v9959_v49, %v9960_v11  ;;  %v9965_v53 = vld [vmem:[#allocation99_spill] sm:$0xff]  ;;  %v9970_v63 = vld [vmem:[#allocation16_spill] sm:$0xff]  ;;  %v9971_v28 = vld [vmem:[#allocation154_spill] sm:$0xff]  ;;  %v9974_v49 = vrot.slane %v5030_v19, 1  ;;  %v9975_v11 = vrot.slane %v9969_v31, 1 }
 0x19f   : > { %9957 = vst [vmem:[#allocation215_spill] sm:$0xff] %v5442_v5  ;;  %v5449_v41 = vsel %vm9961_vm7, %v9958_v29, %v5026_v56  ;;  %vm9967_vm6 = vcmp.eq.f32.partialorder %v9965_v53, %v9966_v42  ;;  %vm9972_vm10 = vcmp.eq.f32.partialorder %v9970_v63, %v9971_v28  ;;  %v9977_v56 = vld [vmem:[#allocation155_spill] sm:$0xff]  ;;  %v9980_v53 = vld [vmem:[#allocation224_spill] sm:$0xff]  ;;  %v9985_v63 = vrot.slane %v5034_v9, 1  ;;  %v10225_v55 = vld [vmem:[#allocation134_spill] sm:$0xff] }
 0x1a0   : > { %9962 = vst [vmem:[#allocation8_spill] sm:$0xff] %v5449_v41  ;;  %v5458_v8 = vsel %vm9967_vm6, %v9964_v39, %v9963_v45  ;;  %v5465_v2 = vsel %vm9972_vm10, %v9969_v31, %v5030_v19  ;;  %v9976_v41 = vld [vmem:[#allocation100_spill] sm:$0xff]  ;;  %v9981_v39 = vld [vmem:[#allocation101_spill] sm:$0xff]  ;;  %v9986_v28 = vrot.slane %v9980_v53, 1  ;;  %vm9987_vm10 = vcmp.eq.f32.partialorder %v9794_v20, %v9793_v0  ;;  %v9989_v31 = vld [vmem:[#allocation243_spill] sm:$0xff] }
 0x1a1   : > { %9968 = vst [vmem:[#allocation88_spill] sm:$0xff] %v5458_v8  ;;  %vm9978_vm7 = vcmp.eq.f32.partialorder %v9976_v41, %v9977_v56  ;;  %v9982_v45 = vld [vmem:[#allocation156_spill] sm:$0xff]  ;;  %v9990_v41 = vld [vmem:[#allocation225_spill] sm:$0xff]  ;;  %v10002_v20 = vld [vmem:[#allocation226_spill] sm:$0xff]  ;;  %v10270_v8 = vmov 0 }
 0x1a2   : > { %9973 = vst [vmem:[#allocation216_spill] sm:$0xff] %v5465_v2  ;;  %v5474_v29 = vsel %vm9978_vm7, %v9975_v11, %v9974_v49  ;;  %vm9983_vm6 = vcmp.eq.f32.partialorder %v9981_v39, %v9982_v45  ;;  %v5490_v19 = vsel %vm9987_vm10, %v9986_v28, %v9985_v63  ;;  %v9991_v11 = vld [vmem:[#allocation17_spill] sm:$0xff]  ;;  %v9992_v49 = vld [vmem:[#allocation158_spill] sm:$0xff]  ;;  %v9995_v39 = vrot.slane %v9989_v31, 1  ;;  %v10003_v28 = vld [vmem:[#allocation104_spill] sm:$0xff] }
 0x1a3   : > { %9979 = vst [vmem:[#allocation89_spill] sm:$0xff] %v5474_v29  ;;  %v5481_v42 = vsel %vm9983_vm6, %v9980_v53, %v5034_v9  ;;  %vm9993_vm7 = vcmp.eq.f32.partialorder %v9991_v11, %v9992_v49  ;;  %v9996_v45 = vrot.slane %v9990_v41, 1  ;;  %v9998_v9 = vld [vmem:[#allocation159_spill] sm:$0xff]  ;;  %v10001_v29 = vld [vmem:[#allocation244_spill] sm:$0xff]  ;;  %v10008_v49 = vrot.slane %v10002_v20, 1  ;;  %v10237_v5 = vld [vmem:[#allocation38_spill] sm:$0xff] }
 0x1a4   : > { %9984 = vst [vmem:[#allocation90_spill] sm:$0xff] %v5481_v42  ;;  %v5497_v56 = vsel %vm9993_vm7, %v9990_v41, %v9989_v31  ;;  %v9997_v42 = vld [vmem:[#allocation103_spill] sm:$0xff]  ;;  %v10004_v63 = vld [vmem:[#allocation160_spill] sm:$0xff]  ;;  %v10007_v11 = vrot.slane %v10001_v29, 1  ;;  %vm10009_vm7 = vcmp.eq.f32.partialorder %v9802_v36, %v9801_v43  ;;  %v10275_v2 = vmov 0 }
 0x1a5   : > { %9988 = vst [vmem:[#allocation32_spill] sm:$0xff] %v5490_v19  ;;  %vm9999_vm6 = vcmp.eq.f32.partialorder %v9997_v42, %v9998_v9  ;;  %vm10005_vm10 = vcmp.eq.f32.partialorder %v10003_v28, %v10004_v63  ;;  %v10011_v42 = vld [vmem:[#allocation227_spill] sm:$0xff]  ;;  %v10017_v63 = vld [vmem:[#allocation106_spill] sm:$0xff]  ;;  %v10021_v9 = vld [vmem:[#allocation245_spill] sm:$0xff] }
 0x1a6   : > { %9994 = vst [vmem:[#allocation217_spill] sm:$0xff] %v5497_v56  ;;  %v5506_v53 = vsel %vm9999_vm6, %v9996_v45, %v9995_v39  ;;  %v5513_v0 = vsel %vm10005_vm10, %v10002_v20, %v10001_v29  ;;  %v5522_v31 = vsel %vm10009_vm7, %v10008_v49, %v10007_v11  ;;  %v10012_v45 = vld [vmem:[#allocation162_spill] sm:$0xff]  ;;  %v10015_v39 = vrot.slane %v5046_v14, 1  ;;  %v10018_v29 = vld [vmem:[#allocation163_spill] sm:$0xff]  ;;  %v10022_v36 = vld [vmem:[#allocation228_spill] sm:$0xff] }
 0x1a7   : > { %10000 = vst [vmem:[#allocation9_spill] sm:$0xff] %v5506_v53  ;;  %vm10013_vm6 = vcmp.eq.f32.partialorder %v9804_v51, %v10012_v45  ;;  %v10016_v28 = vrot.slane %v10011_v42, 1  ;;  %vm10019_vm10 = vcmp.eq.f32.partialorder %v10017_v63, %v10018_v29  ;;  %v10023_v49 = vld [vmem:[#allocation107_spill] sm:$0xff]  ;;  %v10024_v11 = vld [vmem:[#allocation164_spill] sm:$0xff]  ;;  %v10027_v51 = vrot.slane %v10021_v9, 1  ;;  %v10032_v63 = vld [vmem:[#allocation229_spill] sm:$0xff] }
 0x1a8   : > { %10006 = vst [vmem:[#allocation91_spill] sm:$0xff] %v5513_v0  ;;  %v5529_v41 = vsel %vm10013_vm6, %v10011_v42, %v5046_v14  ;;  %vm10025_vm7 = vcmp.eq.f32.partialorder %v10023_v49, %v10024_v11  ;;  %v10028_v45 = vrot.slane %v10022_v36, 1  ;;  %vm10029_vm6 = vcmp.eq.f32.partialorder %v9810_v6, %v9809_v13  ;;  %v10031_v42 = vld [vmem:[#allocation246_spill] sm:$0xff]  ;;  %v10037_v11 = vld [vmem:[#allocation109_spill] sm:$0xff]  ;;  %v10041_v29 = vld [vmem:[#allocation247_spill] sm:$0xff] }
 0x1a9   : > { %10010 = vst [vmem:[#allocation218_spill] sm:$0xff] %v5522_v31  ;;  %v5538_v20 = vsel %vm10019_vm10, %v10016_v28, %v10015_v39  ;;  %v5545_v43 = vsel %vm10025_vm7, %v10022_v36, %v10021_v9  ;;  %vm10033_vm10 = vcmp.eq.f32.partialorder %v9812_v17, %v9811_v22  ;;  %v10035_v28 = vrot.slane %v10031_v42, 1  ;;  %v10038_v9 = vld [vmem:[#allocation167_spill] sm:$0xff]  ;;  %v10042_v6 = vld [vmem:[#allocation230_spill] sm:$0xff]  ;;  %v10279_v53 = vld [vmem:[#allocation44_spill] sm:$0xff] }
 0x1aa   : > { %10014 = vst [vmem:[#allocation92_spill] sm:$0xff] %v5529_v41  ;;  %v5554_v14 = vsel %vm10029_vm6, %v10028_v45, %v10027_v51  ;;  %v5561_v39 = vsel %vm10033_vm10, %v10032_v63, %v10031_v42  ;;  %v10036_v49 = vrot.slane %v10032_v63, 1  ;;  %vm10039_vm7 = vcmp.eq.f32.partialorder %v10037_v11, %v10038_v9  ;;  %v10043_v45 = vld [vmem:[#allocation110_spill] sm:$0xff]  ;;  %v10044_v51 = vld [vmem:[#allocation168_spill] sm:$0xff]  ;;  %v10052_v11 = vld [vmem:[#allocation231_spill] sm:$0xff] }
 0x1ab   : > { %10020 = vst [vmem:[#allocation93_spill] sm:$0xff] %v5538_v20  ;;  %vm10045_vm6 = vcmp.eq.f32.partialorder %v10043_v45, %v10044_v51  ;;  %v10047_v17 = vrot.slane %v10041_v29, 1  ;;  %v10048_v22 = vrot.slane %v10042_v6, 1  ;;  %vm10049_vm10 = vcmp.eq.f32.partialorder %v9818_v21, %v9817_v18  ;;  %v10051_v63 = vld [vmem:[#allocation4_spill] sm:$0xff]  ;;  %v10061_v9 = vld [vmem:[#allocation82_spill] sm:$0xff]  ;;  %v10299_v20 = vld [vmem:[#allocation47_spill] sm:$0xff] }
 0x1ac   : > { %10026 = vst [vmem:[#allocation33_spill] sm:$0xff] %v5545_v43  ;;  %v5570_v36 = vsel %vm10039_vm7, %v10036_v49, %v10035_v28  ;;  %v5577_v13 = vsel %vm10045_vm6, %v10042_v6, %v10041_v29  ;;  %vm10053_vm7 = vcmp.eq.f32.partialorder %v9820_v32, %v9819_v61  ;;  %v10055_v49 = vrot.slane %v10051_v63, 1  ;;  %v10057_v51 = vld [vmem:[#allocation112_spill] sm:$0xff]  ;;  %v10058_v29 = vld [vmem:[#allocation195_spill] sm:$0xff]  ;;  %v10267_v19 = vld [vmem:[#allocation142_spill] sm:$0xff] }
 0x1ad   : > { %10030 = vst [vmem:[#allocation127_spill] sm:$0xff] %v5554_v14  ;;  %v5586_v42 = vsel %vm10049_vm10, %v10048_v22, %v10047_v17  ;;  %v5593_v28 = vsel %vm10053_vm7, %v10052_v11, %v10051_v63  ;;  %v10056_v45 = vrot.slane %v10052_v11, 1  ;;  %vm10059_vm6 = vcmp.eq.f32.partialorder %v10057_v51, %v10058_v29  ;;  %v10062_v21 = vld [vmem:[#allocation232_spill] sm:$0xff]  ;;  %v10063_v22 = vld [vmem:[#allocation113_spill] sm:$0xff]  ;;  %v10064_v17 = vld [vmem:[#allocation170_spill] sm:$0xff] }
 0x1ae   : > { %10034 = vst [vmem:[#allocation219_spill] sm:$0xff] %v5561_v39  ;;  %vm10065_vm10 = vcmp.eq.f32.partialorder %v10063_v22, %v10064_v17  ;;  %v10067_v32 = vrot.slane %v10061_v9, 1  ;;  %v10068_v61 = vrot.slane %v10062_v21, 1  ;;  %vm10069_vm7 = vcmp.eq.f32.partialorder %v9826_v50, %v9825_v59  ;;  %v10071_v11 = vld [vmem:[#allocation83_spill] sm:$0xff]  ;;  %v10072_v51 = vld [vmem:[#allocation233_spill] sm:$0xff]  ;;  %v10078_v50 = vld [vmem:[#allocation234_spill] sm:$0xff] }
 0x1af   : > { %10040 = vst [vmem:[#allocation12_spill] sm:$0xff] %v5570_v36  ;;  %v5602_v6 = vsel %vm10059_vm6, %v10056_v45, %v10055_v49  ;;  %v5609_v18 = vsel %vm10065_vm10, %v10062_v21, %v10061_v9  ;;  %v5625_v49 = vsel %vm1529_vm12, %v10072_v51, %v10071_v11  ;;  %v10074_v45 = vrot.slane %v10071_v11, 1  ;;  %v10077_v21 = vld [vmem:[#allocation84_spill] sm:$0xff]  ;;  %v10287_v31 = vld [vmem:[#allocation146_spill] sm:$0xff] }
 0x1b0   : > { %10046 = vst [vmem:[#allocation94_spill] sm:$0xff] %v5577_v13  ;;  %v5618_v63 = vsel %vm10069_vm7, %v10068_v61, %v10067_v32  ;;  %v10075_v22 = vrot.slane %v10072_v51, 1  ;;  %v5641_v61 = vsel %vm1531_vm14, %v10078_v50, %v10077_v21  ;;  %v10080_v26 = vrot.slane %v10077_v21, 1  ;;  %v10084_v51 = vld [vmem:[#allocation5_spill] sm:$0xff]  ;;  %v10307_v14 = vld [vmem:[#allocation150_spill] sm:$0xff] }
 0x1b1   : > { %10050 = vst [vmem:[#allocation220_spill] sm:$0xff] %v5586_v42  ;;  %v10081_v32 = vrot.slane %v10078_v50, 1  ;;  %vm10082_vm12 = vcmp.eq.f32.partialorder %v9834_v60, %v9833_v23  ;;  %v10087_v35 = vrot.slane %v10084_v51, 1  ;;  %v10090_v50 = vld [vmem:[#allocation85_spill] sm:$0xff]  ;;  %v10091_v60 = vld [vmem:[#allocation236_spill] sm:$0xff]  ;;  %vm10111_vm14 = vcmp.eq.f32.partialorder %v9888_v24, %v9887_v54  ;;  %v10319_v36 = vld [vmem:[#allocation50_spill] sm:$0xff] }
 0x1b2   : > { %10054 = vst [vmem:[#allocation95_spill] sm:$0xff] %v5593_v28  ;;  %v5634_v9 = vsel %vm1530_vm13, %v10075_v22, %v10074_v45  ;;  %v5657_v45 = vsel %vm1533_vm0, %v10085_v4, %v10084_v51  ;;  %v10088_v22 = vrot.slane %v10085_v4, 1  ;;  %v10093_v27 = vrot.slane %v10090_v50, 1  ;;  %v10096_v4 = vld [vmem:[#allocation86_spill] sm:$0xff]  ;;  %v10369_v42 = vld [vmem:[#allocation160_spill] sm:$0xff] }
 0x1b3   : > { %10060 = vst [vmem:[#allocation96_spill] sm:$0xff] %v5602_v6  ;;  %v5650_v11 = vsel %vm10082_vm12, %v10081_v32, %v10080_v26  ;;  %v5673_v26 = vsel %vm1535_vm15, %v10091_v60, %v10090_v50  ;;  %v10094_v32 = vrot.slane %v10091_v60, 1  ;;  %v10099_v58 = vrot.slane %v10096_v4, 1  ;;  %v10102_v60 = vld [vmem:[#allocation248_spill] sm:$0xff]  ;;  %v10329_v13 = vld [vmem:[#allocation154_spill] sm:$0xff]  ;;  %v10343_v6 = vld [vmem:[#allocation53_spill] sm:$0xff] }
 0x1b4   : > { %10066 = vst [vmem:[#allocation221_spill] sm:$0xff] %v5609_v18  ;;  %v5666_v21 = vsel %vm1534_vm1, %v10088_v22, %v10087_v35  ;;  %v5689_v35 = vsel %vm1537_vm3, %v10097_v12, %v10096_v4  ;;  %v10100_v22 = vrot.slane %v10097_v12, 1  ;;  %v10105_v57 = vrot.slane %v10102_v60, 1  ;;  %v10109_v12 = vld [vmem:[#allocation213_spill] sm:$0xff] }
 0x1b5   : > { %10070 = vst [vmem:[#allocation13_spill] sm:$0xff] %v5618_v63  ;;  %v5682_v51 = vsel %vm1536_vm2, %v10094_v32, %v10093_v27  ;;  %v5705_v27 = vsel %vm1539_vm5, %v10103_v30, %v10102_v60  ;;  %v10106_v32 = vrot.slane %v10103_v30, 1  ;;  %vm10107_vm13 = vcmp.eq.f32.partialorder %v9868_v48, %v9867_v25  ;;  %v10116_v60 = vld [vmem:[#allocation179_spill] sm:$0xff]  ;;  %v10120_v48 = vld [vmem:[#allocation240_spill] sm:$0xff] }
 0x1b6   : > { %10073 = vst [vmem:[#allocation97_spill] sm:$0xff] %v5625_v49  ;;  %v5698_v50 = vsel %vm1538_vm4, %v10100_v22, %v10099_v58  ;;  %v5721_v58 = vsel %vm10111_vm14, %v10110_v3, %v10109_v12  ;;  %v10113_v10 = vrot.slane %v10109_v12, 1  ;;  %v10114_v22 = vrot.slane %v10110_v3, 1  ;;  %v10128_v12 = vld [vmem:[#allocation181_spill] sm:$0xff]  ;;  %v10210_v49 = vld [vmem:[#allocation34_spill] sm:$0xff]  ;;  %v10213_v63 = vld [vmem:[#allocation132_spill] sm:$0xff] }
 0x1b7   : > { %10076 = vst [vmem:[#allocation222_spill] sm:$0xff] %v5634_v9  ;;  %v5714_v4 = vsel %vm10107_vm13, %v10106_v32, %v10105_v57  ;;  %vm10117_vm15 = vcmp.eq.f32.partialorder %v10115_v34, %v10116_v60  ;;  %v10121_v57 = vld [vmem:[#allocation125_spill] sm:$0xff]  ;;  %v10122_v32 = vld [vmem:[#allocation180_spill] sm:$0xff]  ;;  %v10125_v24 = vrot.slane %v10119_v37, 1  ;;  %v10126_v54 = vrot.slane %v10120_v48, 1 }
 0x1b8   : > { %10079 = vst [vmem:[#allocation98_spill] sm:$0xff] %v5641_v61  ;;  %v5730_v30 = vsel %vm10117_vm15, %v10114_v22, %v10113_v10  ;;  %vm10123_vm0 = vcmp.eq.f32.partialorder %v10121_v57, %v10122_v32  ;;  %vm10129_vm1 = vcmp.eq.f32.partialorder %v10127_v40, %v10128_v12  ;;  %v10132_v34 = vld [vmem:[#allocation241_spill] sm:$0xff]  ;;  %v10134_v22 = vrot.slane %v10131_v47, 1  ;;  %v10138_v32 = vld [vmem:[#allocation251_spill] sm:$0xff]  ;;  %v10139_v40 = vld [vmem:[#allocation242_spill] sm:$0xff] }
 0x1b9   : > { %10083 = vst [vmem:[#allocation99_spill] sm:$0xff] %v5650_v11  ;;  %v5737_v25 = vsel %vm10123_vm0, %v10120_v48, %v10119_v37  ;;  %v5746_v3 = vsel %vm10129_vm1, %v10126_v54, %v10125_v24  ;;  %v5753_v10 = vsel %vm1545_vm11, %v10132_v34, %v10131_v47  ;;  %v10135_v57 = vrot.slane %v10132_v34, 1  ;;  %v10145_v60 = vld [vmem:[#allocation129_spill] sm:$0xff]  ;;  %v10152_v54 = vld [vmem:[#allocation212_spill] sm:$0xff] }
 0x1ba   : > { %10086 = vst [vmem:[#allocation223_spill] sm:$0xff] %v5657_v45  ;;  %v5769_v12 = vsel %vm1547_vm8, %v10139_v40, %v10138_v32  ;;  %v10143_v62 = vrot.slane %v10138_v32, 1  ;;  %v10144_v33 = vrot.slane %v10139_v40, 1  ;;  %v10146_v47 = vld [vmem:[#allocation185_spill] sm:$0xff]  ;;  %v5790_v24 = vperm.slane %v10150_v38, %v10152_v54  ;;  %v10153_v32 = vld [vmem:[#allocation214_spill] sm:$0xff] }
 0x1bb   : > { %10089 = vst [vmem:[#allocation16_spill] sm:$0xff] %v5666_v21  ;;  %v5762_v48 = vsel %vm1546_vm9, %v10135_v57, %v10134_v22  ;;  %vm10147_vm2 = vcmp.eq.f32.partialorder %v10145_v60, %v10146_v47  ;;  %v5782_v22 = vperm.slane %v10150_v38, %v10149_v1  ;;  %v10151_v57 = vld [vmem:[#allocation211_spill] sm:$0xff]  ;;  %v5794_v40 = vperm.slane %v10150_v38, %v10153_v32  ;;  %v10154_v60 = vld [vmem:[#allocation192_spill] sm:$0xff] }
 0x1bc   : > { %10092 = vst [vmem:[#allocation100_spill] sm:$0xff] %v5673_v26  ;;  %v5778_v34 = vsel %vm10147_vm2, %v10144_v33, %v10143_v62  ;;  %v5786_v37 = vperm.slane %v10150_v38, %v10151_v57  ;;  %v5798_v33 = vperm.slane %v10154_v60, %v10149_v1  ;;  %v5802_v62 = vperm.slane %v10154_v60, %v10151_v57 }
 0x1bd   : > { %10095 = vst [vmem:[#allocation224_spill] sm:$0xff] %v5682_v51  ;;  %v5806_v47 = vperm.slane %v10154_v60, %v10152_v54  ;;  %v5810_v16 = vperm.slane %v10154_v60, %v10153_v32  ;;  %v5814_v38 = vperm.slane %v10155_v52, %v10149_v1  ;;  %v5818_v23 = vperm.slane %v10155_v52, %v10151_v57  ;;  %v10180_v51 = vld [vmem:[#allocation209_spill] sm:$0xff] }
 0x1be   : > { %10098 = vst [vmem:[#allocation101_spill] sm:$0xff] %v5689_v35  ;;  %v5822_v46 = vperm.slane %v10155_v52, %v10152_v54  ;;  %v5826_v7 = vperm.slane %v10155_v52, %v10153_v32  ;;  %v5830_v60 = vperm.slane %v10160_v15, %v10149_v1  ;;  %v5898_v26 = vperm.slane %v10180_v51, %v10151_v57 }
 0x1bf   : > { %10101 = vst [vmem:[#allocation243_spill] sm:$0xff] %v5698_v50  ;;  %v5902_v21 = vperm.slane %v10180_v51, %v10152_v54  ;;  %v5906_v45 = vperm.slane %v10180_v51, %v10153_v32  ;;  %v10290_v0 = vmov 0  ;;  %v10295_v56 = vmov 0 }
 0x1c0   : > { %10104 = vst [vmem:[#allocation225_spill] sm:$0xff] %v5705_v27  ;;  %v10310_v43 = vmov 0  ;;  %v10315_v41 = vmov 0  ;;  %v10332_v39 = vmov 0  ;;  %v10372_v28 = vmov 0 }
 0x1c1   : > { %10108 = vst [vmem:[#allocation17_spill] sm:$0xff] %v5714_v4  ;;  %v10175_v4 = vld [vmem:[#allocation208_spill] sm:$0xff] }
 0x1c2   : > { %10112 = vst [vmem:[#allocation103_spill] sm:$0xff] %v5721_v58  ;;  %v5882_v27 = vperm.slane %v10175_v4, %v10151_v57  ;;  %v5886_v50 = vperm.slane %v10175_v4, %v10152_v54  ;;  %v5890_v35 = vperm.slane %v10175_v4, %v10153_v32 }
 0x1c3   : > { %10118 = vst [vmem:[#allocation244_spill] sm:$0xff] %v5730_v30 }
 0x1c4   : > { %10124 = vst [vmem:[#allocation226_spill] sm:$0xff] %v5737_v25 }
 0x1c5   : > { %10130 = vst [vmem:[#allocation104_spill] sm:$0xff] %v5746_v3  ;;  %v10170_v3 = vld [vmem:[#allocation207_spill] sm:$0xff] }
 0x1c6   : > { %10133 = vst [vmem:[#allocation227_spill] sm:$0xff] %v5753_v10  ;;  %v10165_v10 = vld [vmem:[#allocation206_spill] sm:$0xff]  ;;  %v5866_v25 = vperm.slane %v10170_v3, %v10151_v57  ;;  %v5870_v30 = vperm.slane %v10170_v3, %v10152_v54  ;;  %v5874_v58 = vperm.slane %v10170_v3, %v10153_v32 }
 0x1c7   : > { %10137 = vst [vmem:[#allocation106_spill] sm:$0xff] %v5762_v48  ;;  %v5842_v48 = vperm.slane %v10160_v15, %v10153_v32  ;;  %v5846_v52 = vperm.slane %v10165_v10, %v10149_v1  ;;  %v5850_v59 = vperm.slane %v10165_v10, %v10151_v57  ;;  %v5854_v17 = vperm.slane %v10165_v10, %v10152_v54 }
 0x1c8   : > { %10142 = vst [vmem:[#allocation245_spill] sm:$0xff] %v5769_v12  ;;  %v5838_v12 = vperm.slane %v10160_v15, %v10152_v54  ;;  %v5858_v29 = vperm.slane %v10165_v10, %v10153_v32  ;;  %v5878_v10 = vperm.slane %v10175_v4, %v10149_v1  ;;  %v10185_v32 = vld [vmem:[#allocation102_spill] sm:$0xff]  ;;  %v10218_v4 = vld [vmem:[#allocation133_spill] sm:$0xff] }
 0x1c9   : > { %10148 = vst [vmem:[#allocation228_spill] sm:$0xff] %v5778_v34  ;;  %v5834_v34 = vperm.slane %v10160_v15, %v10151_v57  ;;  %v5862_v15 = vperm.slane %v10170_v3, %v10149_v1  ;;  %v5894_v3 = vperm.slane %v10180_v51, %v10149_v1  ;;  %v10208_v57 = vld [vmem:[#allocation131_spill] sm:$0xff]  ;;  %v10214_v51 = vrot.slane %v10213_v63, 7  ;;  %v10240_v63 = vld [vmem:[#allocation137_spill] sm:$0xff]  ;;  %v10497_v54 = vld [vmem:[#allocation26_spill] sm:$0xff] }
 0x1ca   : > { %10156 = vst [vmem:[#allocation107_spill] sm:$0xff] %v5814_v38  ;;  %v10209_v9 = vrot.slane %v10208_v57, 7  ;;  %v10247_v57 = vld [vmem:[#allocation138_spill] sm:$0xff] }
 0x1cb   : > { %10157 = vst [vmem:[#allocation246_spill] sm:$0xff] %v5818_v23  ;;  %v10549_v38 = vld [vmem:[#allocation30_spill] sm:$0xff] }
 0x1cc   : > { %10158 = vst [vmem:[#allocation229_spill] sm:$0xff] %v5822_v46  ;;  %vm5970_vm4 = vcmp.eq.f32.partialorder %v10210_v49, %v10209_v9  ;;  %v10555_v49 = vmov 0 }
 0x1cd   : > { %10159 = vst [vmem:[#allocation109_spill] sm:$0xff] %v5826_v7  ;;  %v10235_v7 = vld [vmem:[#allocation136_spill] sm:$0xff] }
 0x1ce   : > { %10161 = vst [vmem:[#allocation247_spill] sm:$0xff] %v5830_v60  ;;  %v10215_v60 = vld [vmem:[#allocation35_spill] sm:$0xff]  ;;  %v10236_v9 = vrot.slane %v10235_v7, 7  ;;  %v10262_v7 = vld [vmem:[#allocation141_spill] sm:$0xff] }
 0x1cf   : > { %10162 = vst [vmem:[#allocation230_spill] sm:$0xff] %v5834_v34  ;;  %v10205_v34 = vld [vmem:[#allocation2_spill] sm:$0xff]  ;;  %vm5977_vm5 = vcmp.eq.f32.partialorder %v10215_v60, %v10214_v51  ;;  %v10226_v51 = vrot.slane %v10225_v55, 7  ;;  %v10227_v60 = vld [vmem:[#allocation3_spill] sm:$0xff]  ;;  %v10241_v55 = vrot.slane %v10240_v63, 7  ;;  %v10467_v18 = vld [vmem:[#allocation245_spill] sm:$0xff] }
 0x1d0   : > { %10163 = vst [vmem:[#allocation110_spill] sm:$0xff] %v5838_v12  ;;  %v10203_v12 = vld [vmem:[#allocation130_spill] sm:$0xff]  ;;  %vm6009_vm6 = vcmp.eq.f32.partialorder %v10237_v5, %v10236_v9  ;;  %v10248_v9 = vrot.slane %v10247_v57, 7  ;;  %v10252_v63 = vld [vmem:[#allocation139_spill] sm:$0xff]  ;;  %v10263_v57 = vrot.slane %v10262_v7, 7 }
 0x1d1   : > { %10164 = vst [vmem:[#allocation4_spill] sm:$0xff] %v5842_v48  ;;  %v10204_v61 = vrot.slane %v10203_v12, 7  ;;  %v10219_v12 = vrot.slane %v10218_v4, 7  ;;  %vm5995_vm9 = vcmp.eq.f32.partialorder %v10227_v60, %v10226_v51  ;;  %v10230_v4 = vld [vmem:[#allocation135_spill] sm:$0xff]  ;;  %v10249_v5 = vld [vmem:[#allocation6_spill] sm:$0xff]  ;;  %v10536_v60 = vld [vmem:[#allocation177_spill] sm:$0xff] }
 0x1d2   : > { %10166 = vst [vmem:[#allocation231_spill] sm:$0xff] %v5846_v52  ;;  %v10201_v52 = vld [vmem:[#allocation87_spill] sm:$0xff]  ;;  %vm6027_vm7 = vcmp.eq.f32.partialorder %v10249_v5, %v10248_v9  ;;  %v10264_v9 = vld [vmem:[#allocation42_spill] sm:$0xff]  ;;  %v10560_v5 = vmov 0 }
 0x1d3   : > { %10167 = vst [vmem:[#allocation112_spill] sm:$0xff] %v5850_v59  ;;  %v10200_v59 = vld [vmem:[#allocation120_spill] sm:$0xff]  ;;  %vm5963_vm3 = vcmp.eq.f32.partialorder %v10205_v34, %v10204_v61  ;;  %v10242_v51 = vld [vmem:[#allocation39_spill] sm:$0xff]  ;;  %vm6048_vm14 = vcmp.eq.f32.partialorder %v10264_v9, %v10263_v57 }
 0x1d4   : > { %10168 = vst [vmem:[#allocation82_spill] sm:$0xff] %v5854_v17  ;;  %v10199_v17 = vld [vmem:[#allocation119_spill] sm:$0xff]  ;;  %v10220_v61 = vld [vmem:[#allocation36_spill] sm:$0xff]  ;;  %vm6016_vm10 = vcmp.eq.f32.partialorder %v10242_v51, %v10241_v55  ;;  %v10253_v55 = vrot.slane %v10252_v63, 7 }
 0x1d5   : > { %10169 = vst [vmem:[#allocation232_spill] sm:$0xff] %v5858_v29  ;;  %v10198_v29 = vld [vmem:[#allocation118_spill] sm:$0xff]  ;;  %vm5984_vm8 = vcmp.eq.f32.partialorder %v10220_v61, %v10219_v12  ;;  %v10231_v12 = vrot.slane %v10230_v4, 7  ;;  %v10232_v61 = vld [vmem:[#allocation37_spill] sm:$0xff]  ;;  %v10254_v51 = vld [vmem:[#allocation40_spill] sm:$0xff] }
 0x1d6   : > { %10171 = vst [vmem:[#allocation113_spill] sm:$0xff] %v5862_v15  ;;  %v10197_v15 = vld [vmem:[#allocation28_spill] sm:$0xff]  ;;  %vm6034_vm12 = vcmp.eq.f32.partialorder %v10254_v51, %v10253_v55  ;;  %v10272_v7 = vld [vmem:[#allocation143_spill] sm:$0xff]  ;;  %v10280_v51 = vmov 0 }
 0x1d7   : > { %10172 = vst [vmem:[#allocation83_spill] sm:$0xff] %v5866_v25  ;;  %v10196_v25 = vld [vmem:[#allocation117_spill] sm:$0xff]  ;;  %vm6002_vm11 = vcmp.eq.f32.partialorder %v10232_v61, %v10231_v12  ;;  %v10257_v4 = vld [vmem:[#allocation140_spill] sm:$0xff]  ;;  %v10273_v57 = vrot.slane %v10272_v7, 7  ;;  %v10274_v9 = vld [vmem:[#allocation43_spill] sm:$0xff] }
 0x1d8   : > { %10173 = vst [vmem:[#allocation233_spill] sm:$0xff] %v5870_v30  ;;  %v10186_v30 = vld [vmem:[#allocation105_spill] sm:$0xff]  ;;  %v10258_v61 = vrot.slane %v10257_v4, 7  ;;  %v10277_v63 = vld [vmem:[#allocation144_spill] sm:$0xff]  ;;  %v10523_v48 = vld [vmem:[#allocation27_spill] sm:$0xff] }
 0x1d9   : > { %10174 = vst [vmem:[#allocation84_spill] sm:$0xff] %v5874_v58  ;;  %v10187_v58 = vld [vmem:[#allocation20_spill] sm:$0xff]  ;;  %v10259_v12 = vld [vmem:[#allocation41_spill] sm:$0xff]  ;;  %vm6066_vm0 = vcmp.eq.f32.partialorder %v10274_v9, %v10273_v57  ;;  %v10278_v55 = vrot.slane %v10277_v63, 7  ;;  %v10300_v9 = vmov 0 }
 0x1da   : > { %10176 = vst [vmem:[#allocation234_spill] sm:$0xff] %v5878_v10  ;;  %v10188_v10 = vld [vmem:[#allocation108_spill] sm:$0xff]  ;;  %vm6041_vm13 = vcmp.eq.f32.partialorder %v10259_v12, %v10258_v61  ;;  %v10268_v61 = vrot.slane %v10267_v19, 7  ;;  %v10269_v12 = vld [vmem:[#allocation7_spill] sm:$0xff]  ;;  %v10276_v2 = vsel %vm6066_vm0, 4294967295, %v10275_v2  ;;  %v10282_v4 = vld [vmem:[#allocation145_spill] sm:$0xff] }
 0x1db   : > { %10177 = vst [vmem:[#allocation5_spill] sm:$0xff] %v5882_v27  ;;  %v10189_v27 = vld [vmem:[#allocation21_spill] sm:$0xff]  ;;  %vm6073_vm1 = vcmp.eq.f32.partialorder %v10279_v53, %v10278_v55  ;;  %v10283_v19 = vrot.slane %v10282_v4, 7  ;;  %v10288_v55 = vrot.slane %v10287_v31, 7  ;;  %v10289_v53 = vld [vmem:[#allocation10_spill] sm:$0xff]  ;;  %v10292_v4 = vld [vmem:[#allocation147_spill] sm:$0xff] }
 0x1dc   : > { %10178 = vst [vmem:[#allocation235_spill] sm:$0xff] %v5886_v50  ;;  %v10190_v50 = vld [vmem:[#allocation111_spill] sm:$0xff]  ;;  %vm6059_vm15 = vcmp.eq.f32.partialorder %v10269_v12, %v10268_v61  ;;  %v10281_v51 = vsel %vm6073_vm1, 4294967295, %v10280_v51  ;;  %v10284_v61 = vld [vmem:[#allocation45_spill] sm:$0xff]  ;;  %v10285_v12 = vmov 0  ;;  %v10297_v7 = vld [vmem:[#allocation148_spill] sm:$0xff] }
 0x1dd   : > { %10179 = vst [vmem:[#allocation85_spill] sm:$0xff] %v5890_v35  ;;  %v10191_v35 = vld [vmem:[#allocation24_spill] sm:$0xff]  ;;  %v10271_v8 = vsel %vm6059_vm15, 4294967295, %v10270_v8  ;;  %vm6080_vm2 = vcmp.eq.f32.partialorder %v10284_v61, %v10283_v19  ;;  %vm6091_vm0 = vcmp.eq.f32.partialorder %v10289_v53, %v10288_v55  ;;  %v10293_v19 = vrot.slane %v10292_v4, 7  ;;  %v10294_v61 = vld [vmem:[#allocation46_spill] sm:$0xff]  ;;  %v10302_v63 = vld [vmem:[#allocation149_spill] sm:$0xff] }
 0x1de   : > { %10181 = vst [vmem:[#allocation236_spill] sm:$0xff] %v5894_v3  ;;  %v10192_v3 = vld [vmem:[#allocation114_spill] sm:$0xff]  ;;  %v10286_v12 = vsel %vm6080_vm2, 4294967295, %v10285_v12  ;;  %v10291_v0 = vsel %vm6091_vm0, 4294967295, %v10290_v0  ;;  %v10298_v57 = vrot.slane %v10297_v7, 7  ;;  %v10303_v31 = vrot.slane %v10302_v63, 7 }
 0x1df   : > { %10182 = vst [vmem:[#allocation86_spill] sm:$0xff] %v5898_v26  ;;  %v10193_v26 = vld [vmem:[#allocation25_spill] sm:$0xff]  ;;  %vm6098_vm1 = vcmp.eq.f32.partialorder %v10294_v61, %v10293_v19  ;;  %v10304_v55 = vld [vmem:[#allocation48_spill] sm:$0xff]  ;;  %v10305_v53 = vmov 0  ;;  %v10312_v63 = vld [vmem:[#allocation151_spill] sm:$0xff]  ;;  %v10320_v61 = vmov 0 }
 0x1e0   : > { %10183 = vst [vmem:[#allocation237_spill] sm:$0xff] %v5902_v21  ;;  %v10194_v21 = vld [vmem:[#allocation115_spill] sm:$0xff]  ;;  %v10296_v56 = vsel %vm6098_vm1, 4294967295, %v10295_v56  ;;  %vm6105_vm2 = vcmp.eq.f32.partialorder %v10299_v20, %v10298_v57  ;;  %vm6112_vm15 = vcmp.eq.f32.partialorder %v10304_v55, %v10303_v31  ;;  %v10308_v57 = vrot.slane %v10307_v14, 7  ;;  %v10314_v55 = vld [vmem:[#allocation49_spill] sm:$0xff]  ;;  %v10317_v4 = vld [vmem:[#allocation152_spill] sm:$0xff] }
 0x1e1   : > { %10184 = vst [vmem:[#allocation248_spill] sm:$0xff] %v5906_v45  ;;  %v10195_v45 = vld [vmem:[#allocation116_spill] sm:$0xff]  ;;  %v10301_v9 = vsel %vm6105_vm2, 4294967295, %v10300_v9  ;;  %v10306_v53 = vsel %vm6112_vm15, 4294967295, %v10305_v53  ;;  %v10309_v20 = vld [vmem:[#allocation11_spill] sm:$0xff]  ;;  %v10313_v31 = vrot.slane %v10312_v63, 7 }
 0x1e2   : > { %vm6123_vm1 = vcmp.eq.f32.partialorder %v10309_v20, %v10308_v57  ;;  %v10318_v19 = vrot.slane %v10317_v4, 7  ;;  %v10322_v7 = vld [vmem:[#allocation153_spill] sm:$0xff]  ;;  %v10324_v57 = vld [vmem:[#allocation51_spill] sm:$0xff]  ;;  %v10325_v20 = vmov 0  ;;  %v10341_v63 = vld [vmem:[#allocation156_spill] sm:$0xff] }
 0x1e3   : > { %v10311_v43 = vsel %vm6123_vm1, 4294967295, %v10310_v43  ;;  %vm6130_vm2 = vcmp.eq.f32.partialorder %v10314_v55, %v10313_v31  ;;  %v10323_v14 = vrot.slane %v10322_v7, 7  ;;  %v10335_v7 = vld [vmem:[#allocation155_spill] sm:$0xff]  ;;  %v10342_v31 = vrot.slane %v10341_v63, 7  ;;  %v10347_v4 = vld [vmem:[#allocation157_spill] sm:$0xff] }
 0x1e4   : > { %v10316_v41 = vsel %vm6130_vm2, 4294967295, %v10315_v41  ;;  %vm6137_vm15 = vcmp.eq.f32.partialorder %v10319_v36, %v10318_v19  ;;  %v10330_v19 = vrot.slane %v10329_v13, 7  ;;  %v10331_v36 = vld [vmem:[#allocation14_spill] sm:$0xff]  ;;  %v10344_v55 = vmov 0  ;;  %v10375_v63 = vld [vmem:[#allocation161_spill] sm:$0xff]  ;;  %v10794_v11 = vld [vmem:[#allocation235_spill] sm:$0xff] }
 0x1e5   : > { %v10321_v61 = vsel %vm6137_vm15, 4294967295, %v10320_v61  ;;  %vm6144_vm0 = vcmp.eq.f32.partialorder %v10324_v57, %v10323_v14  ;;  %v10336_v14 = vrot.slane %v10335_v7, 7  ;;  %v10337_v57 = vld [vmem:[#allocation52_spill] sm:$0xff]  ;;  %v10348_v13 = vrot.slane %v10347_v4, 7  ;;  %v10363_v4 = vld [vmem:[#allocation159_spill] sm:$0xff] }
 0x1e6   : > { %v10326_v20 = vsel %vm6144_vm0, 4294967295, %v10325_v20  ;;  %vm6155_vm2 = vcmp.eq.f32.partialorder %v10331_v36, %v10330_v19  ;;  %vm6169_vm0 = vcmp.eq.f32.partialorder %v10343_v6, %v10342_v31  ;;  %v10349_v19 = vld [vmem:[#allocation54_spill] sm:$0xff]  ;;  %v10350_v36 = vmov 0  ;;  %v10359_v6 = vld [vmem:[#allocation15_spill] sm:$0xff]  ;;  %v10810_v46 = vld [vmem:[#allocation236_spill] sm:$0xff] }
 0x1e7   : > { %10327 = vst [vmem:[#allocation238_spill] sm:$0xff] %v10326_v20  ;;  %v10333_v39 = vsel %vm6155_vm2, 4294967295, %v10332_v39  ;;  %vm6162_vm15 = vcmp.eq.f32.partialorder %v10337_v57, %v10336_v14  ;;  %v10338_v20 = vmov 0  ;;  %v10345_v55 = vsel %vm6169_vm0, 4294967295, %v10344_v55  ;;  %v10371_v14 = vld [vmem:[#allocation56_spill] sm:$0xff] }
 0x1e8   : > { %10334 = vst [vmem:[#allocation213_spill] sm:$0xff] %v10333_v39  ;;  %v10339_v20 = vsel %vm6162_vm15, 4294967295, %v10338_v20  ;;  %vm6176_vm1 = vcmp.eq.f32.partialorder %v10349_v19, %v10348_v13  ;;  %v10357_v39 = vld [vmem:[#allocation158_spill] sm:$0xff]  ;;  %v10364_v13 = vrot.slane %v10363_v4, 7  ;;  %v10365_v19 = vld [vmem:[#allocation55_spill] sm:$0xff]  ;;  %v10370_v57 = vrot.slane %v10369_v42, 7 }
 0x1e9   : > { %10340 = vst [vmem:[#allocation239_spill] sm:$0xff] %v10339_v20  ;;  %v10351_v36 = vsel %vm6176_vm1, 4294967295, %v10350_v36  ;;  %v10358_v31 = vrot.slane %v10357_v39, 7  ;;  %v10376_v39 = vrot.slane %v10375_v63, 7  ;;  %v10391_v63 = vld [vmem:[#allocation163_spill] sm:$0xff]  ;;  %v10397_v20 = vld [vmem:[#allocation164_spill] sm:$0xff] }
 0x1ea   : > { %10346 = vst [vmem:[#allocation124_spill] sm:$0xff] %v10345_v55  ;;  %v10360_v55 = vmov 0  ;;  %vm6194_vm0 = vcmp.eq.f32.partialorder %v10365_v19, %v10364_v13  ;;  %vm6201_vm1 = vcmp.eq.f32.partialorder %v10371_v14, %v10370_v57  ;;  %v10387_v14 = vld [vmem:[#allocation18_spill] sm:$0xff]  ;;  %v10398_v19 = vrot.slane %v10397_v20, 7  ;;  %v10399_v13 = vld [vmem:[#allocation59_spill] sm:$0xff]  ;;  %v10403_v42 = vld [vmem:[#allocation165_spill] sm:$0xff] }
 0x1eb   : > { %10352 = vst [vmem:[#allocation249_spill] sm:$0xff] %v10351_v36  ;;  %vm6187_vm15 = vcmp.eq.f32.partialorder %v10359_v6, %v10358_v31  ;;  %v10366_v36 = vmov 0  ;;  %v10373_v28 = vsel %vm6201_vm1, 4294967295, %v10372_v28  ;;  %v10377_v31 = vld [vmem:[#allocation57_spill] sm:$0xff]  ;;  %v10378_v6 = vmov 0  ;;  %v10431_v20 = vld [vmem:[#allocation194_spill] sm:$0xff] }
 0x1ec   : > { %v10361_v55 = vsel %vm6187_vm15, 4294967295, %v10360_v55  ;;  %v10367_v36 = vsel %vm6194_vm0, 4294967295, %v10366_v36  ;;  %10374 = vst [vmem:[#allocation126_spill] sm:$0xff] %v10373_v28  ;;  %vm6208_vm2 = vcmp.eq.f32.partialorder %v10377_v31, %v10376_v39  ;;  %v10388_v28 = vmov 0  ;;  %v10393_v31 = vld [vmem:[#allocation58_spill] sm:$0xff] }
 0x1ed   : > { %10362 = vst [vmem:[#allocation240_spill] sm:$0xff] %v10361_v55  ;;  %v10379_v6 = vsel %vm6208_vm2, 4294967295, %v10378_v6  ;;  %v10385_v55 = vld [vmem:[#allocation162_spill] sm:$0xff]  ;;  %v10392_v39 = vrot.slane %v10391_v63, 7  ;;  %vm6233_vm2 = vcmp.eq.f32.partialorder %v10399_v13, %v10398_v19  ;;  %v10400_v7 = vmov 0  ;;  %v10415_v13 = vld [vmem:[#allocation19_spill] sm:$0xff] }
 0x1ee   : > { %10368 = vst [vmem:[#allocation125_spill] sm:$0xff] %v10367_v36  ;;  %v10386_v57 = vrot.slane %v10385_v55, 7  ;;  %v10401_v7 = vsel %vm6233_vm2, 4294967295, %v10400_v7  ;;  %v10404_v55 = vrot.slane %v10403_v42, 7  ;;  %v10419_v42 = vld [vmem:[#allocation167_spill] sm:$0xff]  ;;  %v10425_v36 = vld [vmem:[#allocation168_spill] sm:$0xff] }
 0x1ef   : > { %10380 = vst [vmem:[#allocation250_spill] sm:$0xff] %v10379_v6  ;;  %vm6226_vm1 = vcmp.eq.f32.partialorder %v10393_v31, %v10392_v39  ;;  %v10394_v6 = vmov 0  ;;  %v10426_v31 = vrot.slane %v10425_v36, 7  ;;  %v10427_v39 = vld [vmem:[#allocation62_spill] sm:$0xff]  ;;  %v10428_v4 = vmov 0  ;;  %v10459_v36 = vld [vmem:[#allocation196_spill] sm:$0xff] }
 0x1f0   : > { %vm6219_vm0 = vcmp.eq.f32.partialorder %v10387_v14, %v10386_v57  ;;  %v10395_v6 = vsel %vm6226_vm1, 4294967295, %v10394_v6  ;;  %10402 = vst [vmem:[#allocation242_spill] sm:$0xff] %v10401_v7  ;;  %v10405_v57 = vld [vmem:[#allocation60_spill] sm:$0xff]  ;;  %v10406_v14 = vmov 0  ;;  %v10416_v7 = vmov 0 }
 0x1f1   : > { %v10389_v28 = vsel %vm6219_vm0, 4294967295, %v10388_v28  ;;  %10396 = vst [vmem:[#allocation251_spill] sm:$0xff] %v10395_v6  ;;  %vm6240_vm15 = vcmp.eq.f32.partialorder %v10405_v57, %v10404_v55  ;;  %v10420_v55 = vrot.slane %v10419_v42, 7  ;;  %v10421_v57 = vld [vmem:[#allocation61_spill] sm:$0xff]  ;;  %v10453_v6 = vld [vmem:[#allocation170_spill] sm:$0xff]  ;;  %v10456_v63 = vmov 0 }
 0x1f2   : > { %10390 = vst [vmem:[#allocation241_spill] sm:$0xff] %v10389_v28  ;;  %v10407_v14 = vsel %vm6240_vm15, 4294967295, %v10406_v14  ;;  %v10413_v28 = vld [vmem:[#allocation166_spill] sm:$0xff]  ;;  %vm6265_vm15 = vcmp.eq.f32.partialorder %v10427_v39, %v10426_v31 }
 0x1f3   : > { %10408 = vst [vmem:[#allocation128_spill] sm:$0xff] %v10407_v14  ;;  %v10414_v19 = vrot.slane %v10413_v28, 7  ;;  %vm6258_vm2 = vcmp.eq.f32.partialorder %v10421_v57, %v10420_v55  ;;  %v10422_v14 = vmov 0  ;;  %v10429_v4 = vsel %vm6265_vm15, 4294967295, %v10428_v4  ;;  %v10443_v39 = vld [vmem:[#allocation22_spill] sm:$0xff]  ;;  %v10455_v55 = vld [vmem:[#allocation65_spill] sm:$0xff] }
 0x1f4   : > { %v10423_v14 = vsel %vm6258_vm2, 4294967295, %v10422_v14  ;;  %10430 = vst [vmem:[#allocation192_spill] sm:$0xff] %v10429_v4  ;;  %v10432_v28 = vrot.slane %v10431_v20, 7  ;;  %v10444_v4 = vmov 0  ;;  %v10447_v20 = vld [vmem:[#allocation195_spill] sm:$0xff]  ;;  %v10454_v57 = vrot.slane %v10453_v6, 7 }
 0x1f5   : > { %vm6251_vm1 = vcmp.eq.f32.partialorder %v10415_v13, %v10414_v19  ;;  %10424 = vst [vmem:[#allocation204_spill] sm:$0xff] %v10423_v14  ;;  %v10433_v19 = vld [vmem:[#allocation63_spill] sm:$0xff]  ;;  %v10434_v13 = vmov 0  ;;  %v10479_v14 = vld [vmem:[#allocation172_spill] sm:$0xff]  ;;  %v10484_v6 = vld [vmem:[#allocation198_spill] sm:$0xff] }
 0x1f6   : > { %v10417_v7 = vsel %vm6251_vm1, 4294967295, %v10416_v7  ;;  %vm6272_vm0 = vcmp.eq.f32.partialorder %v10433_v19, %v10432_v28  ;;  %v10448_v28 = vrot.slane %v10447_v20, 7  ;;  %v10449_v19 = vld [vmem:[#allocation64_spill] sm:$0xff]  ;;  %v10465_v20 = vld [vmem:[#allocation227_spill] sm:$0xff] }
 0x1f7   : > { %10418 = vst [vmem:[#allocation129_spill] sm:$0xff] %v10417_v7  ;;  %v10435_v13 = vsel %vm6272_vm0, 4294967295, %v10434_v13  ;;  %v10441_v7 = vld [vmem:[#allocation169_spill] sm:$0xff]  ;;  %vm6297_vm0 = vcmp.eq.f32.partialorder %v10455_v55, %v10454_v57  ;;  %v10471_v55 = vld [vmem:[#allocation23_spill] sm:$0xff] }
 0x1f8   : > { %10436 = vst [vmem:[#allocation193_spill] sm:$0xff] %v10435_v13  ;;  %v10442_v31 = vrot.slane %v10441_v7, 7  ;;  %vm6290_vm15 = vcmp.eq.f32.partialorder %v10449_v19, %v10448_v28  ;;  %v10450_v13 = vmov 0  ;;  %v10457_v63 = vsel %vm6297_vm0, 4294967295, %v10456_v63  ;;  %v10481_v28 = vld [vmem:[#allocation68_spill] sm:$0xff] }
 0x1f9   : > { %v10451_v13 = vsel %vm6290_vm15, 4294967295, %v10450_v13  ;;  %10458 = vst [vmem:[#allocation207_spill] sm:$0xff] %v10457_v63  ;;  %v10460_v7 = vrot.slane %v10459_v36, 7  ;;  %v10474_v36 = vld [vmem:[#allocation197_spill] sm:$0xff]  ;;  %v10480_v19 = vrot.slane %v10479_v14, 7 }
 0x1fa   : > { %vm6283_vm2 = vcmp.eq.f32.partialorder %v10443_v39, %v10442_v31  ;;  %10452 = vst [vmem:[#allocation206_spill] sm:$0xff] %v10451_v13  ;;  %v10461_v31 = vld [vmem:[#allocation66_spill] sm:$0xff]  ;;  %v10462_v39 = vmov 0  ;;  %v10468_v13 = vld [vmem:[#allocation228_spill] sm:$0xff] }
 0x1fb   : > { %v10445_v4 = vsel %vm6283_vm2, 4294967295, %v10444_v4  ;;  %vm6304_vm1 = vcmp.eq.f32.partialorder %v10461_v31, %v10460_v7  ;;  %v10475_v7 = vrot.slane %v10474_v36, 7  ;;  %v10476_v31 = vld [vmem:[#allocation67_spill] sm:$0xff]  ;;  %v10489_v36 = vrot.slane %v10185_v32, 7 }
 0x1fc   : > { %10446 = vst [vmem:[#allocation205_spill] sm:$0xff] %v10445_v4  ;;  %v10463_v39 = vsel %vm6304_vm1, 4294967295, %v10462_v39  ;;  %v10469_v4 = vld [vmem:[#allocation171_spill] sm:$0xff]  ;;  %vm6329_vm1 = vcmp.eq.f32.partialorder %v10481_v28, %v10480_v19  ;;  %v10491_v19 = vrot.slane %v10186_v30, 7 }
 0x1fd   : > { %10464 = vst [vmem:[#allocation208_spill] sm:$0xff] %v10463_v39  ;;  %v10470_v57 = vrot.slane %v10469_v4, 7  ;;  %vm6322_vm0 = vcmp.eq.f32.partialorder %v10476_v31, %v10475_v7  ;;  %v10485_v4 = vrot.slane %v10484_v6, 7  ;;  %v10490_v7 = vrot.slane %v5782_v22, 7  ;;  %v10778_v39 = vld [vmem:[#allocation234_spill] sm:$0xff] }
 0x1fe   : > { %v6353_v28 = vsel %vm5970_vm4, %v5782_v22, %v10491_v19  ;;  %v10494_v6 = vrot.slane %v10188_v10, 7  ;;  %v10502_v19 = vld [vmem:[#allocation70_spill] sm:$0xff] }
 0x1ff   : > { %vm6315_vm15 = vcmp.eq.f32.partialorder %v10471_v55, %v10470_v57  ;;  %v10486_v57 = vld [vmem:[#allocation69_spill] sm:$0xff]  ;;  %v6346_v31 = vsel %vm5963_vm3, %v10490_v7, %v10489_v36  ;;  %v10505_v10 = vld [vmem:[#allocation174_spill] sm:$0xff] }
 0x200   : > { %vm6336_vm2 = vcmp.eq.f32.partialorder %v10486_v57, %v10485_v4  ;;  %v10492_v4 = vrot.slane %v10187_v58, 7  ;;  %v10493_v57 = vrot.slane %v5786_v37, 7  ;;  %v6368_v1 = vsel %vm5984_vm8, %v5786_v37, %v10494_v6  ;;  %v10495_v36 = vld [vmem:[#allocation173_spill] sm:$0xff]  ;;  %v10500_v58 = vld [vmem:[#allocation199_spill] sm:$0xff]  ;;  %v10510_v37 = vld [vmem:[#allocation200_spill] sm:$0xff] }
 0x201   : > { %v10496_v30 = vrot.slane %v10495_v36, 7  ;;  %v10501_v7 = vrot.slane %v10500_v58, 7  ;;  %v10511_v34 = vrot.slane %v10510_v37, 7  ;;  %v10515_v58 = vrot.slane %v10189_v27, 7  ;;  %v10659_v36 = vld [vmem:[#allocation32_spill] sm:$0xff]  ;;  %v10786_v55 = vld [vmem:[#allocation5_spill] sm:$0xff] }
 0x202   : > { %v6361_v32 = vsel %vm5977_vm5, %v10493_v57, %v10492_v4  ;;  %v10506_v57 = vrot.slane %v10505_v10, 7  ;;  %v10507_v4 = vld [vmem:[#allocation71_spill] sm:$0xff]  ;;  %v10520_v37 = vrot.slane %v10192_v3, 7  ;;  %v10531_v3 = vld [vmem:[#allocation202_spill] sm:$0xff]  ;;  %v10660_v14 = vrot.slane %v10659_v36, 7 }
 0x203   : > { %vm6373_vm3 = vcmp.eq.f32.partialorder %v10497_v54, %v10496_v30  ;;  %vm6380_vm4 = vcmp.eq.f32.partialorder %v10502_v19, %v10501_v7  ;;  %v10512_v30 = vld [vmem:[#allocation72_spill] sm:$0xff]  ;;  %v10516_v7 = vrot.slane %v5790_v24, 7  ;;  %v10676_v36 = vld [vmem:[#allocation91_spill] sm:$0xff]  ;;  %v10802_v54 = vld [vmem:[#allocation85_spill] sm:$0xff] }
 0x204   : > { %vm6387_vm5 = vcmp.eq.f32.partialorder %v10507_v4, %v10506_v57  ;;  %vm6394_vm8 = vcmp.eq.f32.partialorder %v10512_v30, %v10511_v34  ;;  %v10517_v57 = vrot.slane %v10190_v50, 7  ;;  %v10518_v34 = vrot.slane %v10191_v35, 7  ;;  %v10521_v50 = vld [vmem:[#allocation201_spill] sm:$0xff]  ;;  %v10526_v35 = vld [vmem:[#allocation176_spill] sm:$0xff] }
 0x205   : > { %v6404_v19 = vsel %vm5995_vm9, %v10516_v7, %v10515_v58  ;;  %v10519_v30 = vrot.slane %v5794_v40, 7  ;;  %v6426_v23 = vsel %vm6016_vm10, %v5794_v40, %v10520_v37  ;;  %v10522_v58 = vrot.slane %v10521_v50, 7  ;;  %v10647_v50 = vld [vmem:[#allocation89_spill] sm:$0xff] }
 0x206   : > { %v6411_v4 = vsel %vm6002_vm11, %v5790_v24, %v10517_v57  ;;  %v10527_v7 = vrot.slane %v10526_v35, 7  ;;  %v10528_v57 = vld [vmem:[#allocation73_spill] sm:$0xff]  ;;  %v10537_v37 = vrot.slane %v10536_v60, 7  ;;  %v10541_v35 = vrot.slane %v10193_v26, 7 }
 0x207   : > { %v6419_v27 = vsel %vm6009_vm6, %v10519_v30, %v10518_v34  ;;  %vm6431_vm9 = vcmp.eq.f32.partialorder %v10523_v48, %v10522_v58  ;;  %v10532_v30 = vrot.slane %v10531_v3, 7  ;;  %v10533_v34 = vld [vmem:[#allocation74_spill] sm:$0xff]  ;;  %v10538_v58 = vld [vmem:[#allocation75_spill] sm:$0xff]  ;;  %v10546_v60 = vrot.slane %v10196_v25, 7  ;;  %v10557_v25 = vld [vmem:[#allocation180_spill] sm:$0xff] }
 0x208   : > { %vm6438_vm11 = vcmp.eq.f32.partialorder %v10528_v57, %v10527_v7  ;;  %vm6452_vm10 = vcmp.eq.f32.partialorder %v10538_v58, %v10537_v37  ;;  %v10542_v7 = vrot.slane %v5798_v33, 7  ;;  %v10544_v37 = vrot.slane %v10195_v45, 7  ;;  %v10552_v45 = vld [vmem:[#allocation179_spill] sm:$0xff]  ;;  %v10820_v48 = vld [vmem:[#allocation86_spill] sm:$0xff] }
 0x209   : > { %vm6445_vm6 = vcmp.eq.f32.partialorder %v10533_v34, %v10532_v30  ;;  %v10543_v30 = vrot.slane %v10194_v21, 7  ;;  %v10545_v58 = vrot.slane %v5802_v62, 7  ;;  %v6484_v44 = vsel %vm6048_vm14, %v5802_v62, %v10546_v60  ;;  %v10547_v21 = vld [vmem:[#allocation178_spill] sm:$0xff]  ;;  %v10562_v62 = vld [vmem:[#allocation181_spill] sm:$0xff] }
 0x20a   : > { %v6462_v57 = vsel %vm6027_vm7, %v10542_v7, %v10541_v35  ;;  %v10548_v35 = vrot.slane %v10547_v21, 7  ;;  %v10553_v7 = vrot.slane %v10552_v45, 7  ;;  %v10563_v60 = vrot.slane %v10562_v62, 7  ;;  %v10615_v21 = vld [vmem:[#allocation122_spill] sm:$0xff] }
 0x20b   : > { %v6469_v34 = vsel %vm6034_vm12, %v5798_v33, %v10543_v30  ;;  %v6477_v26 = vsel %vm6041_vm13, %v10545_v58, %v10544_v37  ;;  %v10550_v33 = vmov 0  ;;  %v10554_v30 = vld [vmem:[#allocation76_spill] sm:$0xff]  ;;  %v10558_v58 = vrot.slane %v10557_v25, 7  ;;  %v10559_v37 = vld [vmem:[#allocation77_spill] sm:$0xff] }
 0x20c   : > { %vm6489_vm7 = vcmp.eq.f32.partialorder %v10549_v38, %v10548_v35  ;;  %vm6496_vm12 = vcmp.eq.f32.partialorder %v10554_v30, %v10553_v7  ;;  %v10564_v35 = vld [vmem:[#allocation78_spill] sm:$0xff]  ;;  %v10565_v38 = vmov 0  ;;  %v10567_v45 = vrot.slane %v10197_v15, 7 }
 0x20d   : > { %v10551_v33 = vsel %vm6489_vm7, 4294967295, %v10550_v33  ;;  %v10556_v49 = vsel %vm6496_vm12, 4294967295, %v10555_v49  ;;  %vm6503_vm13 = vcmp.eq.f32.partialorder %v10559_v37, %v10558_v58  ;;  %vm6510_vm14 = vcmp.eq.f32.partialorder %v10564_v35, %v10563_v60 }
 0x20e   : > { %v10561_v5 = vsel %vm6503_vm13, 4294967295, %v10560_v5  ;;  %v10566_v38 = vsel %vm6510_vm14, 4294967295, %v10565_v38  ;;  %v10568_v7 = vrot.slane %v5806_v47, 7  ;;  %vm10569_vm12 = vnez %v10271_v8 }
 0x20f   : > { %v10570_v58 = vrot.slane %v10198_v29, 7  ;;  %vm10571_vm13 = vnez %v10276_v2  ;;  %v10573_v60 = vrot.slane %v10199_v17, 7  ;;  %v10574_v35 = vrot.slane %v5810_v16, 7  ;;  %v10580_v29 = vld [vmem:[#allocation182_spill] sm:$0xff]  ;;  %v10582_v2 = vld [vmem:[#allocation31_spill] sm:$0xff] }
 0x210   : > { %v6520_v30 = vsel %vm10569_vm12, %v10568_v7, %v10567_v45  ;;  %vm10575_vm14 = vnez %v10281_v51  ;;  %v10577_v62 = vrot.slane %v10200_v59, 7  ;;  %vm10578_vm12 = vnez %v10286_v12  ;;  %v10585_v17 = vld [vmem:[#allocation183_spill] sm:$0xff]  ;;  %v10590_v59 = vld [vmem:[#allocation184_spill] sm:$0xff]  ;;  %v10595_v12 = vld [vmem:[#allocation185_spill] sm:$0xff] }
 0x211   : > { %v6527_v37 = vsel %vm10571_vm13, %v5806_v47, %v10570_v58  ;;  %v6535_v15 = vsel %vm10575_vm14, %v10574_v35, %v10573_v60  ;;  %v10581_v45 = vrot.slane %v10580_v29, 7  ;;  %v10586_v7 = vrot.slane %v10585_v17, 7  ;;  %v10587_v58 = vld [vmem:[#allocation79_spill] sm:$0xff]  ;;  %v10592_v60 = vld [vmem:[#allocation80_spill] sm:$0xff] }
 0x212   : > { %10572 = vst [vmem:[#allocation209_spill] sm:$0xff] %v6527_v37  ;;  %v6542_v8 = vsel %vm10578_vm12, %v5810_v16, %v10577_v62  ;;  %v10588_v51 = vmov 0  ;;  %v10591_v35 = vrot.slane %v10590_v59, 7  ;;  %v10593_v16 = vmov 0  ;;  %v10605_v59 = vld [vmem:[#allocation29_spill] sm:$0xff] }
 0x213   : > { %10576 = vst [vmem:[#allocation102_spill] sm:$0xff] %v6535_v15  ;;  %vm6547_vm13 = vcmp.eq.f32.partialorder %v10582_v2, %v10581_v45  ;;  %vm6554_vm7 = vcmp.eq.f32.partialorder %v10587_v58, %v10586_v7  ;;  %v10596_v62 = vrot.slane %v10595_v12, 7  ;;  %v10597_v45 = vld [vmem:[#allocation81_spill] sm:$0xff]  ;;  %v10598_v2 = vmov 0  ;;  %v10601_v7 = vld [vmem:[#allocation107_spill] sm:$0xff] }
 0x214   : > { %10579 = vst [vmem:[#allocation105_spill] sm:$0xff] %v6542_v8  ;;  %v10589_v51 = vsel %vm6554_vm7, 4294967295, %v10588_v51  ;;  %vm6561_vm14 = vcmp.eq.f32.partialorder %v10592_v60, %v10591_v35  ;;  %v10600_v17 = vrot.slane %v10201_v52, 7  ;;  %v10602_v58 = vrot.slane %v10601_v7, 7  ;;  %v10609_v12 = vld [vmem:[#allocation121_spill] sm:$0xff]  ;;  %v11018_v8 = vld [vmem:[#allocation198_spill] sm:$0xff] }
 0x215   : > { %v10594_v16 = vsel %vm6561_vm14, 4294967295, %v10593_v16  ;;  %vm6568_vm12 = vcmp.eq.f32.partialorder %v10597_v45, %v10596_v62  ;;  %vm10603_vm7 = vnez %v10291_v0  ;;  %v10606_v35 = vrot.slane %v10605_v59, 7  ;;  %v10611_v45 = vld [vmem:[#allocation246_spill] sm:$0xff]  ;;  %v11019_v37 = vld [vmem:[#allocation69_spill] sm:$0xff] }
 0x216   : > { %v10599_v2 = vsel %vm6568_vm12, 4294967295, %v10598_v2  ;;  %v6578_v29 = vsel %vm10603_vm7, %v10602_v58, %v10600_v17  ;;  %vm10607_vm14 = vnez %v10296_v56  ;;  %v10610_v62 = vrot.slane %v10609_v12, 7  ;;  %v10619_v17 = vld [vmem:[#allocation123_spill] sm:$0xff]  ;;  %v10621_v56 = vld [vmem:[#allocation229_spill] sm:$0xff] }
 0x217   : > { %10604 = vst [vmem:[#allocation20_spill] sm:$0xff] %v6578_v29  ;;  %v6585_v60 = vsel %vm10607_vm14, %v10601_v7, %v10606_v35  ;;  %v10612_v25 = vrot.slane %v10611_v45, 7  ;;  %vm10613_vm12 = vnez %v10301_v9  ;;  %v10616_v3 = vrot.slane %v10615_v21, 7  ;;  %v10625_v7 = vld [vmem:[#allocation215_spill] sm:$0xff]  ;;  %v10629_v21 = vld [vmem:[#allocation8_spill] sm:$0xff] }
 0x218   : > { %10608 = vst [vmem:[#allocation108_spill] sm:$0xff] %v6585_v60  ;;  %vm10617_vm7 = vnez %v10306_v53  ;;  %v10620_v58 = vrot.slane %v10619_v17, 7  ;;  %v10622_v59 = vrot.slane %v10621_v56, 7  ;;  %vm10623_vm14 = vnez %v10311_v43  ;;  %v10631_v53 = vld [vmem:[#allocation109_spill] sm:$0xff]  ;;  %v10637_v43 = vld [vmem:[#allocation238_spill] sm:$0xff]  ;;  %v11013_v60 = vld [vmem:[#allocation23_spill] sm:$0xff] }
 0x219   : > { %v6593_v52 = vsel %vm10613_vm12, %v10612_v25, %v10610_v62  ;;  %v6600_v0 = vsel %vm10617_vm7, %v10611_v45, %v10616_v3  ;;  %v10626_v35 = vrot.slane %v10625_v7, 7  ;;  %vm10627_vm12 = vnez %v10316_v41  ;;  %v10635_v62 = vld [vmem:[#allocation88_spill] sm:$0xff]  ;;  %v10642_v41 = vld [vmem:[#allocation247_spill] sm:$0xff] }
 0x21a   : > { %10614 = vst [vmem:[#allocation21_spill] sm:$0xff] %v6593_v52  ;;  %v6608_v12 = vsel %vm10623_vm14, %v10622_v59, %v10620_v58  ;;  %v10630_v25 = vrot.slane %v10629_v21, 7  ;;  %v10632_v3 = vrot.slane %v10631_v53, 7  ;;  %vm10633_vm7 = vnez %v10321_v61  ;;  %v10640_v59 = vld [vmem:[#allocation216_spill] sm:$0xff]  ;;  %v10649_v61 = vld [vmem:[#allocation239_spill] sm:$0xff]  ;;  %v11014_v52 = vld [vmem:[#allocation197_spill] sm:$0xff] }
 0x21b   : > { %10618 = vst [vmem:[#allocation111_spill] sm:$0xff] %v6600_v0  ;;  %v6615_v9 = vsel %vm10627_vm12, %v10621_v56, %v10626_v35  ;;  %v10636_v17 = vrot.slane %v10635_v62, 7  ;;  %vm10638_vm14 = vnez %v10637_v43  ;;  %v10641_v7 = vrot.slane %v10640_v59, 7  ;;  %v10644_v35 = vld [vmem:[#allocation213_spill] sm:$0xff]  ;;  %v10654_v43 = vld [vmem:[#allocation230_spill] sm:$0xff]  ;;  %v11012_v0 = vld [vmem:[#allocation171_spill] sm:$0xff] }
 0x21c   : > { %10624 = vst [vmem:[#allocation24_spill] sm:$0xff] %v6608_v12  ;;  %v6623_v45 = vsel %vm10633_vm7, %v10632_v3, %v10630_v25  ;;  %v10643_v56 = vrot.slane %v10642_v41, 7  ;;  %vm10645_vm12 = vnez %v10644_v35  ;;  %v10648_v10 = vrot.slane %v10647_v50, 7  ;;  %v10652_v3 = vld [vmem:[#allocation90_spill] sm:$0xff]  ;;  %v10664_v50 = vld [vmem:[#allocation217_spill] sm:$0xff]  ;;  %v10917_v12 = vld [vmem:[#allocation7_spill] sm:$0xff] }
 0x21d   : > { %10628 = vst [vmem:[#allocation114_spill] sm:$0xff] %v6615_v9  ;;  %v6630_v58 = vsel %vm10638_vm14, %v10631_v53, %v10636_v17  ;;  %vm10650_vm7 = vnez %v10649_v61  ;;  %v10653_v62 = vrot.slane %v10652_v3, 7  ;;  %v10655_v53 = vrot.slane %v10654_v43, 7  ;;  %v10656_v17 = vld [vmem:[#allocation124_spill] sm:$0xff]  ;;  %v10666_v61 = vld [vmem:[#allocation110_spill] sm:$0xff]  ;;  %v11015_v29 = vld [vmem:[#allocation67_spill] sm:$0xff] }
 0x21e   : > { %10634 = vst [vmem:[#allocation25_spill] sm:$0xff] %v6623_v45  ;;  %v6638_v21 = vsel %vm10645_vm12, %v10643_v56, %v10641_v7  ;;  %v6645_v25 = vsel %vm10650_vm7, %v10642_v41, %v10648_v10  ;;  %vm10657_vm14 = vnez %v10656_v17  ;;  %v10661_v7 = vld [vmem:[#allocation249_spill] sm:$0xff]  ;;  %v10665_v35 = vrot.slane %v10664_v50, 7  ;;  %v10668_v41 = vld [vmem:[#allocation240_spill] sm:$0xff] }
 0x21f   : > { %10639 = vst [vmem:[#allocation115_spill] sm:$0xff] %v6630_v58  ;;  %v6653_v59 = vsel %vm10657_vm14, %v10655_v53, %v10653_v62  ;;  %vm10662_vm12 = vnez %v10661_v7  ;;  %v10667_v10 = vrot.slane %v10666_v61, 7  ;;  %vm10669_vm7 = vnez %v10668_v41  ;;  %v10673_v62 = vld [vmem:[#allocation125_spill] sm:$0xff]  ;;  %v10678_v7 = vld [vmem:[#allocation4_spill] sm:$0xff] }
 0x220   : > { %10646 = vst [vmem:[#allocation116_spill] sm:$0xff] %v6638_v21  ;;  %v6660_v56 = vsel %vm10662_vm12, %v10654_v43, %v10660_v14  ;;  %vm10674_vm14 = vnez %v10673_v62  ;;  %v10677_v17 = vrot.slane %v10676_v36, 7  ;;  %v10679_v14 = vrot.slane %v10678_v7, 7  ;;  %v10680_v43 = vld [vmem:[#allocation126_spill] sm:$0xff]  ;;  %v10690_v62 = vld [vmem:[#allocation231_spill] sm:$0xff]  ;;  %v10885_v58 = vld [vmem:[#allocation132_spill] sm:$0xff] }
 0x221   : > { %10651 = vst [vmem:[#allocation117_spill] sm:$0xff] %v6645_v25  ;;  %v6668_v3 = vsel %vm10669_vm7, %v10667_v10, %v10665_v35  ;;  %v10671_v25 = vld [vmem:[#allocation9_spill] sm:$0xff]  ;;  %vm10681_vm12 = vnez %v10680_v43  ;;  %v10685_v35 = vld [vmem:[#allocation250_spill] sm:$0xff]  ;;  %v11020_v9 = vrot.slane %v6346_v31, 9 }
 0x222   : > { %10658 = vst [vmem:[#allocation28_spill] sm:$0xff] %v6653_v59  ;;  %v10672_v21 = vrot.slane %v10671_v25, 7  ;;  %v6683_v50 = vsel %vm10681_vm12, %v10679_v14, %v10677_v17  ;;  %vm10686_vm7 = vnez %v10685_v35  ;;  %v10688_v25 = vld [vmem:[#allocation92_spill] sm:$0xff]  ;;  %v10697_v17 = vld [vmem:[#allocation251_spill] sm:$0xff]  ;;  %v10887_v45 = vld [vmem:[#allocation133_spill] sm:$0xff] }
 0x223   : > { %10663 = vst [vmem:[#allocation118_spill] sm:$0xff] %v6660_v56  ;;  %v10683_v56 = vld [vmem:[#allocation218_spill] sm:$0xff]  ;;  %v10689_v41 = vrot.slane %v10688_v25, 7  ;;  %vm10698_vm12 = vnez %v10697_v17  ;;  %v10702_v35 = vld [vmem:[#allocation112_spill] sm:$0xff] }
 0x224   : > { %10670 = vst [vmem:[#allocation119_spill] sm:$0xff] %v6668_v3  ;;  %v6675_v53 = vsel %vm10674_vm14, %v10666_v61, %v10672_v21  ;;  %v10684_v59 = vrot.slane %v10683_v56, 7  ;;  %v10691_v21 = vrot.slane %v10690_v62, 7  ;;  %v10692_v61 = vld [vmem:[#allocation241_spill] sm:$0xff]  ;;  %v10714_v17 = vld [vmem:[#allocation82_spill] sm:$0xff] }
 0x225   : > { %10675 = vst [vmem:[#allocation120_spill] sm:$0xff] %v6675_v53  ;;  %vm10693_vm14 = vnez %v10692_v61  ;;  %v10695_v53 = vld [vmem:[#allocation93_spill] sm:$0xff] }
 0x226   : > { %10682 = vst [vmem:[#allocation87_spill] sm:$0xff] %v6683_v50  ;;  %v6690_v10 = vsel %vm10686_vm7, %v10678_v7, %v10684_v59  ;;  %v6698_v36 = vsel %vm10693_vm14, %v10691_v21, %v10689_v41  ;;  %v10696_v3 = vrot.slane %v10695_v53, 7  ;;  %v10700_v56 = vld [vmem:[#allocation33_spill] sm:$0xff]  ;;  %v10703_v59 = vrot.slane %v10702_v35, 7  ;;  %v10704_v7 = vld [vmem:[#allocation242_spill] sm:$0xff]  ;;  %v10709_v41 = vld [vmem:[#allocation128_spill] sm:$0xff] }
 0x227   : > { %10687 = vst [vmem:[#allocation227_spill] sm:$0xff] %v6690_v10  ;;  %v10701_v43 = vrot.slane %v10700_v56, 7  ;;  %vm10705_vm7 = vnez %v10704_v7  ;;  %v10707_v10 = vld [vmem:[#allocation127_spill] sm:$0xff]  ;;  %vm10710_vm14 = vnez %v10709_v41  ;;  %v10726_v41 = vld [vmem:[#allocation232_spill] sm:$0xff] }
 0x228   : > { %10694 = vst [vmem:[#allocation245_spill] sm:$0xff] %v6698_v36  ;;  %v6705_v14 = vsel %vm10698_vm12, %v10690_v62, %v10696_v3  ;;  %v10708_v50 = vrot.slane %v10707_v10, 7  ;;  %v10712_v53 = vld [vmem:[#allocation219_spill] sm:$0xff]  ;;  %v10715_v3 = vrot.slane %v10714_v17, 7  ;;  %v10716_v62 = vld [vmem:[#allocation129_spill] sm:$0xff]  ;;  %v10724_v10 = vld [vmem:[#allocation94_spill] sm:$0xff] }
 0x229   : > { %10699 = vst [vmem:[#allocation228_spill] sm:$0xff] %v6705_v14  ;;  %v6713_v25 = vsel %vm10705_vm7, %v10703_v59, %v10701_v43  ;;  %v10713_v61 = vrot.slane %v10712_v53, 7  ;;  %vm10717_vm12 = vnez %v10716_v62  ;;  %v10719_v14 = vld [vmem:[#allocation12_spill] sm:$0xff]  ;;  %v10725_v7 = vrot.slane %v10724_v10, 7 }
 0x22a   : > { %10706 = vst [vmem:[#allocation107_spill] sm:$0xff] %v6713_v25  ;;  %v6720_v21 = vsel %vm10710_vm14, %v10702_v35, %v10708_v50  ;;  %v10720_v36 = vrot.slane %v10719_v14, 7  ;;  %v10721_v43 = vld [vmem:[#allocation204_spill] sm:$0xff]  ;;  %v10727_v50 = vrot.slane %v10726_v41, 7  ;;  %v10736_v14 = vld [vmem:[#allocation95_spill] sm:$0xff] }
 0x22b   : > { %10711 = vst [vmem:[#allocation29_spill] sm:$0xff] %v6720_v21  ;;  %v6728_v56 = vsel %vm10717_vm12, %v10715_v3, %v10713_v61  ;;  %vm10722_vm7 = vnez %v10721_v43  ;;  %v10728_v35 = vld [vmem:[#allocation192_spill] sm:$0xff]  ;;  %v10733_v61 = vld [vmem:[#allocation193_spill] sm:$0xff]  ;;  %v10737_v62 = vrot.slane %v10736_v14, 7 }
 0x22c   : > { %10718 = vst [vmem:[#allocation121_spill] sm:$0xff] %v6728_v56  ;;  %v6735_v59 = vsel %vm10722_vm7, %v10714_v17, %v10720_v36  ;;  %vm10729_vm14 = vnez %v10728_v35  ;;  %v10731_v21 = vld [vmem:[#allocation220_spill] sm:$0xff]  ;;  %vm10734_vm12 = vnez %v10733_v61  ;;  %v10738_v43 = vld [vmem:[#allocation113_spill] sm:$0xff]  ;;  %v10750_v61 = vld [vmem:[#allocation83_spill] sm:$0xff] }
 0x22d   : > { %10723 = vst [vmem:[#allocation246_spill] sm:$0xff] %v6735_v59  ;;  %v6743_v53 = vsel %vm10729_vm14, %v10727_v50, %v10725_v7  ;;  %v10732_v25 = vrot.slane %v10731_v21, 7  ;;  %v10739_v36 = vrot.slane %v10738_v43, 7  ;;  %v10740_v17 = vld [vmem:[#allocation205_spill] sm:$0xff]  ;;  %v10743_v59 = vld [vmem:[#allocation96_spill] sm:$0xff]  ;;  %v10745_v7 = vld [vmem:[#allocation206_spill] sm:$0xff] }
 0x22e   : > { %10730 = vst [vmem:[#allocation122_spill] sm:$0xff] %v6743_v53  ;;  %vm10741_vm7 = vnez %v10740_v17  ;;  %v10744_v56 = vrot.slane %v10743_v59, 7  ;;  %vm10746_vm14 = vnez %v10745_v7  ;;  %v10748_v21 = vld [vmem:[#allocation221_spill] sm:$0xff] }
 0x22f   : > { %v6750_v3 = vsel %vm10734_vm12, %v10726_v41, %v10732_v25  ;;  %v6758_v10 = vsel %vm10741_vm7, %v10739_v36, %v10737_v62  ;;  %v10749_v35 = vrot.slane %v10748_v21, 7  ;;  %v10751_v25 = vrot.slane %v10750_v61, 7  ;;  %v10752_v41 = vld [vmem:[#allocation207_spill] sm:$0xff]  ;;  %v10757_v62 = vld [vmem:[#allocation208_spill] sm:$0xff]  ;;  %v10760_v59 = vld [vmem:[#allocation97_spill] sm:$0xff] }
 0x230   : > { %10735 = vst [vmem:[#allocation123_spill] sm:$0xff] %v6750_v3  ;;  %v6765_v50 = vsel %vm10746_vm14, %v10738_v43, %v10744_v56  ;;  %vm10753_vm12 = vnez %v10752_v41  ;;  %v10755_v3 = vld [vmem:[#allocation13_spill] sm:$0xff]  ;;  %vm10758_vm7 = vnez %v10757_v62  ;;  %v10761_v17 = vrot.slane %v10760_v59, 7  ;;  %v10765_v21 = vld [vmem:[#allocation222_spill] sm:$0xff]  ;;  %v10770_v41 = vld [vmem:[#allocation84_spill] sm:$0xff] }
 0x231   : > { %10742 = vst [vmem:[#allocation229_spill] sm:$0xff] %v6758_v10  ;;  %v6773_v14 = vsel %vm10753_vm12, %v10751_v25, %v10749_v35  ;;  %v10756_v53 = vrot.slane %v10755_v3, 7  ;;  %v10762_v7 = vld [vmem:[#allocation233_spill] sm:$0xff]  ;;  %v10768_v3 = vld [vmem:[#allocation98_spill] sm:$0xff]  ;;  %v10773_v62 = vld [vmem:[#allocation99_spill] sm:$0xff] }
 0x232   : > { %10747 = vst [vmem:[#allocation215_spill] sm:$0xff] %v6765_v50  ;;  %v10763_v56 = vrot.slane %v10762_v7, 7  ;;  %v10766_v50 = vrot.slane %v10765_v21, 7  ;;  %v10769_v25 = vrot.slane %v10768_v3, 7  ;;  %v10774_v59 = vrot.slane %v10773_v62, 7  ;;  %v10781_v21 = vld [vmem:[#allocation16_spill] sm:$0xff] }
 0x233   : > { %10754 = vst [vmem:[#allocation8_spill] sm:$0xff] %v6773_v14  ;;  %v6780_v36 = vsel %vm10758_vm7, %v10750_v61, %v10756_v53  ;;  %v10771_v53 = vrot.slane %v10770_v41, 7  ;;  %v10782_v3 = vrot.slane %v10781_v21, 7  ;;  %v10881_v10 = vld [vmem:[#allocation130_spill] sm:$0xff] }
 0x234   : > { %10759 = vst [vmem:[#allocation109_spill] sm:$0xff] %v6780_v36  ;;  %v6788_v43 = vsel %vm6315_vm15, %v10763_v56, %v10761_v17  ;;  %v6795_v35 = vsel %vm6322_vm0, %v10762_v7, %v10766_v50  ;;  %v6810_v63 = vsel %vm6336_vm2, %v10770_v41, %v10774_v59  ;;  %v10776_v17 = vld [vmem:[#allocation223_spill] sm:$0xff]  ;;  %v10779_v50 = vrot.slane %v10778_v39, 7  ;;  %v10789_v59 = vld [vmem:[#allocation224_spill] sm:$0xff]  ;;  %v10882_v14 = vld [vmem:[#allocation2_spill] sm:$0xff] }
 0x235   : > { %10764 = vst [vmem:[#allocation88_spill] sm:$0xff] %v6788_v43  ;;  %v6803_v61 = vsel %vm6329_vm1, %v10771_v53, %v10769_v25  ;;  %v10777_v56 = vrot.slane %v10776_v17, 7  ;;  %v6825_v42 = vsel %vm6380_vm4, %v10778_v39, %v10782_v3  ;;  %v10784_v25 = vld [vmem:[#allocation100_spill] sm:$0xff]  ;;  %v10787_v41 = vrot.slane %v10786_v55, 7  ;;  %v10797_v3 = vld [vmem:[#allocation243_spill] sm:$0xff] }
 0x236   : > { %10767 = vst [vmem:[#allocation238_spill] sm:$0xff] %v6795_v35  ;;  %v10785_v53 = vrot.slane %v10784_v25, 7  ;;  %v10790_v17 = vrot.slane %v10789_v59, 7  ;;  %v10795_v39 = vrot.slane %v10794_v11, 7  ;;  %v10798_v25 = vrot.slane %v10797_v3, 7 }
 0x237   : > { %10772 = vst [vmem:[#allocation216_spill] sm:$0xff] %v6803_v61  ;;  %v6818_v7 = vsel %vm6373_vm3, %v10779_v50, %v10777_v56  ;;  %v10792_v56 = vld [vmem:[#allocation101_spill] sm:$0xff]  ;;  %vm10812_vm15 = vnez %v10551_v33  ;;  %vm10816_vm0 = vnez %v10556_v49  ;;  %vm10822_vm1 = vnez %v10561_v5  ;;  %v10876_v61 = vld [vmem:[#allocation191_spill] sm:$0xff] }
 0x238   : > { %10775 = vst [vmem:[#allocation247_spill] sm:$0xff] %v6810_v63  ;;  %v6833_v62 = vsel %vm6387_vm5, %v10787_v41, %v10785_v53  ;;  %v6840_v22 = vsel %vm6394_vm8, %v10786_v55, %v10790_v17  ;;  %v10793_v50 = vrot.slane %v10792_v56, 7  ;;  %v6855_v6 = vsel %vm6438_vm11, %v10794_v11, %v10798_v25  ;;  %v10800_v53 = vld [vmem:[#allocation225_spill] sm:$0xff]  ;;  %v10814_v25 = vld [vmem:[#allocation244_spill] sm:$0xff] }
 0x239   : > { %10780 = vst [vmem:[#allocation213_spill] sm:$0xff] %v6818_v7  ;;  %v10801_v41 = vrot.slane %v10800_v53, 7  ;;  %v10803_v55 = vrot.slane %v10802_v54, 7  ;;  %v10805_v17 = vld [vmem:[#allocation17_spill] sm:$0xff]  ;;  %v10811_v11 = vrot.slane %v10810_v46, 7  ;;  %v10815_v53 = vrot.slane %v10814_v25, 7 }
 0x23a   : > { %10783 = vst [vmem:[#allocation89_spill] sm:$0xff] %v6825_v42  ;;  %v6848_v21 = vsel %vm6431_vm9, %v10795_v39, %v10793_v50  ;;  %v10806_v56 = vrot.slane %v10805_v17, 7  ;;  %v10808_v50 = vld [vmem:[#allocation103_spill] sm:$0xff]  ;;  %vm10826_vm2 = vnez %v10566_v38  ;;  %v10829_v49 = vld [vmem:[#allocation237_spill] sm:$0xff]  ;;  %v10832_v25 = vld [vmem:[#allocation106_spill] sm:$0xff]  ;;  %vm10834_vm3 = vnez %v10589_v51 }
 0x23b   : > { %10788 = vst [vmem:[#allocation239_spill] sm:$0xff] %v6833_v62  ;;  %v6863_v59 = vsel %vm6445_vm6, %v10803_v55, %v10801_v41  ;;  %v10809_v39 = vrot.slane %v10808_v50, 7  ;;  %v6885_v40 = vsel %vm10816_vm0, %v10810_v46, %v10815_v53  ;;  %v10818_v41 = vld [vmem:[#allocation226_spill] sm:$0xff]  ;;  %v10830_v46 = vrot.slane %v10829_v49, 7  ;;  %v10837_v38 = vld [vmem:[#allocation248_spill] sm:$0xff] }
 0x23c   : > { %10791 = vst [vmem:[#allocation90_spill] sm:$0xff] %v6840_v22  ;;  %v6870_v24 = vsel %vm6452_vm10, %v10802_v54, %v10806_v56  ;;  %v10819_v55 = vrot.slane %v10818_v41, 7  ;;  %v10821_v54 = vrot.slane %v10820_v48, 7  ;;  %v10824_v56 = vld [vmem:[#allocation104_spill] sm:$0xff]  ;;  %v10833_v53 = vrot.slane %v10832_v25, 7  ;;  %v10871_v62 = vld [vmem:[#allocation190_spill] sm:$0xff] }
 0x23d   : > { %10796 = vst [vmem:[#allocation230_spill] sm:$0xff] %v6848_v21  ;;  %v6878_v3 = vsel %vm10812_vm15, %v10811_v11, %v10809_v39  ;;  %v10825_v50 = vrot.slane %v10824_v56, 7  ;;  %v10828_v39 = vrot.slane %v10465_v20, 7  ;;  %v10836_v41 = vrot.slane %v10467_v18, 7  ;;  %v10845_v56 = vld [vmem:[#allocation175_spill] sm:$0xff] }
 0x23e   : > { %10799 = vst [vmem:[#allocation124_spill] sm:$0xff] %v6855_v6  ;;  %v6893_v17 = vsel %vm10822_vm1, %v10821_v54, %v10819_v55  ;;  %v6915_v5 = vsel %vm10834_vm3, %v10829_v49, %v10833_v53  ;;  %v10838_v55 = vrot.slane %v10837_v38, 7  ;;  %vm10839_vm4 = vnez %v10594_v16  ;;  %v10844_v54 = vld [vmem:[#allocation210_spill] sm:$0xff] }
 0x23f   : > { %10804 = vst [vmem:[#allocation32_spill] sm:$0xff] %v6863_v59  ;;  %v6900_v33 = vsel %vm10826_vm2, %v10820_v48, %v10825_v50  ;;  %v6908_v11 = vsel %vm6547_vm13, %v10830_v46, %v10828_v39  ;;  %v10841_v48 = vrot.slane %v10468_v13, 7  ;;  %vm10842_vm5 = vnez %v10599_v2  ;;  %v10846_v50 = vld [vmem:[#allocation211_spill] sm:$0xff]  ;;  %v10847_v39 = vld [vmem:[#allocation212_spill] sm:$0xff]  ;;  %v10848_v49 = vld [vmem:[#allocation214_spill] sm:$0xff] }
 0x240   : > { %10807 = vst [vmem:[#allocation249_spill] sm:$0xff] %v6870_v24  ;;  %v6923_v20 = vsel %vm10839_vm4, %v10838_v55, %v10836_v41  ;;  %v6934_v51 = vperm.slane %v10845_v56, %v10844_v54  ;;  %v6938_v18 = vperm.slane %v10845_v56, %v10846_v50  ;;  %v6942_v16 = vperm.slane %v10845_v56, %v10847_v39  ;;  %v10849_v2 = vld [vmem:[#allocation186_spill] sm:$0xff]  ;;  %v10866_v59 = vld [vmem:[#allocation189_spill] sm:$0xff] }
 0x241   : > { %10813 = vst [vmem:[#allocation217_spill] sm:$0xff] %v6878_v3  ;;  %v6930_v47 = vsel %vm10842_vm5, %v10837_v38, %v10841_v48  ;;  %v6946_v13 = vperm.slane %v10845_v56, %v10848_v49  ;;  %v6950_v46 = vperm.slane %v10849_v2, %v10844_v54  ;;  %v6954_v25 = vperm.slane %v10849_v2, %v10846_v50  ;;  %v10851_v38 = vld [vmem:[#allocation187_spill] sm:$0xff] }
 0x242   : > { %10817 = vst [vmem:[#allocation110_spill] sm:$0xff] %v6885_v40  ;;  %v6958_v53 = vperm.slane %v10849_v2, %v10847_v39  ;;  %v6962_v41 = vperm.slane %v10849_v2, %v10848_v49  ;;  %v6966_v55 = vperm.slane %v10851_v38, %v10844_v54  ;;  %v6970_v48 = vperm.slane %v10851_v38, %v10846_v50 }
 0x243   : > { %10823 = vst [vmem:[#allocation240_spill] sm:$0xff] %v6893_v17  ;;  %v6974_v56 = vperm.slane %v10851_v38, %v10847_v39  ;;  %v10861_v17 = vld [vmem:[#allocation203_spill] sm:$0xff]  ;;  %v7018_v6 = vperm.slane %v10866_v59, %v10846_v50  ;;  %v7022_v21 = vperm.slane %v10866_v59, %v10847_v39  ;;  %v7026_v22 = vperm.slane %v10866_v59, %v10848_v49 }
 0x244   : > { %10827 = vst [vmem:[#allocation9_spill] sm:$0xff] %v6900_v33  ;;  %v7002_v40 = vperm.slane %v10861_v17, %v10846_v50  ;;  %v7006_v3 = vperm.slane %v10861_v17, %v10847_v39  ;;  %v7010_v24 = vperm.slane %v10861_v17, %v10848_v49  ;;  %v7034_v42 = vperm.slane %v10871_v62, %v10846_v50 }
 0x245   : > { %10831 = vst [vmem:[#allocation125_spill] sm:$0xff] %v6908_v11  ;;  %v7038_v7 = vperm.slane %v10871_v62, %v10847_v39  ;;  %v7042_v63 = vperm.slane %v10871_v62, %v10848_v49  ;;  %v7050_v35 = vperm.slane %v10876_v61, %v10846_v50  ;;  %v7054_v43 = vperm.slane %v10876_v61, %v10847_v39 }
 0x246   : > { %10835 = vst [vmem:[#allocation91_spill] sm:$0xff] %v6915_v5  ;;  %v7058_v36 = vperm.slane %v10876_v61, %v10848_v49  ;;  %vm1157_vm8 = vcmp.eq.f32.partialorder %v10882_v14, %v10881_v10  ;;  %vm1201_vm2 = vcmp.eq.f32.partialorder %v11013_v60, %v11012_v0  ;;  %vm1202_vm3 = vcmp.eq.f32.partialorder %v11015_v29, %v11014_v52  ;;  %v11312_v60 = vld [vmem:[#allocation247_spill] sm:$0xff]  ;;  %v11317_v29 = vld [vmem:[#allocation213_spill] sm:$0xff] }
 0x247   : > { %10840 = vst [vmem:[#allocation4_spill] sm:$0xff] %v6923_v20  ;;  %v10856_v20 = vld [vmem:[#allocation188_spill] sm:$0xff]  ;;  %v11028_v14 = vrot.slane %v6938_v18, 1 }
 0x248   : > { %10843 = vst [vmem:[#allocation126_spill] sm:$0xff] %v6930_v47  ;;  %v6978_v47 = vperm.slane %v10851_v38, %v10848_v49  ;;  %v6982_v2 = vperm.slane %v10856_v20, %v10844_v54  ;;  %v6986_v5 = vperm.slane %v10856_v20, %v10846_v50  ;;  %v6990_v11 = vperm.slane %v10856_v20, %v10847_v39  ;;  %v10886_v50 = vld [vmem:[#allocation35_spill] sm:$0xff]  ;;  %v10911_v39 = vld [vmem:[#allocation42_spill] sm:$0xff] }
 0x249   : > { %10850 = vst [vmem:[#allocation218_spill] sm:$0xff] %v6962_v41  ;;  %v6994_v33 = vperm.slane %v10856_v20, %v10848_v49  ;;  %v6998_v38 = vperm.slane %v10861_v17, %v10844_v54  ;;  %v7014_v20 = vperm.slane %v10866_v59, %v10844_v54  ;;  %v7030_v17 = vperm.slane %v10871_v62, %v10844_v54  ;;  %v11017_v41 = vld [vmem:[#allocation68_spill] sm:$0xff] }
 0x24a   : > { %10852 = vst [vmem:[#allocation250_spill] sm:$0xff] %v6966_v55  ;;  %v7046_v59 = vperm.slane %v10876_v61, %v10844_v54  ;;  %v10883_v54 = vld [vmem:[#allocation131_spill] sm:$0xff]  ;;  %vm1159_vm11 = vcmp.eq.f32.partialorder %v10886_v50, %v10885_v58  ;;  %v11016_v55 = vld [vmem:[#allocation172_spill] sm:$0xff]  ;;  %v7258_v49 = vsel %vm1157_vm8, %v6934_v51, %v11020_v9  ;;  %v11022_v62 = vrot.slane %v6353_v28, 9 }
 0x24b   : > { %10853 = vst [vmem:[#allocation92_spill] sm:$0xff] %v6970_v48  ;;  %v11007_v48 = vld [vmem:[#allocation66_spill] sm:$0xff]  ;;  %vm1203_vm4 = vcmp.eq.f32.partialorder %v11017_v41, %v11016_v55  ;;  %v11023_v61 = vrot.slane %v6934_v51, 1  ;;  %v11027_v9 = vrot.slane %v6368_v1, 9  ;;  %v11037_v50 = vld [vmem:[#allocation72_spill] sm:$0xff]  ;;  %v11038_v1 = vrot.slane %v6404_v19, 9 }
 0x24c   : > { %10854 = vst [vmem:[#allocation231_spill] sm:$0xff] %v6974_v56  ;;  %v11006_v56 = vld [vmem:[#allocation196_spill] sm:$0xff]  ;;  %v11031_v51 = vld [vmem:[#allocation26_spill] sm:$0xff]  ;;  %v11321_v41 = vld [vmem:[#allocation89_spill] sm:$0xff] }
 0x24d   : > { %10855 = vst [vmem:[#allocation241_spill] sm:$0xff] %v6978_v47  ;;  %v10909_v47 = vld [vmem:[#allocation41_spill] sm:$0xff] }
 0x24e   : > { %10857 = vst [vmem:[#allocation93_spill] sm:$0xff] %v6982_v2  ;;  %v10907_v2 = vld [vmem:[#allocation40_spill] sm:$0xff] }
 0x24f   : > { %10858 = vst [vmem:[#allocation251_spill] sm:$0xff] %v6986_v5  ;;  %v10906_v5 = vld [vmem:[#allocation139_spill] sm:$0xff] }
 0x250   : > { %10859 = vst [vmem:[#allocation33_spill] sm:$0xff] %v6990_v11  ;;  %v10905_v11 = vld [vmem:[#allocation6_spill] sm:$0xff]  ;;  %vm1166_vm15 = vcmp.eq.f32.partialorder %v10907_v2, %v10906_v5  ;;  %v11117_v5 = vld [vmem:[#allocation147_spill] sm:$0xff] }
 0x251   : > { %10860 = vst [vmem:[#allocation112_spill] sm:$0xff] %v6994_v33  ;;  %v10904_v33 = vld [vmem:[#allocation138_spill] sm:$0xff] }
 0x252   : > { %10862 = vst [vmem:[#allocation242_spill] sm:$0xff] %v6998_v38  ;;  %vm1165_vm7 = vcmp.eq.f32.partialorder %v10905_v11, %v10904_v33  ;;  %v10916_v38 = vld [vmem:[#allocation142_spill] sm:$0xff]  ;;  %v11063_v11 = vrot.slane %v6484_v44, 9  ;;  %v11074_v44 = vrot.slane %v6520_v30, 9  ;;  %v11088_v30 = vld [vmem:[#allocation144_spill] sm:$0xff] }
 0x253   : > { %10863 = vst [vmem:[#allocation127_spill] sm:$0xff] %v7002_v40  ;;  %v11025_v40 = vrot.slane %v6361_v32, 9  ;;  %v11033_v32 = vld [vmem:[#allocation70_spill] sm:$0xff] }
 0x254   : > { %10864 = vst [vmem:[#allocation128_spill] sm:$0xff] %v7006_v3  ;;  %v11009_v3 = vld [vmem:[#allocation91_spill] sm:$0xff]  ;;  %v11067_v2 = vld [vmem:[#allocation30_spill] sm:$0xff] }
 0x255   : > { %10865 = vst [vmem:[#allocation219_spill] sm:$0xff] %v7010_v24  ;;  %v11008_v24 = vld [vmem:[#allocation125_spill] sm:$0xff]  ;;  %v7275_v31 = vsel %vm1159_vm11, %v6938_v18, %v11025_v40  ;;  %v11036_v40 = vld [vmem:[#allocation200_spill] sm:$0xff]  ;;  %v11040_v18 = vrot.slane %v6411_v4, 9 }
 0x256   : > { %10867 = vst [vmem:[#allocation82_spill] sm:$0xff] %v7014_v20  ;;  %v10899_v20 = vld [vmem:[#allocation39_spill] sm:$0xff]  ;;  %vm1208_vm11 = vcmp.eq.f32.partialorder %v11037_v50, %v11036_v40  ;;  %v11341_v50 = vld [vmem:[#allocation32_spill] sm:$0xff] }
 0x257   : > { %10868 = vst [vmem:[#allocation129_spill] sm:$0xff] %v7018_v6  ;;  %v10898_v6 = vld [vmem:[#allocation137_spill] sm:$0xff] }
 0x258   : > { %10869 = vst [vmem:[#allocation12_spill] sm:$0xff] %v7022_v21  ;;  %v10897_v21 = vld [vmem:[#allocation38_spill] sm:$0xff]  ;;  %vm1164_vm12 = vcmp.eq.f32.partialorder %v10899_v20, %v10898_v6  ;;  %v11058_v20 = vrot.slane %v6469_v34, 9  ;;  %v11120_v6 = vld [vmem:[#allocation21_spill] sm:$0xff] }
 0x259   : > { %10870 = vst [vmem:[#allocation204_spill] sm:$0xff] %v7026_v22  ;;  %v10896_v22 = vld [vmem:[#allocation136_spill] sm:$0xff] }
 0x25a   : > { %10872 = vst [vmem:[#allocation94_spill] sm:$0xff] %v7030_v17  ;;  %v10895_v17 = vld [vmem:[#allocation37_spill] sm:$0xff]  ;;  %vm1163_vm14 = vcmp.eq.f32.partialorder %v10897_v21, %v10896_v22  ;;  %v11121_v22 = vrot.slane %v11120_v6, 9  ;;  %v11138_v6 = vld [vmem:[#allocation150_spill] sm:$0xff] }
 0x25b   : > { %10873 = vst [vmem:[#allocation232_spill] sm:$0xff] %v7034_v42  ;;  %v10894_v42 = vld [vmem:[#allocation135_spill] sm:$0xff]  ;;  %v11054_v21 = vld [vmem:[#allocation177_spill] sm:$0xff] }
 0x25c   : > { %10874 = vst [vmem:[#allocation192_spill] sm:$0xff] %v7038_v7  ;;  %v10893_v7 = vld [vmem:[#allocation3_spill] sm:$0xff]  ;;  %vm1162_vm13 = vcmp.eq.f32.partialorder %v10895_v17, %v10894_v42  ;;  %v11122_v42 = vld [vmem:[#allocation92_spill] sm:$0xff] }
 0x25d   : > { %10875 = vst [vmem:[#allocation220_spill] sm:$0xff] %v7042_v63  ;;  %v10892_v63 = vld [vmem:[#allocation134_spill] sm:$0xff]  ;;  %v11049_v17 = vld [vmem:[#allocation27_spill] sm:$0xff] }
 0x25e   : > { %10877 = vst [vmem:[#allocation193_spill] sm:$0xff] %v7046_v59  ;;  %vm1161_vm10 = vcmp.eq.f32.partialorder %v10893_v7, %v10892_v63  ;;  %v10908_v59 = vld [vmem:[#allocation140_spill] sm:$0xff]  ;;  %v11045_v7 = vrot.slane %v6426_v23, 9  ;;  %v11056_v23 = vrot.slane %v6462_v57, 9  ;;  %v11123_v63 = vld [vmem:[#allocation47_spill] sm:$0xff] }
 0x25f   : > { %10878 = vst [vmem:[#allocation95_spill] sm:$0xff] %v7050_v35  ;;  %vm1167_vm0 = vcmp.eq.f32.partialorder %v10909_v47, %v10908_v59  ;;  %v10910_v35 = vld [vmem:[#allocation141_spill] sm:$0xff]  ;;  %v11110_v59 = vld [vmem:[#allocation146_spill] sm:$0xff] }
 0x260   : > { %10879 = vst [vmem:[#allocation113_spill] sm:$0xff] %v7054_v43  ;;  %v10888_v43 = vld [vmem:[#allocation36_spill] sm:$0xff]  ;;  %vm1168_vm1 = vcmp.eq.f32.partialorder %v10911_v39, %v10910_v35  ;;  %v11072_v47 = vld [vmem:[#allocation181_spill] sm:$0xff] }
 0x261   : > { %10880 = vst [vmem:[#allocation205_spill] sm:$0xff] %v7058_v36  ;;  %v10884_v36 = vld [vmem:[#allocation34_spill] sm:$0xff]  ;;  %vm1160_vm6 = vcmp.eq.f32.partialorder %v10888_v43, %v10887_v45  ;;  %v7300_v43 = vsel %vm1161_vm10, %v6942_v16, %v11038_v1  ;;  %v11046_v1 = vrot.slane %v6946_v13, 1  ;;  %v11077_v39 = vld [vmem:[#allocation209_spill] sm:$0xff] }
 0x262   : > { %vm1158_vm9 = vcmp.eq.f32.partialorder %v10884_v36, %v10883_v54  ;;  %11021 = vst [vmem:[#allocation96_spill] sm:$0xff] %v7258_v49  ;;  %v7284_v28 = vsel %vm1160_vm6, %v11028_v14, %v11027_v9  ;;  %v11030_v36 = vld [vmem:[#allocation173_spill] sm:$0xff]  ;;  %v11041_v9 = vrot.slane %v6942_v16, 1  ;;  %v11087_v49 = vld [vmem:[#allocation44_spill] sm:$0xff] }
 0x263   : > { %v7267_v15 = vsel %vm1158_vm9, %v11023_v61, %v11022_v62  ;;  %11026 = vst [vmem:[#allocation221_spill] sm:$0xff] %v7275_v31  ;;  %vm1205_vm8 = vcmp.eq.f32.partialorder %v11031_v51, %v11030_v36  ;;  %v11032_v62 = vld [vmem:[#allocation199_spill] sm:$0xff]  ;;  %v11034_v61 = vld [vmem:[#allocation174_spill] sm:$0xff]  ;;  %v7326_v4 = vsel %vm1164_vm12, %v11046_v1, %v11045_v7  ;;  %v11048_v16 = vld [vmem:[#allocation201_spill] sm:$0xff]  ;;  %v11059_v7 = vrot.slane %v6950_v46, 1 }
 0x264   : > { %11024 = vst [vmem:[#allocation206_spill] sm:$0xff] %v7267_v15  ;;  %vm1206_vm9 = vcmp.eq.f32.partialorder %v11033_v32, %v11032_v62  ;;  %v11035_v15 = vld [vmem:[#allocation71_spill] sm:$0xff]  ;;  %v7309_v14 = vsel %vm1162_vm13, %v11041_v9, %v11040_v18  ;;  %vm1209_vm6 = vcmp.eq.f32.partialorder %v11049_v17, %v11048_v16  ;;  %v11050_v18 = vld [vmem:[#allocation176_spill] sm:$0xff]  ;;  %v11052_v9 = vld [vmem:[#allocation202_spill] sm:$0xff] }
 0x265   : > { %11029 = vst [vmem:[#allocation83_spill] sm:$0xff] %v7284_v28  ;;  %vm1207_vm5 = vcmp.eq.f32.partialorder %v11035_v15, %v11034_v61  ;;  %v11043_v28 = vrot.slane %v6419_v27, 9  ;;  %v11051_v27 = vld [vmem:[#allocation73_spill] sm:$0xff]  ;;  %v7351_v1 = vsel %vm1166_vm15, %v11059_v7, %v11058_v20  ;;  %v11068_v20 = vld [vmem:[#allocation179_spill] sm:$0xff]  ;;  %v11070_v7 = vld [vmem:[#allocation180_spill] sm:$0xff] }
 0x266   : > { %11039 = vst [vmem:[#allocation207_spill] sm:$0xff] %v7300_v43  ;;  %vm1210_vm10 = vcmp.eq.f32.partialorder %v11051_v27, %v11050_v18  ;;  %v11086_v31 = vld [vmem:[#allocation218_spill] sm:$0xff]  ;;  %v11337_v15 = vld [vmem:[#allocation124_spill] sm:$0xff]  ;;  %v11345_v17 = vld [vmem:[#allocation249_spill] sm:$0xff] }
 0x267   : > { %11042 = vst [vmem:[#allocation13_spill] sm:$0xff] %v7309_v14  ;;  %v7317_v19 = vsel %vm1163_vm14, %v6946_v13, %v11043_v28  ;;  %v11053_v14 = vld [vmem:[#allocation74_spill] sm:$0xff]  ;;  %v11055_v28 = vld [vmem:[#allocation75_spill] sm:$0xff]  ;;  %v7342_v13 = vsel %vm1165_vm7, %v6950_v46, %v11056_v23  ;;  %v11064_v23 = vrot.slane %v6954_v25, 1  ;;  %vm11075_vm14 = vcmp.eq.f32.partialorder %v10917_v12, %v10916_v38  ;;  %v11091_v12 = vld [vmem:[#allocation105_spill] sm:$0xff] }
 0x268   : > { %11044 = vst [vmem:[#allocation208_spill] sm:$0xff] %v7317_v19  ;;  %vm1211_vm13 = vcmp.eq.f32.partialorder %v11053_v14, %v11052_v9  ;;  %v11066_v46 = vld [vmem:[#allocation178_spill] sm:$0xff]  ;;  %v11095_v38 = vld [vmem:[#allocation145_spill] sm:$0xff] }
 0x269   : > { %11047 = vst [vmem:[#allocation97_spill] sm:$0xff] %v7326_v4  ;;  %v11061_v4 = vrot.slane %v6477_v26, 9  ;;  %v7368_v34 = vsel %vm1168_vm1, %v11064_v23, %v11063_v11  ;;  %v11069_v26 = vld [vmem:[#allocation76_spill] sm:$0xff]  ;;  %v11078_v11 = vrot.slane %v11077_v39, 9  ;;  %v11079_v23 = vrot.slane %v6958_v53, 1  ;;  %v11084_v19 = vld [vmem:[#allocation102_spill] sm:$0xff] }
 0x26a   : > { %11057 = vst [vmem:[#allocation233_spill] sm:$0xff] %v7342_v13  ;;  %v11085_v43 = vrot.slane %v11084_v19, 9  ;;  %v11094_v39 = vld [vmem:[#allocation45_spill] sm:$0xff]  ;;  %v11101_v19 = vld [vmem:[#allocation79_spill] sm:$0xff]  ;;  %v11329_v51 = vld [vmem:[#allocation90_spill] sm:$0xff] }
 0x26b   : > { %11060 = vst [vmem:[#allocation222_spill] sm:$0xff] %v7351_v1  ;;  %v7359_v57 = vsel %vm1167_vm0, %v6954_v25, %v11061_v4  ;;  %v11071_v1 = vld [vmem:[#allocation77_spill] sm:$0xff]  ;;  %v11073_v4 = vld [vmem:[#allocation78_spill] sm:$0xff]  ;;  %v7384_v25 = vsel %vm11075_vm14, %v6958_v53, %v11074_v44  ;;  %vm11089_vm0 = vcmp.eq.f32.partialorder %v11087_v49, %v11088_v30  ;;  %v11092_v44 = vrot.slane %v11091_v12, 9  ;;  %v11106_v12 = vld [vmem:[#allocation20_spill] sm:$0xff] }
 0x26c   : > { %11062 = vst [vmem:[#allocation98_spill] sm:$0xff] %v7359_v57  ;;  %v11081_v57 = vld [vmem:[#allocation143_spill] sm:$0xff]  ;;  %v7401_v35 = vsel %vm11089_vm0, %v11086_v31, %v11085_v43  ;;  %vm11096_vm14 = vcmp.eq.f32.partialorder %v11094_v39, %v11095_v38  ;;  %v11104_v49 = vld [vmem:[#allocation185_spill] sm:$0xff]  ;;  %v11109_v30 = vld [vmem:[#allocation10_spill] sm:$0xff] }
 0x26d   : > { %11065 = vst [vmem:[#allocation84_spill] sm:$0xff] %v7368_v34  ;;  %v11080_v34 = vld [vmem:[#allocation43_spill] sm:$0xff]  ;;  %v11105_v43 = vld [vmem:[#allocation81_spill] sm:$0xff]  ;;  %vm11111_vm12 = vcmp.eq.f32.partialorder %v11109_v30, %v11110_v59  ;;  %v11116_v38 = vld [vmem:[#allocation46_spill] sm:$0xff] }
 0x26e   : > { %11076 = vst [vmem:[#allocation99_spill] sm:$0xff] %v7384_v25  ;;  %vm11082_vm1 = vcmp.eq.f32.partialorder %v11080_v34, %v11081_v57  ;;  %v11093_v25 = vrot.slane %v11086_v31, 1  ;;  %v11098_v34 = vld [vmem:[#allocation182_spill] sm:$0xff]  ;;  %v11103_v57 = vld [vmem:[#allocation80_spill] sm:$0xff]  ;;  %v11127_v30 = vld [vmem:[#allocation111_spill] sm:$0xff] }
 0x26f   : > { %v7393_v13 = vsel %vm11082_vm1, %v11079_v23, %v11078_v11  ;;  %11090 = vst [vmem:[#allocation234_spill] sm:$0xff] %v7401_v35  ;;  %v11099_v11 = vld [vmem:[#allocation31_spill] sm:$0xff]  ;;  %v11107_v35 = vrot.slane %v11106_v12, 9  ;;  %v11108_v31 = vld [vmem:[#allocation250_spill] sm:$0xff]  ;;  %v11124_v12 = vld [vmem:[#allocation148_spill] sm:$0xff] }
 0x270   : > { %11083 = vst [vmem:[#allocation223_spill] sm:$0xff] %v7393_v13  ;;  %v7410_v53 = vsel %vm11096_vm14, %v11093_v25, %v11092_v44  ;;  %vm1217_vm1 = vcmp.eq.f32.partialorder %v11099_v11, %v11098_v34  ;;  %v11100_v23 = vld [vmem:[#allocation183_spill] sm:$0xff]  ;;  %v11102_v13 = vld [vmem:[#allocation184_spill] sm:$0xff]  ;;  %vm11118_vm14 = vcmp.eq.f32.partialorder %v11116_v38, %v11117_v5  ;;  %vm11125_vm0 = vcmp.eq.f32.partialorder %v11123_v63, %v11124_v12  ;;  %v11131_v59 = vld [vmem:[#allocation149_spill] sm:$0xff] }
 0x271   : > { %11097 = vst [vmem:[#allocation16_spill] sm:$0xff] %v7410_v53  ;;  %vm1218_vm15 = vcmp.eq.f32.partialorder %v11101_v19, %v11100_v23  ;;  %vm1219_vm7 = vcmp.eq.f32.partialorder %v11103_v57, %v11102_v13  ;;  %v7426_v25 = vsel %vm11111_vm12, %v11108_v31, %v11107_v35  ;;  %v11113_v44 = vld [vmem:[#allocation108_spill] sm:$0xff]  ;;  %v11115_v53 = vrot.slane %v11108_v31, 1  ;;  %v11141_v63 = vld [vmem:[#allocation114_spill] sm:$0xff]  ;;  %v11145_v12 = vld [vmem:[#allocation151_spill] sm:$0xff] }
 0x272   : > { %11112 = vst [vmem:[#allocation100_spill] sm:$0xff] %v7426_v25  ;;  %v11114_v39 = vrot.slane %v11113_v44, 9  ;;  %v7443_v45 = vsel %vm11125_vm0, %v11122_v42, %v11121_v22  ;;  %v11128_v35 = vrot.slane %v11127_v30, 9  ;;  %v11129_v25 = vrot.slane %v11122_v42, 1  ;;  %v11130_v44 = vld [vmem:[#allocation48_spill] sm:$0xff]  ;;  %v11144_v30 = vld [vmem:[#allocation49_spill] sm:$0xff] }
 0x273   : > { %11126 = vst [vmem:[#allocation224_spill] sm:$0xff] %v7443_v45  ;;  %vm11132_vm12 = vcmp.eq.f32.partialorder %v11130_v44, %v11131_v59  ;;  %v11134_v38 = vld [vmem:[#allocation24_spill] sm:$0xff]  ;;  %v11142_v22 = vrot.slane %v11141_v63, 9  ;;  %vm11146_vm0 = vcmp.eq.f32.partialorder %v11144_v30, %v11145_v12  ;;  %v11148_v44 = vld [vmem:[#allocation25_spill] sm:$0xff]  ;;  %v11158_v63 = vld [vmem:[#allocation51_spill] sm:$0xff] }
 0x274   : > { %v7435_v33 = vsel %vm11118_vm14, %v11115_v53, %v11114_v39  ;;  %v7452_v31 = vsel %vm11132_vm12, %v11129_v25, %v11128_v35  ;;  %v11135_v53 = vrot.slane %v11134_v38, 9  ;;  %v11136_v39 = vld [vmem:[#allocation231_spill] sm:$0xff]  ;;  %v11149_v25 = vrot.slane %v11148_v44, 9  ;;  %v11150_v35 = vld [vmem:[#allocation241_spill] sm:$0xff]  ;;  %v11152_v38 = vld [vmem:[#allocation152_spill] sm:$0xff] }
 0x275   : > { %11119 = vst [vmem:[#allocation5_spill] sm:$0xff] %v7435_v33  ;;  %v11137_v33 = vld [vmem:[#allocation11_spill] sm:$0xff]  ;;  %v11143_v45 = vrot.slane %v11136_v39, 1  ;;  %v11162_v30 = vld [vmem:[#allocation116_spill] sm:$0xff]  ;;  %v11166_v44 = vld [vmem:[#allocation154_spill] sm:$0xff] }
 0x276   : > { %11133 = vst [vmem:[#allocation101_spill] sm:$0xff] %v7452_v31  ;;  %vm11139_vm14 = vcmp.eq.f32.partialorder %v11137_v33, %v11138_v6  ;;  %v11151_v31 = vld [vmem:[#allocation50_spill] sm:$0xff]  ;;  %v11155_v33 = vld [vmem:[#allocation115_spill] sm:$0xff]  ;;  %v11159_v6 = vld [vmem:[#allocation153_spill] sm:$0xff] }
 0x277   : > { %v7460_v5 = vsel %vm11139_vm14, %v11136_v39, %v11135_v53  ;;  %v7469_v42 = vsel %vm11146_vm0, %v11143_v45, %v11142_v22  ;;  %vm11153_vm12 = vcmp.eq.f32.partialorder %v11151_v31, %v11152_v38  ;;  %v11156_v53 = vrot.slane %v11155_v33, 9  ;;  %v11164_v22 = vld [vmem:[#allocation93_spill] sm:$0xff]  ;;  %v11172_v33 = vld [vmem:[#allocation52_spill] sm:$0xff]  ;;  %v11173_v38 = vld [vmem:[#allocation155_spill] sm:$0xff] }
 0x278   : > { %11140 = vst [vmem:[#allocation235_spill] sm:$0xff] %v7460_v5  ;;  %v7477_v59 = vsel %vm11153_vm12, %v11150_v35, %v11149_v25  ;;  %v11157_v5 = vrot.slane %v11150_v35, 1  ;;  %vm11160_vm14 = vcmp.eq.f32.partialorder %v11158_v63, %v11159_v6  ;;  %v11163_v45 = vrot.slane %v11162_v30, 9  ;;  %v11169_v31 = vld [vmem:[#allocation117_spill] sm:$0xff]  ;;  %v11176_v63 = vld [vmem:[#allocation28_spill] sm:$0xff]  ;;  %v11333_v32 = vld [vmem:[#allocation230_spill] sm:$0xff] }
 0x279   : > { %11147 = vst [vmem:[#allocation243_spill] sm:$0xff] %v7469_v42  ;;  %v11165_v42 = vld [vmem:[#allocation14_spill] sm:$0xff]  ;;  %v11170_v25 = vrot.slane %v11169_v31, 9  ;;  %vm11174_vm12 = vcmp.eq.f32.partialorder %v11172_v33, %v11173_v38  ;;  %v11180_v30 = vld [vmem:[#allocation156_spill] sm:$0xff]  ;;  %v11190_v33 = vld [vmem:[#allocation119_spill] sm:$0xff] }
 0x27a   : > { %11154 = vst [vmem:[#allocation225_spill] sm:$0xff] %v7477_v59  ;;  %v7486_v39 = vsel %vm11160_vm14, %v11157_v5, %v11156_v53  ;;  %vm11167_vm0 = vcmp.eq.f32.partialorder %v11165_v42, %v11166_v44  ;;  %v11171_v59 = vrot.slane %v11164_v22, 1  ;;  %v11177_v5 = vrot.slane %v11176_v63, 9  ;;  %v11178_v53 = vld [vmem:[#allocation251_spill] sm:$0xff]  ;;  %v11183_v42 = vld [vmem:[#allocation118_spill] sm:$0xff]  ;;  %v11187_v44 = vld [vmem:[#allocation157_spill] sm:$0xff] }
 0x27b   : > { %11161 = vst [vmem:[#allocation85_spill] sm:$0xff] %v7486_v39  ;;  %v7494_v12 = vsel %vm11167_vm0, %v11164_v22, %v11163_v45  ;;  %v11179_v39 = vld [vmem:[#allocation53_spill] sm:$0xff]  ;;  %v11184_v45 = vrot.slane %v11183_v42, 9  ;;  %v11186_v31 = vld [vmem:[#allocation54_spill] sm:$0xff]  ;;  %v11200_v42 = vld [vmem:[#allocation55_spill] sm:$0xff] }
 0x27c   : > { %11168 = vst [vmem:[#allocation17_spill] sm:$0xff] %v7494_v12  ;;  %v7503_v35 = vsel %vm11174_vm12, %v11171_v59, %v11170_v25  ;;  %vm11181_vm14 = vcmp.eq.f32.partialorder %v11179_v39, %v11180_v30  ;;  %v11185_v12 = vrot.slane %v11178_v53, 1  ;;  %vm11188_vm0 = vcmp.eq.f32.partialorder %v11186_v31, %v11187_v44  ;;  %v11192_v25 = vld [vmem:[#allocation33_spill] sm:$0xff]  ;;  %v11194_v63 = vld [vmem:[#allocation158_spill] sm:$0xff]  ;;  %v11197_v39 = vld [vmem:[#allocation120_spill] sm:$0xff] }
 0x27d   : > { %11175 = vst [vmem:[#allocation103_spill] sm:$0xff] %v7503_v35  ;;  %v7511_v6 = vsel %vm11181_vm14, %v11178_v53, %v11177_v5  ;;  %v11191_v59 = vrot.slane %v11190_v33, 9  ;;  %v11193_v35 = vld [vmem:[#allocation15_spill] sm:$0xff]  ;;  %v11198_v5 = vrot.slane %v11197_v39, 9  ;;  %v11208_v33 = vld [vmem:[#allocation160_spill] sm:$0xff]  ;;  %v11214_v39 = vld [vmem:[#allocation57_spill] sm:$0xff] }
 0x27e   : > { %11182 = vst [vmem:[#allocation236_spill] sm:$0xff] %v7511_v6  ;;  %v7520_v22 = vsel %vm11188_vm0, %v11185_v12, %v11184_v45  ;;  %vm11195_vm12 = vcmp.eq.f32.partialorder %v11193_v35, %v11194_v63  ;;  %v11199_v6 = vrot.slane %v11192_v25, 1  ;;  %v11201_v30 = vld [vmem:[#allocation159_spill] sm:$0xff]  ;;  %v11206_v45 = vld [vmem:[#allocation112_spill] sm:$0xff]  ;;  %v11215_v63 = vld [vmem:[#allocation161_spill] sm:$0xff] }
 0x27f   : > { %11189 = vst [vmem:[#allocation244_spill] sm:$0xff] %v7520_v22  ;;  %v7528_v38 = vsel %vm11195_vm12, %v11192_v25, %v11191_v59  ;;  %vm11202_vm14 = vcmp.eq.f32.partialorder %v11200_v42, %v11201_v30  ;;  %v11204_v31 = vld [vmem:[#allocation87_spill] sm:$0xff]  ;;  %v11207_v22 = vld [vmem:[#allocation56_spill] sm:$0xff]  ;;  %vm11216_vm12 = vcmp.eq.f32.partialorder %v11214_v39, %v11215_v63  ;;  %v11218_v42 = vld [vmem:[#allocation245_spill] sm:$0xff] }
 0x280   : > { %11196 = vst [vmem:[#allocation226_spill] sm:$0xff] %v7528_v38  ;;  %v7537_v53 = vsel %vm11202_vm14, %v11199_v6, %v11198_v5  ;;  %v11205_v12 = vrot.slane %v11204_v31, 9  ;;  %vm11209_vm0 = vcmp.eq.f32.partialorder %v11207_v22, %v11208_v33  ;;  %v11211_v35 = vld [vmem:[#allocation227_spill] sm:$0xff]  ;;  %v11213_v38 = vrot.slane %v11206_v45, 1  ;;  %v11220_v5 = vld [vmem:[#allocation242_spill] sm:$0xff]  ;;  %v11225_v22 = vld [vmem:[#allocation228_spill] sm:$0xff] }
 0x281   : > { %11203 = vst [vmem:[#allocation86_spill] sm:$0xff] %v7537_v53  ;;  %v11212_v59 = vrot.slane %v11211_v35, 9  ;;  %v11219_v6 = vrot.slane %v11218_v42, 9  ;;  %v11221_v53 = vld [vmem:[#allocation18_spill] sm:$0xff]  ;;  %v11229_v33 = vld [vmem:[#allocation163_spill] sm:$0xff]  ;;  %v11236_v42 = vld [vmem:[#allocation164_spill] sm:$0xff] }
 0x282   : > { %v7545_v44 = vsel %vm11209_vm0, %v11206_v45, %v11205_v12  ;;  %v11222_v31 = vld [vmem:[#allocation162_spill] sm:$0xff]  ;;  %v11226_v12 = vrot.slane %v11225_v22, 9  ;;  %v11232_v39 = vld [vmem:[#allocation107_spill] sm:$0xff]  ;;  %v11242_v22 = vld [vmem:[#allocation60_spill] sm:$0xff] }
 0x283   : > { %11210 = vst [vmem:[#allocation104_spill] sm:$0xff] %v7545_v44  ;;  %v7554_v25 = vsel %vm11216_vm12, %v11213_v38, %v11212_v59  ;;  %vm11223_vm14 = vcmp.eq.f32.partialorder %v11221_v53, %v11222_v31  ;;  %v11227_v44 = vrot.slane %v11220_v5, 1  ;;  %v11228_v35 = vld [vmem:[#allocation58_spill] sm:$0xff]  ;;  %v11233_v38 = vrot.slane %v11232_v39, 9  ;;  %v11234_v59 = vld [vmem:[#allocation127_spill] sm:$0xff]  ;;  %v11239_v53 = vld [vmem:[#allocation29_spill] sm:$0xff] }
 0x284   : > { %11217 = vst [vmem:[#allocation237_spill] sm:$0xff] %v7554_v25  ;;  %v7562_v30 = vsel %vm11223_vm14, %v11220_v5, %v11219_v6  ;;  %vm11230_vm0 = vcmp.eq.f32.partialorder %v11228_v35, %v11229_v33  ;;  %v11235_v25 = vld [vmem:[#allocation59_spill] sm:$0xff]  ;;  %v11240_v6 = vrot.slane %v11239_v53, 9  ;;  %v11243_v31 = vld [vmem:[#allocation165_spill] sm:$0xff]  ;;  %v11250_v39 = vld [vmem:[#allocation166_spill] sm:$0xff] }
 0x285   : > { %11224 = vst [vmem:[#allocation106_spill] sm:$0xff] %v7562_v30  ;;  %v7571_v45 = vsel %vm11230_vm0, %v11227_v44, %v11226_v12  ;;  %vm11237_vm12 = vcmp.eq.f32.partialorder %v11235_v25, %v11236_v42  ;;  %v11241_v30 = vrot.slane %v11234_v59, 1  ;;  %vm11244_vm14 = vcmp.eq.f32.partialorder %v11242_v22, %v11243_v31  ;;  %v11246_v35 = vld [vmem:[#allocation121_spill] sm:$0xff]  ;;  %v11248_v12 = vld [vmem:[#allocation128_spill] sm:$0xff]  ;;  %v11253_v25 = vld [vmem:[#allocation246_spill] sm:$0xff] }
 0x286   : > { %11231 = vst [vmem:[#allocation248_spill] sm:$0xff] %v7571_v45  ;;  %v7579_v63 = vsel %vm11237_vm12, %v11234_v59, %v11233_v38  ;;  %v11247_v44 = vrot.slane %v11246_v35, 9  ;;  %v11249_v45 = vld [vmem:[#allocation19_spill] sm:$0xff]  ;;  %v11254_v38 = vrot.slane %v11253_v25, 9  ;;  %v11256_v53 = vld [vmem:[#allocation61_spill] sm:$0xff]  ;;  %v11260_v22 = vld [vmem:[#allocation122_spill] sm:$0xff] }
 0x287   : > { %11238 = vst [vmem:[#allocation210_spill] sm:$0xff] %v7579_v63  ;;  %v7588_v5 = vsel %vm11244_vm14, %v11241_v30, %v11240_v6  ;;  %vm11251_vm0 = vcmp.eq.f32.partialorder %v11249_v45, %v11250_v39  ;;  %v11255_v63 = vrot.slane %v11248_v12, 1  ;;  %v11257_v42 = vld [vmem:[#allocation167_spill] sm:$0xff]  ;;  %v11261_v30 = vrot.slane %v11260_v22, 9  ;;  %v11264_v35 = vld [vmem:[#allocation168_spill] sm:$0xff]  ;;  %v11271_v39 = vld [vmem:[#allocation194_spill] sm:$0xff] }
 0x288   : > { %11245 = vst [vmem:[#allocation175_spill] sm:$0xff] %v7588_v5  ;;  %v7596_v33 = vsel %vm11251_vm0, %v11248_v12, %v11247_v44  ;;  %vm11258_vm12 = vcmp.eq.f32.partialorder %v11256_v53, %v11257_v42  ;;  %v11262_v6 = vld [vmem:[#allocation219_spill] sm:$0xff]  ;;  %v11263_v5 = vld [vmem:[#allocation62_spill] sm:$0xff]  ;;  %v11274_v53 = vld [vmem:[#allocation229_spill] sm:$0xff] }
 0x289   : > { %11252 = vst [vmem:[#allocation211_spill] sm:$0xff] %v7596_v33  ;;  %v7605_v59 = vsel %vm11258_vm12, %v11255_v63, %v11254_v38  ;;  %vm11265_vm14 = vcmp.eq.f32.partialorder %v11263_v5, %v11264_v35  ;;  %v11267_v45 = vld [vmem:[#allocation123_spill] sm:$0xff]  ;;  %v11269_v33 = vrot.slane %v11262_v6, 1  ;;  %v11275_v63 = vrot.slane %v11274_v53, 9  ;;  %v11276_v38 = vld [vmem:[#allocation82_spill] sm:$0xff]  ;;  %v11278_v22 = vld [vmem:[#allocation169_spill] sm:$0xff] }
 0x28a   : > { %11259 = vst [vmem:[#allocation212_spill] sm:$0xff] %v7605_v59  ;;  %v7613_v31 = vsel %vm11265_vm14, %v11262_v6, %v11261_v30  ;;  %v11268_v44 = vrot.slane %v11267_v45, 9  ;;  %v11270_v25 = vld [vmem:[#allocation63_spill] sm:$0xff]  ;;  %v11277_v59 = vld [vmem:[#allocation22_spill] sm:$0xff]  ;;  %v11284_v45 = vld [vmem:[#allocation64_spill] sm:$0xff]  ;;  %v2629_v19 = vperm.slane %v11278_v22, 0 }
 0x28b   : > { %11266 = vst [vmem:[#allocation214_spill] sm:$0xff] %v7613_v31  ;;  %vm11272_vm0 = vcmp.eq.f32.partialorder %v11270_v25, %v11271_v39  ;;  %vm11279_vm12 = vcmp.eq.f32.partialorder %v11277_v59, %v11278_v22  ;;  %v11281_v5 = vld [vmem:[#allocation215_spill] sm:$0xff]  ;;  %v11283_v31 = vrot.slane %v11276_v38, 1  ;;  %v11288_v25 = vld [vmem:[#allocation8_spill] sm:$0xff]  ;;  %v11292_v53 = vld [vmem:[#allocation170_spill] sm:$0xff]  ;;  %v2639_v22 = vperm.slane %v11034_v61, 0 }
 0x28c   : > { %v7622_v12 = vsel %vm11272_vm0, %v11269_v33, %v11268_v44  ;;  %v7630_v42 = vsel %vm11279_vm12, %v11276_v38, %v11275_v63  ;;  %v11282_v30 = vrot.slane %v11281_v5, 9  ;;  %v11285_v35 = vld [vmem:[#allocation195_spill] sm:$0xff]  ;;  %v11289_v33 = vrot.slane %v11288_v25, 9  ;;  %v11290_v44 = vld [vmem:[#allocation129_spill] sm:$0xff]  ;;  %v11300_v5 = vld [vmem:[#allocation88_spill] sm:$0xff] }
 0x28d   : > { %11273 = vst [vmem:[#allocation186_spill] sm:$0xff] %v7622_v12  ;;  %vm11286_vm14 = vcmp.eq.f32.partialorder %v11284_v45, %v11285_v35  ;;  %v11291_v12 = vld [vmem:[#allocation65_spill] sm:$0xff]  ;;  %vm11298_vm12 = vcmp.eq.f32.partialorder %v11007_v48, %v11006_v56  ;;  %v11308_v48 = vld [vmem:[#allocation216_spill] sm:$0xff]  ;;  %v11355_v14 = vld [vmem:[#allocation110_spill] sm:$0xff]  ;;  %v2649_v61 = vperm.slane %v11098_v34, 0 }
 0x28e   : > { %11280 = vst [vmem:[#allocation187_spill] sm:$0xff] %v7630_v42  ;;  %v7639_v6 = vsel %vm11286_vm14, %v11283_v31, %v11282_v30  ;;  %vm11293_vm0 = vcmp.eq.f32.partialorder %v11291_v12, %v11292_v53  ;;  %v11295_v59 = vld [vmem:[#allocation109_spill] sm:$0xff]  ;;  %v11297_v42 = vrot.slane %v11290_v44, 1  ;;  %v11301_v31 = vrot.slane %v11300_v5, 9  ;;  %v11302_v30 = vld [vmem:[#allocation12_spill] sm:$0xff]  ;;  %v11304_v12 = vld [vmem:[#allocation238_spill] sm:$0xff] }
 0x28f   : > { %11287 = vst [vmem:[#allocation188_spill] sm:$0xff] %v7639_v6  ;;  %v7647_v39 = vsel %vm11293_vm0, %v11290_v44, %v11289_v33  ;;  %v11296_v63 = vrot.slane %v11295_v59, 9  ;;  %v11305_v25 = vrot.slane %v11304_v12, 9  ;;  %v11306_v33 = vrot.slane %v11302_v30, 1  ;;  %v11310_v59 = vld [vmem:[#allocation204_spill] sm:$0xff]  ;;  %v11350_v27 = vld [vmem:[#allocation217_spill] sm:$0xff] }
 0x290   : > { %11294 = vst [vmem:[#allocation203_spill] sm:$0xff] %v7647_v39  ;;  %v7664_v45 = vsel %vm1201_vm2, %v11302_v30, %v11301_v31  ;;  %v11313_v5 = vrot.slane %v11312_v60, 9  ;;  %v11314_v31 = vrot.slane %v11310_v59, 1  ;;  %vm11315_vm2 = vcmp.eq.f32.partialorder %v11019_v37, %v11018_v8  ;;  %v11325_v37 = vld [vmem:[#allocation239_spill] sm:$0xff]  ;;  %v11380_v11 = vld [vmem:[#allocation126_spill] sm:$0xff] }
 0x291   : > { %v7656_v38 = vsel %vm11298_vm12, %v11297_v42, %v11296_v63  ;;  %11303 = vst [vmem:[#allocation190_spill] sm:$0xff] %v7664_v45  ;;  %v7673_v44 = vsel %vm1202_vm3, %v11306_v33, %v11305_v25  ;;  %v11309_v42 = vrot.slane %v11308_v48, 9  ;;  %v11318_v12 = vrot.slane %v11317_v29, 9  ;;  %v11319_v25 = vld [vmem:[#allocation94_spill] sm:$0xff]  ;;  %v11408_v45 = vld [vmem:[#allocation156_spill] sm:$0xff]  ;;  %v11411_v6 = vld [vmem:[#allocation159_spill] sm:$0xff] }
 0x292   : > { %11299 = vst [vmem:[#allocation189_spill] sm:$0xff] %v7656_v38  ;;  %v7690_v30 = vsel %vm11315_vm2, %v11314_v31, %v11313_v5  ;;  %v11322_v48 = vrot.slane %v11321_v41, 9  ;;  %v11326_v60 = vrot.slane %v11325_v37, 9  ;;  %v11327_v5 = vld [vmem:[#allocation232_spill] sm:$0xff]  ;;  %v11330_v29 = vrot.slane %v11329_v51, 9  ;;  %v11386_v57 = vld [vmem:[#allocation134_spill] sm:$0xff] }
 0x293   : > { %11307 = vst [vmem:[#allocation191_spill] sm:$0xff] %v7673_v44  ;;  %v7681_v63 = vsel %vm1203_vm4, %v11310_v59, %v11309_v42  ;;  %v7698_v33 = vsel %vm1205_vm8, %v11319_v25, %v11318_v12  ;;  %v11323_v42 = vrot.slane %v11319_v25, 1  ;;  %v11331_v12 = vrot.slane %v11327_v5, 1  ;;  %v11407_v44 = vld [vmem:[#allocation155_spill] sm:$0xff]  ;;  %v11409_v38 = vld [vmem:[#allocation157_spill] sm:$0xff]  ;;  %v11410_v39 = vld [vmem:[#allocation158_spill] sm:$0xff] }
 0x294   : > { %11311 = vst [vmem:[#allocation130_spill] sm:$0xff] %v7681_v63  ;;  %v7715_v31 = vsel %vm1207_vm5, %v11327_v5, %v11326_v60  ;;  %v11334_v41 = vrot.slane %v11333_v32, 9  ;;  %v11338_v37 = vrot.slane %v11337_v15, 9  ;;  %v11342_v51 = vrot.slane %v11341_v50, 9  ;;  %v11406_v63 = vld [vmem:[#allocation154_spill] sm:$0xff] }
 0x295   : > { %11316 = vst [vmem:[#allocation2_spill] sm:$0xff] %v7690_v30  ;;  %v7707_v59 = vsel %vm1206_vm9, %v11323_v42, %v11322_v48  ;;  %v7724_v25 = vsel %vm1208_vm11, %v11331_v12, %v11330_v29  ;;  %v11335_v48 = vld [vmem:[#allocation192_spill] sm:$0xff]  ;;  %v11346_v32 = vrot.slane %v11345_v17, 9  ;;  %vm11348_vm3 = vcmp.eq.f32.partialorder %v11055_v28, %v11054_v21 }
 0x296   : > { %11320 = vst [vmem:[#allocation131_spill] sm:$0xff] %v7698_v33  ;;  %v7732_v42 = vsel %vm1209_vm6, %v11335_v48, %v11334_v41  ;;  %v11339_v60 = vrot.slane %v11335_v48, 1  ;;  %v11343_v29 = vld [vmem:[#allocation220_spill] sm:$0xff]  ;;  %v11351_v15 = vrot.slane %v11350_v27, 9  ;;  %vm11353_vm4 = vcmp.eq.f32.partialorder %v11067_v2, %v11066_v46  ;;  %v11365_v2 = vld [vmem:[#allocation9_spill] sm:$0xff]  ;;  %v11415_v33 = vld [vmem:[#allocation163_spill] sm:$0xff] }
 0x297   : > { %11324 = vst [vmem:[#allocation34_spill] sm:$0xff] %v7707_v59  ;;  %v7749_v12 = vsel %vm1211_vm13, %v11343_v29, %v11342_v51  ;;  %v11347_v41 = vrot.slane %v11343_v29, 1  ;;  %v11356_v50 = vrot.slane %v11355_v14, 9  ;;  %vm11358_vm5 = vcmp.eq.f32.partialorder %v11069_v26, %v11068_v20  ;;  %v11360_v28 = vld [vmem:[#allocation240_spill] sm:$0xff]  ;;  %v11371_v14 = vld [vmem:[#allocation113_spill] sm:$0xff] }
 0x298   : > { %11328 = vst [vmem:[#allocation132_spill] sm:$0xff] %v7715_v31  ;;  %v7741_v5 = vsel %vm1210_vm10, %v11339_v60, %v11338_v37  ;;  %v11352_v37 = vld [vmem:[#allocation193_spill] sm:$0xff]  ;;  %v11361_v17 = vrot.slane %v11360_v28, 9  ;;  %vm11363_vm8 = vcmp.eq.f32.partialorder %v11071_v1, %v11070_v7  ;;  %v11366_v27 = vrot.slane %v11365_v2, 9  ;;  %v11416_v30 = vld [vmem:[#allocation164_spill] sm:$0xff] }
 0x299   : > { %11332 = vst [vmem:[#allocation35_spill] sm:$0xff] %v7724_v25  ;;  %v7758_v48 = vsel %vm11348_vm3, %v11347_v41, %v11346_v32  ;;  %v7766_v60 = vsel %vm11353_vm4, %v11352_v37, %v11351_v15  ;;  %v11357_v51 = vrot.slane %v11352_v37, 1  ;;  %v11362_v32 = vld [vmem:[#allocation95_spill] sm:$0xff]  ;;  %vm11368_vm9 = vcmp.eq.f32.partialorder %v11073_v4, %v11072_v47  ;;  %v11376_v4 = vld [vmem:[#allocation4_spill] sm:$0xff]  ;;  %v11401_v25 = vld [vmem:[#allocation149_spill] sm:$0xff] }
 0x29a   : > { %11336 = vst [vmem:[#allocation36_spill] sm:$0xff] %v7732_v42  ;;  %v7783_v41 = vsel %vm11363_vm8, %v11362_v32, %v11361_v17  ;;  %v11367_v15 = vrot.slane %v11362_v32, 1  ;;  %v11370_v26 = vrot.slane %v11008_v24, 9  ;;  %v11373_v1 = vrot.slane %v11009_v3, 9  ;;  %v11378_v32 = vld [vmem:[#allocation205_spill] sm:$0xff]  ;;  %v11400_v42 = vld [vmem:[#allocation148_spill] sm:$0xff] }
 0x29b   : > { %11340 = vst [vmem:[#allocation3_spill] sm:$0xff] %v7741_v5  ;;  %v7775_v29 = vsel %vm11358_vm5, %v11357_v51, %v11356_v50  ;;  %v11374_v51 = vrot.slane %v11371_v14, 1  ;;  %v11377_v17 = vrot.slane %v11376_v4, 9  ;;  %v11381_v2 = vrot.slane %v11380_v11, 9  ;;  %v11387_v4 = vld [vmem:[#allocation135_spill] sm:$0xff]  ;;  %v11417_v59 = vld [vmem:[#allocation165_spill] sm:$0xff] }
 0x29c   : > { %11344 = vst [vmem:[#allocation37_spill] sm:$0xff] %v7749_v12  ;;  %v7792_v37 = vsel %vm11368_vm9, %v11367_v15, %v11366_v27  ;;  %v7800_v50 = vsel %vm1217_vm1, %v11371_v14, %v11370_v26  ;;  %v11382_v27 = vrot.slane %v11378_v32, 1  ;;  %vm11383_vm11 = vcmp.eq.f32.partialorder %v11105_v43, %v11104_v49  ;;  %v11385_v14 = vld [vmem:[#allocation133_spill] sm:$0xff]  ;;  %v11398_v12 = vld [vmem:[#allocation146_spill] sm:$0xff]  ;;  %v11399_v5 = vld [vmem:[#allocation147_spill] sm:$0xff] }
 0x29d   : > { %11349 = vst [vmem:[#allocation38_spill] sm:$0xff] %v7758_v48  ;;  %v7809_v28 = vsel %vm1218_vm15, %v11374_v51, %v11373_v1  ;;  %v7817_v24 = vsel %vm1219_vm7, %v11378_v32, %v11377_v17  ;;  %v2607_v43 = vperm.slane %v11400_v42, 0  ;;  %v2613_v51 = vperm.slane %v11406_v63, 0  ;;  %v11412_v48 = vld [vmem:[#allocation160_spill] sm:$0xff]  ;;  %v11414_v32 = vld [vmem:[#allocation162_spill] sm:$0xff]  ;;  %v11419_v11 = vld [vmem:[#allocation167_spill] sm:$0xff] }
 0x29e   : > { %11354 = vst [vmem:[#allocation39_spill] sm:$0xff] %v7766_v60  ;;  %v7826_v3 = vsel %vm11383_vm11, %v11382_v27, %v11381_v2  ;;  %v11391_v2 = vld [vmem:[#allocation139_spill] sm:$0xff]  ;;  %v2614_v17 = vperm.slane %v11407_v44, 0  ;;  %v2617_v42 = vperm.slane %v11410_v39, 0  ;;  %v11413_v60 = vld [vmem:[#allocation161_spill] sm:$0xff]  ;;  %v11420_v31 = vld [vmem:[#allocation168_spill] sm:$0xff] }
 0x29f   : > { %11359 = vst [vmem:[#allocation6_spill] sm:$0xff] %v7775_v29  ;;  %v11418_v29 = vld [vmem:[#allocation166_spill] sm:$0xff]  ;;  %v2630_v15 = vperm.slane %v11285_v35, 0  ;;  %v2637_v39 = vperm.slane %v11030_v36, 0  ;;  %v2638_v27 = vperm.slane %v11032_v62, 0  ;;  %v2640_v35 = vperm.slane %v11036_v40, 0 }
 0x2a0   : > { %11364 = vst [vmem:[#allocation40_spill] sm:$0xff] %v7783_v41  ;;  %v11421_v41 = vld [vmem:[#allocation194_spill] sm:$0xff]  ;;  %v2643_v63 = vperm.slane %v11052_v9, 0  ;;  %v2647_v36 = vperm.slane %v11070_v7, 0  ;;  %v2648_v62 = vperm.slane %v11072_v47, 0  ;;  %v2650_v40 = vperm.slane %v11100_v23, 0 }
 0x2a1   : > { %11369 = vst [vmem:[#allocation41_spill] sm:$0xff] %v7792_v37  ;;  %v11393_v37 = vld [vmem:[#allocation141_spill] sm:$0xff]  ;;  %vm2653_vm6 = vcmask 1041409   ;;  %vm2655_vm10 = vcmask 1042434   ;;  %vm2657_vm13 = vcmask 1043459   ;;  %vm2659_vm7 = vcmask 1044484  }
 0x2a2   : > { %11372 = vst [vmem:[#allocation42_spill] sm:$0xff] %v7800_v50  ;;  %v11390_v50 = vld [vmem:[#allocation138_spill] sm:$0xff]  ;;  %vm2661_vm15 = vcmask 1045509   ;;  %vm2663_vm1 = vcmask 1046534   ;;  %vm2665_vm14 = vcmask 1047559   ;;  %v11424_v47 = vperm.slane %v10885_v58, 0 }
 0x2a3   : > { %11375 = vst [vmem:[#allocation7_spill] sm:$0xff] %v7809_v28  ;;  %v2606_v28 = vperm.slane %v11399_v5, 0  ;;  %v2616_v5 = vperm.slane %v11409_v38, 0  ;;  %v2646_v38 = vperm.slane %v11068_v20, 0  ;;  %v11423_v20 = vperm.slane %v10883_v54, 0  ;;  %v11475_v9 = vld [vmem:[#allocation96_spill] sm:$0xff] }
 0x2a4   : > { %11379 = vst [vmem:[#allocation196_spill] sm:$0xff] %v7817_v24  ;;  %v2605_v24 = vperm.slane %v11398_v12, 0  ;;  %v2615_v12 = vperm.slane %v11408_v45, 0  ;;  %v2645_v45 = vperm.slane %v11066_v46, 0  ;;  %v11422_v46 = vperm.slane %v10881_v10, 0 }
 0x2a5   : > { %11384 = vst [vmem:[#allocation66_spill] sm:$0xff] %v7826_v3  ;;  %v11392_v3 = vld [vmem:[#allocation140_spill] sm:$0xff]  ;;  %v11425_v23 = vperm.slane %v11390_v50, 0  ;;  %v11426_v1 = vperm.slane %v11391_v2, 0  ;;  %v2681_v10 = vsel %vm2653_vm6, %v2614_v17, %v2613_v51  ;;  %v11427_v54 = vperm.slane %v11385_v14, 0 }
 0x2a6   : > { %v2654_v7 = vsel %vm2653_vm6, %v11423_v20, %v11422_v46  ;;  %v2674_v26 = vsel %vm2653_vm6, %v2606_v28, %v2605_v24  ;;  %v11428_v20 = vperm.slane %v11392_v3, 0  ;;  %v2682_v50 = vsel %vm2655_vm10, %v2615_v12, %v2681_v10 }
 0x2a7   : > { %v2656_v34 = vsel %vm2655_vm10, %v11424_v47, %v2654_v7  ;;  %v2667_v44 = vsel %vm2653_vm6, %v11426_v1, %v11425_v23  ;;  %v2675_v7 = vsel %vm2655_vm10, %v2607_v43, %v2674_v26  ;;  %v11429_v2 = vperm.slane %v11386_v57, 0  ;;  %v11433_v43 = vld [vmem:[#allocation142_spill] sm:$0xff]  ;;  %v11437_v23 = vld [vmem:[#allocation136_spill] sm:$0xff] }
 0x2a8   : > { %v2658_v46 = vsel %vm2657_vm13, %v11427_v54, %v2656_v34  ;;  %v2668_v58 = vsel %vm2655_vm10, %v11428_v20, %v2667_v44  ;;  %v11430_v28 = vperm.slane %v11393_v37, 0  ;;  %v11431_v14 = vperm.slane %v11401_v25, 0  ;;  %v11435_v44 = vld [vmem:[#allocation150_spill] sm:$0xff]  ;;  %v11439_v54 = vld [vmem:[#allocation143_spill] sm:$0xff] }
 0x2a9   : > { %v2660_v1 = vsel %vm2659_vm7, %v11429_v2, %v2658_v46  ;;  %v2683_v3 = vsel %vm2657_vm13, %v2616_v5, %v2682_v50  ;;  %v11432_v17 = vperm.slane %v11387_v4, 0  ;;  %v11434_v12 = vperm.slane %v11433_v43, 0  ;;  %v11441_v46 = vld [vmem:[#allocation151_spill] sm:$0xff]  ;;  %v11444_v2 = vld [vmem:[#allocation137_spill] sm:$0xff] }
 0x2aa   : > { %v2669_v24 = vsel %vm2657_vm13, %v11430_v28, %v2668_v58  ;;  %v2676_v51 = vsel %vm2657_vm13, %v11431_v14, %v2675_v7  ;;  %v11436_v47 = vperm.slane %v11435_v44, 0  ;;  %v2684_v34 = vsel %vm2659_vm7, %v2617_v42, %v2683_v3  ;;  %v11446_v28 = vld [vmem:[#allocation144_spill] sm:$0xff]  ;;  %v11453_v44 = vld [vmem:[#allocation153_spill] sm:$0xff] }
 0x2ab   : > { %v2662_v26 = vsel %vm2661_vm15, %v11432_v17, %v2660_v1  ;;  %v2670_v57 = vsel %vm2659_vm7, %v11434_v12, %v2669_v24  ;;  %v11438_v25 = vperm.slane %v11437_v23, 0  ;;  %v11440_v5 = vperm.slane %v11439_v54, 0  ;;  %v11451_v12 = vld [vmem:[#allocation145_spill] sm:$0xff] }
 0x2ac   : > { %v2677_v37 = vsel %vm2659_vm7, %v11436_v47, %v2676_v51  ;;  %v11442_v20 = vperm.slane %v11441_v46, 0  ;;  %v11443_v7 = vperm.slane %v11411_v6, 0  ;;  %v11445_v1 = vperm.slane %v11444_v2, 0  ;;  %v11448_v51 = vld [vmem:[#allocation152_spill] sm:$0xff] }
 0x2ad   : > { %v2664_v10 = vsel %vm2663_vm1, %v11438_v25, %v2662_v26  ;;  %v2671_v4 = vsel %vm2661_vm15, %v11440_v5, %v2670_v57  ;;  %v11447_v24 = vperm.slane %v11446_v28, 0  ;;  %v11449_v3 = vperm.slane %v11448_v51, 0 }
 0x2ae   : > { %v2678_v58 = vsel %vm2661_vm15, %v11442_v20, %v2677_v37  ;;  %v2685_v50 = vsel %vm2661_vm15, %v11443_v7, %v2684_v34  ;;  %v2666_v42 = vsel %vm2665_vm14, %v11445_v1, %v2664_v10  ;;  %v11450_v26 = vperm.slane %v11412_v48, 0 }
 0x2af   : > { %v2672_v14 = vsel %vm2663_vm1, %v11447_v24, %v2671_v4  ;;  %v2679_v17 = vsel %vm2663_vm1, %v11449_v3, %v2678_v58  ;;  %v11452_v6 = vperm.slane %v11451_v12, 0  ;;  %v11454_v47 = vperm.slane %v11453_v44, 0  ;;  %v11478_v12 = vld [vmem:[#allocation83_spill] sm:$0xff]  ;;  %v11532_v44 = vld [vmem:[#allocation6_spill] sm:$0xff] }
 0x2b0   : > { %v2686_v43 = vsel %vm2663_vm1, %v11450_v26, %v2685_v50  ;;  %v11455_v34 = vperm.slane %v11413_v60, 0  ;;  %v11456_v25 = vperm.slane %v11414_v32, 0  ;;  %v11457_v10 = vperm.slane %v11415_v33, 0  ;;  %v11527_v26 = vld [vmem:[#allocation36_spill] sm:$0xff] }
 0x2b1   : > { %v2673_v57 = vsel %vm2665_vm14, %v11452_v6, %v2672_v14  ;;  %v2680_v37 = vsel %vm2665_vm14, %v11454_v47, %v2679_v17  ;;  %v11458_v54 = vperm.slane %v11416_v30, 0  ;;  %v2695_v4 = vsel %vm2653_vm6, %v2630_v15, %v2629_v19  ;;  %v11523_v6 = vld [vmem:[#allocation131_spill] sm:$0xff]  ;;  %v11535_v47 = vld [vmem:[#allocation42_spill] sm:$0xff] }
 0x2b2   : > { %v2687_v23 = vsel %vm2665_vm14, %v11455_v34, %v2686_v43  ;;  %v2688_v48 = vsel %vm2653_vm6, %v11457_v10, %v11456_v25  ;;  %v2702_v46 = vsel %vm2653_vm6, %v2638_v27, %v2637_v39  ;;  %v2709_v20 = vsel %vm2653_vm6, %v2646_v38, %v2645_v45  ;;  %v11477_v43 = vld [vmem:[#allocation221_spill] sm:$0xff]  ;;  %v11481_v34 = vld [vmem:[#allocation208_spill] sm:$0xff] }
 0x2b3   : > { %v2689_v5 = vsel %vm2655_vm10, %v11458_v54, %v2688_v48  ;;  %v11459_v60 = vperm.slane %v11417_v59, 0  ;;  %v11460_v33 = vperm.slane %v11292_v53, 0  ;;  %v2703_v30 = vsel %vm2655_vm10, %v2639_v22, %v2702_v46  ;;  %v11482_v10 = vld [vmem:[#allocation97_spill] sm:$0xff]  ;;  %v11485_v46 = vld [vmem:[#allocation98_spill] sm:$0xff]  ;;  %v11516_v25 = vld [vmem:[#allocation188_spill] sm:$0xff] }
 0x2b4   : > { %v2710_v7 = vsel %vm2655_vm10, %v2647_v36, %v2709_v20  ;;  %v11461_v19 = vperm.slane %v11418_v29, 0  ;;  %v11462_v27 = vperm.slane %v11006_v56, 0  ;;  %v2704_v59 = vsel %vm2657_vm13, %v2640_v35, %v2703_v30  ;;  %v11518_v30 = vld [vmem:[#allocation189_spill] sm:$0xff]  ;;  %v11524_v20 = vld [vmem:[#allocation34_spill] sm:$0xff]  ;;  %v11526_v54 = vld [vmem:[#allocation35_spill] sm:$0xff] }
 0x2b5   : > { %v2690_v32 = vsel %vm2657_vm13, %v11459_v60, %v2689_v5  ;;  %v2696_v58 = vsel %vm2655_vm10, %v11460_v33, %v2695_v4  ;;  %v2711_v38 = vsel %vm2657_vm13, %v2648_v62, %v2710_v7  ;;  %v11463_v53 = vperm.slane %v11419_v11, 0  ;;  %v11484_v5 = vld [vmem:[#allocation222_spill] sm:$0xff]  ;;  %v11486_v60 = vld [vmem:[#allocation84_spill] sm:$0xff]  ;;  %v11531_v33 = vld [vmem:[#allocation39_spill] sm:$0xff] }
 0x2b6   : > { %v2691_v15 = vsel %vm2659_vm7, %v11461_v19, %v2690_v32  ;;  %v2697_v45 = vsel %vm2657_vm13, %v11462_v27, %v2696_v58  ;;  %v11464_v22 = vperm.slane %v11012_v0, 0  ;;  %v11465_v29 = vperm.slane %v11048_v16, 0  ;;  %v11488_v58 = vld [vmem:[#allocation223_spill] sm:$0xff]  ;;  %v11489_v7 = vld [vmem:[#allocation234_spill] sm:$0xff]  ;;  %v11533_v32 = vld [vmem:[#allocation40_spill] sm:$0xff] }
 0x2b7   : > { %v2692_v39 = vsel %vm2661_vm15, %v11463_v53, %v2691_v15  ;;  %v2712_v56 = vsel %vm2659_vm7, %v2649_v61, %v2711_v38  ;;  %v11466_v11 = vperm.slane %v11420_v31, 0  ;;  %v11467_v0 = vperm.slane %v11014_v52, 0  ;;  %v11490_v15 = vld [vmem:[#allocation16_spill] sm:$0xff]  ;;  %v11515_v19 = vld [vmem:[#allocation187_spill] sm:$0xff]  ;;  %v11530_v48 = vld [vmem:[#allocation38_spill] sm:$0xff] }
 0x2b8   : > { %v2698_v36 = vsel %vm2659_vm7, %v11464_v22, %v2697_v45  ;;  %v2705_v50 = vsel %vm2659_vm7, %v11465_v29, %v2704_v59  ;;  %v11468_v16 = vperm.slane %v11050_v18, 0  ;;  %v2713_v2 = vsel %vm2661_vm15, %v2650_v40, %v2712_v56  ;;  %v11492_v59 = vld [vmem:[#allocation5_spill] sm:$0xff]  ;;  %v11493_v53 = vld [vmem:[#allocation224_spill] sm:$0xff]  ;;  %v11517_v56 = vld [vmem:[#allocation203_spill] sm:$0xff] }
 0x2b9   : > { %v2693_v35 = vsel %vm2663_vm1, %v11466_v11, %v2692_v39  ;;  %v2699_v62 = vsel %vm2661_vm15, %v11467_v0, %v2698_v36  ;;  %v11469_v1 = vperm.slane %v11421_v41, 0  ;;  %v11470_v31 = vperm.slane %v11016_v55, 0  ;;  %v11494_v22 = vld [vmem:[#allocation101_spill] sm:$0xff] }
 0x2ba   : > { %v2706_v61 = vsel %vm2661_vm15, %v11468_v16, %v2705_v50  ;;  %v11471_v14 = vperm.slane %v11102_v13, 0  ;;  %v11472_v51 = vperm.slane %v11018_v8, 0  ;;  %v11473_v41 = vperm.slane %v11054_v21, 0  ;;  %v11479_v21 = vld [vmem:[#allocation207_spill] sm:$0xff]  ;;  %v11497_v11 = vld [vmem:[#allocation225_spill] sm:$0xff]  ;;  %v11525_v8 = vld [vmem:[#allocation132_spill] sm:$0xff] }
 0x2bb   : > { %v2694_v28 = vsel %vm2665_vm14, %v11469_v1, %v2693_v35  ;;  %v2700_v24 = vsel %vm2663_vm1, %v11470_v31, %v2699_v62  ;;  %v2707_v52 = vsel %vm2663_vm1, %v2643_v63, %v2706_v61  ;;  %v11474_v55 = vperm.slane %v11104_v49, 0  ;;  %v11476_v63 = vld [vmem:[#allocation206_spill] sm:$0xff]  ;;  %v11480_v49 = vld [vmem:[#allocation13_spill] sm:$0xff]  ;;  %v11496_v50 = vld [vmem:[#allocation243_spill] sm:$0xff] }
 0x2bc   : > { %v2714_v18 = vsel %vm2663_vm1, %v11471_v14, %v2713_v2  ;;  %v2701_v40 = vsel %vm2665_vm14, %v11472_v51, %v2700_v24  ;;  %v2708_v3 = vsel %vm2665_vm14, %v11473_v41, %v2707_v52  ;;  %vm2724_vm0 = vcmask 64512   ;;  %v11498_v0 = vld [vmem:[#allocation85_spill] sm:$0xff]  ;;  %v11500_v2 = vld [vmem:[#allocation103_spill] sm:$0xff]  ;;  %v11502_v24 = vld [vmem:[#allocation244_spill] sm:$0xff] }
 0x2bd   : > { %v2715_v17 = vsel %vm2665_vm14, %v11474_v55, %v2714_v18  ;;  %2725 = vst.msk [vmem:[%s8011_s28] sm:$0xff] %vm2724_vm0, %v2666_v42  ;;  %v11483_v42 = vld [vmem:[#allocation233_spill] sm:$0xff]  ;;  %v2742_v4 = vperm.slane %v11484_v5, 0  ;;  %v2750_v38 = vperm.slane %v11492_v59, 0  ;;  %v2751_v39 = vperm.slane %v11493_v53, 0  ;;  %v11503_v14 = vld [vmem:[#allocation226_spill] sm:$0xff] }
 0x2be   : > { %2726 = vst.msk [vmem:[%s8011_s28 + $0x8] sm:$0xff] %vm2724_vm0, %v2673_v57  ;;  %v11487_v57 = vld [vmem:[#allocation99_spill] sm:$0xff]  ;;  %v2752_v36 = vperm.slane %v11494_v22, 0  ;;  %v11499_v16 = vld [vmem:[#allocation17_spill] sm:$0xff]  ;;  %v2758_v1 = vperm.slane %v11500_v2, 0  ;;  %v2760_v52 = vperm.slane %v11502_v24, 0 }
 0x2bf   : > { %2727 = vst.msk [vmem:[%s8011_s28 + $0x10] sm:$0xff] %vm2724_vm0, %v2680_v37  ;;  %v11491_v37 = vld [vmem:[#allocation100_spill] sm:$0xff]  ;;  %v2757_v61 = vperm.slane %v11499_v16, 0  ;;  %v2761_v18 = vperm.slane %v11503_v14, 0  ;;  %v11504_v51 = vld [vmem:[#allocation86_spill] sm:$0xff]  ;;  %v11506_v5 = vld [vmem:[#allocation237_spill] sm:$0xff] }
 0x2c0   : > { %2728 = vst.msk [vmem:[%s8011_s28 + $0x18] sm:$0xff] %vm2724_vm0, %v2687_v23  ;;  %v2749_v45 = vperm.slane %v11491_v37, 0  ;;  %v11495_v23 = vld [vmem:[#allocation235_spill] sm:$0xff]  ;;  %v11505_v41 = vld [vmem:[#allocation104_spill] sm:$0xff]  ;;  %v2764_v37 = vperm.slane %v11506_v5, 0  ;;  %v11507_v59 = vld [vmem:[#allocation106_spill] sm:$0xff] }
 0x2c1   : > { %2729 = vst.msk [vmem:[%s8011_s28 + $0x20] sm:$0xff] %vm2724_vm0, %v2694_v28  ;;  %v2753_v29 = vperm.slane %v11495_v23, 0  ;;  %v11501_v28 = vld [vmem:[#allocation236_spill] sm:$0xff]  ;;  %v2763_v55 = vperm.slane %v11505_v41, 0  ;;  %v2773_v41 = vperm.slane %v11515_v19, 0  ;;  %v2774_v5 = vperm.slane %v11516_v25, 0 }
 0x2c2   : > { %2730 = vst.msk [vmem:[%s8011_s28 + $0x28] sm:$0xff] %vm2724_vm0, %v2701_v40  ;;  %v2759_v31 = vperm.slane %v11501_v28, 0  ;;  %v2762_v40 = vperm.slane %v11504_v51, 0  ;;  %v11508_v53 = vld [vmem:[#allocation248_spill] sm:$0xff]  ;;  %v2781_v14 = vperm.slane %v11523_v6, 0  ;;  %v2782_v51 = vperm.slane %v11524_v20, 0 }
 0x2c3   : > { %2731 = vst.msk [vmem:[%s8011_s28 + $0x30] sm:$0xff] %vm2724_vm0, %v2708_v3  ;;  %v2765_v3 = vperm.slane %v11507_v59, 0  ;;  %v2766_v22 = vperm.slane %v11508_v53, 0  ;;  %v2775_v59 = vperm.slane %v11517_v56, 0  ;;  %v2776_v53 = vperm.slane %v11518_v30, 0  ;;  %v11528_v13 = vld [vmem:[#allocation3_spill] sm:$0xff] }
 0x2c4   : > { %2732 = vst.msk [vmem:[%s8011_s28 + $0x38] sm:$0xff] %vm2724_vm0, %v2715_v17  ;;  %v2783_v19 = vperm.slane %v11525_v8, 0  ;;  %v2784_v25 = vperm.slane %v11526_v54, 0  ;;  %v2785_v56 = vperm.slane %v11527_v26, 0  ;;  %v11529_v35 = vld [vmem:[#allocation37_spill] sm:$0xff]  ;;  %v2789_v24 = vperm.slane %v11531_v33, 0 }
 0x2c5   : > { %v2790_v17 = vperm.slane %v11532_v44, 0  ;;  %v2791_v6 = vperm.slane %v11533_v32, 0  ;;  %v11534_v27 = vld [vmem:[#allocation41_spill] sm:$0xff]  ;;  %v2793_v8 = vperm.slane %v11535_v47, 0  ;;  %v11536_v62 = vld [vmem:[#allocation7_spill] sm:$0xff]  ;;  %v11537_v2 = vld [vmem:[#allocation196_spill] sm:$0xff]  ;;  %v2818_v47 = vsel %vm2653_vm6, %v2758_v1, %v2757_v61 }
 0x2c6   : > { %v2792_v20 = vperm.slane %v11534_v27, 0  ;;  %v2794_v54 = vperm.slane %v11536_v62, 0  ;;  %v2795_v26 = vperm.slane %v11537_v2, 0  ;;  %v11538_v23 = vld [vmem:[#allocation66_spill] sm:$0xff]  ;;  %v11539_v16 = vperm.slane %v11475_v9, 0 }
 0x2c7   : > { %v2796_v30 = vperm.slane %v11538_v23, 0  ;;  %v11540_v28 = vperm.slane %v11476_v63, 0  ;;  %v11541_v44 = vperm.slane %v11483_v42, 0  ;;  %v2811_v27 = vsel %vm2653_vm6, %v2750_v38, %v2749_v45 }
 0x2c8   : > { %v11542_v62 = vperm.slane %v11477_v43, 0  ;;  %v11543_v23 = vperm.slane %v11485_v46, 0  ;;  %v2812_v63 = vsel %vm2655_vm10, %v2751_v39, %v2811_v27  ;;  %v11544_v42 = vperm.slane %v11478_v12, 0 }
 0x2c9   : > { %v2797_v33 = vsel %vm2653_vm6, %v11540_v28, %v11539_v16  ;;  %v2804_v32 = vsel %vm2653_vm6, %v2742_v4, %v11541_v44  ;;  %v2819_v16 = vsel %vm2655_vm10, %v2759_v31, %v2818_v47  ;;  %v11545_v45 = vperm.slane %v11486_v60, 0 }
 0x2ca   : > { %v2798_v2 = vsel %vm2655_vm10, %v11542_v62, %v2797_v33  ;;  %v2805_v9 = vsel %vm2655_vm10, %v11543_v23, %v2804_v32  ;;  %v2813_v43 = vsel %vm2657_vm13, %v2752_v36, %v2812_v63  ;;  %v2820_v61 = vsel %vm2657_vm13, %v2760_v52, %v2819_v16 }
 0x2cb   : > { %v2799_v4 = vsel %vm2657_vm13, %v11544_v42, %v2798_v2  ;;  %v2806_v38 = vsel %vm2657_vm13, %v11545_v45, %v2805_v9  ;;  %v11546_v46 = vperm.slane %v11479_v21, 0  ;;  %v11547_v39 = vperm.slane %v11487_v57, 0 }
 0x2cc   : > { %v2814_v12 = vsel %vm2659_vm7, %v2753_v29, %v2813_v43  ;;  %v2821_v28 = vsel %vm2659_vm7, %v2761_v18, %v2820_v61  ;;  %v11548_v60 = vperm.slane %v11480_v49, 0  ;;  %v11549_v36 = vperm.slane %v11488_v58, 0  ;;  %v11567_v43 = vld [vmem:[#allocation191_spill] sm:$0xff] }
 0x2cd   : > { %v2800_v1 = vsel %vm2659_vm7, %v11546_v46, %v2799_v4  ;;  %v2807_v31 = vsel %vm2659_vm7, %v11547_v39, %v2806_v38  ;;  %v11550_v52 = vperm.slane %v11496_v50, 0  ;;  %v2822_v18 = vsel %vm2661_vm15, %v2762_v40, %v2821_v28  ;;  %v11572_v28 = vld [vmem:[#allocation130_spill] sm:$0xff] }
 0x2ce   : > { %v2801_v21 = vsel %vm2661_vm15, %v11548_v60, %v2800_v1  ;;  %v2808_v57 = vsel %vm2661_vm15, %v11549_v36, %v2807_v31  ;;  %v11551_v33 = vperm.slane %v11481_v34, 0  ;;  %v11552_v32 = vperm.slane %v11489_v7, 0  ;;  %v11570_v31 = vld [vmem:[#allocation214_spill] sm:$0xff] }
 0x2cf   : > { %v2815_v29 = vsel %vm2661_vm15, %v11550_v52, %v2814_v12  ;;  %v11553_v27 = vperm.slane %v11497_v11, 0  ;;  %v2823_v47 = vsel %vm2663_vm1, %v2763_v55, %v2822_v18  ;;  %v11554_v50 = vperm.slane %v11482_v10, 0 }
 0x2d0   : > { %v2802_v44 = vsel %vm2663_vm1, %v11551_v33, %v2801_v21  ;;  %v2809_v49 = vsel %vm2663_vm1, %v11552_v32, %v2808_v57  ;;  %v11555_v40 = vperm.slane %v11490_v15, 0  ;;  %v11556_v2 = vperm.slane %v11498_v0, 0  ;;  %v11557_v15 = vld [vmem:[#allocation210_spill] sm:$0xff] }
 0x2d1   : > { %v2816_v58 = vsel %vm2663_vm1, %v11553_v27, %v2815_v29  ;;  %v2803_v62 = vsel %vm2665_vm14, %v11554_v50, %v2802_v44  ;;  %v2824_v11 = vsel %vm2665_vm14, %v2764_v37, %v2823_v47  ;;  %v2825_v23 = vsel %vm2653_vm6, %v2766_v22, %v2765_v3  ;;  %v11559_v3 = vld [vmem:[#allocation175_spill] sm:$0xff]  ;;  %v11575_v29 = vld [vmem:[#allocation186_spill] sm:$0xff] }
 0x2d2   : > { %v2810_v34 = vsel %vm2665_vm14, %v11555_v40, %v2809_v49  ;;  %v2817_v7 = vsel %vm2665_vm14, %v11556_v2, %v2816_v58  ;;  %v2832_v9 = vsel %vm2653_vm6, %v2774_v5, %v2773_v41  ;;  %v2839_v55 = vsel %vm2653_vm6, %v2782_v51, %v2781_v14  ;;  %2853 = vst.msk [vmem:[%s8163_s5] sm:$0xff] %vm2724_vm0, %v2803_v62  ;;  %v11561_v41 = vld [vmem:[#allocation211_spill] sm:$0xff]  ;;  %v11577_v33 = vld [vmem:[#allocation2_spill] sm:$0xff] }
 0x2d3   : > { %v2846_v10 = vsel %vm2653_vm6, %v2790_v17, %v2789_v24  ;;  %v11558_v63 = vperm.slane %v11557_v15, 0  ;;  %v2833_v16 = vsel %vm2655_vm10, %v2775_v59, %v2832_v9  ;;  %v2840_v42 = vsel %vm2655_vm10, %v2783_v19, %v2839_v55  ;;  %2854 = vst.msk [vmem:[%s8163_s5 + $0x8] sm:$0xff] %vm2724_vm0, %v2810_v34  ;;  %v11563_v19 = vld [vmem:[#allocation190_spill] sm:$0xff] }
 0x2d4   : > { %v2847_v37 = vsel %vm2655_vm10, %v2791_v6, %v2846_v10  ;;  %v11560_v22 = vperm.slane %v11559_v3, 0  ;;  %v2834_v24 = vsel %vm2657_vm13, %v2776_v53, %v2833_v16  ;;  %v2841_v17 = vsel %vm2657_vm13, %v2784_v25, %v2840_v42  ;;  %2855 = vst.msk [vmem:[%s8163_s5 + $0x10] sm:$0xff] %vm2724_vm0, %v2817_v7  ;;  %v11565_v25 = vld [vmem:[#allocation212_spill] sm:$0xff] }
 0x2d5   : > { %v2826_v0 = vsel %vm2655_vm10, %v11558_v63, %v2825_v23  ;;  %v2848_v51 = vsel %vm2657_vm13, %v2792_v20, %v2847_v37  ;;  %v11562_v5 = vperm.slane %v11561_v41, 0  ;;  %v11564_v6 = vperm.slane %v11563_v19, 0  ;;  %2856 = vst.msk [vmem:[%s8163_s5 + $0x18] sm:$0xff] %vm2724_vm0, %v2824_v11 }
 0x2d6   : > { %v2827_v14 = vsel %vm2657_vm13, %v11560_v22, %v2826_v0  ;;  %v2842_v45 = vsel %vm2659_vm7, %v2785_v56, %v2841_v17  ;;  %v2849_v53 = vsel %vm2659_vm7, %v2793_v8, %v2848_v51  ;;  %v11566_v20 = vperm.slane %v11565_v25, 0 }
 0x2d7   : > { %v2828_v59 = vsel %vm2659_vm7, %v11562_v5, %v2827_v14  ;;  %v2835_v4 = vsel %vm2659_vm7, %v11564_v6, %v2834_v24  ;;  %v11568_v61 = vperm.slane %v11567_v43, 0  ;;  %v11569_v1 = vperm.slane %v11528_v13, 0 }
 0x2d8   : > { %v2829_v38 = vsel %vm2661_vm15, %v11566_v20, %v2828_v59  ;;  %v2850_v56 = vsel %vm2661_vm15, %v2794_v54, %v2849_v53  ;;  %v11571_v8 = vperm.slane %v11570_v31, 0  ;;  %v11573_v60 = vperm.slane %v11572_v28, 0 }
 0x2d9   : > { %v2836_v46 = vsel %vm2661_vm15, %v11568_v61, %v2835_v4  ;;  %v2843_v39 = vsel %vm2661_vm15, %v11569_v1, %v2842_v45  ;;  %v11574_v36 = vperm.slane %v11529_v35, 0  ;;  %v2851_v52 = vsel %vm2663_vm1, %v2795_v26, %v2850_v56 }
 0x2da   : > { %v2830_v12 = vsel %vm2663_vm1, %v11571_v8, %v2829_v38  ;;  %v2837_v21 = vsel %vm2663_vm1, %v11573_v60, %v2836_v46  ;;  %v11576_v13 = vperm.slane %v11575_v29, 0  ;;  %v11578_v54 = vperm.slane %v11577_v33, 0 }
 0x2db   : > { %v2844_v57 = vsel %vm2663_vm1, %v11574_v36, %v2843_v39  ;;  %v11579_v32 = vperm.slane %v11530_v48, 0  ;;  %v2852_v27 = vsel %vm2665_vm14, %v2796_v30, %v2851_v52 }
 0x2dc   : > { %v2831_v18 = vsel %vm2665_vm14, %v11576_v13, %v2830_v12  ;;  %v2838_v44 = vsel %vm2665_vm14, %v11578_v54, %v2837_v21  ;;  %2860 = vst.msk [vmem:[%s8163_s5 + $0x38] sm:$0xff] %vm2724_vm0, %v2852_v27 }
 0x2dd   : > { %v2845_v49 = vsel %vm2665_vm14, %v11579_v32, %v2844_v57  ;;  %2857 = vst.msk [vmem:[%s8163_s5 + $0x20] sm:$0xff] %vm2724_vm0, %v2831_v18 }
 0x2de   : > { %2858 = vst.msk [vmem:[%s8163_s5 + $0x28] sm:$0xff] %vm2724_vm0, %v2838_v44 }
 0x2df   : > { %2859 = vst.msk [vmem:[%s8163_s5 + $0x30] sm:$0xff] %vm2724_vm0, %v2845_v49 }
 0x2e0 PF: > { %s15_s15 = sadd.s32 1, %s3177_s15  }
 0x2e1   : > { %p12_p4 = scmp.ge.s32.totalorder %s15_s15, 4  }
 0x2e3   :  { %14 = sbr.rel (!%p12_p4) target bundleno = 1 (0x1), region = 74 }

</bundles_post_ra>
